<compile_context>
chip_gen: v5e
topology: v5e:2x2
jax: 0.10.0
libtpu: 0.0.40
codegen_flags: <defaults>
</compile_context>

<pallas_src>
import functools

import jax
import jax.numpy as jnp
from jax import lax
from jax.experimental import pallas as pl
from jax.experimental.pallas import tpu as pltpu

NEG_SLOPE = 0.01   # nn.LeakyReLU default negative_slope
BN_EPS = 1e-5      # nn.BatchNorm2d default eps


def _lrelu(v):
    return jnp.where(v >= 0, v, NEG_SLOPE * v)


@functools.lru_cache(maxsize=1)
def _vmem_limit_bytes():
    try:
        cap = int(pltpu.get_tpu_info().vmem_capacity_bytes)
    except Exception:                              # pragma: no cover
        cap = 64 * 1024 * 1024
    return min((cap * 3) // 4, 100 * 1024 * 1024)


def _compiler_params():
    return pltpu.CompilerParams(
        dimension_semantics=("parallel",),
        vmem_limit_bytes=_vmem_limit_bytes(),
    )


def _full_spec(shape):
    zeros = (0,) * len(shape)
    return pl.BlockSpec(shape, lambda n, z=zeros: z)


# ---------------- fused DenseNet2D_down_block forward kernel -----------------
def _block_kernel(x_ref, *rest, H, W, Cin, Cout, down):
    """Pool (optional) + 5 convs + LeakyReLUs + BN partial stats for one sample.

    Channel-major flat layout: activations are (C, H*W) with pixels on lanes.
    The padded scratch has (H+2)*W + 2 columns; real pixel (h, w) sits at flat
    column (h+1)*W + w + 1, so tap (kh, kw) of output pixel a = h*W + w reads
    padded column a + kh*W + kw.
    """
    if down:
        pmat_ref, rest = rest[0], rest[1:]
    (w1_ref, b1_ref,
     w21a_ref, w21b_ref, b21_ref,
     w22_ref, b22_ref,
     w31a_ref, w31b_ref, w31c_ref, b31_ref,
     w32_ref, b32_ref,
     y_ref, stats_ref,
     xpad_ref, tpad_ref) = rest

    A = H * W
    f32 = jnp.float32

    # keep the pad entries of the persistent scratches at zero (only 2*(W+1)
    # entries per scratch; the interiors are fully overwritten every step).
    xpad_ref[:, pl.ds(0, W + 1)] = jnp.zeros((Cin, W + 1), f32)
    xpad_ref[:, pl.ds(A + W + 1, W + 1)] = jnp.zeros((Cin, W + 1), f32)
    tpad_ref[:, pl.ds(0, W + 1)] = jnp.zeros((Cout, W + 1), f32)
    tpad_ref[:, pl.ds(A + W + 1, W + 1)] = jnp.zeros((Cout, W + 1), f32)

    # --- ingest: optional 2x2 avg-pool as one selection matmul, one store
    if down:
        pooled = jnp.dot(x_ref[0], pmat_ref[...], preferred_element_type=f32)
        xpad_ref[:, pl.ds(W + 1, A)] = pooled
    else:
        xpad_ref[:, pl.ds(W + 1, A)] = x_ref[0]

    # --- horizontal border masks, shared by the three 3x3 convs
    col = lax.broadcasted_iota(jnp.int32, (1, A), 1) % W
    not_left = col != 0            # kw=0 taps invalid where w == 0
    not_right = col != (W - 1)     # kw=2 taps invalid where w == W-1

    def conv3x3(pad_ref, wk_ref, b_ref):
        # wk_ref: (3, Cout, 3*C); wk_ref[kw] has the 3 kh taps stacked on K.
        def taps(kw):
            return jnp.concatenate(
                [pad_ref[:, pl.ds(kh * W + kw, A)] for kh in range(3)], axis=0)
        mid = jnp.dot(wk_ref[1], taps(1), preferred_element_type=f32)
        lft = jnp.dot(wk_ref[0], taps(0), preferred_element_type=f32)
        rgt = jnp.dot(wk_ref[2], taps(2), preferred_element_type=f32)
        return (mid + jnp.where(not_left, lft, 0.0)
                + jnp.where(not_right, rgt, 0.0) + b_ref[...])

    def mul_or_dot(w, x):                         # (Cout, K) x (K, A)
        if w.shape[1] == 1:                       # K == 1 -> broadcast multiply
            return w * x
        return jnp.dot(w, x, preferred_element_type=f32)

    def x_interior():                             # (pooled) input, (Cin, A)
        return xpad_ref[:, pl.ds(W + 1, A)]

    # conv1: 3x3 Cin -> Cout, LeakyReLU
    x1 = _lrelu(conv3x3(xpad_ref, w1_ref, b1_ref))

    # conv21 (1x1 on cat(x, x1) == split matmuls) -> conv22 (3x3) + LeakyReLU
    t = (mul_or_dot(w21a_ref[...], x_interior())
         + jnp.dot(w21b_ref[...], x1, preferred_element_type=f32)
         + b21_ref[...])
    tpad_ref[:, pl.ds(W + 1, A)] = t
    x22 = _lrelu(conv3x3(tpad_ref, w22_ref, b22_ref))

    # conv31 (1x1 on cat(x, x1, x22)) -> conv32 (3x3) + LeakyReLU
    t2 = (mul_or_dot(w31a_ref[...], x_interior())
          + jnp.dot(w31b_ref[...], x1, preferred_element_type=f32)
          + jnp.dot(w31c_ref[...], x22, preferred_element_type=f32)
          + b31_ref[...])
    tpad_ref[:, pl.ds(W + 1, A)] = t2             # pad columns stay zero
    out = _lrelu(conv3x3(tpad_ref, w32_ref, b32_ref))   # pre-BN, (Cout, A)

    # pre-BN output (lane-dense store) + per-sample BN partial statistics
    y_ref[0] = out.astype(y_ref.dtype)
    s1 = jnp.sum(out, axis=1, keepdims=True)
    s2 = jnp.sum(out * out, axis=1, keepdims=True)
    stats_ref[0] = jnp.concatenate([s1, s2], axis=1)     # (Cout, 2), one store


def _down_block_pallas(x_flat, weights, pmat, *, N, H_in, W_in, Cin, Cout, down):
    if down:
        assert H_in % 2 == 0 and W_in % 2 == 0, (H_in, W_in)
        H, W = H_in // 2, W_in // 2
    else:
        H, W = H_in, W_in
    A, A_in = H * W, H_in * W_in
    Ppad = (H + 2) * W + 2                        # padded flat columns

    kern = functools.partial(_block_kernel, H=H, W=W, Cin=Cin, Cout=Cout,
                             down=down)

    in_specs = [pl.BlockSpec((1, Cin, A_in), lambda n: (n, 0, 0))]
    args = [x_flat]
    if down:
        in_specs.append(_full_spec((A_in, A)))
        args.append(pmat)
    in_specs += [
        _full_spec((3, Cout, 3 * Cin)), _full_spec((Cout, 1)),
        _full_spec((Cout, Cin)), _full_spec((Cout, Cout)), _full_spec((Cout, 1)),
        _full_spec((3, Cout, 3 * Cout)), _full_spec((Cout, 1)),
        _full_spec((Cout, Cin)), _full_spec((Cout, Cout)),
        _full_spec((Cout, Cout)), _full_spec((Cout, 1)),
        _full_spec((3, Cout, 3 * Cout)), _full_spec((Cout, 1)),
    ]
    args += list(weights)

    y, stats = pl.pallas_call(
        kern,
        out_shape=(jax.ShapeDtypeStruct((N, Cout, A), jnp.float32),
                   jax.ShapeDtypeStruct((N, Cout, 2), jnp.float32)),
        grid=(N,),
        in_specs=in_specs,
        out_specs=(pl.BlockSpec((1, Cout, A), lambda n: (n, 0, 0)),
                   pl.BlockSpec((1, Cout, 2), lambda n: (n, 0, 0))),
        scratch_shapes=[pltpu.VMEM((Cin, Ppad), jnp.float32),
                        pltpu.VMEM((Cout, Ppad), jnp.float32)],
        compiler_params=_compiler_params(),
    )(*args)
    return y, stats, H, W


# ------------------------- BatchNorm affine apply -----------------------------
def _bn_apply_kernel(y_ref, scale_ref, shift_ref, o_ref):
    o_ref[0] = y_ref[0] * scale_ref[...] + shift_ref[...]


def _bn_apply(y, scale, shift):
    N, C, A = y.shape
    return pl.pallas_call(
        _bn_apply_kernel,
        out_shape=jax.ShapeDtypeStruct((N, C, A), jnp.float32),
        grid=(N,),
        in_specs=[pl.BlockSpec((1, C, A), lambda n: (n, 0, 0)),
                  _full_spec((C, 1)), _full_spec((C, 1))],
        out_specs=pl.BlockSpec((1, C, A), lambda n: (n, 0, 0)),
        input_output_aliases={0: 0},              # apply in place, lane-dense
        compiler_params=_compiler_params(),
    )(y, scale, shift)


# ------------------------------ block forward --------------------------------
def _pack3x3(w):
    """(3, 3, Cin, Cout) HWIO -> (3[kw], Cout, 3*Cin) with kh stacked on K."""
    return jnp.stack(
        [jnp.concatenate([w[kh, kw] for kh in range(3)], axis=0).T
         for kw in range(3)], axis=0)


def _pool_matrix(H, W):
    """Selection matrix (4*H*W, H*W): 2x2 average pooling of a (2H, 2W) image."""
    H_in, W_in = 2 * H, 2 * W
    idx = jnp.arange(H_in * W_in)
    a = ((idx // W_in) // 2) * W + (idx % W_in) // 2
    return 0.25 * jax.nn.one_hot(a, H * W, dtype=jnp.float32)


def down_block_forward(params, x_flat, H_in, W_in, Cin, Cout, down):
    w1, b1 = params["conv1"]
    w21, b21 = params["conv21"]
    w22, b22 = params["conv22"]
    w31, b31 = params["conv31"]
    w32, b32 = params["conv32"]

    w21 = w21[0, 0]                               # (Cin + Cout, Cout)
    w31 = w31[0, 0]                               # (Cin + 2*Cout, Cout)
    weights = (
        _pack3x3(w1), b1.reshape(Cout, 1),
        w21[:Cin].T, w21[Cin:].T, b21.reshape(Cout, 1),
        _pack3x3(w22), b22.reshape(Cout, 1),
        w31[:Cin].T, w31[Cin:Cin + Cout].T, w31[Cin + Cout:].T,
        b31.reshape(Cout, 1),
        _pack3x3(w32), b32.reshape(Cout, 1),
    )

    N = x_flat.shape[0]
    pmat = _pool_matrix(H_in // 2, W_in // 2) if down else None
    y, stats, H, W = _down_block_pallas(x_flat, weights, pmat, N=N, H_in=H_in,
                                        W_in=W_in, Cin=Cin, Cout=Cout, down=down)

    cnt = float(N * H * W)
    mean = jnp.sum(stats[:, :, 0], axis=0) / cnt
    var = jnp.maximum(jnp.sum(stats[:, :, 1], axis=0) / cnt - mean * mean, 0.0)
    scale = params["bn_gamma"] * lax.rsqrt(var + BN_EPS)
    shift = params["bn_beta"] - mean * scale
    out = _bn_apply(y, scale.reshape(Cout, 1), shift.reshape(Cout, 1))
    return out, H, W


@jax.jit
def densenet_encoder_forward(params, x_nchw):
    # x_nchw: (N, Cin, H, W) float32, PyTorch layout.
    N, Cin, H, W = x_nchw.shape
    Cout = params[0]["bn_gamma"].shape[0]
    x = x_nchw.reshape(N, Cin, H * W)             # channel-major flat == NCHW

    x1, H1, W1 = down_block_forward(params[0], x, H, W, Cin, Cout, down=False)
    x2, H2, W2 = down_block_forward(params[1], x1, H1, W1, Cout, Cout, down=True)
    x3, H3, W3 = down_block_forward(params[2], x2, H2, W2, Cout, Cout, down=True)
    x4, H4, W4 = down_block_forward(params[3], x3, H3, W3, Cout, Cout, down=True)
    x5, H5, W5 = down_block_forward(params[4], x4, H4, W4, Cout, Cout, down=True)

    def to_nchw(t, h, w):
        return t.reshape(N, Cout, h, w)

    return (to_nchw(x4, H4, W4), to_nchw(x3, H3, W3), to_nchw(x2, H2, W2),
            to_nchw(x1, H1, W1), to_nchw(x5, H5, W5))


# ------------------------------ parameter init --------------------------------
def _conv_init(key, kh, kw, cin, cout):
    k1, k2 = jax.random.split(key)
    fan_in = cin * kh * kw
    bound = 1.0 / float(fan_in) ** 0.5
    w = jax.random.uniform(k1, (kh, kw, cin, cout), jnp.float32, -bound, bound)
    b = jax.random.uniform(k2, (cout,), jnp.float32, -bound, bound)
    return w, b


def down_block_params(key, cin, cout):
    ks = jax.random.split(key, 5)
    return {
        "conv1":  _conv_init(ks[0], 3, 3, cin, cout),
        "conv21": _conv_init(ks[1], 1, 1, cin + cout, cout),
        "conv22": _conv_init(ks[2], 3, 3, cout, cout),
        "conv31": _conv_init(ks[3], 1, 1, cin + 2 * cout, cout),
        "conv32": _conv_init(ks[4], 3, 3, cout, cout),
        "bn_gamma": jnp.ones((cout,), jnp.float32),
        "bn_beta": jnp.zeros((cout,), jnp.float32),
    }


def init_encoder_params(key, in_channels=1, channel_size=8):
    keys = jax.random.split(key, 5)
    cins = [in_channels] + [channel_size] * 4
    return [down_block_params(keys[i], cins[i], channel_size) for i in range(5)]


# ----------------------------- pure-JAX reference -----------------------------
def _conv_ref(x, w, b):
    y = lax.conv_general_dilated(x, w, (1, 1), "SAME",
                                 dimension_numbers=("NHWC", "HWIO", "NHWC"),
                                 precision=lax.Precision.HIGHEST)
    return y + b


def _pool_ref(x):
    N, H, W, C = x.shape
    return x.reshape(N, H // 2, 2, W // 2, 2, C).mean(axis=(2, 4))


def _bn_ref(x, g, b):
    mean = x.mean(axis=(0, 1, 2), keepdims=True)
    var = ((x - mean) ** 2).mean(axis=(0, 1, 2), keepdims=True)
    return (x - mean) * lax.rsqrt(var + BN_EPS) * g + b


def _block_ref(params, x, down):
    if down:
        x = _pool_ref(x)
    w, b = params["conv1"]; x1 = _lrelu(_conv_ref(x, w, b))
    x21 = jnp.concatenate([x, x1], axis=-1)
    w, b = params["conv21"]; t = _conv_ref(x21, w, b)
    w, b = params["conv22"]; x22 = _lrelu(_conv_ref(t, w, b))
    x31 = jnp.concatenate([x21, x22], axis=-1)
    w, b = params["conv31"]; t = _conv_ref(x31, w, b)
    w, b = params["conv32"]; out = _lrelu(_conv_ref(t, w, b))
    return _bn_ref(out, params["bn_gamma"], params["bn_beta"])


def encoder_ref(params, x_nchw):
    x = jnp.transpose(x_nchw, (0, 2, 3, 1))
    x1 = _block_ref(params[0], x, False)
    x2 = _block_ref(params[1], x1, True)
    x3 = _block_ref(params[2], x2, True)
    x4 = _block_ref(params[3], x3, True)
    x5 = _block_ref(params[4], x4, True)
    to_nchw = lambda t: jnp.transpose(t, (0, 3, 1, 2))
    return tuple(to_nchw(t) for t in (x4, x3, x2, x1, x5))


# ------------------------------------ main ------------------------------------
if __name__ == "__main__":
    key = jax.random.PRNGKey(0)
    kp, kx = jax.random.split(key)
    in_channels, channel_size = 1, 8              # small shapes for the demo
    params = init_encoder_params(kp, in_channels, channel_size)
    x = jax.random.normal(kx, (2, in_channels, 16, 16), jnp.float32)

    outs = jax.block_until_ready(densenet_encoder_forward(params, x))

    refs = encoder_ref(params, x)
    for o, r in zip(outs, refs):
        assert o.shape == r.shape, (o.shape, r.shape)
        err = float(jnp.max(jnp.abs(o - r)))
        assert jnp.allclose(o, r, rtol=1e-3, atol=1e-3), err

    print("KERNEL_OK")
</pallas_src>

<mosaic_0001>
module attributes {stable_mosaic.version = 11 : i64} {
  func.func @_bn_apply_kernel(%arg0: i32, %arg1: memref<1x8x256xf32, #tpu.memory_space<vmem>>, %arg2: memref<8x1xf32, #tpu.memory_space<vmem>>, %arg3: memref<8x1xf32, #tpu.memory_space<vmem>>, %arg4: memref<1x8x256xf32, #tpu.memory_space<vmem>>) attributes {dimension_semantics = [#tpu.dimension_semantics<parallel>], iteration_bounds = array<i64: 2>, scalar_prefetch = 0 : i64, scratch_operands = 0 : i64, tpu.core_type = #tpu.core_type<tc>, window_params = [{transform_indices = @transform_0, window_bounds = array<i64: 1, 8, 256>}, {pipeline_mode = #tpu.pipeline_mode<synchronous>, transform_indices = @transform_1, window_bounds = array<i64: 8, 1>}, {pipeline_mode = #tpu.pipeline_mode<synchronous>, transform_indices = @transform_2, window_bounds = array<i64: 8, 1>}, {transform_indices = @transform_3, window_bounds = array<i64: 1, 8, 256>}]} {
    %c0 = arith.constant 0 : index
    %c0_0 = arith.constant 0 : index
    %c0_1 = arith.constant 0 : index
    %0 = vector.load %arg1[%c0, %c0_0, %c0_1] : memref<1x8x256xf32, #tpu.memory_space<vmem>>, vector<1x8x256xf32>
    %1 = vector.shape_cast %0 : vector<1x8x256xf32> to vector<8x256xf32>
    %c0_2 = arith.constant 0 : index
    %c0_3 = arith.constant 0 : index
    %2 = vector.load %arg2[%c0_2, %c0_3] : memref<8x1xf32, #tpu.memory_space<vmem>>, vector<8x1xf32>
    %3 = vector.broadcast %2 : vector<8x1xf32> to vector<8x256xf32>
    %4 = arith.mulf %1, %3 : vector<8x256xf32>
    %c0_4 = arith.constant 0 : index
    %c0_5 = arith.constant 0 : index
    %5 = vector.load %arg3[%c0_4, %c0_5] : memref<8x1xf32, #tpu.memory_space<vmem>>, vector<8x1xf32>
    %6 = vector.broadcast %5 : vector<8x1xf32> to vector<8x256xf32>
    %7 = arith.addf %4, %6 : vector<8x256xf32>
    %c0_6 = arith.constant 0 : index
    %c0_7 = arith.constant 0 : index
    %c0_8 = arith.constant 0 : index
    %8 = vector.load %arg4[%c0_6, %c0_7, %c0_8] : memref<1x8x256xf32, #tpu.memory_space<vmem>>, vector<1x8x256xf32>
    %9 = vector.shape_cast %8 : vector<1x8x256xf32> to vector<8x256xf32>
    %10 = vector.shape_cast %7 : vector<8x256xf32> to vector<1x8x256xf32>
    tpu.vector_store %arg4[%c0_6, %c0_7, %c0_8], %10 {strides = array<i32>} : memref<1x8x256xf32, #tpu.memory_space<vmem>>, vector<1x8x256xf32>,
    return
  }
  func.func @transform_0(%arg0: i32) -> (i32, i32, i32) {
    %c0_i32 = arith.constant 0 : i32
    %c0_i32_0 = arith.constant 0 : i32
    %c0_i32_1 = arith.constant 0 : i32
    return %arg0, %c0_i32, %c0_i32_0 : i32, i32, i32
  }
  func.func @transform_1(%arg0: i32) -> (i32, i32) {
    %c0_i32 = arith.constant 0 : i32
    %c0_i32_0 = arith.constant 0 : i32
    %c0_i32_1 = arith.constant 0 : i32
    return %c0_i32, %c0_i32_0 : i32, i32
  }
  func.func @transform_2(%arg0: i32) -> (i32, i32) {
    %c0_i32 = arith.constant 0 : i32
    %c0_i32_0 = arith.constant 0 : i32
    %c0_i32_1 = arith.constant 0 : i32
    return %c0_i32, %c0_i32_0 : i32, i32
  }
  func.func @transform_3(%arg0: i32) -> (i32, i32, i32) {
    %c0_i32 = arith.constant 0 : i32
    %c0_i32_0 = arith.constant 0 : i32
    %c0_i32_1 = arith.constant 0 : i32
    return %arg0, %c0_i32, %c0_i32_0 : i32, i32, i32
  }
}

module attributes {stable_mosaic.version = 11 : i64} {
  func.func @_block_kernel(%arg0: i32, %arg1: memref<1x1x256xf32, #tpu.memory_space<vmem>>, %arg2: memref<3x8x3xf32, #tpu.memory_space<vmem>>, %arg3: memref<8x1xf32, #tpu.memory_space<vmem>>, %arg4: memref<8x1xf32, #tpu.memory_space<vmem>>, %arg5: memref<8x8xf32, #tpu.memory_space<vmem>>, %arg6: memref<8x1xf32, #tpu.memory_space<vmem>>, %arg7: memref<3x8x24xf32, #tpu.memory_space<vmem>>, %arg8: memref<8x1xf32, #tpu.memory_space<vmem>>, %arg9: memref<8x1xf32, #tpu.memory_space<vmem>>, %arg10: memref<8x8xf32, #tpu.memory_space<vmem>>, %arg11: memref<8x8xf32, #tpu.memory_space<vmem>>, %arg12: memref<8x1xf32, #tpu.memory_space<vmem>>, %arg13: memref<3x8x24xf32, #tpu.memory_space<vmem>>, %arg14: memref<8x1xf32, #tpu.memory_space<vmem>>, %arg15: memref<1x8x256xf32, #tpu.memory_space<vmem>>, %arg16: memref<1x8x2xf32, #tpu.memory_space<vmem>>, %arg17: memref<1x290xf32, #tpu.memory_space<vmem>>, %arg18: memref<8x290xf32, #tpu.memory_space<vmem>>) attributes {dimension_semantics = [#tpu.dimension_semantics<parallel>], iteration_bounds = array<i64: 2>, scalar_prefetch = 0 : i64, scratch_operands = 2 : i64, tpu.core_type = #tpu.core_type<tc>, window_params = [{transform_indices = @transform_0, window_bounds = array<i64: 1, 1, 256>}, {pipeline_mode = #tpu.pipeline_mode<synchronous>, transform_indices = @transform_1, window_bounds = array<i64: 3, 8, 3>}, {pipeline_mode = #tpu.pipeline_mode<synchronous>, transform_indices = @transform_2, window_bounds = array<i64: 8, 1>}, {pipeline_mode = #tpu.pipeline_mode<synchronous>, transform_indices = @transform_3, window_bounds = array<i64: 8, 1>}, {pipeline_mode = #tpu.pipeline_mode<synchronous>, transform_indices = @transform_4, window_bounds = array<i64: 8, 8>}, {pipeline_mode = #tpu.pipeline_mode<synchronous>, transform_indices = @transform_5, window_bounds = array<i64: 8, 1>}, {pipeline_mode = #tpu.pipeline_mode<synchronous>, transform_indices = @transform_6, window_bounds = array<i64: 3, 8, 24>}, {pipeline_mode = #tpu.pipeline_mode<synchronous>, transform_indices = @transform_7, window_bounds = array<i64: 8, 1>}, {pipeline_mode = #tpu.pipeline_mode<synchronous>, transform_indices = @transform_8, window_bounds = array<i64: 8, 1>}, {pipeline_mode = #tpu.pipeline_mode<synchronous>, transform_indices = @transform_9, window_bounds = array<i64: 8, 8>}, {pipeline_mode = #tpu.pipeline_mode<synchronous>, transform_indices = @transform_10, window_bounds = array<i64: 8, 8>}, {pipeline_mode = #tpu.pipeline_mode<synchronous>, transform_indices = @transform_11, window_bounds = array<i64: 8, 1>}, {pipeline_mode = #tpu.pipeline_mode<synchronous>, transform_indices = @transform_12, window_bounds = array<i64: 3, 8, 24>}, {pipeline_mode = #tpu.pipeline_mode<synchronous>, transform_indices = @transform_13, window_bounds = array<i64: 8, 1>}, {transform_indices = @transform_14, window_bounds = array<i64: 1, 8, 256>}, {transform_indices = @transform_15, window_bounds = array<i64: 1, 8, 2>}]} {
    %cst = arith.constant 0.000000e+00 : f32
    %0 = vector.broadcast %cst : f32 to vector<1x17xf32>
    %c0 = arith.constant 0 : index
    %c0_0 = arith.constant 0 : index
    %1 = vector.load %arg17[%c0, %c0_0] : memref<1x290xf32, #tpu.memory_space<vmem>>, vector<1x17xf32>
    tpu.vector_store %arg17[%c0, %c0_0], %0 {strides = array<i32>} : memref<1x290xf32, #tpu.memory_space<vmem>>, vector<1x17xf32>,
    %cst_1 = arith.constant 0.000000e+00 : f32
    %2 = vector.broadcast %cst_1 : f32 to vector<1x17xf32>
    %c0_2 = arith.constant 0 : index
    %c273 = arith.constant 273 : index
    %3 = vector.load %arg17[%c0_2, %c273] : memref<1x290xf32, #tpu.memory_space<vmem>>, vector<1x17xf32>
    tpu.vector_store %arg17[%c0_2, %c273], %2 {strides = array<i32>} : memref<1x290xf32, #tpu.memory_space<vmem>>, vector<1x17xf32>,
    %cst_3 = arith.constant 0.000000e+00 : f32
    %4 = vector.broadcast %cst_3 : f32 to vector<8x17xf32>
    %c0_4 = arith.constant 0 : index
    %c0_5 = arith.constant 0 : index
    %5 = vector.load %arg18[%c0_4, %c0_5] : memref<8x290xf32, #tpu.memory_space<vmem>>, vector<8x17xf32>
    tpu.vector_store %arg18[%c0_4, %c0_5], %4 {strides = array<i32>} : memref<8x290xf32, #tpu.memory_space<vmem>>, vector<8x17xf32>,
    %cst_6 = arith.constant 0.000000e+00 : f32
    %6 = vector.broadcast %cst_6 : f32 to vector<8x17xf32>
    %c0_7 = arith.constant 0 : index
    %c273_8 = arith.constant 273 : index
    %7 = vector.load %arg18[%c0_7, %c273_8] : memref<8x290xf32, #tpu.memory_space<vmem>>, vector<8x17xf32>
    tpu.vector_store %arg18[%c0_7, %c273_8], %6 {strides = array<i32>} : memref<8x290xf32, #tpu.memory_space<vmem>>, vector<8x17xf32>,
    %c0_9 = arith.constant 0 : index
    %c0_10 = arith.constant 0 : index
    %c0_11 = arith.constant 0 : index
    %8 = vector.load %arg1[%c0_9, %c0_10, %c0_11] : memref<1x1x256xf32, #tpu.memory_space<vmem>>, vector<1x1x256xf32>
    %9 = vector.shape_cast %8 : vector<1x1x256xf32> to vector<1x256xf32>
    %c0_12 = arith.constant 0 : index
    %c17 = arith.constant 17 : index
    %10 = vector.load %arg17[%c0_12, %c17] : memref<1x290xf32, #tpu.memory_space<vmem>>, vector<1x256xf32>
    tpu.vector_store %arg17[%c0_12, %c17], %9 {strides = array<i32>} : memref<1x290xf32, #tpu.memory_space<vmem>>, vector<1x256xf32>,
    %11 = tpu.iota {dimensions = array<i32: 1>} : vector<1x256xi32>
    %c16_i32 = arith.constant 16 : i32
    %c0_i32 = arith.constant 0 : i32
    %12 = arith.cmpi eq, %c16_i32, %c0_i32 : i32
    %c1_i32 = arith.constant 1 : i32
    %13 = arith.select %12, %c1_i32, %c16_i32 : i32
    %14 = vector.broadcast %13 : i32 to vector<1x256xi32>
    %15 = arith.remsi %11, %14 : vector<1x256xi32>
    %c0_i32_13 = arith.constant 0 : i32
    %16 = vector.broadcast %c0_i32_13 : i32 to vector<1x256xi32>
    %17 = arith.cmpi ne, %15, %16 : vector<1x256xi32>
    %c0_i32_14 = arith.constant 0 : i32
    %18 = vector.broadcast %c0_i32_14 : i32 to vector<1x256xi32>
    %19 = arith.cmpi slt, %15, %18 : vector<1x256xi32>
    %c0_i32_15 = arith.constant 0 : i32
    %20 = arith.cmpi slt, %13, %c0_i32_15 : i32
    %21 = vector.broadcast %20 : i1 to vector<1x256xi1>
    %22 = vector.broadcast %21 : vector<1x256xi1> to vector<1x256xi1>
    %23 = arith.xori %19, %22 : vector<1x256xi1>
    %24 = arith.andi %23, %17 : vector<1x256xi1>
    %25 = vector.broadcast %13 : i32 to vector<1x256xi32>
    %26 = arith.addi %15, %25 : vector<1x256xi32>
    %27 = arith.select %24, %26, %15 : vector<1x256xi1>, vector<1x256xi32>
    %c0_i32_16 = arith.constant 0 : i32
    %28 = vector.broadcast %c0_i32_16 : i32 to vector<1x256xi32>
    %29 = arith.cmpi ne, %27, %28 : vector<1x256xi32>
    %c15_i32 = arith.constant 15 : i32
    %30 = vector.broadcast %c15_i32 : i32 to vector<1x256xi32>
    %31 = arith.cmpi ne, %27, %30 : vector<1x256xi32>
    %c1 = arith.constant 1 : index
    %c0_17 = arith.constant 0 : index
    %c0_18 = arith.constant 0 : index
    %32 = vector.load %arg2[%c1, %c0_17, %c0_18] : memref<3x8x3xf32, #tpu.memory_space<vmem>>, vector<1x8x3xf32>
    %33 = vector.shape_cast %32 : vector<1x8x3xf32> to vector<8x3xf32>
    %c0_19 = arith.constant 0 : index
    %c1_20 = arith.constant 1 : index
    %34 = vector.load %arg17[%c0_19, %c1_20] : memref<1x290xf32, #tpu.memory_space<vmem>>, vector<1x256xf32>
    %c0_21 = arith.constant 0 : index
    %c17_22 = arith.constant 17 : index
    %35 = vector.load %arg17[%c0_21, %c17_22] : memref<1x290xf32, #tpu.memory_space<vmem>>, vector<1x256xf32>
    %c0_23 = arith.constant 0 : index
    %c33 = arith.constant 33 : index
    %36 = vector.load %arg17[%c0_23, %c33] : memref<1x290xf32, #tpu.memory_space<vmem>>, vector<1x256xf32>
    %37 = tpu.concatenate %34, %35, %36 in 0 : vector<1x256xf32>, vector<1x256xf32>, vector<1x256xf32> -> vector<3x256xf32>
    %cst_24 = arith.constant dense<0.000000e+00> : vector<8x256xf32>
    %38 = tpu.matmul %33, %37, %cst_24 {dimension_numbers = #tpu.dot_dimension_numbers<[1], [0], [0], [1], [0, 0, 1, 1], [], []>} : vector<8x3xf32>, vector<3x256xf32>, vector<8x256xf32> -> vector<8x256xf32>
    %c0_25 = arith.constant 0 : index
    %c0_26 = arith.constant 0 : index
    %c0_27 = arith.constant 0 : index
    %39 = vector.load %arg2[%c0_25, %c0_26, %c0_27] : memref<3x8x3xf32, #tpu.memory_space<vmem>>, vector<1x8x3xf32>
    %40 = vector.shape_cast %39 : vector<1x8x3xf32> to vector<8x3xf32>
    %c0_28 = arith.constant 0 : index
    %c0_29 = arith.constant 0 : index
    %41 = vector.load %arg17[%c0_28, %c0_29] : memref<1x290xf32, #tpu.memory_space<vmem>>, vector<1x256xf32>
    %c0_30 = arith.constant 0 : index
    %c16 = arith.constant 16 : index
    %42 = vector.load %arg17[%c0_30, %c16] : memref<1x290xf32, #tpu.memory_space<vmem>>, vector<1x256xf32>
    %c0_31 = arith.constant 0 : index
    %c32 = arith.constant 32 : index
    %43 = vector.load %arg17[%c0_31, %c32] : memref<1x290xf32, #tpu.memory_space<vmem>>, vector<1x256xf32>
    %44 = tpu.concatenate %41, %42, %43 in 0 : vector<1x256xf32>, vector<1x256xf32>, vector<1x256xf32> -> vector<3x256xf32>
    %cst_32 = arith.constant dense<0.000000e+00> : vector<8x256xf32>
    %45 = tpu.matmul %40, %44, %cst_32 {dimension_numbers = #tpu.dot_dimension_numbers<[1], [0], [0], [1], [0, 0, 1, 1], [], []>} : vector<8x3xf32>, vector<3x256xf32>, vector<8x256xf32> -> vector<8x256xf32>
    %c2 = arith.constant 2 : index
    %c0_33 = arith.constant 0 : index
    %c0_34 = arith.constant 0 : index
    %46 = vector.load %arg2[%c2, %c0_33, %c0_34] : memref<3x8x3xf32, #tpu.memory_space<vmem>>, vector<1x8x3xf32>
    %47 = vector.shape_cast %46 : vector<1x8x3xf32> to vector<8x3xf32>
    %c0_35 = arith.constant 0 : index
    %c2_36 = arith.constant 2 : index
    %48 = vector.load %arg17[%c0_35, %c2_36] : memref<1x290xf32, #tpu.memory_space<vmem>>, vector<1x256xf32>
    %c0_37 = arith.constant 0 : index
    %c18 = arith.constant 18 : index
    %49 = vector.load %arg17[%c0_37, %c18] : memref<1x290xf32, #tpu.memory_space<vmem>>, vector<1x256xf32>
    %c0_38 = arith.constant 0 : index
    %c34 = arith.constant 34 : index
    %50 = vector.load %arg17[%c0_38, %c34] : memref<1x290xf32, #tpu.memory_space<vmem>>, vector<1x256xf32>
    %51 = tpu.concatenate %48, %49, %50 in 0 : vector<1x256xf32>, vector<1x256xf32>, vector<1x256xf32> -> vector<3x256xf32>
    %cst_39 = arith.constant dense<0.000000e+00> : vector<8x256xf32>
    %52 = tpu.matmul %47, %51, %cst_39 {dimension_numbers = #tpu.dot_dimension_numbers<[1], [0], [0], [1], [0, 0, 1, 1], [], []>} : vector<8x3xf32>, vector<3x256xf32>, vector<8x256xf32> -> vector<8x256xf32>
    %cst_40 = arith.constant 0.000000e+00 : f32
    %53 = vector.shape_cast %29 : vector<1x256xi1> to vector<1x256xi1>
    %54 = vector.broadcast %53 : vector<1x256xi1> to vector<8x256xi1>
    %55 = vector.broadcast %cst_40 : f32 to vector<8x256xf32>
    %56 = arith.select %54, %45, %55 : vector<8x256xi1>, vector<8x256xf32>
    %57 = arith.addf %38, %56 : vector<8x256xf32>
    %cst_41 = arith.constant 0.000000e+00 : f32
    %58 = vector.shape_cast %31 : vector<1x256xi1> to vector<1x256xi1>
    %59 = vector.broadcast %58 : vector<1x256xi1> to vector<8x256xi1>
    %60 = vector.broadcast %cst_41 : f32 to vector<8x256xf32>
    %61 = arith.select %59, %52, %60 : vector<8x256xi1>, vector<8x256xf32>
    %62 = arith.addf %57, %61 : vector<8x256xf32>
    %c0_42 = arith.constant 0 : index
    %c0_43 = arith.constant 0 : index
    %63 = vector.load %arg3[%c0_42, %c0_43] : memref<8x1xf32, #tpu.memory_space<vmem>>, vector<8x1xf32>
    %64 = vector.broadcast %63 : vector<8x1xf32> to vector<8x256xf32>
    %65 = arith.addf %62, %64 : vector<8x256xf32>
    %cst_44 = arith.constant 0.000000e+00 : f32
    %66 = vector.broadcast %cst_44 : f32 to vector<8x256xf32>
    %67 = arith.cmpf oge, %65, %66 : vector<8x256xf32>
    %cst_45 = arith.constant 0.00999999977 : f32
    %68 = vector.broadcast %cst_45 : f32 to vector<8x256xf32>
    %69 = arith.mulf %68, %65 : vector<8x256xf32>
    %70 = arith.select %67, %65, %69 : vector<8x256xi1>, vector<8x256xf32>
    %c0_46 = arith.constant 0 : index
    %c0_47 = arith.constant 0 : index
    %71 = vector.load %arg4[%c0_46, %c0_47] : memref<8x1xf32, #tpu.memory_space<vmem>>, vector<8x1xf32>
    %c0_48 = arith.constant 0 : index
    %c17_49 = arith.constant 17 : index
    %72 = vector.load %arg17[%c0_48, %c17_49] : memref<1x290xf32, #tpu.memory_space<vmem>>, vector<1x256xf32>
    %73 = vector.broadcast %71 : vector<8x1xf32> to vector<8x256xf32>
    %74 = vector.broadcast %72 : vector<1x256xf32> to vector<8x256xf32>
    %75 = arith.mulf %73, %74 : vector<8x256xf32>
    %c0_50 = arith.constant 0 : index
    %c0_51 = arith.constant 0 : index
    %76 = vector.load %arg5[%c0_50, %c0_51] : memref<8x8xf32, #tpu.memory_space<vmem>>, vector<8x8xf32>
    %cst_52 = arith.constant dense<0.000000e+00> : vector<8x256xf32>
    %77 = tpu.matmul %76, %70, %cst_52 {dimension_numbers = #tpu.dot_dimension_numbers<[1], [0], [0], [1], [0, 0, 1, 1], [], []>} : vector<8x8xf32>, vector<8x256xf32>, vector<8x256xf32> -> vector<8x256xf32>
    %78 = arith.addf %75, %77 : vector<8x256xf32>
    %c0_53 = arith.constant 0 : index
    %c0_54 = arith.constant 0 : index
    %79 = vector.load %arg6[%c0_53, %c0_54] : memref<8x1xf32, #tpu.memory_space<vmem>>, vector<8x1xf32>
    %80 = vector.broadcast %79 : vector<8x1xf32> to vector<8x256xf32>
    %81 = arith.addf %78, %80 : vector<8x256xf32>
    %c0_55 = arith.constant 0 : index
    %c17_56 = arith.constant 17 : index
    %82 = vector.load %arg18[%c0_55, %c17_56] : memref<8x290xf32, #tpu.memory_space<vmem>>, vector<8x256xf32>
    tpu.vector_store %arg18[%c0_55, %c17_56], %81 {strides = array<i32>} : memref<8x290xf32, #tpu.memory_space<vmem>>, vector<8x256xf32>,
    %c1_57 = arith.constant 1 : index
    %c0_58 = arith.constant 0 : index
    %c0_59 = arith.constant 0 : index
    %83 = vector.load %arg7[%c1_57, %c0_58, %c0_59] : memref<3x8x24xf32, #tpu.memory_space<vmem>>, vector<1x8x24xf32>
    %84 = vector.shape_cast %83 : vector<1x8x24xf32> to vector<8x24xf32>
    %c0_60 = arith.constant 0 : index
    %c1_61 = arith.constant 1 : index
    %85 = vector.load %arg18[%c0_60, %c1_61] : memref<8x290xf32, #tpu.memory_space<vmem>>, vector<8x256xf32>
    %c0_62 = arith.constant 0 : index
    %c17_63 = arith.constant 17 : index
    %86 = vector.load %arg18[%c0_62, %c17_63] : memref<8x290xf32, #tpu.memory_space<vmem>>, vector<8x256xf32>
    %c0_64 = arith.constant 0 : index
    %c33_65 = arith.constant 33 : index
    %87 = vector.load %arg18[%c0_64, %c33_65] : memref<8x290xf32, #tpu.memory_space<vmem>>, vector<8x256xf32>
    %88 = tpu.concatenate %85, %86, %87 in 0 : vector<8x256xf32>, vector<8x256xf32>, vector<8x256xf32> -> vector<24x256xf32>
    %cst_66 = arith.constant dense<0.000000e+00> : vector<8x256xf32>
    %89 = tpu.matmul %84, %88, %cst_66 {dimension_numbers = #tpu.dot_dimension_numbers<[1], [0], [0], [1], [0, 0, 1, 1], [], []>} : vector<8x24xf32>, vector<24x256xf32>, vector<8x256xf32> -> vector<8x256xf32>
    %c0_67 = arith.constant 0 : index
    %c0_68 = arith.constant 0 : index
    %c0_69 = arith.constant 0 : index
    %90 = vector.load %arg7[%c0_67, %c0_68, %c0_69] : memref<3x8x24xf32, #tpu.memory_space<vmem>>, vector<1x8x24xf32>
    %91 = vector.shape_cast %90 : vector<1x8x24xf32> to vector<8x24xf32>
    %c0_70 = arith.constant 0 : index
    %c0_71 = arith.constant 0 : index
    %92 = vector.load %arg18[%c0_70, %c0_71] : memref<8x290xf32, #tpu.memory_space<vmem>>, vector<8x256xf32>
    %c0_72 = arith.constant 0 : index
    %c16_73 = arith.constant 16 : index
    %93 = vector.load %arg18[%c0_72, %c16_73] : memref<8x290xf32, #tpu.memory_space<vmem>>, vector<8x256xf32>
    %c0_74 = arith.constant 0 : index
    %c32_75 = arith.constant 32 : index
    %94 = vector.load %arg18[%c0_74, %c32_75] : memref<8x290xf32, #tpu.memory_space<vmem>>, vector<8x256xf32>
    %95 = tpu.concatenate %92, %93, %94 in 0 : vector<8x256xf32>, vector<8x256xf32>, vector<8x256xf32> -> vector<24x256xf32>
    %cst_76 = arith.constant dense<0.000000e+00> : vector<8x256xf32>
    %96 = tpu.matmul %91, %95, %cst_76 {dimension_numbers = #tpu.dot_dimension_numbers<[1], [0], [0], [1], [0, 0, 1, 1], [], []>} : vector<8x24xf32>, vector<24x256xf32>, vector<8x256xf32> -> vector<8x256xf32>
    %c2_77 = arith.constant 2 : index
    %c0_78 = arith.constant 0 : index
    %c0_79 = arith.constant 0 : index
    %97 = vector.load %arg7[%c2_77, %c0_78, %c0_79] : memref<3x8x24xf32, #tpu.memory_space<vmem>>, vector<1x8x24xf32>
    %98 = vector.shape_cast %97 : vector<1x8x24xf32> to vector<8x24xf32>
    %c0_80 = arith.constant 0 : index
    %c2_81 = arith.constant 2 : index
    %99 = vector.load %arg18[%c0_80, %c2_81] : memref<8x290xf32, #tpu.memory_space<vmem>>, vector<8x256xf32>
    %c0_82 = arith.constant 0 : index
    %c18_83 = arith.constant 18 : index
    %100 = vector.load %arg18[%c0_82, %c18_83] : memref<8x290xf32, #tpu.memory_space<vmem>>, vector<8x256xf32>
    %c0_84 = arith.constant 0 : index
    %c34_85 = arith.constant 34 : index
    %101 = vector.load %arg18[%c0_84, %c34_85] : memref<8x290xf32, #tpu.memory_space<vmem>>, vector<8x256xf32>
    %102 = tpu.concatenate %99, %100, %101 in 0 : vector<8x256xf32>, vector<8x256xf32>, vector<8x256xf32> -> vector<24x256xf32>
    %cst_86 = arith.constant dense<0.000000e+00> : vector<8x256xf32>
    %103 = tpu.matmul %98, %102, %cst_86 {dimension_numbers = #tpu.dot_dimension_numbers<[1], [0], [0], [1], [0, 0, 1, 1], [], []>} : vector<8x24xf32>, vector<24x256xf32>, vector<8x256xf32> -> vector<8x256xf32>
    %cst_87 = arith.constant 0.000000e+00 : f32
    %104 = vector.shape_cast %29 : vector<1x256xi1> to vector<1x256xi1>
    %105 = vector.broadcast %104 : vector<1x256xi1> to vector<8x256xi1>
    %106 = vector.broadcast %cst_87 : f32 to vector<8x256xf32>
    %107 = arith.select %105, %96, %106 : vector<8x256xi1>, vector<8x256xf32>
    %108 = arith.addf %89, %107 : vector<8x256xf32>
    %cst_88 = arith.constant 0.000000e+00 : f32
    %109 = vector.shape_cast %31 : vector<1x256xi1> to vector<1x256xi1>
    %110 = vector.broadcast %109 : vector<1x256xi1> to vector<8x256xi1>
    %111 = vector.broadcast %cst_88 : f32 to vector<8x256xf32>
    %112 = arith.select %110, %103, %111 : vector<8x256xi1>, vector<8x256xf32>
    %113 = arith.addf %108, %112 : vector<8x256xf32>
    %c0_89 = arith.constant 0 : index
    %c0_90 = arith.constant 0 : index
    %114 = vector.load %arg8[%c0_89, %c0_90] : memref<8x1xf32, #tpu.memory_space<vmem>>, vector<8x1xf32>
    %115 = vector.broadcast %114 : vector<8x1xf32> to vector<8x256xf32>
    %116 = arith.addf %113, %115 : vector<8x256xf32>
    %cst_91 = arith.constant 0.000000e+00 : f32
    %117 = vector.broadcast %cst_91 : f32 to vector<8x256xf32>
    %118 = arith.cmpf oge, %116, %117 : vector<8x256xf32>
    %cst_92 = arith.constant 0.00999999977 : f32
    %119 = vector.broadcast %cst_92 : f32 to vector<8x256xf32>
    %120 = arith.mulf %119, %116 : vector<8x256xf32>
    %121 = arith.select %118, %116, %120 : vector<8x256xi1>, vector<8x256xf32>
    %c0_93 = arith.constant 0 : index
    %c0_94 = arith.constant 0 : index
    %122 = vector.load %arg9[%c0_93, %c0_94] : memref<8x1xf32, #tpu.memory_space<vmem>>, vector<8x1xf32>
    %c0_95 = arith.constant 0 : index
    %c17_96 = arith.constant 17 : index
    %123 = vector.load %arg17[%c0_95, %c17_96] : memref<1x290xf32, #tpu.memory_space<vmem>>, vector<1x256xf32>
    %124 = vector.broadcast %122 : vector<8x1xf32> to vector<8x256xf32>
    %125 = vector.broadcast %123 : vector<1x256xf32> to vector<8x256xf32>
    %126 = arith.mulf %124, %125 : vector<8x256xf32>
    %c0_97 = arith.constant 0 : index
    %c0_98 = arith.constant 0 : index
    %127 = vector.load %arg10[%c0_97, %c0_98] : memref<8x8xf32, #tpu.memory_space<vmem>>, vector<8x8xf32>
    %cst_99 = arith.constant dense<0.000000e+00> : vector<8x256xf32>
    %128 = tpu.matmul %127, %70, %cst_99 {dimension_numbers = #tpu.dot_dimension_numbers<[1], [0], [0], [1], [0, 0, 1, 1], [], []>} : vector<8x8xf32>, vector<8x256xf32>, vector<8x256xf32> -> vector<8x256xf32>
    %129 = arith.addf %126, %128 : vector<8x256xf32>
    %c0_100 = arith.constant 0 : index
    %c0_101 = arith.constant 0 : index
    %130 = vector.load %arg11[%c0_100, %c0_101] : memref<8x8xf32, #tpu.memory_space<vmem>>, vector<8x8xf32>
    %cst_102 = arith.constant dense<0.000000e+00> : vector<8x256xf32>
    %131 = tpu.matmul %130, %121, %cst_102 {dimension_numbers = #tpu.dot_dimension_numbers<[1], [0], [0], [1], [0, 0, 1, 1], [], []>} : vector<8x8xf32>, vector<8x256xf32>, vector<8x256xf32> -> vector<8x256xf32>
    %132 = arith.addf %129, %131 : vector<8x256xf32>
    %c0_103 = arith.constant 0 : index
    %c0_104 = arith.constant 0 : index
    %133 = vector.load %arg12[%c0_103, %c0_104] : memref<8x1xf32, #tpu.memory_space<vmem>>, vector<8x1xf32>
    %134 = vector.broadcast %133 : vector<8x1xf32> to vector<8x256xf32>
    %135 = arith.addf %132, %134 : vector<8x256xf32>
    %c0_105 = arith.constant 0 : index
    %c17_106 = arith.constant 17 : index
    %136 = vector.load %arg18[%c0_105, %c17_106] : memref<8x290xf32, #tpu.memory_space<vmem>>, vector<8x256xf32>
    tpu.vector_store %arg18[%c0_105, %c17_106], %135 {strides = array<i32>} : memref<8x290xf32, #tpu.memory_space<vmem>>, vector<8x256xf32>,
    %c1_107 = arith.constant 1 : index
    %c0_108 = arith.constant 0 : index
    %c0_109 = arith.constant 0 : index
    %137 = vector.load %arg13[%c1_107, %c0_108, %c0_109] : memref<3x8x24xf32, #tpu.memory_space<vmem>>, vector<1x8x24xf32>
    %138 = vector.shape_cast %137 : vector<1x8x24xf32> to vector<8x24xf32>
    %c0_110 = arith.constant 0 : index
    %c1_111 = arith.constant 1 : index
    %139 = vector.load %arg18[%c0_110, %c1_111] : memref<8x290xf32, #tpu.memory_space<vmem>>, vector<8x256xf32>
    %c0_112 = arith.constant 0 : index
    %c17_113 = arith.constant 17 : index
    %140 = vector.load %arg18[%c0_112, %c17_113] : memref<8x290xf32, #tpu.memory_space<vmem>>, vector<8x256xf32>
    %c0_114 = arith.constant 0 : index
    %c33_115 = arith.constant 33 : index
    %141 = vector.load %arg18[%c0_114, %c33_115] : memref<8x290xf32, #tpu.memory_space<vmem>>, vector<8x256xf32>
    %142 = tpu.concatenate %139, %140, %141 in 0 : vector<8x256xf32>, vector<8x256xf32>, vector<8x256xf32> -> vector<24x256xf32>
    %cst_116 = arith.constant dense<0.000000e+00> : vector<8x256xf32>
    %143 = tpu.matmul %138, %142, %cst_116 {dimension_numbers = #tpu.dot_dimension_numbers<[1], [0], [0], [1], [0, 0, 1, 1], [], []>} : vector<8x24xf32>, vector<24x256xf32>, vector<8x256xf32> -> vector<8x256xf32>
    %c0_117 = arith.constant 0 : index
    %c0_118 = arith.constant 0 : index
    %c0_119 = arith.constant 0 : index
    %144 = vector.load %arg13[%c0_117, %c0_118, %c0_119] : memref<3x8x24xf32, #tpu.memory_space<vmem>>, vector<1x8x24xf32>
    %145 = vector.shape_cast %144 : vector<1x8x24xf32> to vector<8x24xf32>
    %c0_120 = arith.constant 0 : index
    %c0_121 = arith.constant 0 : index
    %146 = vector.load %arg18[%c0_120, %c0_121] : memref<8x290xf32, #tpu.memory_space<vmem>>, vector<8x256xf32>
    %c0_122 = arith.constant 0 : index
    %c16_123 = arith.constant 16 : index
    %147 = vector.load %arg18[%c0_122, %c16_123] : memref<8x290xf32, #tpu.memory_space<vmem>>, vector<8x256xf32>
    %c0_124 = arith.constant 0 : index
    %c32_125 = arith.constant 32 : index
    %148 = vector.load %arg18[%c0_124, %c32_125] : memref<8x290xf32, #tpu.memory_space<vmem>>, vector<8x256xf32>
    %149 = tpu.concatenate %146, %147, %148 in 0 : vector<8x256xf32>, vector<8x256xf32>, vector<8x256xf32> -> vector<24x256xf32>
    %cst_126 = arith.constant dense<0.000000e+00> : vector<8x256xf32>
    %150 = tpu.matmul %145, %149, %cst_126 {dimension_numbers = #tpu.dot_dimension_numbers<[1], [0], [0], [1], [0, 0, 1, 1], [], []>} : vector<8x24xf32>, vector<24x256xf32>, vector<8x256xf32> -> vector<8x256xf32>
    %c2_127 = arith.constant 2 : index
    %c0_128 = arith.constant 0 : index
    %c0_129 = arith.constant 0 : index
    %151 = vector.load %arg13[%c2_127, %c0_128, %c0_129] : memref<3x8x24xf32, #tpu.memory_space<vmem>>, vector<1x8x24xf32>
    %152 = vector.shape_cast %151 : vector<1x8x24xf32> to vector<8x24xf32>
    %c0_130 = arith.constant 0 : index
    %c2_131 = arith.constant 2 : index
    %153 = vector.load %arg18[%c0_130, %c2_131] : memref<8x290xf32, #tpu.memory_space<vmem>>, vector<8x256xf32>
    %c0_132 = arith.constant 0 : index
    %c18_133 = arith.constant 18 : index
    %154 = vector.load %arg18[%c0_132, %c18_133] : memref<8x290xf32, #tpu.memory_space<vmem>>, vector<8x256xf32>
    %c0_134 = arith.constant 0 : index
    %c34_135 = arith.constant 34 : index
    %155 = vector.load %arg18[%c0_134, %c34_135] : memref<8x290xf32, #tpu.memory_space<vmem>>, vector<8x256xf32>
    %156 = tpu.concatenate %153, %154, %155 in 0 : vector<8x256xf32>, vector<8x256xf32>, vector<8x256xf32> -> vector<24x256xf32>
    %cst_136 = arith.constant dense<0.000000e+00> : vector<8x256xf32>
    %157 = tpu.matmul %152, %156, %cst_136 {dimension_numbers = #tpu.dot_dimension_numbers<[1], [0], [0], [1], [0, 0, 1, 1], [], []>} : vector<8x24xf32>, vector<24x256xf32>, vector<8x256xf32> -> vector<8x256xf32>
    %cst_137 = arith.constant 0.000000e+00 : f32
    %158 = vector.shape_cast %29 : vector<1x256xi1> to vector<1x256xi1>
    %159 = vector.broadcast %158 : vector<1x256xi1> to vector<8x256xi1>
    %160 = vector.broadcast %cst_137 : f32 to vector<8x256xf32>
    %161 = arith.select %159, %150, %160 : vector<8x256xi1>, vector<8x256xf32>
    %162 = arith.addf %143, %161 : vector<8x256xf32>
    %cst_138 = arith.constant 0.000000e+00 : f32
    %163 = vector.shape_cast %31 : vector<1x256xi1> to vector<1x256xi1>
    %164 = vector.broadcast %163 : vector<1x256xi1> to vector<8x256xi1>
    %165 = vector.broadcast %cst_138 : f32 to vector<8x256xf32>
    %166 = arith.select %164, %157, %165 : vector<8x256xi1>, vector<8x256xf32>
    %167 = arith.addf %162, %166 : vector<8x256xf32>
    %c0_139 = arith.constant 0 : index
    %c0_140 = arith.constant 0 : index
    %168 = vector.load %arg14[%c0_139, %c0_140] : memref<8x1xf32, #tpu.memory_space<vmem>>, vector<8x1xf32>
    %169 = vector.broadcast %168 : vector<8x1xf32> to vector<8x256xf32>
    %170 = arith.addf %167, %169 : vector<8x256xf32>
    %cst_141 = arith.constant 0.000000e+00 : f32
    %171 = vector.broadcast %cst_141 : f32 to vector<8x256xf32>
    %172 = arith.cmpf oge, %170, %171 : vector<8x256xf32>
    %cst_142 = arith.constant 0.00999999977 : f32
    %173 = vector.broadcast %cst_142 : f32 to vector<8x256xf32>
    %174 = arith.mulf %173, %170 : vector<8x256xf32>
    %175 = arith.select %172, %170, %174 : vector<8x256xi1>, vector<8x256xf32>
    %c0_143 = arith.constant 0 : index
    %c0_144 = arith.constant 0 : index
    %c0_145 = arith.constant 0 : index
    %176 = vector.load %arg15[%c0_143, %c0_144, %c0_145] : memref<1x8x256xf32, #tpu.memory_space<vmem>>, vector<1x8x256xf32>
    %177 = vector.shape_cast %176 : vector<1x8x256xf32> to vector<8x256xf32>
    %178 = vector.shape_cast %175 : vector<8x256xf32> to vector<1x8x256xf32>
    tpu.vector_store %arg15[%c0_143, %c0_144, %c0_145], %178 {strides = array<i32>} : memref<1x8x256xf32, #tpu.memory_space<vmem>>, vector<1x8x256xf32>,
    %cst_146 = arith.constant dense<0.000000e+00> : vector<8xf32>
    %179 = vector.multi_reduction <add>, %175, %cst_146 [1] : vector<8x256xf32> to vector<8xf32>
    %180 = vector.shape_cast %179 : vector<8xf32> to vector<8x1xf32>
    %181 = arith.mulf %175, %175 : vector<8x256xf32>
    %cst_147 = arith.constant dense<0.000000e+00> : vector<8xf32>
    %182 = vector.multi_reduction <add>, %181, %cst_147 [1] : vector<8x256xf32> to vector<8xf32>
    %183 = vector.shape_cast %182 : vector<8xf32> to vector<8x1xf32>
    %184 = tpu.concatenate %180, %183 in 1 : vector<8x1xf32>, vector<8x1xf32> -> vector<8x2xf32>
    %c0_148 = arith.constant 0 : index
    %c0_149 = arith.constant 0 : index
    %c0_150 = arith.constant 0 : index
    %185 = vector.load %arg16[%c0_148, %c0_149, %c0_150] : memref<1x8x2xf32, #tpu.memory_space<vmem>>, vector<1x8x2xf32>
    %186 = vector.shape_cast %185 : vector<1x8x2xf32> to vector<8x2xf32>
    %187 = vector.shape_cast %184 : vector<8x2xf32> to vector<1x8x2xf32>
    tpu.vector_store %arg16[%c0_148, %c0_149, %c0_150], %187 {strides = array<i32>} : memref<1x8x2xf32, #tpu.memory_space<vmem>>, vector<1x8x2xf32>,
    return
  }
  func.func @transform_0(%arg0: i32) -> (i32, i32, i32) {
    %c0_i32 = arith.constant 0 : i32
    %c0_i32_0 = arith.constant 0 : i32
    %c0_i32_1 = arith.constant 0 : i32
    return %arg0, %c0_i32, %c0_i32_0 : i32, i32, i32
  }
  func.func @transform_1(%arg0: i32) -> (i32, i32, i32) {
    %c0_i32 = arith.constant 0 : i32
    %c0_i32_0 = arith.constant 0 : i32
    %c0_i32_1 = arith.constant 0 : i32
    %c0_i32_2 = arith.constant 0 : i32
    return %c0_i32, %c0_i32_0, %c0_i32_1 : i32, i32, i32
  }
  func.func @transform_2(%arg0: i32) -> (i32, i32) {
    %c0_i32 = arith.constant 0 : i32
    %c0_i32_0 = arith.constant 0 : i32
    %c0_i32_1 = arith.constant 0 : i32
    return %c0_i32, %c0_i32_0 : i32, i32
  }
  func.func @transform_3(%arg0: i32) -> (i32, i32) {
    %c0_i32 = arith.constant 0 : i32
    %c0_i32_0 = arith.constant 0 : i32
    %c0_i32_1 = arith.constant 0 : i32
    return %c0_i32, %c0_i32_0 : i32, i32
  }
  func.func @transform_4(%arg0: i32) -> (i32, i32) {
    %c0_i32 = arith.constant 0 : i32
    %c0_i32_0 = arith.constant 0 : i32
    %c0_i32_1 = arith.constant 0 : i32
    return %c0_i32, %c0_i32_0 : i32, i32
  }
  func.func @transform_5(%arg0: i32) -> (i32, i32) {
    %c0_i32 = arith.constant 0 : i32
    %c0_i32_0 = arith.constant 0 : i32
    %c0_i32_1 = arith.constant 0 : i32
    return %c0_i32, %c0_i32_0 : i32, i32
  }
  func.func @transform_6(%arg0: i32) -> (i32, i32, i32) {
    %c0_i32 = arith.constant 0 : i32
    %c0_i32_0 = arith.constant 0 : i32
    %c0_i32_1 = arith.constant 0 : i32
    %c0_i32_2 = arith.constant 0 : i32
    return %c0_i32, %c0_i32_0, %c0_i32_1 : i32, i32, i32
  }
  func.func @transform_7(%arg0: i32) -> (i32, i32) {
    %c0_i32 = arith.constant 0 : i32
    %c0_i32_0 = arith.constant 0 : i32
    %c0_i32_1 = arith.constant 0 : i32
    return %c0_i32, %c0_i32_0 : i32, i32
  }
  func.func @transform_8(%arg0: i32) -> (i32, i32) {
    %c0_i32 = arith.constant 0 : i32
    %c0_i32_0 = arith.constant 0 : i32
    %c0_i32_1 = arith.constant 0 : i32
    return %c0_i32, %c0_i32_0 : i32, i32
  }
  func.func @transform_9(%arg0: i32) -> (i32, i32) {
    %c0_i32 = arith.constant 0 : i32
    %c0_i32_0 = arith.constant 0 : i32
    %c0_i32_1 = arith.constant 0 : i32
    return %c0_i32, %c0_i32_0 : i32, i32
  }
  func.func @transform_10(%arg0: i32) -> (i32, i32) {
    %c0_i32 = arith.constant 0 : i32
    %c0_i32_0 = arith.constant 0 : i32
    %c0_i32_1 = arith.constant 0 : i32
    return %c0_i32, %c0_i32_0 : i32, i32
  }
  func.func @transform_11(%arg0: i32) -> (i32, i32) {
    %c0_i32 = arith.constant 0 : i32
    %c0_i32_0 = arith.constant 0 : i32
    %c0_i32_1 = arith.constant 0 : i32
    return %c0_i32, %c0_i32_0 : i32, i32
  }
  func.func @transform_12(%arg0: i32) -> (i32, i32, i32) {
    %c0_i32 = arith.constant 0 : i32
    %c0_i32_0 = arith.constant 0 : i32
    %c0_i32_1 = arith.constant 0 : i32
    %c0_i32_2 = arith.constant 0 : i32
    return %c0_i32, %c0_i32_0, %c0_i32_1 : i32, i32, i32
  }
  func.func @transform_13(%arg0: i32) -> (i32, i32) {
    %c0_i32 = arith.constant 0 : i32
    %c0_i32_0 = arith.constant 0 : i32
    %c0_i32_1 = arith.constant 0 : i32
    return %c0_i32, %c0_i32_0 : i32, i32
  }
  func.func @transform_14(%arg0: i32) -> (i32, i32, i32) {
    %c0_i32 = arith.constant 0 : i32
    %c0_i32_0 = arith.constant 0 : i32
    %c0_i32_1 = arith.constant 0 : i32
    return %arg0, %c0_i32, %c0_i32_0 : i32, i32, i32
  }
  func.func @transform_15(%arg0: i32) -> (i32, i32, i32) {
    %c0_i32 = arith.constant 0 : i32
    %c0_i32_0 = arith.constant 0 : i32
    %c0_i32_1 = arith.constant 0 : i32
    return %arg0, %c0_i32, %c0_i32_0 : i32, i32, i32
  }
}

module attributes {stable_mosaic.version = 11 : i64} {
  func.func @_bn_apply_kernel(%arg0: i32, %arg1: memref<1x8x64xf32, #tpu.memory_space<vmem>>, %arg2: memref<8x1xf32, #tpu.memory_space<vmem>>, %arg3: memref<8x1xf32, #tpu.memory_space<vmem>>, %arg4: memref<1x8x64xf32, #tpu.memory_space<vmem>>) attributes {dimension_semantics = [#tpu.dimension_semantics<parallel>], iteration_bounds = array<i64: 2>, scalar_prefetch = 0 : i64, scratch_operands = 0 : i64, tpu.core_type = #tpu.core_type<tc>, window_params = [{transform_indices = @transform_0, window_bounds = array<i64: 1, 8, 64>}, {pipeline_mode = #tpu.pipeline_mode<synchronous>, transform_indices = @transform_1, window_bounds = array<i64: 8, 1>}, {pipeline_mode = #tpu.pipeline_mode<synchronous>, transform_indices = @transform_2, window_bounds = array<i64: 8, 1>}, {transform_indices = @transform_3, window_bounds = array<i64: 1, 8, 64>}]} {
    %c0 = arith.constant 0 : index
    %c0_0 = arith.constant 0 : index
    %c0_1 = arith.constant 0 : index
    %0 = vector.load %arg1[%c0, %c0_0, %c0_1] : memref<1x8x64xf32, #tpu.memory_space<vmem>>, vector<1x8x64xf32>
    %1 = vector.shape_cast %0 : vector<1x8x64xf32> to vector<8x64xf32>
    %c0_2 = arith.constant 0 : index
    %c0_3 = arith.constant 0 : index
    %2 = vector.load %arg2[%c0_2, %c0_3] : memref<8x1xf32, #tpu.memory_space<vmem>>, vector<8x1xf32>
    %3 = vector.broadcast %2 : vector<8x1xf32> to vector<8x64xf32>
    %4 = arith.mulf %1, %3 : vector<8x64xf32>
    %c0_4 = arith.constant 0 : index
    %c0_5 = arith.constant 0 : index
    %5 = vector.load %arg3[%c0_4, %c0_5] : memref<8x1xf32, #tpu.memory_space<vmem>>, vector<8x1xf32>
    %6 = vector.broadcast %5 : vector<8x1xf32> to vector<8x64xf32>
    %7 = arith.addf %4, %6 : vector<8x64xf32>
    %c0_6 = arith.constant 0 : index
    %c0_7 = arith.constant 0 : index
    %c0_8 = arith.constant 0 : index
    %8 = vector.load %arg4[%c0_6, %c0_7, %c0_8] : memref<1x8x64xf32, #tpu.memory_space<vmem>>, vector<1x8x64xf32>
    %9 = vector.shape_cast %8 : vector<1x8x64xf32> to vector<8x64xf32>
    %10 = vector.shape_cast %7 : vector<8x64xf32> to vector<1x8x64xf32>
    tpu.vector_store %arg4[%c0_6, %c0_7, %c0_8], %10 {strides = array<i32>} : memref<1x8x64xf32, #tpu.memory_space<vmem>>, vector<1x8x64xf32>,
    return
  }
  func.func @transform_0(%arg0: i32) -> (i32, i32, i32) {
    %c0_i32 = arith.constant 0 : i32
    %c0_i32_0 = arith.constant 0 : i32
    %c0_i32_1 = arith.constant 0 : i32
    return %arg0, %c0_i32, %c0_i32_0 : i32, i32, i32
  }
  func.func @transform_1(%arg0: i32) -> (i32, i32) {
    %c0_i32 = arith.constant 0 : i32
    %c0_i32_0 = arith.constant 0 : i32
    %c0_i32_1 = arith.constant 0 : i32
    return %c0_i32, %c0_i32_0 : i32, i32
  }
  func.func @transform_2(%arg0: i32) -> (i32, i32) {
    %c0_i32 = arith.constant 0 : i32
    %c0_i32_0 = arith.constant 0 : i32
    %c0_i32_1 = arith.constant 0 : i32
    return %c0_i32, %c0_i32_0 : i32, i32
  }
  func.func @transform_3(%arg0: i32) -> (i32, i32, i32) {
    %c0_i32 = arith.constant 0 : i32
    %c0_i32_0 = arith.constant 0 : i32
    %c0_i32_1 = arith.constant 0 : i32
    return %arg0, %c0_i32, %c0_i32_0 : i32, i32, i32
  }
}

module attributes {stable_mosaic.version = 11 : i64} {
  func.func @_block_kernel(%arg0: i32, %arg1: memref<1x8x256xf32, #tpu.memory_space<vmem>>, %arg2: memref<256x64xf32, #tpu.memory_space<vmem>>, %arg3: memref<3x8x24xf32, #tpu.memory_space<vmem>>, %arg4: memref<8x1xf32, #tpu.memory_space<vmem>>, %arg5: memref<8x8xf32, #tpu.memory_space<vmem>>, %arg6: memref<8x8xf32, #tpu.memory_space<vmem>>, %arg7: memref<8x1xf32, #tpu.memory_space<vmem>>, %arg8: memref<3x8x24xf32, #tpu.memory_space<vmem>>, %arg9: memref<8x1xf32, #tpu.memory_space<vmem>>, %arg10: memref<8x8xf32, #tpu.memory_space<vmem>>, %arg11: memref<8x8xf32, #tpu.memory_space<vmem>>, %arg12: memref<8x8xf32, #tpu.memory_space<vmem>>, %arg13: memref<8x1xf32, #tpu.memory_space<vmem>>, %arg14: memref<3x8x24xf32, #tpu.memory_space<vmem>>, %arg15: memref<8x1xf32, #tpu.memory_space<vmem>>, %arg16: memref<1x8x64xf32, #tpu.memory_space<vmem>>, %arg17: memref<1x8x2xf32, #tpu.memory_space<vmem>>, %arg18: memref<8x82xf32, #tpu.memory_space<vmem>>, %arg19: memref<8x82xf32, #tpu.memory_space<vmem>>) attributes {dimension_semantics = [#tpu.dimension_semantics<parallel>], iteration_bounds = array<i64: 2>, scalar_prefetch = 0 : i64, scratch_operands = 2 : i64, tpu.core_type = #tpu.core_type<tc>, window_params = [{transform_indices = @transform_0, window_bounds = array<i64: 1, 8, 256>}, {pipeline_mode = #tpu.pipeline_mode<synchronous>, transform_indices = @transform_1, window_bounds = array<i64: 256, 64>}, {pipeline_mode = #tpu.pipeline_mode<synchronous>, transform_indices = @transform_2, window_bounds = array<i64: 3, 8, 24>}, {pipeline_mode = #tpu.pipeline_mode<synchronous>, transform_indices = @transform_3, window_bounds = array<i64: 8, 1>}, {pipeline_mode = #tpu.pipeline_mode<synchronous>, transform_indices = @transform_4, window_bounds = array<i64: 8, 8>}, {pipeline_mode = #tpu.pipeline_mode<synchronous>, transform_indices = @transform_5, window_bounds = array<i64: 8, 8>}, {pipeline_mode = #tpu.pipeline_mode<synchronous>, transform_indices = @transform_6, window_bounds = array<i64: 8, 1>}, {pipeline_mode = #tpu.pipeline_mode<synchronous>, transform_indices = @transform_7, window_bounds = array<i64: 3, 8, 24>}, {pipeline_mode = #tpu.pipeline_mode<synchronous>, transform_indices = @transform_8, window_bounds = array<i64: 8, 1>}, {pipeline_mode = #tpu.pipeline_mode<synchronous>, transform_indices = @transform_9, window_bounds = array<i64: 8, 8>}, {pipeline_mode = #tpu.pipeline_mode<synchronous>, transform_indices = @transform_10, window_bounds = array<i64: 8, 8>}, {pipeline_mode = #tpu.pipeline_mode<synchronous>, transform_indices = @transform_11, window_bounds = array<i64: 8, 8>}, {pipeline_mode = #tpu.pipeline_mode<synchronous>, transform_indices = @transform_12, window_bounds = array<i64: 8, 1>}, {pipeline_mode = #tpu.pipeline_mode<synchronous>, transform_indices = @transform_13, window_bounds = array<i64: 3, 8, 24>}, {pipeline_mode = #tpu.pipeline_mode<synchronous>, transform_indices = @transform_14, window_bounds = array<i64: 8, 1>}, {transform_indices = @transform_15, window_bounds = array<i64: 1, 8, 64>}, {transform_indices = @transform_16, window_bounds = array<i64: 1, 8, 2>}]} {
    %cst = arith.constant 0.000000e+00 : f32
    %0 = vector.broadcast %cst : f32 to vector<8x9xf32>
    %c0 = arith.constant 0 : index
    %c0_0 = arith.constant 0 : index
    %1 = vector.load %arg18[%c0, %c0_0] : memref<8x82xf32, #tpu.memory_space<vmem>>, vector<8x9xf32>
    tpu.vector_store %arg18[%c0, %c0_0], %0 {strides = array<i32>} : memref<8x82xf32, #tpu.memory_space<vmem>>, vector<8x9xf32>,
    %cst_1 = arith.constant 0.000000e+00 : f32
    %2 = vector.broadcast %cst_1 : f32 to vector<8x9xf32>
    %c0_2 = arith.constant 0 : index
    %c73 = arith.constant 73 : index
    %3 = vector.load %arg18[%c0_2, %c73] : memref<8x82xf32, #tpu.memory_space<vmem>>, vector<8x9xf32>
    tpu.vector_store %arg18[%c0_2, %c73], %2 {strides = array<i32>} : memref<8x82xf32, #tpu.memory_space<vmem>>, vector<8x9xf32>,
    %cst_3 = arith.constant 0.000000e+00 : f32
    %4 = vector.broadcast %cst_3 : f32 to vector<8x9xf32>
    %c0_4 = arith.constant 0 : index
    %c0_5 = arith.constant 0 : index
    %5 = vector.load %arg19[%c0_4, %c0_5] : memref<8x82xf32, #tpu.memory_space<vmem>>, vector<8x9xf32>
    tpu.vector_store %arg19[%c0_4, %c0_5], %4 {strides = array<i32>} : memref<8x82xf32, #tpu.memory_space<vmem>>, vector<8x9xf32>,
    %cst_6 = arith.constant 0.000000e+00 : f32
    %6 = vector.broadcast %cst_6 : f32 to vector<8x9xf32>
    %c0_7 = arith.constant 0 : index
    %c73_8 = arith.constant 73 : index
    %7 = vector.load %arg19[%c0_7, %c73_8] : memref<8x82xf32, #tpu.memory_space<vmem>>, vector<8x9xf32>
    tpu.vector_store %arg19[%c0_7, %c73_8], %6 {strides = array<i32>} : memref<8x82xf32, #tpu.memory_space<vmem>>, vector<8x9xf32>,
    %c0_9 = arith.constant 0 : index
    %c0_10 = arith.constant 0 : index
    %c0_11 = arith.constant 0 : index
    %8 = vector.load %arg1[%c0_9, %c0_10, %c0_11] : memref<1x8x256xf32, #tpu.memory_space<vmem>>, vector<1x8x256xf32>
    %9 = vector.shape_cast %8 : vector<1x8x256xf32> to vector<8x256xf32>
    %c0_12 = arith.constant 0 : index
    %c0_13 = arith.constant 0 : index
    %10 = vector.load %arg2[%c0_12, %c0_13] : memref<256x64xf32, #tpu.memory_space<vmem>>, vector<256x64xf32>
    %cst_14 = arith.constant dense<0.000000e+00> : vector<8x64xf32>
    %11 = tpu.matmul %9, %10, %cst_14 {dimension_numbers = #tpu.dot_dimension_numbers<[1], [0], [0], [1], [0, 0, 1, 1], [], []>} : vector<8x256xf32>, vector<256x64xf32>, vector<8x64xf32> -> vector<8x64xf32>
    %c0_15 = arith.constant 0 : index
    %c9 = arith.constant 9 : index
    %12 = vector.load %arg18[%c0_15, %c9] : memref<8x82xf32, #tpu.memory_space<vmem>>, vector<8x64xf32>
    tpu.vector_store %arg18[%c0_15, %c9], %11 {strides = array<i32>} : memref<8x82xf32, #tpu.memory_space<vmem>>, vector<8x64xf32>,
    %13 = tpu.iota {dimensions = array<i32: 1>} : vector<1x64xi32>
    %c8_i32 = arith.constant 8 : i32
    %c0_i32 = arith.constant 0 : i32
    %14 = arith.cmpi eq, %c8_i32, %c0_i32 : i32
    %c1_i32 = arith.constant 1 : i32
    %15 = arith.select %14, %c1_i32, %c8_i32 : i32
    %16 = vector.broadcast %15 : i32 to vector<1x64xi32>
    %17 = arith.remsi %13, %16 : vector<1x64xi32>
    %c0_i32_16 = arith.constant 0 : i32
    %18 = vector.broadcast %c0_i32_16 : i32 to vector<1x64xi32>
    %19 = arith.cmpi ne, %17, %18 : vector<1x64xi32>
    %c0_i32_17 = arith.constant 0 : i32
    %20 = vector.broadcast %c0_i32_17 : i32 to vector<1x64xi32>
    %21 = arith.cmpi slt, %17, %20 : vector<1x64xi32>
    %c0_i32_18 = arith.constant 0 : i32
    %22 = arith.cmpi slt, %15, %c0_i32_18 : i32
    %23 = vector.broadcast %22 : i1 to vector<1x64xi1>
    %24 = vector.broadcast %23 : vector<1x64xi1> to vector<1x64xi1>
    %25 = arith.xori %21, %24 : vector<1x64xi1>
    %26 = arith.andi %25, %19 : vector<1x64xi1>
    %27 = vector.broadcast %15 : i32 to vector<1x64xi32>
    %28 = arith.addi %17, %27 : vector<1x64xi32>
    %29 = arith.select %26, %28, %17 : vector<1x64xi1>, vector<1x64xi32>
    %c0_i32_19 = arith.constant 0 : i32
    %30 = vector.broadcast %c0_i32_19 : i32 to vector<1x64xi32>
    %31 = arith.cmpi ne, %29, %30 : vector<1x64xi32>
    %c7_i32 = arith.constant 7 : i32
    %32 = vector.broadcast %c7_i32 : i32 to vector<1x64xi32>
    %33 = arith.cmpi ne, %29, %32 : vector<1x64xi32>
    %c1 = arith.constant 1 : index
    %c0_20 = arith.constant 0 : index
    %c0_21 = arith.constant 0 : index
    %34 = vector.load %arg3[%c1, %c0_20, %c0_21] : memref<3x8x24xf32, #tpu.memory_space<vmem>>, vector<1x8x24xf32>
    %35 = vector.shape_cast %34 : vector<1x8x24xf32> to vector<8x24xf32>
    %c0_22 = arith.constant 0 : index
    %c1_23 = arith.constant 1 : index
    %36 = vector.load %arg18[%c0_22, %c1_23] : memref<8x82xf32, #tpu.memory_space<vmem>>, vector<8x64xf32>
    %c0_24 = arith.constant 0 : index
    %c9_25 = arith.constant 9 : index
    %37 = vector.load %arg18[%c0_24, %c9_25] : memref<8x82xf32, #tpu.memory_space<vmem>>, vector<8x64xf32>
    %c0_26 = arith.constant 0 : index
    %c17 = arith.constant 17 : index
    %38 = vector.load %arg18[%c0_26, %c17] : memref<8x82xf32, #tpu.memory_space<vmem>>, vector<8x64xf32>
    %39 = tpu.concatenate %36, %37, %38 in 0 : vector<8x64xf32>, vector<8x64xf32>, vector<8x64xf32> -> vector<24x64xf32>
    %cst_27 = arith.constant dense<0.000000e+00> : vector<8x64xf32>
    %40 = tpu.matmul %35, %39, %cst_27 {dimension_numbers = #tpu.dot_dimension_numbers<[1], [0], [0], [1], [0, 0, 1, 1], [], []>} : vector<8x24xf32>, vector<24x64xf32>, vector<8x64xf32> -> vector<8x64xf32>
    %c0_28 = arith.constant 0 : index
    %c0_29 = arith.constant 0 : index
    %c0_30 = arith.constant 0 : index
    %41 = vector.load %arg3[%c0_28, %c0_29, %c0_30] : memref<3x8x24xf32, #tpu.memory_space<vmem>>, vector<1x8x24xf32>
    %42 = vector.shape_cast %41 : vector<1x8x24xf32> to vector<8x24xf32>
    %c0_31 = arith.constant 0 : index
    %c0_32 = arith.constant 0 : index
    %43 = vector.load %arg18[%c0_31, %c0_32] : memref<8x82xf32, #tpu.memory_space<vmem>>, vector<8x64xf32>
    %c0_33 = arith.constant 0 : index
    %c8 = arith.constant 8 : index
    %44 = vector.load %arg18[%c0_33, %c8] : memref<8x82xf32, #tpu.memory_space<vmem>>, vector<8x64xf32>
    %c0_34 = arith.constant 0 : index
    %c16 = arith.constant 16 : index
    %45 = vector.load %arg18[%c0_34, %c16] : memref<8x82xf32, #tpu.memory_space<vmem>>, vector<8x64xf32>
    %46 = tpu.concatenate %43, %44, %45 in 0 : vector<8x64xf32>, vector<8x64xf32>, vector<8x64xf32> -> vector<24x64xf32>
    %cst_35 = arith.constant dense<0.000000e+00> : vector<8x64xf32>
    %47 = tpu.matmul %42, %46, %cst_35 {dimension_numbers = #tpu.dot_dimension_numbers<[1], [0], [0], [1], [0, 0, 1, 1], [], []>} : vector<8x24xf32>, vector<24x64xf32>, vector<8x64xf32> -> vector<8x64xf32>
    %c2 = arith.constant 2 : index
    %c0_36 = arith.constant 0 : index
    %c0_37 = arith.constant 0 : index
    %48 = vector.load %arg3[%c2, %c0_36, %c0_37] : memref<3x8x24xf32, #tpu.memory_space<vmem>>, vector<1x8x24xf32>
    %49 = vector.shape_cast %48 : vector<1x8x24xf32> to vector<8x24xf32>
    %c0_38 = arith.constant 0 : index
    %c2_39 = arith.constant 2 : index
    %50 = vector.load %arg18[%c0_38, %c2_39] : memref<8x82xf32, #tpu.memory_space<vmem>>, vector<8x64xf32>
    %c0_40 = arith.constant 0 : index
    %c10 = arith.constant 10 : index
    %51 = vector.load %arg18[%c0_40, %c10] : memref<8x82xf32, #tpu.memory_space<vmem>>, vector<8x64xf32>
    %c0_41 = arith.constant 0 : index
    %c18 = arith.constant 18 : index
    %52 = vector.load %arg18[%c0_41, %c18] : memref<8x82xf32, #tpu.memory_space<vmem>>, vector<8x64xf32>
    %53 = tpu.concatenate %50, %51, %52 in 0 : vector<8x64xf32>, vector<8x64xf32>, vector<8x64xf32> -> vector<24x64xf32>
    %cst_42 = arith.constant dense<0.000000e+00> : vector<8x64xf32>
    %54 = tpu.matmul %49, %53, %cst_42 {dimension_numbers = #tpu.dot_dimension_numbers<[1], [0], [0], [1], [0, 0, 1, 1], [], []>} : vector<8x24xf32>, vector<24x64xf32>, vector<8x64xf32> -> vector<8x64xf32>
    %cst_43 = arith.constant 0.000000e+00 : f32
    %55 = vector.shape_cast %31 : vector<1x64xi1> to vector<1x64xi1>
    %56 = vector.broadcast %55 : vector<1x64xi1> to vector<8x64xi1>
    %57 = vector.broadcast %cst_43 : f32 to vector<8x64xf32>
    %58 = arith.select %56, %47, %57 : vector<8x64xi1>, vector<8x64xf32>
    %59 = arith.addf %40, %58 : vector<8x64xf32>
    %cst_44 = arith.constant 0.000000e+00 : f32
    %60 = vector.shape_cast %33 : vector<1x64xi1> to vector<1x64xi1>
    %61 = vector.broadcast %60 : vector<1x64xi1> to vector<8x64xi1>
    %62 = vector.broadcast %cst_44 : f32 to vector<8x64xf32>
    %63 = arith.select %61, %54, %62 : vector<8x64xi1>, vector<8x64xf32>
    %64 = arith.addf %59, %63 : vector<8x64xf32>
    %c0_45 = arith.constant 0 : index
    %c0_46 = arith.constant 0 : index
    %65 = vector.load %arg4[%c0_45, %c0_46] : memref<8x1xf32, #tpu.memory_space<vmem>>, vector<8x1xf32>
    %66 = vector.broadcast %65 : vector<8x1xf32> to vector<8x64xf32>
    %67 = arith.addf %64, %66 : vector<8x64xf32>
    %cst_47 = arith.constant 0.000000e+00 : f32
    %68 = vector.broadcast %cst_47 : f32 to vector<8x64xf32>
    %69 = arith.cmpf oge, %67, %68 : vector<8x64xf32>
    %cst_48 = arith.constant 0.00999999977 : f32
    %70 = vector.broadcast %cst_48 : f32 to vector<8x64xf32>
    %71 = arith.mulf %70, %67 : vector<8x64xf32>
    %72 = arith.select %69, %67, %71 : vector<8x64xi1>, vector<8x64xf32>
    %c0_49 = arith.constant 0 : index
    %c0_50 = arith.constant 0 : index
    %73 = vector.load %arg5[%c0_49, %c0_50] : memref<8x8xf32, #tpu.memory_space<vmem>>, vector<8x8xf32>
    %c0_51 = arith.constant 0 : index
    %c9_52 = arith.constant 9 : index
    %74 = vector.load %arg18[%c0_51, %c9_52] : memref<8x82xf32, #tpu.memory_space<vmem>>, vector<8x64xf32>
    %cst_53 = arith.constant dense<0.000000e+00> : vector<8x64xf32>
    %75 = tpu.matmul %73, %74, %cst_53 {dimension_numbers = #tpu.dot_dimension_numbers<[1], [0], [0], [1], [0, 0, 1, 1], [], []>} : vector<8x8xf32>, vector<8x64xf32>, vector<8x64xf32> -> vector<8x64xf32>
    %c0_54 = arith.constant 0 : index
    %c0_55 = arith.constant 0 : index
    %76 = vector.load %arg6[%c0_54, %c0_55] : memref<8x8xf32, #tpu.memory_space<vmem>>, vector<8x8xf32>
    %cst_56 = arith.constant dense<0.000000e+00> : vector<8x64xf32>
    %77 = tpu.matmul %76, %72, %cst_56 {dimension_numbers = #tpu.dot_dimension_numbers<[1], [0], [0], [1], [0, 0, 1, 1], [], []>} : vector<8x8xf32>, vector<8x64xf32>, vector<8x64xf32> -> vector<8x64xf32>
    %78 = arith.addf %75, %77 : vector<8x64xf32>
    %c0_57 = arith.constant 0 : index
    %c0_58 = arith.constant 0 : index
    %79 = vector.load %arg7[%c0_57, %c0_58] : memref<8x1xf32, #tpu.memory_space<vmem>>, vector<8x1xf32>
    %80 = vector.broadcast %79 : vector<8x1xf32> to vector<8x64xf32>
    %81 = arith.addf %78, %80 : vector<8x64xf32>
    %c0_59 = arith.constant 0 : index
    %c9_60 = arith.constant 9 : index
    %82 = vector.load %arg19[%c0_59, %c9_60] : memref<8x82xf32, #tpu.memory_space<vmem>>, vector<8x64xf32>
    tpu.vector_store %arg19[%c0_59, %c9_60], %81 {strides = array<i32>} : memref<8x82xf32, #tpu.memory_space<vmem>>, vector<8x64xf32>,
    %c1_61 = arith.constant 1 : index
    %c0_62 = arith.constant 0 : index
    %c0_63 = arith.constant 0 : index
    %83 = vector.load %arg8[%c1_61, %c0_62, %c0_63] : memref<3x8x24xf32, #tpu.memory_space<vmem>>, vector<1x8x24xf32>
    %84 = vector.shape_cast %83 : vector<1x8x24xf32> to vector<8x24xf32>
    %c0_64 = arith.constant 0 : index
    %c1_65 = arith.constant 1 : index
    %85 = vector.load %arg19[%c0_64, %c1_65] : memref<8x82xf32, #tpu.memory_space<vmem>>, vector<8x64xf32>
    %c0_66 = arith.constant 0 : index
    %c9_67 = arith.constant 9 : index
    %86 = vector.load %arg19[%c0_66, %c9_67] : memref<8x82xf32, #tpu.memory_space<vmem>>, vector<8x64xf32>
    %c0_68 = arith.constant 0 : index
    %c17_69 = arith.constant 17 : index
    %87 = vector.load %arg19[%c0_68, %c17_69] : memref<8x82xf32, #tpu.memory_space<vmem>>, vector<8x64xf32>
    %88 = tpu.concatenate %85, %86, %87 in 0 : vector<8x64xf32>, vector<8x64xf32>, vector<8x64xf32> -> vector<24x64xf32>
    %cst_70 = arith.constant dense<0.000000e+00> : vector<8x64xf32>
    %89 = tpu.matmul %84, %88, %cst_70 {dimension_numbers = #tpu.dot_dimension_numbers<[1], [0], [0], [1], [0, 0, 1, 1], [], []>} : vector<8x24xf32>, vector<24x64xf32>, vector<8x64xf32> -> vector<8x64xf32>
    %c0_71 = arith.constant 0 : index
    %c0_72 = arith.constant 0 : index
    %c0_73 = arith.constant 0 : index
    %90 = vector.load %arg8[%c0_71, %c0_72, %c0_73] : memref<3x8x24xf32, #tpu.memory_space<vmem>>, vector<1x8x24xf32>
    %91 = vector.shape_cast %90 : vector<1x8x24xf32> to vector<8x24xf32>
    %c0_74 = arith.constant 0 : index
    %c0_75 = arith.constant 0 : index
    %92 = vector.load %arg19[%c0_74, %c0_75] : memref<8x82xf32, #tpu.memory_space<vmem>>, vector<8x64xf32>
    %c0_76 = arith.constant 0 : index
    %c8_77 = arith.constant 8 : index
    %93 = vector.load %arg19[%c0_76, %c8_77] : memref<8x82xf32, #tpu.memory_space<vmem>>, vector<8x64xf32>
    %c0_78 = arith.constant 0 : index
    %c16_79 = arith.constant 16 : index
    %94 = vector.load %arg19[%c0_78, %c16_79] : memref<8x82xf32, #tpu.memory_space<vmem>>, vector<8x64xf32>
    %95 = tpu.concatenate %92, %93, %94 in 0 : vector<8x64xf32>, vector<8x64xf32>, vector<8x64xf32> -> vector<24x64xf32>
    %cst_80 = arith.constant dense<0.000000e+00> : vector<8x64xf32>
    %96 = tpu.matmul %91, %95, %cst_80 {dimension_numbers = #tpu.dot_dimension_numbers<[1], [0], [0], [1], [0, 0, 1, 1], [], []>} : vector<8x24xf32>, vector<24x64xf32>, vector<8x64xf32> -> vector<8x64xf32>
    %c2_81 = arith.constant 2 : index
    %c0_82 = arith.constant 0 : index
    %c0_83 = arith.constant 0 : index
    %97 = vector.load %arg8[%c2_81, %c0_82, %c0_83] : memref<3x8x24xf32, #tpu.memory_space<vmem>>, vector<1x8x24xf32>
    %98 = vector.shape_cast %97 : vector<1x8x24xf32> to vector<8x24xf32>
    %c0_84 = arith.constant 0 : index
    %c2_85 = arith.constant 2 : index
    %99 = vector.load %arg19[%c0_84, %c2_85] : memref<8x82xf32, #tpu.memory_space<vmem>>, vector<8x64xf32>
    %c0_86 = arith.constant 0 : index
    %c10_87 = arith.constant 10 : index
    %100 = vector.load %arg19[%c0_86, %c10_87] : memref<8x82xf32, #tpu.memory_space<vmem>>, vector<8x64xf32>
    %c0_88 = arith.constant 0 : index
    %c18_89 = arith.constant 18 : index
    %101 = vector.load %arg19[%c0_88, %c18_89] : memref<8x82xf32, #tpu.memory_space<vmem>>, vector<8x64xf32>
    %102 = tpu.concatenate %99, %100, %101 in 0 : vector<8x64xf32>, vector<8x64xf32>, vector<8x64xf32> -> vector<24x64xf32>
    %cst_90 = arith.constant dense<0.000000e+00> : vector<8x64xf32>
    %103 = tpu.matmul %98, %102, %cst_90 {dimension_numbers = #tpu.dot_dimension_numbers<[1], [0], [0], [1], [0, 0, 1, 1], [], []>} : vector<8x24xf32>, vector<24x64xf32>, vector<8x64xf32> -> vector<8x64xf32>
    %cst_91 = arith.constant 0.000000e+00 : f32
    %104 = vector.shape_cast %31 : vector<1x64xi1> to vector<1x64xi1>
    %105 = vector.broadcast %104 : vector<1x64xi1> to vector<8x64xi1>
    %106 = vector.broadcast %cst_91 : f32 to vector<8x64xf32>
    %107 = arith.select %105, %96, %106 : vector<8x64xi1>, vector<8x64xf32>
    %108 = arith.addf %89, %107 : vector<8x64xf32>
    %cst_92 = arith.constant 0.000000e+00 : f32
    %109 = vector.shape_cast %33 : vector<1x64xi1> to vector<1x64xi1>
    %110 = vector.broadcast %109 : vector<1x64xi1> to vector<8x64xi1>
    %111 = vector.broadcast %cst_92 : f32 to vector<8x64xf32>
    %112 = arith.select %110, %103, %111 : vector<8x64xi1>, vector<8x64xf32>
    %113 = arith.addf %108, %112 : vector<8x64xf32>
    %c0_93 = arith.constant 0 : index
    %c0_94 = arith.constant 0 : index
    %114 = vector.load %arg9[%c0_93, %c0_94] : memref<8x1xf32, #tpu.memory_space<vmem>>, vector<8x1xf32>
    %115 = vector.broadcast %114 : vector<8x1xf32> to vector<8x64xf32>
    %116 = arith.addf %113, %115 : vector<8x64xf32>
    %cst_95 = arith.constant 0.000000e+00 : f32
    %117 = vector.broadcast %cst_95 : f32 to vector<8x64xf32>
    %118 = arith.cmpf oge, %116, %117 : vector<8x64xf32>
    %cst_96 = arith.constant 0.00999999977 : f32
    %119 = vector.broadcast %cst_96 : f32 to vector<8x64xf32>
    %120 = arith.mulf %119, %116 : vector<8x64xf32>
    %121 = arith.select %118, %116, %120 : vector<8x64xi1>, vector<8x64xf32>
    %c0_97 = arith.constant 0 : index
    %c0_98 = arith.constant 0 : index
    %122 = vector.load %arg10[%c0_97, %c0_98] : memref<8x8xf32, #tpu.memory_space<vmem>>, vector<8x8xf32>
    %c0_99 = arith.constant 0 : index
    %c9_100 = arith.constant 9 : index
    %123 = vector.load %arg18[%c0_99, %c9_100] : memref<8x82xf32, #tpu.memory_space<vmem>>, vector<8x64xf32>
    %cst_101 = arith.constant dense<0.000000e+00> : vector<8x64xf32>
    %124 = tpu.matmul %122, %123, %cst_101 {dimension_numbers = #tpu.dot_dimension_numbers<[1], [0], [0], [1], [0, 0, 1, 1], [], []>} : vector<8x8xf32>, vector<8x64xf32>, vector<8x64xf32> -> vector<8x64xf32>
    %c0_102 = arith.constant 0 : index
    %c0_103 = arith.constant 0 : index
    %125 = vector.load %arg11[%c0_102, %c0_103] : memref<8x8xf32, #tpu.memory_space<vmem>>, vector<8x8xf32>
    %cst_104 = arith.constant dense<0.000000e+00> : vector<8x64xf32>
    %126 = tpu.matmul %125, %72, %cst_104 {dimension_numbers = #tpu.dot_dimension_numbers<[1], [0], [0], [1], [0, 0, 1, 1], [], []>} : vector<8x8xf32>, vector<8x64xf32>, vector<8x64xf32> -> vector<8x64xf32>
    %127 = arith.addf %124, %126 : vector<8x64xf32>
    %c0_105 = arith.constant 0 : index
    %c0_106 = arith.constant 0 : index
    %128 = vector.load %arg12[%c0_105, %c0_106] : memref<8x8xf32, #tpu.memory_space<vmem>>, vector<8x8xf32>
    %cst_107 = arith.constant dense<0.000000e+00> : vector<8x64xf32>
    %129 = tpu.matmul %128, %121, %cst_107 {dimension_numbers = #tpu.dot_dimension_numbers<[1], [0], [0], [1], [0, 0, 1, 1], [], []>} : vector<8x8xf32>, vector<8x64xf32>, vector<8x64xf32> -> vector<8x64xf32>
    %130 = arith.addf %127, %129 : vector<8x64xf32>
    %c0_108 = arith.constant 0 : index
    %c0_109 = arith.constant 0 : index
    %131 = vector.load %arg13[%c0_108, %c0_109] : memref<8x1xf32, #tpu.memory_space<vmem>>, vector<8x1xf32>
    %132 = vector.broadcast %131 : vector<8x1xf32> to vector<8x64xf32>
    %133 = arith.addf %130, %132 : vector<8x64xf32>
    %c0_110 = arith.constant 0 : index
    %c9_111 = arith.constant 9 : index
    %134 = vector.load %arg19[%c0_110, %c9_111] : memref<8x82xf32, #tpu.memory_space<vmem>>, vector<8x64xf32>
    tpu.vector_store %arg19[%c0_110, %c9_111], %133 {strides = array<i32>} : memref<8x82xf32, #tpu.memory_space<vmem>>, vector<8x64xf32>,
    %c1_112 = arith.constant 1 : index
    %c0_113 = arith.constant 0 : index
    %c0_114 = arith.constant 0 : index
    %135 = vector.load %arg14[%c1_112, %c0_113, %c0_114] : memref<3x8x24xf32, #tpu.memory_space<vmem>>, vector<1x8x24xf32>
    %136 = vector.shape_cast %135 : vector<1x8x24xf32> to vector<8x24xf32>
    %c0_115 = arith.constant 0 : index
    %c1_116 = arith.constant 1 : index
    %137 = vector.load %arg19[%c0_115, %c1_116] : memref<8x82xf32, #tpu.memory_space<vmem>>, vector<8x64xf32>
    %c0_117 = arith.constant 0 : index
    %c9_118 = arith.constant 9 : index
    %138 = vector.load %arg19[%c0_117, %c9_118] : memref<8x82xf32, #tpu.memory_space<vmem>>, vector<8x64xf32>
    %c0_119 = arith.constant 0 : index
    %c17_120 = arith.constant 17 : index
    %139 = vector.load %arg19[%c0_119, %c17_120] : memref<8x82xf32, #tpu.memory_space<vmem>>, vector<8x64xf32>
    %140 = tpu.concatenate %137, %138, %139 in 0 : vector<8x64xf32>, vector<8x64xf32>, vector<8x64xf32> -> vector<24x64xf32>
    %cst_121 = arith.constant dense<0.000000e+00> : vector<8x64xf32>
    %141 = tpu.matmul %136, %140, %cst_121 {dimension_numbers = #tpu.dot_dimension_numbers<[1], [0], [0], [1], [0, 0, 1, 1], [], []>} : vector<8x24xf32>, vector<24x64xf32>, vector<8x64xf32> -> vector<8x64xf32>
    %c0_122 = arith.constant 0 : index
    %c0_123 = arith.constant 0 : index
    %c0_124 = arith.constant 0 : index
    %142 = vector.load %arg14[%c0_122, %c0_123, %c0_124] : memref<3x8x24xf32, #tpu.memory_space<vmem>>, vector<1x8x24xf32>
    %143 = vector.shape_cast %142 : vector<1x8x24xf32> to vector<8x24xf32>
    %c0_125 = arith.constant 0 : index
    %c0_126 = arith.constant 0 : index
    %144 = vector.load %arg19[%c0_125, %c0_126] : memref<8x82xf32, #tpu.memory_space<vmem>>, vector<8x64xf32>
    %c0_127 = arith.constant 0 : index
    %c8_128 = arith.constant 8 : index
    %145 = vector.load %arg19[%c0_127, %c8_128] : memref<8x82xf32, #tpu.memory_space<vmem>>, vector<8x64xf32>
    %c0_129 = arith.constant 0 : index
    %c16_130 = arith.constant 16 : index
    %146 = vector.load %arg19[%c0_129, %c16_130] : memref<8x82xf32, #tpu.memory_space<vmem>>, vector<8x64xf32>
    %147 = tpu.concatenate %144, %145, %146 in 0 : vector<8x64xf32>, vector<8x64xf32>, vector<8x64xf32> -> vector<24x64xf32>
    %cst_131 = arith.constant dense<0.000000e+00> : vector<8x64xf32>
    %148 = tpu.matmul %143, %147, %cst_131 {dimension_numbers = #tpu.dot_dimension_numbers<[1], [0], [0], [1], [0, 0, 1, 1], [], []>} : vector<8x24xf32>, vector<24x64xf32>, vector<8x64xf32> -> vector<8x64xf32>
    %c2_132 = arith.constant 2 : index
    %c0_133 = arith.constant 0 : index
    %c0_134 = arith.constant 0 : index
    %149 = vector.load %arg14[%c2_132, %c0_133, %c0_134] : memref<3x8x24xf32, #tpu.memory_space<vmem>>, vector<1x8x24xf32>
    %150 = vector.shape_cast %149 : vector<1x8x24xf32> to vector<8x24xf32>
    %c0_135 = arith.constant 0 : index
    %c2_136 = arith.constant 2 : index
    %151 = vector.load %arg19[%c0_135, %c2_136] : memref<8x82xf32, #tpu.memory_space<vmem>>, vector<8x64xf32>
    %c0_137 = arith.constant 0 : index
    %c10_138 = arith.constant 10 : index
    %152 = vector.load %arg19[%c0_137, %c10_138] : memref<8x82xf32, #tpu.memory_space<vmem>>, vector<8x64xf32>
    %c0_139 = arith.constant 0 : index
    %c18_140 = arith.constant 18 : index
    %153 = vector.load %arg19[%c0_139, %c18_140] : memref<8x82xf32, #tpu.memory_space<vmem>>, vector<8x64xf32>
    %154 = tpu.concatenate %151, %152, %153 in 0 : vector<8x64xf32>, vector<8x64xf32>, vector<8x64xf32> -> vector<24x64xf32>
    %cst_141 = arith.constant dense<0.000000e+00> : vector<8x64xf32>
    %155 = tpu.matmul %150, %154, %cst_141 {dimension_numbers = #tpu.dot_dimension_numbers<[1], [0], [0], [1], [0, 0, 1, 1], [], []>} : vector<8x24xf32>, vector<24x64xf32>, vector<8x64xf32> -> vector<8x64xf32>
    %cst_142 = arith.constant 0.000000e+00 : f32
    %156 = vector.shape_cast %31 : vector<1x64xi1> to vector<1x64xi1>
    %157 = vector.broadcast %156 : vector<1x64xi1> to vector<8x64xi1>
    %158 = vector.broadcast %cst_142 : f32 to vector<8x64xf32>
    %159 = arith.select %157, %148, %158 : vector<8x64xi1>, vector<8x64xf32>
    %160 = arith.addf %141, %159 : vector<8x64xf32>
    %cst_143 = arith.constant 0.000000e+00 : f32
    %161 = vector.shape_cast %33 : vector<1x64xi1> to vector<1x64xi1>
    %162 = vector.broadcast %161 : vector<1x64xi1> to vector<8x64xi1>
    %163 = vector.broadcast %cst_143 : f32 to vector<8x64xf32>
    %164 = arith.select %162, %155, %163 : vector<8x64xi1>, vector<8x64xf32>
    %165 = arith.addf %160, %164 : vector<8x64xf32>
    %c0_144 = arith.constant 0 : index
    %c0_145 = arith.constant 0 : index
    %166 = vector.load %arg15[%c0_144, %c0_145] : memref<8x1xf32, #tpu.memory_space<vmem>>, vector<8x1xf32>
    %167 = vector.broadcast %166 : vector<8x1xf32> to vector<8x64xf32>
    %168 = arith.addf %165, %167 : vector<8x64xf32>
    %cst_146 = arith.constant 0.000000e+00 : f32
    %169 = vector.broadcast %cst_146 : f32 to vector<8x64xf32>
    %170 = arith.cmpf oge, %168, %169 : vector<8x64xf32>
    %cst_147 = arith.constant 0.00999999977 : f32
    %171 = vector.broadcast %cst_147 : f32 to vector<8x64xf32>
    %172 = arith.mulf %171, %168 : vector<8x64xf32>
    %173 = arith.select %170, %168, %172 : vector<8x64xi1>, vector<8x64xf32>
    %c0_148 = arith.constant 0 : index
    %c0_149 = arith.constant 0 : index
    %c0_150 = arith.constant 0 : index
    %174 = vector.load %arg16[%c0_148, %c0_149, %c0_150] : memref<1x8x64xf32, #tpu.memory_space<vmem>>, vector<1x8x64xf32>
    %175 = vector.shape_cast %174 : vector<1x8x64xf32> to vector<8x64xf32>
    %176 = vector.shape_cast %173 : vector<8x64xf32> to vector<1x8x64xf32>
    tpu.vector_store %arg16[%c0_148, %c0_149, %c0_150], %176 {strides = array<i32>} : memref<1x8x64xf32, #tpu.memory_space<vmem>>, vector<1x8x64xf32>,
    %cst_151 = arith.constant dense<0.000000e+00> : vector<8xf32>
    %177 = vector.multi_reduction <add>, %173, %cst_151 [1] : vector<8x64xf32> to vector<8xf32>
    %178 = vector.shape_cast %177 : vector<8xf32> to vector<8x1xf32>
    %179 = arith.mulf %173, %173 : vector<8x64xf32>
    %cst_152 = arith.constant dense<0.000000e+00> : vector<8xf32>
    %180 = vector.multi_reduction <add>, %179, %cst_152 [1] : vector<8x64xf32> to vector<8xf32>
    %181 = vector.shape_cast %180 : vector<8xf32> to vector<8x1xf32>
    %182 = tpu.concatenate %178, %181 in 1 : vector<8x1xf32>, vector<8x1xf32> -> vector<8x2xf32>
    %c0_153 = arith.constant 0 : index
    %c0_154 = arith.constant 0 : index
    %c0_155 = arith.constant 0 : index
    %183 = vector.load %arg17[%c0_153, %c0_154, %c0_155] : memref<1x8x2xf32, #tpu.memory_space<vmem>>, vector<1x8x2xf32>
    %184 = vector.shape_cast %183 : vector<1x8x2xf32> to vector<8x2xf32>
    %185 = vector.shape_cast %182 : vector<8x2xf32> to vector<1x8x2xf32>
    tpu.vector_store %arg17[%c0_153, %c0_154, %c0_155], %185 {strides = array<i32>} : memref<1x8x2xf32, #tpu.memory_space<vmem>>, vector<1x8x2xf32>,
    return
  }
  func.func @transform_0(%arg0: i32) -> (i32, i32, i32) {
    %c0_i32 = arith.constant 0 : i32
    %c0_i32_0 = arith.constant 0 : i32
    %c0_i32_1 = arith.constant 0 : i32
    return %arg0, %c0_i32, %c0_i32_0 : i32, i32, i32
  }
  func.func @transform_1(%arg0: i32) -> (i32, i32) {
    %c0_i32 = arith.constant 0 : i32
    %c0_i32_0 = arith.constant 0 : i32
    %c0_i32_1 = arith.constant 0 : i32
    return %c0_i32, %c0_i32_0 : i32, i32
  }
  func.func @transform_2(%arg0: i32) -> (i32, i32, i32) {
    %c0_i32 = arith.constant 0 : i32
    %c0_i32_0 = arith.constant 0 : i32
    %c0_i32_1 = arith.constant 0 : i32
    %c0_i32_2 = arith.constant 0 : i32
    return %c0_i32, %c0_i32_0, %c0_i32_1 : i32, i32, i32
  }
  func.func @transform_3(%arg0: i32) -> (i32, i32) {
    %c0_i32 = arith.constant 0 : i32
    %c0_i32_0 = arith.constant 0 : i32
    %c0_i32_1 = arith.constant 0 : i32
    return %c0_i32, %c0_i32_0 : i32, i32
  }
  func.func @transform_4(%arg0: i32) -> (i32, i32) {
    %c0_i32 = arith.constant 0 : i32
    %c0_i32_0 = arith.constant 0 : i32
    %c0_i32_1 = arith.constant 0 : i32
    return %c0_i32, %c0_i32_0 : i32, i32
  }
  func.func @transform_5(%arg0: i32) -> (i32, i32) {
    %c0_i32 = arith.constant 0 : i32
    %c0_i32_0 = arith.constant 0 : i32
    %c0_i32_1 = arith.constant 0 : i32
    return %c0_i32, %c0_i32_0 : i32, i32
  }
  func.func @transform_6(%arg0: i32) -> (i32, i32) {
    %c0_i32 = arith.constant 0 : i32
    %c0_i32_0 = arith.constant 0 : i32
    %c0_i32_1 = arith.constant 0 : i32
    return %c0_i32, %c0_i32_0 : i32, i32
  }
  func.func @transform_7(%arg0: i32) -> (i32, i32, i32) {
    %c0_i32 = arith.constant 0 : i32
    %c0_i32_0 = arith.constant 0 : i32
    %c0_i32_1 = arith.constant 0 : i32
    %c0_i32_2 = arith.constant 0 : i32
    return %c0_i32, %c0_i32_0, %c0_i32_1 : i32, i32, i32
  }
  func.func @transform_8(%arg0: i32) -> (i32, i32) {
    %c0_i32 = arith.constant 0 : i32
    %c0_i32_0 = arith.constant 0 : i32
    %c0_i32_1 = arith.constant 0 : i32
    return %c0_i32, %c0_i32_0 : i32, i32
  }
  func.func @transform_9(%arg0: i32) -> (i32, i32) {
    %c0_i32 = arith.constant 0 : i32
    %c0_i32_0 = arith.constant 0 : i32
    %c0_i32_1 = arith.constant 0 : i32
    return %c0_i32, %c0_i32_0 : i32, i32
  }
  func.func @transform_10(%arg0: i32) -> (i32, i32) {
    %c0_i32 = arith.constant 0 : i32
    %c0_i32_0 = arith.constant 0 : i32
    %c0_i32_1 = arith.constant 0 : i32
    return %c0_i32, %c0_i32_0 : i32, i32
  }
  func.func @transform_11(%arg0: i32) -> (i32, i32) {
    %c0_i32 = arith.constant 0 : i32
    %c0_i32_0 = arith.constant 0 : i32
    %c0_i32_1 = arith.constant 0 : i32
    return %c0_i32, %c0_i32_0 : i32, i32
  }
  func.func @transform_12(%arg0: i32) -> (i32, i32) {
    %c0_i32 = arith.constant 0 : i32
    %c0_i32_0 = arith.constant 0 : i32
    %c0_i32_1 = arith.constant 0 : i32
    return %c0_i32, %c0_i32_0 : i32, i32
  }
  func.func @transform_13(%arg0: i32) -> (i32, i32, i32) {
    %c0_i32 = arith.constant 0 : i32
    %c0_i32_0 = arith.constant 0 : i32
    %c0_i32_1 = arith.constant 0 : i32
    %c0_i32_2 = arith.constant 0 : i32
    return %c0_i32, %c0_i32_0, %c0_i32_1 : i32, i32, i32
  }
  func.func @transform_14(%arg0: i32) -> (i32, i32) {
    %c0_i32 = arith.constant 0 : i32
    %c0_i32_0 = arith.constant 0 : i32
    %c0_i32_1 = arith.constant 0 : i32
    return %c0_i32, %c0_i32_0 : i32, i32
  }
  func.func @transform_15(%arg0: i32) -> (i32, i32, i32) {
    %c0_i32 = arith.constant 0 : i32
    %c0_i32_0 = arith.constant 0 : i32
    %c0_i32_1 = arith.constant 0 : i32
    return %arg0, %c0_i32, %c0_i32_0 : i32, i32, i32
  }
  func.func @transform_16(%arg0: i32) -> (i32, i32, i32) {
    %c0_i32 = arith.constant 0 : i32
    %c0_i32_0 = arith.constant 0 : i32
    %c0_i32_1 = arith.constant 0 : i32
    return %arg0, %c0_i32, %c0_i32_0 : i32, i32, i32
  }
}

module attributes {stable_mosaic.version = 11 : i64} {
  func.func @_bn_apply_kernel(%arg0: i32, %arg1: memref<1x8x16xf32, #tpu.memory_space<vmem>>, %arg2: memref<8x1xf32, #tpu.memory_space<vmem>>, %arg3: memref<8x1xf32, #tpu.memory_space<vmem>>, %arg4: memref<1x8x16xf32, #tpu.memory_space<vmem>>) attributes {dimension_semantics = [#tpu.dimension_semantics<parallel>], iteration_bounds = array<i64: 2>, scalar_prefetch = 0 : i64, scratch_operands = 0 : i64, tpu.core_type = #tpu.core_type<tc>, window_params = [{transform_indices = @transform_0, window_bounds = array<i64: 1, 8, 16>}, {pipeline_mode = #tpu.pipeline_mode<synchronous>, transform_indices = @transform_1, window_bounds = array<i64: 8, 1>}, {pipeline_mode = #tpu.pipeline_mode<synchronous>, transform_indices = @transform_2, window_bounds = array<i64: 8, 1>}, {transform_indices = @transform_3, window_bounds = array<i64: 1, 8, 16>}]} {
    %c0 = arith.constant 0 : index
    %c0_0 = arith.constant 0 : index
    %c0_1 = arith.constant 0 : index
    %0 = vector.load %arg1[%c0, %c0_0, %c0_1] : memref<1x8x16xf32, #tpu.memory_space<vmem>>, vector<1x8x16xf32>
    %1 = vector.shape_cast %0 : vector<1x8x16xf32> to vector<8x16xf32>
    %c0_2 = arith.constant 0 : index
    %c0_3 = arith.constant 0 : index
    %2 = vector.load %arg2[%c0_2, %c0_3] : memref<8x1xf32, #tpu.memory_space<vmem>>, vector<8x1xf32>
    %3 = vector.broadcast %2 : vector<8x1xf32> to vector<8x16xf32>
    %4 = arith.mulf %1, %3 : vector<8x16xf32>
    %c0_4 = arith.constant 0 : index
    %c0_5 = arith.constant 0 : index
    %5 = vector.load %arg3[%c0_4, %c0_5] : memref<8x1xf32, #tpu.memory_space<vmem>>, vector<8x1xf32>
    %6 = vector.broadcast %5 : vector<8x1xf32> to vector<8x16xf32>
    %7 = arith.addf %4, %6 : vector<8x16xf32>
    %c0_6 = arith.constant 0 : index
    %c0_7 = arith.constant 0 : index
    %c0_8 = arith.constant 0 : index
    %8 = vector.load %arg4[%c0_6, %c0_7, %c0_8] : memref<1x8x16xf32, #tpu.memory_space<vmem>>, vector<1x8x16xf32>
    %9 = vector.shape_cast %8 : vector<1x8x16xf32> to vector<8x16xf32>
    %10 = vector.shape_cast %7 : vector<8x16xf32> to vector<1x8x16xf32>
    tpu.vector_store %arg4[%c0_6, %c0_7, %c0_8], %10 {strides = array<i32>} : memref<1x8x16xf32, #tpu.memory_space<vmem>>, vector<1x8x16xf32>,
    return
  }
  func.func @transform_0(%arg0: i32) -> (i32, i32, i32) {
    %c0_i32 = arith.constant 0 : i32
    %c0_i32_0 = arith.constant 0 : i32
    %c0_i32_1 = arith.constant 0 : i32
    return %arg0, %c0_i32, %c0_i32_0 : i32, i32, i32
  }
  func.func @transform_1(%arg0: i32) -> (i32, i32) {
    %c0_i32 = arith.constant 0 : i32
    %c0_i32_0 = arith.constant 0 : i32
    %c0_i32_1 = arith.constant 0 : i32
    return %c0_i32, %c0_i32_0 : i32, i32
  }
  func.func @transform_2(%arg0: i32) -> (i32, i32) {
    %c0_i32 = arith.constant 0 : i32
    %c0_i32_0 = arith.constant 0 : i32
    %c0_i32_1 = arith.constant 0 : i32
    return %c0_i32, %c0_i32_0 : i32, i32
  }
  func.func @transform_3(%arg0: i32) -> (i32, i32, i32) {
    %c0_i32 = arith.constant 0 : i32
    %c0_i32_0 = arith.constant 0 : i32
    %c0_i32_1 = arith.constant 0 : i32
    return %arg0, %c0_i32, %c0_i32_0 : i32, i32, i32
  }
}

module attributes {stable_mosaic.version = 11 : i64} {
  func.func @_block_kernel(%arg0: i32, %arg1: memref<1x8x64xf32, #tpu.memory_space<vmem>>, %arg2: memref<64x16xf32, #tpu.memory_space<vmem>>, %arg3: memref<3x8x24xf32, #tpu.memory_space<vmem>>, %arg4: memref<8x1xf32, #tpu.memory_space<vmem>>, %arg5: memref<8x8xf32, #tpu.memory_space<vmem>>, %arg6: memref<8x8xf32, #tpu.memory_space<vmem>>, %arg7: memref<8x1xf32, #tpu.memory_space<vmem>>, %arg8: memref<3x8x24xf32, #tpu.memory_space<vmem>>, %arg9: memref<8x1xf32, #tpu.memory_space<vmem>>, %arg10: memref<8x8xf32, #tpu.memory_space<vmem>>, %arg11: memref<8x8xf32, #tpu.memory_space<vmem>>, %arg12: memref<8x8xf32, #tpu.memory_space<vmem>>, %arg13: memref<8x1xf32, #tpu.memory_space<vmem>>, %arg14: memref<3x8x24xf32, #tpu.memory_space<vmem>>, %arg15: memref<8x1xf32, #tpu.memory_space<vmem>>, %arg16: memref<1x8x16xf32, #tpu.memory_space<vmem>>, %arg17: memref<1x8x2xf32, #tpu.memory_space<vmem>>, %arg18: memref<8x26xf32, #tpu.memory_space<vmem>>, %arg19: memref<8x26xf32, #tpu.memory_space<vmem>>) attributes {dimension_semantics = [#tpu.dimension_semantics<parallel>], iteration_bounds = array<i64: 2>, scalar_prefetch = 0 : i64, scratch_operands = 2 : i64, tpu.core_type = #tpu.core_type<tc>, window_params = [{transform_indices = @transform_0, window_bounds = array<i64: 1, 8, 64>}, {pipeline_mode = #tpu.pipeline_mode<synchronous>, transform_indices = @transform_1, window_bounds = array<i64: 64, 16>}, {pipeline_mode = #tpu.pipeline_mode<synchronous>, transform_indices = @transform_2, window_bounds = array<i64: 3, 8, 24>}, {pipeline_mode = #tpu.pipeline_mode<synchronous>, transform_indices = @transform_3, window_bounds = array<i64: 8, 1>}, {pipeline_mode = #tpu.pipeline_mode<synchronous>, transform_indices = @transform_4, window_bounds = array<i64: 8, 8>}, {pipeline_mode = #tpu.pipeline_mode<synchronous>, transform_indices = @transform_5, window_bounds = array<i64: 8, 8>}, {pipeline_mode = #tpu.pipeline_mode<synchronous>, transform_indices = @transform_6, window_bounds = array<i64: 8, 1>}, {pipeline_mode = #tpu.pipeline_mode<synchronous>, transform_indices = @transform_7, window_bounds = array<i64: 3, 8, 24>}, {pipeline_mode = #tpu.pipeline_mode<synchronous>, transform_indices = @transform_8, window_bounds = array<i64: 8, 1>}, {pipeline_mode = #tpu.pipeline_mode<synchronous>, transform_indices = @transform_9, window_bounds = array<i64: 8, 8>}, {pipeline_mode = #tpu.pipeline_mode<synchronous>, transform_indices = @transform_10, window_bounds = array<i64: 8, 8>}, {pipeline_mode = #tpu.pipeline_mode<synchronous>, transform_indices = @transform_11, window_bounds = array<i64: 8, 8>}, {pipeline_mode = #tpu.pipeline_mode<synchronous>, transform_indices = @transform_12, window_bounds = array<i64: 8, 1>}, {pipeline_mode = #tpu.pipeline_mode<synchronous>, transform_indices = @transform_13, window_bounds = array<i64: 3, 8, 24>}, {pipeline_mode = #tpu.pipeline_mode<synchronous>, transform_indices = @transform_14, window_bounds = array<i64: 8, 1>}, {transform_indices = @transform_15, window_bounds = array<i64: 1, 8, 16>}, {transform_indices = @transform_16, window_bounds = array<i64: 1, 8, 2>}]} {
    %cst = arith.constant 0.000000e+00 : f32
    %0 = vector.broadcast %cst : f32 to vector<8x5xf32>
    %c0 = arith.constant 0 : index
    %c0_0 = arith.constant 0 : index
    %1 = vector.load %arg18[%c0, %c0_0] : memref<8x26xf32, #tpu.memory_space<vmem>>, vector<8x5xf32>
    tpu.vector_store %arg18[%c0, %c0_0], %0 {strides = array<i32>} : memref<8x26xf32, #tpu.memory_space<vmem>>, vector<8x5xf32>,
    %cst_1 = arith.constant 0.000000e+00 : f32
    %2 = vector.broadcast %cst_1 : f32 to vector<8x5xf32>
    %c0_2 = arith.constant 0 : index
    %c21 = arith.constant 21 : index
    %3 = vector.load %arg18[%c0_2, %c21] : memref<8x26xf32, #tpu.memory_space<vmem>>, vector<8x5xf32>
    tpu.vector_store %arg18[%c0_2, %c21], %2 {strides = array<i32>} : memref<8x26xf32, #tpu.memory_space<vmem>>, vector<8x5xf32>,
    %cst_3 = arith.constant 0.000000e+00 : f32
    %4 = vector.broadcast %cst_3 : f32 to vector<8x5xf32>
    %c0_4 = arith.constant 0 : index
    %c0_5 = arith.constant 0 : index
    %5 = vector.load %arg19[%c0_4, %c0_5] : memref<8x26xf32, #tpu.memory_space<vmem>>, vector<8x5xf32>
    tpu.vector_store %arg19[%c0_4, %c0_5], %4 {strides = array<i32>} : memref<8x26xf32, #tpu.memory_space<vmem>>, vector<8x5xf32>,
    %cst_6 = arith.constant 0.000000e+00 : f32
    %6 = vector.broadcast %cst_6 : f32 to vector<8x5xf32>
    %c0_7 = arith.constant 0 : index
    %c21_8 = arith.constant 21 : index
    %7 = vector.load %arg19[%c0_7, %c21_8] : memref<8x26xf32, #tpu.memory_space<vmem>>, vector<8x5xf32>
    tpu.vector_store %arg19[%c0_7, %c21_8], %6 {strides = array<i32>} : memref<8x26xf32, #tpu.memory_space<vmem>>, vector<8x5xf32>,
    %c0_9 = arith.constant 0 : index
    %c0_10 = arith.constant 0 : index
    %c0_11 = arith.constant 0 : index
    %8 = vector.load %arg1[%c0_9, %c0_10, %c0_11] : memref<1x8x64xf32, #tpu.memory_space<vmem>>, vector<1x8x64xf32>
    %9 = vector.shape_cast %8 : vector<1x8x64xf32> to vector<8x64xf32>
    %c0_12 = arith.constant 0 : index
    %c0_13 = arith.constant 0 : index
    %10 = vector.load %arg2[%c0_12, %c0_13] : memref<64x16xf32, #tpu.memory_space<vmem>>, vector<64x16xf32>
    %cst_14 = arith.constant dense<0.000000e+00> : vector<8x16xf32>
    %11 = tpu.matmul %9, %10, %cst_14 {dimension_numbers = #tpu.dot_dimension_numbers<[1], [0], [0], [1], [0, 0, 1, 1], [], []>} : vector<8x64xf32>, vector<64x16xf32>, vector<8x16xf32> -> vector<8x16xf32>
    %c0_15 = arith.constant 0 : index
    %c5 = arith.constant 5 : index
    %12 = vector.load %arg18[%c0_15, %c5] : memref<8x26xf32, #tpu.memory_space<vmem>>, vector<8x16xf32>
    tpu.vector_store %arg18[%c0_15, %c5], %11 {strides = array<i32>} : memref<8x26xf32, #tpu.memory_space<vmem>>, vector<8x16xf32>,
    %13 = tpu.iota {dimensions = array<i32: 1>} : vector<1x16xi32>
    %c4_i32 = arith.constant 4 : i32
    %c0_i32 = arith.constant 0 : i32
    %14 = arith.cmpi eq, %c4_i32, %c0_i32 : i32
    %c1_i32 = arith.constant 1 : i32
    %15 = arith.select %14, %c1_i32, %c4_i32 : i32
    %16 = vector.broadcast %15 : i32 to vector<1x16xi32>
    %17 = arith.remsi %13, %16 : vector<1x16xi32>
    %c0_i32_16 = arith.constant 0 : i32
    %18 = vector.broadcast %c0_i32_16 : i32 to vector<1x16xi32>
    %19 = arith.cmpi ne, %17, %18 : vector<1x16xi32>
    %c0_i32_17 = arith.constant 0 : i32
    %20 = vector.broadcast %c0_i32_17 : i32 to vector<1x16xi32>
    %21 = arith.cmpi slt, %17, %20 : vector<1x16xi32>
    %c0_i32_18 = arith.constant 0 : i32
    %22 = arith.cmpi slt, %15, %c0_i32_18 : i32
    %23 = vector.broadcast %22 : i1 to vector<1x16xi1>
    %24 = vector.broadcast %23 : vector<1x16xi1> to vector<1x16xi1>
    %25 = arith.xori %21, %24 : vector<1x16xi1>
    %26 = arith.andi %25, %19 : vector<1x16xi1>
    %27 = vector.broadcast %15 : i32 to vector<1x16xi32>
    %28 = arith.addi %17, %27 : vector<1x16xi32>
    %29 = arith.select %26, %28, %17 : vector<1x16xi1>, vector<1x16xi32>
    %c0_i32_19 = arith.constant 0 : i32
    %30 = vector.broadcast %c0_i32_19 : i32 to vector<1x16xi32>
    %31 = arith.cmpi ne, %29, %30 : vector<1x16xi32>
    %c3_i32 = arith.constant 3 : i32
    %32 = vector.broadcast %c3_i32 : i32 to vector<1x16xi32>
    %33 = arith.cmpi ne, %29, %32 : vector<1x16xi32>
    %c1 = arith.constant 1 : index
    %c0_20 = arith.constant 0 : index
    %c0_21 = arith.constant 0 : index
    %34 = vector.load %arg3[%c1, %c0_20, %c0_21] : memref<3x8x24xf32, #tpu.memory_space<vmem>>, vector<1x8x24xf32>
    %35 = vector.shape_cast %34 : vector<1x8x24xf32> to vector<8x24xf32>
    %c0_22 = arith.constant 0 : index
    %c1_23 = arith.constant 1 : index
    %36 = vector.load %arg18[%c0_22, %c1_23] : memref<8x26xf32, #tpu.memory_space<vmem>>, vector<8x16xf32>
    %c0_24 = arith.constant 0 : index
    %c5_25 = arith.constant 5 : index
    %37 = vector.load %arg18[%c0_24, %c5_25] : memref<8x26xf32, #tpu.memory_space<vmem>>, vector<8x16xf32>
    %c0_26 = arith.constant 0 : index
    %c9 = arith.constant 9 : index
    %38 = vector.load %arg18[%c0_26, %c9] : memref<8x26xf32, #tpu.memory_space<vmem>>, vector<8x16xf32>
    %39 = tpu.concatenate %36, %37, %38 in 0 : vector<8x16xf32>, vector<8x16xf32>, vector<8x16xf32> -> vector<24x16xf32>
    %cst_27 = arith.constant dense<0.000000e+00> : vector<8x16xf32>
    %40 = tpu.matmul %35, %39, %cst_27 {dimension_numbers = #tpu.dot_dimension_numbers<[1], [0], [0], [1], [0, 0, 1, 1], [], []>} : vector<8x24xf32>, vector<24x16xf32>, vector<8x16xf32> -> vector<8x16xf32>
    %c0_28 = arith.constant 0 : index
    %c0_29 = arith.constant 0 : index
    %c0_30 = arith.constant 0 : index
    %41 = vector.load %arg3[%c0_28, %c0_29, %c0_30] : memref<3x8x24xf32, #tpu.memory_space<vmem>>, vector<1x8x24xf32>
    %42 = vector.shape_cast %41 : vector<1x8x24xf32> to vector<8x24xf32>
    %c0_31 = arith.constant 0 : index
    %c0_32 = arith.constant 0 : index
    %43 = vector.load %arg18[%c0_31, %c0_32] : memref<8x26xf32, #tpu.memory_space<vmem>>, vector<8x16xf32>
    %c0_33 = arith.constant 0 : index
    %c4 = arith.constant 4 : index
    %44 = vector.load %arg18[%c0_33, %c4] : memref<8x26xf32, #tpu.memory_space<vmem>>, vector<8x16xf32>
    %c0_34 = arith.constant 0 : index
    %c8 = arith.constant 8 : index
    %45 = vector.load %arg18[%c0_34, %c8] : memref<8x26xf32, #tpu.memory_space<vmem>>, vector<8x16xf32>
    %46 = tpu.concatenate %43, %44, %45 in 0 : vector<8x16xf32>, vector<8x16xf32>, vector<8x16xf32> -> vector<24x16xf32>
    %cst_35 = arith.constant dense<0.000000e+00> : vector<8x16xf32>
    %47 = tpu.matmul %42, %46, %cst_35 {dimension_numbers = #tpu.dot_dimension_numbers<[1], [0], [0], [1], [0, 0, 1, 1], [], []>} : vector<8x24xf32>, vector<24x16xf32>, vector<8x16xf32> -> vector<8x16xf32>
    %c2 = arith.constant 2 : index
    %c0_36 = arith.constant 0 : index
    %c0_37 = arith.constant 0 : index
    %48 = vector.load %arg3[%c2, %c0_36, %c0_37] : memref<3x8x24xf32, #tpu.memory_space<vmem>>, vector<1x8x24xf32>
    %49 = vector.shape_cast %48 : vector<1x8x24xf32> to vector<8x24xf32>
    %c0_38 = arith.constant 0 : index
    %c2_39 = arith.constant 2 : index
    %50 = vector.load %arg18[%c0_38, %c2_39] : memref<8x26xf32, #tpu.memory_space<vmem>>, vector<8x16xf32>
    %c0_40 = arith.constant 0 : index
    %c6 = arith.constant 6 : index
    %51 = vector.load %arg18[%c0_40, %c6] : memref<8x26xf32, #tpu.memory_space<vmem>>, vector<8x16xf32>
    %c0_41 = arith.constant 0 : index
    %c10 = arith.constant 10 : index
    %52 = vector.load %arg18[%c0_41, %c10] : memref<8x26xf32, #tpu.memory_space<vmem>>, vector<8x16xf32>
    %53 = tpu.concatenate %50, %51, %52 in 0 : vector<8x16xf32>, vector<8x16xf32>, vector<8x16xf32> -> vector<24x16xf32>
    %cst_42 = arith.constant dense<0.000000e+00> : vector<8x16xf32>
    %54 = tpu.matmul %49, %53, %cst_42 {dimension_numbers = #tpu.dot_dimension_numbers<[1], [0], [0], [1], [0, 0, 1, 1], [], []>} : vector<8x24xf32>, vector<24x16xf32>, vector<8x16xf32> -> vector<8x16xf32>
    %cst_43 = arith.constant 0.000000e+00 : f32
    %55 = vector.shape_cast %31 : vector<1x16xi1> to vector<1x16xi1>
    %56 = vector.broadcast %55 : vector<1x16xi1> to vector<8x16xi1>
    %57 = vector.broadcast %cst_43 : f32 to vector<8x16xf32>
    %58 = arith.select %56, %47, %57 : vector<8x16xi1>, vector<8x16xf32>
    %59 = arith.addf %40, %58 : vector<8x16xf32>
    %cst_44 = arith.constant 0.000000e+00 : f32
    %60 = vector.shape_cast %33 : vector<1x16xi1> to vector<1x16xi1>
    %61 = vector.broadcast %60 : vector<1x16xi1> to vector<8x16xi1>
    %62 = vector.broadcast %cst_44 : f32 to vector<8x16xf32>
    %63 = arith.select %61, %54, %62 : vector<8x16xi1>, vector<8x16xf32>
    %64 = arith.addf %59, %63 : vector<8x16xf32>
    %c0_45 = arith.constant 0 : index
    %c0_46 = arith.constant 0 : index
    %65 = vector.load %arg4[%c0_45, %c0_46] : memref<8x1xf32, #tpu.memory_space<vmem>>, vector<8x1xf32>
    %66 = vector.broadcast %65 : vector<8x1xf32> to vector<8x16xf32>
    %67 = arith.addf %64, %66 : vector<8x16xf32>
    %cst_47 = arith.constant 0.000000e+00 : f32
    %68 = vector.broadcast %cst_47 : f32 to vector<8x16xf32>
    %69 = arith.cmpf oge, %67, %68 : vector<8x16xf32>
    %cst_48 = arith.constant 0.00999999977 : f32
    %70 = vector.broadcast %cst_48 : f32 to vector<8x16xf32>
    %71 = arith.mulf %70, %67 : vector<8x16xf32>
    %72 = arith.select %69, %67, %71 : vector<8x16xi1>, vector<8x16xf32>
    %c0_49 = arith.constant 0 : index
    %c0_50 = arith.constant 0 : index
    %73 = vector.load %arg5[%c0_49, %c0_50] : memref<8x8xf32, #tpu.memory_space<vmem>>, vector<8x8xf32>
    %c0_51 = arith.constant 0 : index
    %c5_52 = arith.constant 5 : index
    %74 = vector.load %arg18[%c0_51, %c5_52] : memref<8x26xf32, #tpu.memory_space<vmem>>, vector<8x16xf32>
    %cst_53 = arith.constant dense<0.000000e+00> : vector<8x16xf32>
    %75 = tpu.matmul %73, %74, %cst_53 {dimension_numbers = #tpu.dot_dimension_numbers<[1], [0], [0], [1], [0, 0, 1, 1], [], []>} : vector<8x8xf32>, vector<8x16xf32>, vector<8x16xf32> -> vector<8x16xf32>
    %c0_54 = arith.constant 0 : index
    %c0_55 = arith.constant 0 : index
    %76 = vector.load %arg6[%c0_54, %c0_55] : memref<8x8xf32, #tpu.memory_space<vmem>>, vector<8x8xf32>
    %cst_56 = arith.constant dense<0.000000e+00> : vector<8x16xf32>
    %77 = tpu.matmul %76, %72, %cst_56 {dimension_numbers = #tpu.dot_dimension_numbers<[1], [0], [0], [1], [0, 0, 1, 1], [], []>} : vector<8x8xf32>, vector<8x16xf32>, vector<8x16xf32> -> vector<8x16xf32>
    %78 = arith.addf %75, %77 : vector<8x16xf32>
    %c0_57 = arith.constant 0 : index
    %c0_58 = arith.constant 0 : index
    %79 = vector.load %arg7[%c0_57, %c0_58] : memref<8x1xf32, #tpu.memory_space<vmem>>, vector<8x1xf32>
    %80 = vector.broadcast %79 : vector<8x1xf32> to vector<8x16xf32>
    %81 = arith.addf %78, %80 : vector<8x16xf32>
    %c0_59 = arith.constant 0 : index
    %c5_60 = arith.constant 5 : index
    %82 = vector.load %arg19[%c0_59, %c5_60] : memref<8x26xf32, #tpu.memory_space<vmem>>, vector<8x16xf32>
    tpu.vector_store %arg19[%c0_59, %c5_60], %81 {strides = array<i32>} : memref<8x26xf32, #tpu.memory_space<vmem>>, vector<8x16xf32>,
    %c1_61 = arith.constant 1 : index
    %c0_62 = arith.constant 0 : index
    %c0_63 = arith.constant 0 : index
    %83 = vector.load %arg8[%c1_61, %c0_62, %c0_63] : memref<3x8x24xf32, #tpu.memory_space<vmem>>, vector<1x8x24xf32>
    %84 = vector.shape_cast %83 : vector<1x8x24xf32> to vector<8x24xf32>
    %c0_64 = arith.constant 0 : index
    %c1_65 = arith.constant 1 : index
    %85 = vector.load %arg19[%c0_64, %c1_65] : memref<8x26xf32, #tpu.memory_space<vmem>>, vector<8x16xf32>
    %c0_66 = arith.constant 0 : index
    %c5_67 = arith.constant 5 : index
    %86 = vector.load %arg19[%c0_66, %c5_67] : memref<8x26xf32, #tpu.memory_space<vmem>>, vector<8x16xf32>
    %c0_68 = arith.constant 0 : index
    %c9_69 = arith.constant 9 : index
    %87 = vector.load %arg19[%c0_68, %c9_69] : memref<8x26xf32, #tpu.memory_space<vmem>>, vector<8x16xf32>
    %88 = tpu.concatenate %85, %86, %87 in 0 : vector<8x16xf32>, vector<8x16xf32>, vector<8x16xf32> -> vector<24x16xf32>
    %cst_70 = arith.constant dense<0.000000e+00> : vector<8x16xf32>
    %89 = tpu.matmul %84, %88, %cst_70 {dimension_numbers = #tpu.dot_dimension_numbers<[1], [0], [0], [1], [0, 0, 1, 1], [], []>} : vector<8x24xf32>, vector<24x16xf32>, vector<8x16xf32> -> vector<8x16xf32>
    %c0_71 = arith.constant 0 : index
    %c0_72 = arith.constant 0 : index
    %c0_73 = arith.constant 0 : index
    %90 = vector.load %arg8[%c0_71, %c0_72, %c0_73] : memref<3x8x24xf32, #tpu.memory_space<vmem>>, vector<1x8x24xf32>
    %91 = vector.shape_cast %90 : vector<1x8x24xf32> to vector<8x24xf32>
    %c0_74 = arith.constant 0 : index
    %c0_75 = arith.constant 0 : index
    %92 = vector.load %arg19[%c0_74, %c0_75] : memref<8x26xf32, #tpu.memory_space<vmem>>, vector<8x16xf32>
    %c0_76 = arith.constant 0 : index
    %c4_77 = arith.constant 4 : index
    %93 = vector.load %arg19[%c0_76, %c4_77] : memref<8x26xf32, #tpu.memory_space<vmem>>, vector<8x16xf32>
    %c0_78 = arith.constant 0 : index
    %c8_79 = arith.constant 8 : index
    %94 = vector.load %arg19[%c0_78, %c8_79] : memref<8x26xf32, #tpu.memory_space<vmem>>, vector<8x16xf32>
    %95 = tpu.concatenate %92, %93, %94 in 0 : vector<8x16xf32>, vector<8x16xf32>, vector<8x16xf32> -> vector<24x16xf32>
    %cst_80 = arith.constant dense<0.000000e+00> : vector<8x16xf32>
    %96 = tpu.matmul %91, %95, %cst_80 {dimension_numbers = #tpu.dot_dimension_numbers<[1], [0], [0], [1], [0, 0, 1, 1], [], []>} : vector<8x24xf32>, vector<24x16xf32>, vector<8x16xf32> -> vector<8x16xf32>
    %c2_81 = arith.constant 2 : index
    %c0_82 = arith.constant 0 : index
    %c0_83 = arith.constant 0 : index
    %97 = vector.load %arg8[%c2_81, %c0_82, %c0_83] : memref<3x8x24xf32, #tpu.memory_space<vmem>>, vector<1x8x24xf32>
    %98 = vector.shape_cast %97 : vector<1x8x24xf32> to vector<8x24xf32>
    %c0_84 = arith.constant 0 : index
    %c2_85 = arith.constant 2 : index
    %99 = vector.load %arg19[%c0_84, %c2_85] : memref<8x26xf32, #tpu.memory_space<vmem>>, vector<8x16xf32>
    %c0_86 = arith.constant 0 : index
    %c6_87 = arith.constant 6 : index
    %100 = vector.load %arg19[%c0_86, %c6_87] : memref<8x26xf32, #tpu.memory_space<vmem>>, vector<8x16xf32>
    %c0_88 = arith.constant 0 : index
    %c10_89 = arith.constant 10 : index
    %101 = vector.load %arg19[%c0_88, %c10_89] : memref<8x26xf32, #tpu.memory_space<vmem>>, vector<8x16xf32>
    %102 = tpu.concatenate %99, %100, %101 in 0 : vector<8x16xf32>, vector<8x16xf32>, vector<8x16xf32> -> vector<24x16xf32>
    %cst_90 = arith.constant dense<0.000000e+00> : vector<8x16xf32>
    %103 = tpu.matmul %98, %102, %cst_90 {dimension_numbers = #tpu.dot_dimension_numbers<[1], [0], [0], [1], [0, 0, 1, 1], [], []>} : vector<8x24xf32>, vector<24x16xf32>, vector<8x16xf32> -> vector<8x16xf32>
    %cst_91 = arith.constant 0.000000e+00 : f32
    %104 = vector.shape_cast %31 : vector<1x16xi1> to vector<1x16xi1>
    %105 = vector.broadcast %104 : vector<1x16xi1> to vector<8x16xi1>
    %106 = vector.broadcast %cst_91 : f32 to vector<8x16xf32>
    %107 = arith.select %105, %96, %106 : vector<8x16xi1>, vector<8x16xf32>
    %108 = arith.addf %89, %107 : vector<8x16xf32>
    %cst_92 = arith.constant 0.000000e+00 : f32
    %109 = vector.shape_cast %33 : vector<1x16xi1> to vector<1x16xi1>
    %110 = vector.broadcast %109 : vector<1x16xi1> to vector<8x16xi1>
    %111 = vector.broadcast %cst_92 : f32 to vector<8x16xf32>
    %112 = arith.select %110, %103, %111 : vector<8x16xi1>, vector<8x16xf32>
    %113 = arith.addf %108, %112 : vector<8x16xf32>
    %c0_93 = arith.constant 0 : index
    %c0_94 = arith.constant 0 : index
    %114 = vector.load %arg9[%c0_93, %c0_94] : memref<8x1xf32, #tpu.memory_space<vmem>>, vector<8x1xf32>
    %115 = vector.broadcast %114 : vector<8x1xf32> to vector<8x16xf32>
    %116 = arith.addf %113, %115 : vector<8x16xf32>
    %cst_95 = arith.constant 0.000000e+00 : f32
    %117 = vector.broadcast %cst_95 : f32 to vector<8x16xf32>
    %118 = arith.cmpf oge, %116, %117 : vector<8x16xf32>
    %cst_96 = arith.constant 0.00999999977 : f32
    %119 = vector.broadcast %cst_96 : f32 to vector<8x16xf32>
    %120 = arith.mulf %119, %116 : vector<8x16xf32>
    %121 = arith.select %118, %116, %120 : vector<8x16xi1>, vector<8x16xf32>
    %c0_97 = arith.constant 0 : index
    %c0_98 = arith.constant 0 : index
    %122 = vector.load %arg10[%c0_97, %c0_98] : memref<8x8xf32, #tpu.memory_space<vmem>>, vector<8x8xf32>
    %c0_99 = arith.constant 0 : index
    %c5_100 = arith.constant 5 : index
    %123 = vector.load %arg18[%c0_99, %c5_100] : memref<8x26xf32, #tpu.memory_space<vmem>>, vector<8x16xf32>
    %cst_101 = arith.constant dense<0.000000e+00> : vector<8x16xf32>
    %124 = tpu.matmul %122, %123, %cst_101 {dimension_numbers = #tpu.dot_dimension_numbers<[1], [0], [0], [1], [0, 0, 1, 1], [], []>} : vector<8x8xf32>, vector<8x16xf32>, vector<8x16xf32> -> vector<8x16xf32>
    %c0_102 = arith.constant 0 : index
    %c0_103 = arith.constant 0 : index
    %125 = vector.load %arg11[%c0_102, %c0_103] : memref<8x8xf32, #tpu.memory_space<vmem>>, vector<8x8xf32>
    %cst_104 = arith.constant dense<0.000000e+00> : vector<8x16xf32>
    %126 = tpu.matmul %125, %72, %cst_104 {dimension_numbers = #tpu.dot_dimension_numbers<[1], [0], [0], [1], [0, 0, 1, 1], [], []>} : vector<8x8xf32>, vector<8x16xf32>, vector<8x16xf32> -> vector<8x16xf32>
    %127 = arith.addf %124, %126 : vector<8x16xf32>
    %c0_105 = arith.constant 0 : index
    %c0_106 = arith.constant 0 : index
    %128 = vector.load %arg12[%c0_105, %c0_106] : memref<8x8xf32, #tpu.memory_space<vmem>>, vector<8x8xf32>
    %cst_107 = arith.constant dense<0.000000e+00> : vector<8x16xf32>
    %129 = tpu.matmul %128, %121, %cst_107 {dimension_numbers = #tpu.dot_dimension_numbers<[1], [0], [0], [1], [0, 0, 1, 1], [], []>} : vector<8x8xf32>, vector<8x16xf32>, vector<8x16xf32> -> vector<8x16xf32>
    %130 = arith.addf %127, %129 : vector<8x16xf32>
    %c0_108 = arith.constant 0 : index
    %c0_109 = arith.constant 0 : index
    %131 = vector.load %arg13[%c0_108, %c0_109] : memref<8x1xf32, #tpu.memory_space<vmem>>, vector<8x1xf32>
    %132 = vector.broadcast %131 : vector<8x1xf32> to vector<8x16xf32>
    %133 = arith.addf %130, %132 : vector<8x16xf32>
    %c0_110 = arith.constant 0 : index
    %c5_111 = arith.constant 5 : index
    %134 = vector.load %arg19[%c0_110, %c5_111] : memref<8x26xf32, #tpu.memory_space<vmem>>, vector<8x16xf32>
    tpu.vector_store %arg19[%c0_110, %c5_111], %133 {strides = array<i32>} : memref<8x26xf32, #tpu.memory_space<vmem>>, vector<8x16xf32>,
    %c1_112 = arith.constant 1 : index
    %c0_113 = arith.constant 0 : index
    %c0_114 = arith.constant 0 : index
    %135 = vector.load %arg14[%c1_112, %c0_113, %c0_114] : memref<3x8x24xf32, #tpu.memory_space<vmem>>, vector<1x8x24xf32>
    %136 = vector.shape_cast %135 : vector<1x8x24xf32> to vector<8x24xf32>
    %c0_115 = arith.constant 0 : index
    %c1_116 = arith.constant 1 : index
    %137 = vector.load %arg19[%c0_115, %c1_116] : memref<8x26xf32, #tpu.memory_space<vmem>>, vector<8x16xf32>
    %c0_117 = arith.constant 0 : index
    %c5_118 = arith.constant 5 : index
    %138 = vector.load %arg19[%c0_117, %c5_118] : memref<8x26xf32, #tpu.memory_space<vmem>>, vector<8x16xf32>
    %c0_119 = arith.constant 0 : index
    %c9_120 = arith.constant 9 : index
    %139 = vector.load %arg19[%c0_119, %c9_120] : memref<8x26xf32, #tpu.memory_space<vmem>>, vector<8x16xf32>
    %140 = tpu.concatenate %137, %138, %139 in 0 : vector<8x16xf32>, vector<8x16xf32>, vector<8x16xf32> -> vector<24x16xf32>
    %cst_121 = arith.constant dense<0.000000e+00> : vector<8x16xf32>
    %141 = tpu.matmul %136, %140, %cst_121 {dimension_numbers = #tpu.dot_dimension_numbers<[1], [0], [0], [1], [0, 0, 1, 1], [], []>} : vector<8x24xf32>, vector<24x16xf32>, vector<8x16xf32> -> vector<8x16xf32>
    %c0_122 = arith.constant 0 : index
    %c0_123 = arith.constant 0 : index
    %c0_124 = arith.constant 0 : index
    %142 = vector.load %arg14[%c0_122, %c0_123, %c0_124] : memref<3x8x24xf32, #tpu.memory_space<vmem>>, vector<1x8x24xf32>
    %143 = vector.shape_cast %142 : vector<1x8x24xf32> to vector<8x24xf32>
    %c0_125 = arith.constant 0 : index
    %c0_126 = arith.constant 0 : index
    %144 = vector.load %arg19[%c0_125, %c0_126] : memref<8x26xf32, #tpu.memory_space<vmem>>, vector<8x16xf32>
    %c0_127 = arith.constant 0 : index
    %c4_128 = arith.constant 4 : index
    %145 = vector.load %arg19[%c0_127, %c4_128] : memref<8x26xf32, #tpu.memory_space<vmem>>, vector<8x16xf32>
    %c0_129 = arith.constant 0 : index
    %c8_130 = arith.constant 8 : index
    %146 = vector.load %arg19[%c0_129, %c8_130] : memref<8x26xf32, #tpu.memory_space<vmem>>, vector<8x16xf32>
    %147 = tpu.concatenate %144, %145, %146 in 0 : vector<8x16xf32>, vector<8x16xf32>, vector<8x16xf32> -> vector<24x16xf32>
    %cst_131 = arith.constant dense<0.000000e+00> : vector<8x16xf32>
    %148 = tpu.matmul %143, %147, %cst_131 {dimension_numbers = #tpu.dot_dimension_numbers<[1], [0], [0], [1], [0, 0, 1, 1], [], []>} : vector<8x24xf32>, vector<24x16xf32>, vector<8x16xf32> -> vector<8x16xf32>
    %c2_132 = arith.constant 2 : index
    %c0_133 = arith.constant 0 : index
    %c0_134 = arith.constant 0 : index
    %149 = vector.load %arg14[%c2_132, %c0_133, %c0_134] : memref<3x8x24xf32, #tpu.memory_space<vmem>>, vector<1x8x24xf32>
    %150 = vector.shape_cast %149 : vector<1x8x24xf32> to vector<8x24xf32>
    %c0_135 = arith.constant 0 : index
    %c2_136 = arith.constant 2 : index
    %151 = vector.load %arg19[%c0_135, %c2_136] : memref<8x26xf32, #tpu.memory_space<vmem>>, vector<8x16xf32>
    %c0_137 = arith.constant 0 : index
    %c6_138 = arith.constant 6 : index
    %152 = vector.load %arg19[%c0_137, %c6_138] : memref<8x26xf32, #tpu.memory_space<vmem>>, vector<8x16xf32>
    %c0_139 = arith.constant 0 : index
    %c10_140 = arith.constant 10 : index
    %153 = vector.load %arg19[%c0_139, %c10_140] : memref<8x26xf32, #tpu.memory_space<vmem>>, vector<8x16xf32>
    %154 = tpu.concatenate %151, %152, %153 in 0 : vector<8x16xf32>, vector<8x16xf32>, vector<8x16xf32> -> vector<24x16xf32>
    %cst_141 = arith.constant dense<0.000000e+00> : vector<8x16xf32>
    %155 = tpu.matmul %150, %154, %cst_141 {dimension_numbers = #tpu.dot_dimension_numbers<[1], [0], [0], [1], [0, 0, 1, 1], [], []>} : vector<8x24xf32>, vector<24x16xf32>, vector<8x16xf32> -> vector<8x16xf32>
    %cst_142 = arith.constant 0.000000e+00 : f32
    %156 = vector.shape_cast %31 : vector<1x16xi1> to vector<1x16xi1>
    %157 = vector.broadcast %156 : vector<1x16xi1> to vector<8x16xi1>
    %158 = vector.broadcast %cst_142 : f32 to vector<8x16xf32>
    %159 = arith.select %157, %148, %158 : vector<8x16xi1>, vector<8x16xf32>
    %160 = arith.addf %141, %159 : vector<8x16xf32>
    %cst_143 = arith.constant 0.000000e+00 : f32
    %161 = vector.shape_cast %33 : vector<1x16xi1> to vector<1x16xi1>
    %162 = vector.broadcast %161 : vector<1x16xi1> to vector<8x16xi1>
    %163 = vector.broadcast %cst_143 : f32 to vector<8x16xf32>
    %164 = arith.select %162, %155, %163 : vector<8x16xi1>, vector<8x16xf32>
    %165 = arith.addf %160, %164 : vector<8x16xf32>
    %c0_144 = arith.constant 0 : index
    %c0_145 = arith.constant 0 : index
    %166 = vector.load %arg15[%c0_144, %c0_145] : memref<8x1xf32, #tpu.memory_space<vmem>>, vector<8x1xf32>
    %167 = vector.broadcast %166 : vector<8x1xf32> to vector<8x16xf32>
    %168 = arith.addf %165, %167 : vector<8x16xf32>
    %cst_146 = arith.constant 0.000000e+00 : f32
    %169 = vector.broadcast %cst_146 : f32 to vector<8x16xf32>
    %170 = arith.cmpf oge, %168, %169 : vector<8x16xf32>
    %cst_147 = arith.constant 0.00999999977 : f32
    %171 = vector.broadcast %cst_147 : f32 to vector<8x16xf32>
    %172 = arith.mulf %171, %168 : vector<8x16xf32>
    %173 = arith.select %170, %168, %172 : vector<8x16xi1>, vector<8x16xf32>
    %c0_148 = arith.constant 0 : index
    %c0_149 = arith.constant 0 : index
    %c0_150 = arith.constant 0 : index
    %174 = vector.load %arg16[%c0_148, %c0_149, %c0_150] : memref<1x8x16xf32, #tpu.memory_space<vmem>>, vector<1x8x16xf32>
    %175 = vector.shape_cast %174 : vector<1x8x16xf32> to vector<8x16xf32>
    %176 = vector.shape_cast %173 : vector<8x16xf32> to vector<1x8x16xf32>
    tpu.vector_store %arg16[%c0_148, %c0_149, %c0_150], %176 {strides = array<i32>} : memref<1x8x16xf32, #tpu.memory_space<vmem>>, vector<1x8x16xf32>,
    %cst_151 = arith.constant dense<0.000000e+00> : vector<8xf32>
    %177 = vector.multi_reduction <add>, %173, %cst_151 [1] : vector<8x16xf32> to vector<8xf32>
    %178 = vector.shape_cast %177 : vector<8xf32> to vector<8x1xf32>
    %179 = arith.mulf %173, %173 : vector<8x16xf32>
    %cst_152 = arith.constant dense<0.000000e+00> : vector<8xf32>
    %180 = vector.multi_reduction <add>, %179, %cst_152 [1] : vector<8x16xf32> to vector<8xf32>
    %181 = vector.shape_cast %180 : vector<8xf32> to vector<8x1xf32>
    %182 = tpu.concatenate %178, %181 in 1 : vector<8x1xf32>, vector<8x1xf32> -> vector<8x2xf32>
    %c0_153 = arith.constant 0 : index
    %c0_154 = arith.constant 0 : index
    %c0_155 = arith.constant 0 : index
    %183 = vector.load %arg17[%c0_153, %c0_154, %c0_155] : memref<1x8x2xf32, #tpu.memory_space<vmem>>, vector<1x8x2xf32>
    %184 = vector.shape_cast %183 : vector<1x8x2xf32> to vector<8x2xf32>
    %185 = vector.shape_cast %182 : vector<8x2xf32> to vector<1x8x2xf32>
    tpu.vector_store %arg17[%c0_153, %c0_154, %c0_155], %185 {strides = array<i32>} : memref<1x8x2xf32, #tpu.memory_space<vmem>>, vector<1x8x2xf32>,
    return
  }
  func.func @transform_0(%arg0: i32) -> (i32, i32, i32) {
    %c0_i32 = arith.constant 0 : i32
    %c0_i32_0 = arith.constant 0 : i32
    %c0_i32_1 = arith.constant 0 : i32
    return %arg0, %c0_i32, %c0_i32_0 : i32, i32, i32
  }
  func.func @transform_1(%arg0: i32) -> (i32, i32) {
    %c0_i32 = arith.constant 0 : i32
    %c0_i32_0 = arith.constant 0 : i32
    %c0_i32_1 = arith.constant 0 : i32
    return %c0_i32, %c0_i32_0 : i32, i32
  }
  func.func @transform_2(%arg0: i32) -> (i32, i32, i32) {
    %c0_i32 = arith.constant 0 : i32
    %c0_i32_0 = arith.constant 0 : i32
    %c0_i32_1 = arith.constant 0 : i32
    %c0_i32_2 = arith.constant 0 : i32
    return %c0_i32, %c0_i32_0, %c0_i32_1 : i32, i32, i32
  }
  func.func @transform_3(%arg0: i32) -> (i32, i32) {
    %c0_i32 = arith.constant 0 : i32
    %c0_i32_0 = arith.constant 0 : i32
    %c0_i32_1 = arith.constant 0 : i32
    return %c0_i32, %c0_i32_0 : i32, i32
  }
  func.func @transform_4(%arg0: i32) -> (i32, i32) {
    %c0_i32 = arith.constant 0 : i32
    %c0_i32_0 = arith.constant 0 : i32
    %c0_i32_1 = arith.constant 0 : i32
    return %c0_i32, %c0_i32_0 : i32, i32
  }
  func.func @transform_5(%arg0: i32) -> (i32, i32) {
    %c0_i32 = arith.constant 0 : i32
    %c0_i32_0 = arith.constant 0 : i32
    %c0_i32_1 = arith.constant 0 : i32
    return %c0_i32, %c0_i32_0 : i32, i32
  }
  func.func @transform_6(%arg0: i32) -> (i32, i32) {
    %c0_i32 = arith.constant 0 : i32
    %c0_i32_0 = arith.constant 0 : i32
    %c0_i32_1 = arith.constant 0 : i32
    return %c0_i32, %c0_i32_0 : i32, i32
  }
  func.func @transform_7(%arg0: i32) -> (i32, i32, i32) {
    %c0_i32 = arith.constant 0 : i32
    %c0_i32_0 = arith.constant 0 : i32
    %c0_i32_1 = arith.constant 0 : i32
    %c0_i32_2 = arith.constant 0 : i32
    return %c0_i32, %c0_i32_0, %c0_i32_1 : i32, i32, i32
  }
  func.func @transform_8(%arg0: i32) -> (i32, i32) {
    %c0_i32 = arith.constant 0 : i32
    %c0_i32_0 = arith.constant 0 : i32
    %c0_i32_1 = arith.constant 0 : i32
    return %c0_i32, %c0_i32_0 : i32, i32
  }
  func.func @transform_9(%arg0: i32) -> (i32, i32) {
    %c0_i32 = arith.constant 0 : i32
    %c0_i32_0 = arith.constant 0 : i32
    %c0_i32_1 = arith.constant 0 : i32
    return %c0_i32, %c0_i32_0 : i32, i32
  }
  func.func @transform_10(%arg0: i32) -> (i32, i32) {
    %c0_i32 = arith.constant 0 : i32
    %c0_i32_0 = arith.constant 0 : i32
    %c0_i32_1 = arith.constant 0 : i32
    return %c0_i32, %c0_i32_0 : i32, i32
  }
  func.func @transform_11(%arg0: i32) -> (i32, i32) {
    %c0_i32 = arith.constant 0 : i32
    %c0_i32_0 = arith.constant 0 : i32
    %c0_i32_1 = arith.constant 0 : i32
    return %c0_i32, %c0_i32_0 : i32, i32
  }
  func.func @transform_12(%arg0: i32) -> (i32, i32) {
    %c0_i32 = arith.constant 0 : i32
    %c0_i32_0 = arith.constant 0 : i32
    %c0_i32_1 = arith.constant 0 : i32
    return %c0_i32, %c0_i32_0 : i32, i32
  }
  func.func @transform_13(%arg0: i32) -> (i32, i32, i32) {
    %c0_i32 = arith.constant 0 : i32
    %c0_i32_0 = arith.constant 0 : i32
    %c0_i32_1 = arith.constant 0 : i32
    %c0_i32_2 = arith.constant 0 : i32
    return %c0_i32, %c0_i32_0, %c0_i32_1 : i32, i32, i32
  }
  func.func @transform_14(%arg0: i32) -> (i32, i32) {
    %c0_i32 = arith.constant 0 : i32
    %c0_i32_0 = arith.constant 0 : i32
    %c0_i32_1 = arith.constant 0 : i32
    return %c0_i32, %c0_i32_0 : i32, i32
  }
  func.func @transform_15(%arg0: i32) -> (i32, i32, i32) {
    %c0_i32 = arith.constant 0 : i32
    %c0_i32_0 = arith.constant 0 : i32
    %c0_i32_1 = arith.constant 0 : i32
    return %arg0, %c0_i32, %c0_i32_0 : i32, i32, i32
  }
  func.func @transform_16(%arg0: i32) -> (i32, i32, i32) {
    %c0_i32 = arith.constant 0 : i32
    %c0_i32_0 = arith.constant 0 : i32
    %c0_i32_1 = arith.constant 0 : i32
    return %arg0, %c0_i32, %c0_i32_0 : i32, i32, i32
  }
}

module attributes {stable_mosaic.version = 11 : i64} {
  func.func @_block_kernel(%arg0: i32, %arg1: memref<1x8x16xf32, #tpu.memory_space<vmem>>, %arg2: memref<16x4xf32, #tpu.memory_space<vmem>>, %arg3: memref<3x8x24xf32, #tpu.memory_space<vmem>>, %arg4: memref<8x1xf32, #tpu.memory_space<vmem>>, %arg5: memref<8x8xf32, #tpu.memory_space<vmem>>, %arg6: memref<8x8xf32, #tpu.memory_space<vmem>>, %arg7: memref<8x1xf32, #tpu.memory_space<vmem>>, %arg8: memref<3x8x24xf32, #tpu.memory_space<vmem>>, %arg9: memref<8x1xf32, #tpu.memory_space<vmem>>, %arg10: memref<8x8xf32, #tpu.memory_space<vmem>>, %arg11: memref<8x8xf32, #tpu.memory_space<vmem>>, %arg12: memref<8x8xf32, #tpu.memory_space<vmem>>, %arg13: memref<8x1xf32, #tpu.memory_space<vmem>>, %arg14: memref<3x8x24xf32, #tpu.memory_space<vmem>>, %arg15: memref<8x1xf32, #tpu.memory_space<vmem>>, %arg16: memref<1x8x4xf32, #tpu.memory_space<vmem>>, %arg17: memref<1x8x2xf32, #tpu.memory_space<vmem>>, %arg18: memref<8x10xf32, #tpu.memory_space<vmem>>, %arg19: memref<8x10xf32, #tpu.memory_space<vmem>>) attributes {dimension_semantics = [#tpu.dimension_semantics<parallel>], iteration_bounds = array<i64: 2>, scalar_prefetch = 0 : i64, scratch_operands = 2 : i64, tpu.core_type = #tpu.core_type<tc>, window_params = [{transform_indices = @transform_0, window_bounds = array<i64: 1, 8, 16>}, {pipeline_mode = #tpu.pipeline_mode<synchronous>, transform_indices = @transform_1, window_bounds = array<i64: 16, 4>}, {pipeline_mode = #tpu.pipeline_mode<synchronous>, transform_indices = @transform_2, window_bounds = array<i64: 3, 8, 24>}, {pipeline_mode = #tpu.pipeline_mode<synchronous>, transform_indices = @transform_3, window_bounds = array<i64: 8, 1>}, {pipeline_mode = #tpu.pipeline_mode<synchronous>, transform_indices = @transform_4, window_bounds = array<i64: 8, 8>}, {pipeline_mode = #tpu.pipeline_mode<synchronous>, transform_indices = @transform_5, window_bounds = array<i64: 8, 8>}, {pipeline_mode = #tpu.pipeline_mode<synchronous>, transform_indices = @transform_6, window_bounds = array<i64: 8, 1>}, {pipeline_mode = #tpu.pipeline_mode<synchronous>, transform_indices = @transform_7, window_bounds = array<i64: 3, 8, 24>}, {pipeline_mode = #tpu.pipeline_mode<synchronous>, transform_indices = @transform_8, window_bounds = array<i64: 8, 1>}, {pipeline_mode = #tpu.pipeline_mode<synchronous>, transform_indices = @transform_9, window_bounds = array<i64: 8, 8>}, {pipeline_mode = #tpu.pipeline_mode<synchronous>, transform_indices = @transform_10, window_bounds = array<i64: 8, 8>}, {pipeline_mode = #tpu.pipeline_mode<synchronous>, transform_indices = @transform_11, window_bounds = array<i64: 8, 8>}, {pipeline_mode = #tpu.pipeline_mode<synchronous>, transform_indices = @transform_12, window_bounds = array<i64: 8, 1>}, {pipeline_mode = #tpu.pipeline_mode<synchronous>, transform_indices = @transform_13, window_bounds = array<i64: 3, 8, 24>}, {pipeline_mode = #tpu.pipeline_mode<synchronous>, transform_indices = @transform_14, window_bounds = array<i64: 8, 1>}, {transform_indices = @transform_15, window_bounds = array<i64: 1, 8, 4>}, {transform_indices = @transform_16, window_bounds = array<i64: 1, 8, 2>}]} {
    %cst = arith.constant 0.000000e+00 : f32
    %0 = vector.broadcast %cst : f32 to vector<8x3xf32>
    %c0 = arith.constant 0 : index
    %c0_0 = arith.constant 0 : index
    %1 = vector.load %arg18[%c0, %c0_0] : memref<8x10xf32, #tpu.memory_space<vmem>>, vector<8x3xf32>
    tpu.vector_store %arg18[%c0, %c0_0], %0 {strides = array<i32>} : memref<8x10xf32, #tpu.memory_space<vmem>>, vector<8x3xf32>,
    %cst_1 = arith.constant 0.000000e+00 : f32
    %2 = vector.broadcast %cst_1 : f32 to vector<8x3xf32>
    %c0_2 = arith.constant 0 : index
    %c7 = arith.constant 7 : index
    %3 = vector.load %arg18[%c0_2, %c7] : memref<8x10xf32, #tpu.memory_space<vmem>>, vector<8x3xf32>
    tpu.vector_store %arg18[%c0_2, %c7], %2 {strides = array<i32>} : memref<8x10xf32, #tpu.memory_space<vmem>>, vector<8x3xf32>,
    %cst_3 = arith.constant 0.000000e+00 : f32
    %4 = vector.broadcast %cst_3 : f32 to vector<8x3xf32>
    %c0_4 = arith.constant 0 : index
    %c0_5 = arith.constant 0 : index
    %5 = vector.load %arg19[%c0_4, %c0_5] : memref<8x10xf32, #tpu.memory_space<vmem>>, vector<8x3xf32>
    tpu.vector_store %arg19[%c0_4, %c0_5], %4 {strides = array<i32>} : memref<8x10xf32, #tpu.memory_space<vmem>>, vector<8x3xf32>,
    %cst_6 = arith.constant 0.000000e+00 : f32
    %6 = vector.broadcast %cst_6 : f32 to vector<8x3xf32>
    %c0_7 = arith.constant 0 : index
    %c7_8 = arith.constant 7 : index
    %7 = vector.load %arg19[%c0_7, %c7_8] : memref<8x10xf32, #tpu.memory_space<vmem>>, vector<8x3xf32>
    tpu.vector_store %arg19[%c0_7, %c7_8], %6 {strides = array<i32>} : memref<8x10xf32, #tpu.memory_space<vmem>>, vector<8x3xf32>,
    %c0_9 = arith.constant 0 : index
    %c0_10 = arith.constant 0 : index
    %c0_11 = arith.constant 0 : index
    %8 = vector.load %arg1[%c0_9, %c0_10, %c0_11] : memref<1x8x16xf32, #tpu.memory_space<vmem>>, vector<1x8x16xf32>
    %9 = vector.shape_cast %8 : vector<1x8x16xf32> to vector<8x16xf32>
    %c0_12 = arith.constant 0 : index
    %c0_13 = arith.constant 0 : index
    %10 = vector.load %arg2[%c0_12, %c0_13] : memref<16x4xf32, #tpu.memory_space<vmem>>, vector<16x4xf32>
    %cst_14 = arith.constant dense<0.000000e+00> : vector<8x4xf32>
    %11 = tpu.matmul %9, %10, %cst_14 {dimension_numbers = #tpu.dot_dimension_numbers<[1], [0], [0], [1], [0, 0, 1, 1], [], []>} : vector<8x16xf32>, vector<16x4xf32>, vector<8x4xf32> -> vector<8x4xf32>
    %c0_15 = arith.constant 0 : index
    %c3 = arith.constant 3 : index
    %12 = vector.load %arg18[%c0_15, %c3] : memref<8x10xf32, #tpu.memory_space<vmem>>, vector<8x4xf32>
    tpu.vector_store %arg18[%c0_15, %c3], %11 {strides = array<i32>} : memref<8x10xf32, #tpu.memory_space<vmem>>, vector<8x4xf32>,
    %13 = tpu.iota {dimensions = array<i32: 1>} : vector<1x4xi32>
    %c2_i32 = arith.constant 2 : i32
    %c0_i32 = arith.constant 0 : i32
    %14 = arith.cmpi eq, %c2_i32, %c0_i32 : i32
    %c1_i32 = arith.constant 1 : i32
    %15 = arith.select %14, %c1_i32, %c2_i32 : i32
    %16 = vector.broadcast %15 : i32 to vector<1x4xi32>
    %17 = arith.remsi %13, %16 : vector<1x4xi32>
    %c0_i32_16 = arith.constant 0 : i32
    %18 = vector.broadcast %c0_i32_16 : i32 to vector<1x4xi32>
    %19 = arith.cmpi ne, %17, %18 : vector<1x4xi32>
    %c0_i32_17 = arith.constant 0 : i32
    %20 = vector.broadcast %c0_i32_17 : i32 to vector<1x4xi32>
    %21 = arith.cmpi slt, %17, %20 : vector<1x4xi32>
    %c0_i32_18 = arith.constant 0 : i32
    %22 = arith.cmpi slt, %15, %c0_i32_18 : i32
    %23 = vector.broadcast %22 : i1 to vector<1x4xi1>
    %24 = vector.broadcast %23 : vector<1x4xi1> to vector<1x4xi1>
    %25 = arith.xori %21, %24 : vector<1x4xi1>
    %26 = arith.andi %25, %19 : vector<1x4xi1>
    %27 = vector.broadcast %15 : i32 to vector<1x4xi32>
    %28 = arith.addi %17, %27 : vector<1x4xi32>
    %29 = arith.select %26, %28, %17 : vector<1x4xi1>, vector<1x4xi32>
    %c0_i32_19 = arith.constant 0 : i32
    %30 = vector.broadcast %c0_i32_19 : i32 to vector<1x4xi32>
    %31 = arith.cmpi ne, %29, %30 : vector<1x4xi32>
    %c1_i32_20 = arith.constant 1 : i32
    %32 = vector.broadcast %c1_i32_20 : i32 to vector<1x4xi32>
    %33 = arith.cmpi ne, %29, %32 : vector<1x4xi32>
    %c1 = arith.constant 1 : index
    %c0_21 = arith.constant 0 : index
    %c0_22 = arith.constant 0 : index
    %34 = vector.load %arg3[%c1, %c0_21, %c0_22] : memref<3x8x24xf32, #tpu.memory_space<vmem>>, vector<1x8x24xf32>
    %35 = vector.shape_cast %34 : vector<1x8x24xf32> to vector<8x24xf32>
    %c0_23 = arith.constant 0 : index
    %c1_24 = arith.constant 1 : index
    %36 = vector.load %arg18[%c0_23, %c1_24] : memref<8x10xf32, #tpu.memory_space<vmem>>, vector<8x4xf32>
    %c0_25 = arith.constant 0 : index
    %c3_26 = arith.constant 3 : index
    %37 = vector.load %arg18[%c0_25, %c3_26] : memref<8x10xf32, #tpu.memory_space<vmem>>, vector<8x4xf32>
    %c0_27 = arith.constant 0 : index
    %c5 = arith.constant 5 : index
    %38 = vector.load %arg18[%c0_27, %c5] : memref<8x10xf32, #tpu.memory_space<vmem>>, vector<8x4xf32>
    %39 = tpu.concatenate %36, %37, %38 in 0 : vector<8x4xf32>, vector<8x4xf32>, vector<8x4xf32> -> vector<24x4xf32>
    %cst_28 = arith.constant dense<0.000000e+00> : vector<8x4xf32>
    %40 = tpu.matmul %35, %39, %cst_28 {dimension_numbers = #tpu.dot_dimension_numbers<[1], [0], [0], [1], [0, 0, 1, 1], [], []>} : vector<8x24xf32>, vector<24x4xf32>, vector<8x4xf32> -> vector<8x4xf32>
    %c0_29 = arith.constant 0 : index
    %c0_30 = arith.constant 0 : index
    %c0_31 = arith.constant 0 : index
    %41 = vector.load %arg3[%c0_29, %c0_30, %c0_31] : memref<3x8x24xf32, #tpu.memory_space<vmem>>, vector<1x8x24xf32>
    %42 = vector.shape_cast %41 : vector<1x8x24xf32> to vector<8x24xf32>
    %c0_32 = arith.constant 0 : index
    %c0_33 = arith.constant 0 : index
    %43 = vector.load %arg18[%c0_32, %c0_33] : memref<8x10xf32, #tpu.memory_space<vmem>>, vector<8x4xf32>
    %c0_34 = arith.constant 0 : index
    %c2 = arith.constant 2 : index
    %44 = vector.load %arg18[%c0_34, %c2] : memref<8x10xf32, #tpu.memory_space<vmem>>, vector<8x4xf32>
    %c0_35 = arith.constant 0 : index
    %c4 = arith.constant 4 : index
    %45 = vector.load %arg18[%c0_35, %c4] : memref<8x10xf32, #tpu.memory_space<vmem>>, vector<8x4xf32>
    %46 = tpu.concatenate %43, %44, %45 in 0 : vector<8x4xf32>, vector<8x4xf32>, vector<8x4xf32> -> vector<24x4xf32>
    %cst_36 = arith.constant dense<0.000000e+00> : vector<8x4xf32>
    %47 = tpu.matmul %42, %46, %cst_36 {dimension_numbers = #tpu.dot_dimension_numbers<[1], [0], [0], [1], [0, 0, 1, 1], [], []>} : vector<8x24xf32>, vector<24x4xf32>, vector<8x4xf32> -> vector<8x4xf32>
    %c2_37 = arith.constant 2 : index
    %c0_38 = arith.constant 0 : index
    %c0_39 = arith.constant 0 : index
    %48 = vector.load %arg3[%c2_37, %c0_38, %c0_39] : memref<3x8x24xf32, #tpu.memory_space<vmem>>, vector<1x8x24xf32>
    %49 = vector.shape_cast %48 : vector<1x8x24xf32> to vector<8x24xf32>
    %c0_40 = arith.constant 0 : index
    %c2_41 = arith.constant 2 : index
    %50 = vector.load %arg18[%c0_40, %c2_41] : memref<8x10xf32, #tpu.memory_space<vmem>>, vector<8x4xf32>
    %c0_42 = arith.constant 0 : index
    %c4_43 = arith.constant 4 : index
    %51 = vector.load %arg18[%c0_42, %c4_43] : memref<8x10xf32, #tpu.memory_space<vmem>>, vector<8x4xf32>
    %c0_44 = arith.constant 0 : index
    %c6 = arith.constant 6 : index
    %52 = vector.load %arg18[%c0_44, %c6] : memref<8x10xf32, #tpu.memory_space<vmem>>, vector<8x4xf32>
    %53 = tpu.concatenate %50, %51, %52 in 0 : vector<8x4xf32>, vector<8x4xf32>, vector<8x4xf32> -> vector<24x4xf32>
    %cst_45 = arith.constant dense<0.000000e+00> : vector<8x4xf32>
    %54 = tpu.matmul %49, %53, %cst_45 {dimension_numbers = #tpu.dot_dimension_numbers<[1], [0], [0], [1], [0, 0, 1, 1], [], []>} : vector<8x24xf32>, vector<24x4xf32>, vector<8x4xf32> -> vector<8x4xf32>
    %cst_46 = arith.constant 0.000000e+00 : f32
    %55 = vector.shape_cast %31 : vector<1x4xi1> to vector<1x4xi1>
    %56 = vector.broadcast %55 : vector<1x4xi1> to vector<8x4xi1>
    %57 = vector.broadcast %cst_46 : f32 to vector<8x4xf32>
    %58 = arith.select %56, %47, %57 : vector<8x4xi1>, vector<8x4xf32>
    %59 = arith.addf %40, %58 : vector<8x4xf32>
    %cst_47 = arith.constant 0.000000e+00 : f32
    %60 = vector.shape_cast %33 : vector<1x4xi1> to vector<1x4xi1>
    %61 = vector.broadcast %60 : vector<1x4xi1> to vector<8x4xi1>
    %62 = vector.broadcast %cst_47 : f32 to vector<8x4xf32>
    %63 = arith.select %61, %54, %62 : vector<8x4xi1>, vector<8x4xf32>
    %64 = arith.addf %59, %63 : vector<8x4xf32>
    %c0_48 = arith.constant 0 : index
    %c0_49 = arith.constant 0 : index
    %65 = vector.load %arg4[%c0_48, %c0_49] : memref<8x1xf32, #tpu.memory_space<vmem>>, vector<8x1xf32>
    %66 = vector.broadcast %65 : vector<8x1xf32> to vector<8x4xf32>
    %67 = arith.addf %64, %66 : vector<8x4xf32>
    %cst_50 = arith.constant 0.000000e+00 : f32
    %68 = vector.broadcast %cst_50 : f32 to vector<8x4xf32>
    %69 = arith.cmpf oge, %67, %68 : vector<8x4xf32>
    %cst_51 = arith.constant 0.00999999977 : f32
    %70 = vector.broadcast %cst_51 : f32 to vector<8x4xf32>
    %71 = arith.mulf %70, %67 : vector<8x4xf32>
    %72 = arith.select %69, %67, %71 : vector<8x4xi1>, vector<8x4xf32>
    %c0_52 = arith.constant 0 : index
    %c0_53 = arith.constant 0 : index
    %73 = vector.load %arg5[%c0_52, %c0_53] : memref<8x8xf32, #tpu.memory_space<vmem>>, vector<8x8xf32>
    %c0_54 = arith.constant 0 : index
    %c3_55 = arith.constant 3 : index
    %74 = vector.load %arg18[%c0_54, %c3_55] : memref<8x10xf32, #tpu.memory_space<vmem>>, vector<8x4xf32>
    %cst_56 = arith.constant dense<0.000000e+00> : vector<8x4xf32>
    %75 = tpu.matmul %73, %74, %cst_56 {dimension_numbers = #tpu.dot_dimension_numbers<[1], [0], [0], [1], [0, 0, 1, 1], [], []>} : vector<8x8xf32>, vector<8x4xf32>, vector<8x4xf32> -> vector<8x4xf32>
    %c0_57 = arith.constant 0 : index
    %c0_58 = arith.constant 0 : index
    %76 = vector.load %arg6[%c0_57, %c0_58] : memref<8x8xf32, #tpu.memory_space<vmem>>, vector<8x8xf32>
    %cst_59 = arith.constant dense<0.000000e+00> : vector<8x4xf32>
    %77 = tpu.matmul %76, %72, %cst_59 {dimension_numbers = #tpu.dot_dimension_numbers<[1], [0], [0], [1], [0, 0, 1, 1], [], []>} : vector<8x8xf32>, vector<8x4xf32>, vector<8x4xf32> -> vector<8x4xf32>
    %78 = arith.addf %75, %77 : vector<8x4xf32>
    %c0_60 = arith.constant 0 : index
    %c0_61 = arith.constant 0 : index
    %79 = vector.load %arg7[%c0_60, %c0_61] : memref<8x1xf32, #tpu.memory_space<vmem>>, vector<8x1xf32>
    %80 = vector.broadcast %79 : vector<8x1xf32> to vector<8x4xf32>
    %81 = arith.addf %78, %80 : vector<8x4xf32>
    %c0_62 = arith.constant 0 : index
    %c3_63 = arith.constant 3 : index
    %82 = vector.load %arg19[%c0_62, %c3_63] : memref<8x10xf32, #tpu.memory_space<vmem>>, vector<8x4xf32>
    tpu.vector_store %arg19[%c0_62, %c3_63], %81 {strides = array<i32>} : memref<8x10xf32, #tpu.memory_space<vmem>>, vector<8x4xf32>,
    %c1_64 = arith.constant 1 : index
    %c0_65 = arith.constant 0 : index
    %c0_66 = arith.constant 0 : index
    %83 = vector.load %arg8[%c1_64, %c0_65, %c0_66] : memref<3x8x24xf32, #tpu.memory_space<vmem>>, vector<1x8x24xf32>
    %84 = vector.shape_cast %83 : vector<1x8x24xf32> to vector<8x24xf32>
    %c0_67 = arith.constant 0 : index
    %c1_68 = arith.constant 1 : index
    %85 = vector.load %arg19[%c0_67, %c1_68] : memref<8x10xf32, #tpu.memory_space<vmem>>, vector<8x4xf32>
    %c0_69 = arith.constant 0 : index
    %c3_70 = arith.constant 3 : index
    %86 = vector.load %arg19[%c0_69, %c3_70] : memref<8x10xf32, #tpu.memory_space<vmem>>, vector<8x4xf32>
    %c0_71 = arith.constant 0 : index
    %c5_72 = arith.constant 5 : index
    %87 = vector.load %arg19[%c0_71, %c5_72] : memref<8x10xf32, #tpu.memory_space<vmem>>, vector<8x4xf32>
    %88 = tpu.concatenate %85, %86, %87 in 0 : vector<8x4xf32>, vector<8x4xf32>, vector<8x4xf32> -> vector<24x4xf32>
    %cst_73 = arith.constant dense<0.000000e+00> : vector<8x4xf32>
    %89 = tpu.matmul %84, %88, %cst_73 {dimension_numbers = #tpu.dot_dimension_numbers<[1], [0], [0], [1], [0, 0, 1, 1], [], []>} : vector<8x24xf32>, vector<24x4xf32>, vector<8x4xf32> -> vector<8x4xf32>
    %c0_74 = arith.constant 0 : index
    %c0_75 = arith.constant 0 : index
    %c0_76 = arith.constant 0 : index
    %90 = vector.load %arg8[%c0_74, %c0_75, %c0_76] : memref<3x8x24xf32, #tpu.memory_space<vmem>>, vector<1x8x24xf32>
    %91 = vector.shape_cast %90 : vector<1x8x24xf32> to vector<8x24xf32>
    %c0_77 = arith.constant 0 : index
    %c0_78 = arith.constant 0 : index
    %92 = vector.load %arg19[%c0_77, %c0_78] : memref<8x10xf32, #tpu.memory_space<vmem>>, vector<8x4xf32>
    %c0_79 = arith.constant 0 : index
    %c2_80 = arith.constant 2 : index
    %93 = vector.load %arg19[%c0_79, %c2_80] : memref<8x10xf32, #tpu.memory_space<vmem>>, vector<8x4xf32>
    %c0_81 = arith.constant 0 : index
    %c4_82 = arith.constant 4 : index
    %94 = vector.load %arg19[%c0_81, %c4_82] : memref<8x10xf32, #tpu.memory_space<vmem>>, vector<8x4xf32>
    %95 = tpu.concatenate %92, %93, %94 in 0 : vector<8x4xf32>, vector<8x4xf32>, vector<8x4xf32> -> vector<24x4xf32>
    %cst_83 = arith.constant dense<0.000000e+00> : vector<8x4xf32>
    %96 = tpu.matmul %91, %95, %cst_83 {dimension_numbers = #tpu.dot_dimension_numbers<[1], [0], [0], [1], [0, 0, 1, 1], [], []>} : vector<8x24xf32>, vector<24x4xf32>, vector<8x4xf32> -> vector<8x4xf32>
    %c2_84 = arith.constant 2 : index
    %c0_85 = arith.constant 0 : index
    %c0_86 = arith.constant 0 : index
    %97 = vector.load %arg8[%c2_84, %c0_85, %c0_86] : memref<3x8x24xf32, #tpu.memory_space<vmem>>, vector<1x8x24xf32>
    %98 = vector.shape_cast %97 : vector<1x8x24xf32> to vector<8x24xf32>
    %c0_87 = arith.constant 0 : index
    %c2_88 = arith.constant 2 : index
    %99 = vector.load %arg19[%c0_87, %c2_88] : memref<8x10xf32, #tpu.memory_space<vmem>>, vector<8x4xf32>
    %c0_89 = arith.constant 0 : index
    %c4_90 = arith.constant 4 : index
    %100 = vector.load %arg19[%c0_89, %c4_90] : memref<8x10xf32, #tpu.memory_space<vmem>>, vector<8x4xf32>
    %c0_91 = arith.constant 0 : index
    %c6_92 = arith.constant 6 : index
    %101 = vector.load %arg19[%c0_91, %c6_92] : memref<8x10xf32, #tpu.memory_space<vmem>>, vector<8x4xf32>
    %102 = tpu.concatenate %99, %100, %101 in 0 : vector<8x4xf32>, vector<8x4xf32>, vector<8x4xf32> -> vector<24x4xf32>
    %cst_93 = arith.constant dense<0.000000e+00> : vector<8x4xf32>
    %103 = tpu.matmul %98, %102, %cst_93 {dimension_numbers = #tpu.dot_dimension_numbers<[1], [0], [0], [1], [0, 0, 1, 1], [], []>} : vector<8x24xf32>, vector<24x4xf32>, vector<8x4xf32> -> vector<8x4xf32>
    %cst_94 = arith.constant 0.000000e+00 : f32
    %104 = vector.shape_cast %31 : vector<1x4xi1> to vector<1x4xi1>
    %105 = vector.broadcast %104 : vector<1x4xi1> to vector<8x4xi1>
    %106 = vector.broadcast %cst_94 : f32 to vector<8x4xf32>
    %107 = arith.select %105, %96, %106 : vector<8x4xi1>, vector<8x4xf32>
    %108 = arith.addf %89, %107 : vector<8x4xf32>
    %cst_95 = arith.constant 0.000000e+00 : f32
    %109 = vector.shape_cast %33 : vector<1x4xi1> to vector<1x4xi1>
    %110 = vector.broadcast %109 : vector<1x4xi1> to vector<8x4xi1>
    %111 = vector.broadcast %cst_95 : f32 to vector<8x4xf32>
    %112 = arith.select %110, %103, %111 : vector<8x4xi1>, vector<8x4xf32>
    %113 = arith.addf %108, %112 : vector<8x4xf32>
    %c0_96 = arith.constant 0 : index
    %c0_97 = arith.constant 0 : index
    %114 = vector.load %arg9[%c0_96, %c0_97] : memref<8x1xf32, #tpu.memory_space<vmem>>, vector<8x1xf32>
    %115 = vector.broadcast %114 : vector<8x1xf32> to vector<8x4xf32>
    %116 = arith.addf %113, %115 : vector<8x4xf32>
    %cst_98 = arith.constant 0.000000e+00 : f32
    %117 = vector.broadcast %cst_98 : f32 to vector<8x4xf32>
    %118 = arith.cmpf oge, %116, %117 : vector<8x4xf32>
    %cst_99 = arith.constant 0.00999999977 : f32
    %119 = vector.broadcast %cst_99 : f32 to vector<8x4xf32>
    %120 = arith.mulf %119, %116 : vector<8x4xf32>
    %121 = arith.select %118, %116, %120 : vector<8x4xi1>, vector<8x4xf32>
    %c0_100 = arith.constant 0 : index
    %c0_101 = arith.constant 0 : index
    %122 = vector.load %arg10[%c0_100, %c0_101] : memref<8x8xf32, #tpu.memory_space<vmem>>, vector<8x8xf32>
    %c0_102 = arith.constant 0 : index
    %c3_103 = arith.constant 3 : index
    %123 = vector.load %arg18[%c0_102, %c3_103] : memref<8x10xf32, #tpu.memory_space<vmem>>, vector<8x4xf32>
    %cst_104 = arith.constant dense<0.000000e+00> : vector<8x4xf32>
    %124 = tpu.matmul %122, %123, %cst_104 {dimension_numbers = #tpu.dot_dimension_numbers<[1], [0], [0], [1], [0, 0, 1, 1], [], []>} : vector<8x8xf32>, vector<8x4xf32>, vector<8x4xf32> -> vector<8x4xf32>
    %c0_105 = arith.constant 0 : index
    %c0_106 = arith.constant 0 : index
    %125 = vector.load %arg11[%c0_105, %c0_106] : memref<8x8xf32, #tpu.memory_space<vmem>>, vector<8x8xf32>
    %cst_107 = arith.constant dense<0.000000e+00> : vector<8x4xf32>
    %126 = tpu.matmul %125, %72, %cst_107 {dimension_numbers = #tpu.dot_dimension_numbers<[1], [0], [0], [1], [0, 0, 1, 1], [], []>} : vector<8x8xf32>, vector<8x4xf32>, vector<8x4xf32> -> vector<8x4xf32>
    %127 = arith.addf %124, %126 : vector<8x4xf32>
    %c0_108 = arith.constant 0 : index
    %c0_109 = arith.constant 0 : index
    %128 = vector.load %arg12[%c0_108, %c0_109] : memref<8x8xf32, #tpu.memory_space<vmem>>, vector<8x8xf32>
    %cst_110 = arith.constant dense<0.000000e+00> : vector<8x4xf32>
    %129 = tpu.matmul %128, %121, %cst_110 {dimension_numbers = #tpu.dot_dimension_numbers<[1], [0], [0], [1], [0, 0, 1, 1], [], []>} : vector<8x8xf32>, vector<8x4xf32>, vector<8x4xf32> -> vector<8x4xf32>
    %130 = arith.addf %127, %129 : vector<8x4xf32>
    %c0_111 = arith.constant 0 : index
    %c0_112 = arith.constant 0 : index
    %131 = vector.load %arg13[%c0_111, %c0_112] : memref<8x1xf32, #tpu.memory_space<vmem>>, vector<8x1xf32>
    %132 = vector.broadcast %131 : vector<8x1xf32> to vector<8x4xf32>
    %133 = arith.addf %130, %132 : vector<8x4xf32>
    %c0_113 = arith.constant 0 : index
    %c3_114 = arith.constant 3 : index
    %134 = vector.load %arg19[%c0_113, %c3_114] : memref<8x10xf32, #tpu.memory_space<vmem>>, vector<8x4xf32>
    tpu.vector_store %arg19[%c0_113, %c3_114], %133 {strides = array<i32>} : memref<8x10xf32, #tpu.memory_space<vmem>>, vector<8x4xf32>,
    %c1_115 = arith.constant 1 : index
    %c0_116 = arith.constant 0 : index
    %c0_117 = arith.constant 0 : index
    %135 = vector.load %arg14[%c1_115, %c0_116, %c0_117] : memref<3x8x24xf32, #tpu.memory_space<vmem>>, vector<1x8x24xf32>
    %136 = vector.shape_cast %135 : vector<1x8x24xf32> to vector<8x24xf32>
    %c0_118 = arith.constant 0 : index
    %c1_119 = arith.constant 1 : index
    %137 = vector.load %arg19[%c0_118, %c1_119] : memref<8x10xf32, #tpu.memory_space<vmem>>, vector<8x4xf32>
    %c0_120 = arith.constant 0 : index
    %c3_121 = arith.constant 3 : index
    %138 = vector.load %arg19[%c0_120, %c3_121] : memref<8x10xf32, #tpu.memory_space<vmem>>, vector<8x4xf32>
    %c0_122 = arith.constant 0 : index
    %c5_123 = arith.constant 5 : index
    %139 = vector.load %arg19[%c0_122, %c5_123] : memref<8x10xf32, #tpu.memory_space<vmem>>, vector<8x4xf32>
    %140 = tpu.concatenate %137, %138, %139 in 0 : vector<8x4xf32>, vector<8x4xf32>, vector<8x4xf32> -> vector<24x4xf32>
    %cst_124 = arith.constant dense<0.000000e+00> : vector<8x4xf32>
    %141 = tpu.matmul %136, %140, %cst_124 {dimension_numbers = #tpu.dot_dimension_numbers<[1], [0], [0], [1], [0, 0, 1, 1], [], []>} : vector<8x24xf32>, vector<24x4xf32>, vector<8x4xf32> -> vector<8x4xf32>
    %c0_125 = arith.constant 0 : index
    %c0_126 = arith.constant 0 : index
    %c0_127 = arith.constant 0 : index
    %142 = vector.load %arg14[%c0_125, %c0_126, %c0_127] : memref<3x8x24xf32, #tpu.memory_space<vmem>>, vector<1x8x24xf32>
    %143 = vector.shape_cast %142 : vector<1x8x24xf32> to vector<8x24xf32>
    %c0_128 = arith.constant 0 : index
    %c0_129 = arith.constant 0 : index
    %144 = vector.load %arg19[%c0_128, %c0_129] : memref<8x10xf32, #tpu.memory_space<vmem>>, vector<8x4xf32>
    %c0_130 = arith.constant 0 : index
    %c2_131 = arith.constant 2 : index
    %145 = vector.load %arg19[%c0_130, %c2_131] : memref<8x10xf32, #tpu.memory_space<vmem>>, vector<8x4xf32>
    %c0_132 = arith.constant 0 : index
    %c4_133 = arith.constant 4 : index
    %146 = vector.load %arg19[%c0_132, %c4_133] : memref<8x10xf32, #tpu.memory_space<vmem>>, vector<8x4xf32>
    %147 = tpu.concatenate %144, %145, %146 in 0 : vector<8x4xf32>, vector<8x4xf32>, vector<8x4xf32> -> vector<24x4xf32>
    %cst_134 = arith.constant dense<0.000000e+00> : vector<8x4xf32>
    %148 = tpu.matmul %143, %147, %cst_134 {dimension_numbers = #tpu.dot_dimension_numbers<[1], [0], [0], [1], [0, 0, 1, 1], [], []>} : vector<8x24xf32>, vector<24x4xf32>, vector<8x4xf32> -> vector<8x4xf32>
    %c2_135 = arith.constant 2 : index
    %c0_136 = arith.constant 0 : index
    %c0_137 = arith.constant 0 : index
    %149 = vector.load %arg14[%c2_135, %c0_136, %c0_137] : memref<3x8x24xf32, #tpu.memory_space<vmem>>, vector<1x8x24xf32>
    %150 = vector.shape_cast %149 : vector<1x8x24xf32> to vector<8x24xf32>
    %c0_138 = arith.constant 0 : index
    %c2_139 = arith.constant 2 : index
    %151 = vector.load %arg19[%c0_138, %c2_139] : memref<8x10xf32, #tpu.memory_space<vmem>>, vector<8x4xf32>
    %c0_140 = arith.constant 0 : index
    %c4_141 = arith.constant 4 : index
    %152 = vector.load %arg19[%c0_140, %c4_141] : memref<8x10xf32, #tpu.memory_space<vmem>>, vector<8x4xf32>
    %c0_142 = arith.constant 0 : index
    %c6_143 = arith.constant 6 : index
    %153 = vector.load %arg19[%c0_142, %c6_143] : memref<8x10xf32, #tpu.memory_space<vmem>>, vector<8x4xf32>
    %154 = tpu.concatenate %151, %152, %153 in 0 : vector<8x4xf32>, vector<8x4xf32>, vector<8x4xf32> -> vector<24x4xf32>
    %cst_144 = arith.constant dense<0.000000e+00> : vector<8x4xf32>
    %155 = tpu.matmul %150, %154, %cst_144 {dimension_numbers = #tpu.dot_dimension_numbers<[1], [0], [0], [1], [0, 0, 1, 1], [], []>} : vector<8x24xf32>, vector<24x4xf32>, vector<8x4xf32> -> vector<8x4xf32>
    %cst_145 = arith.constant 0.000000e+00 : f32
    %156 = vector.shape_cast %31 : vector<1x4xi1> to vector<1x4xi1>
    %157 = vector.broadcast %156 : vector<1x4xi1> to vector<8x4xi1>
    %158 = vector.broadcast %cst_145 : f32 to vector<8x4xf32>
    %159 = arith.select %157, %148, %158 : vector<8x4xi1>, vector<8x4xf32>
    %160 = arith.addf %141, %159 : vector<8x4xf32>
    %cst_146 = arith.constant 0.000000e+00 : f32
    %161 = vector.shape_cast %33 : vector<1x4xi1> to vector<1x4xi1>
    %162 = vector.broadcast %161 : vector<1x4xi1> to vector<8x4xi1>
    %163 = vector.broadcast %cst_146 : f32 to vector<8x4xf32>
    %164 = arith.select %162, %155, %163 : vector<8x4xi1>, vector<8x4xf32>
    %165 = arith.addf %160, %164 : vector<8x4xf32>
    %c0_147 = arith.constant 0 : index
    %c0_148 = arith.constant 0 : index
    %166 = vector.load %arg15[%c0_147, %c0_148] : memref<8x1xf32, #tpu.memory_space<vmem>>, vector<8x1xf32>
    %167 = vector.broadcast %166 : vector<8x1xf32> to vector<8x4xf32>
    %168 = arith.addf %165, %167 : vector<8x4xf32>
    %cst_149 = arith.constant 0.000000e+00 : f32
    %169 = vector.broadcast %cst_149 : f32 to vector<8x4xf32>
    %170 = arith.cmpf oge, %168, %169 : vector<8x4xf32>
    %cst_150 = arith.constant 0.00999999977 : f32
    %171 = vector.broadcast %cst_150 : f32 to vector<8x4xf32>
    %172 = arith.mulf %171, %168 : vector<8x4xf32>
    %173 = arith.select %170, %168, %172 : vector<8x4xi1>, vector<8x4xf32>
    %c0_151 = arith.constant 0 : index
    %c0_152 = arith.constant 0 : index
    %c0_153 = arith.constant 0 : index
    %174 = vector.load %arg16[%c0_151, %c0_152, %c0_153] : memref<1x8x4xf32, #tpu.memory_space<vmem>>, vector<1x8x4xf32>
    %175 = vector.shape_cast %174 : vector<1x8x4xf32> to vector<8x4xf32>
    %176 = vector.shape_cast %173 : vector<8x4xf32> to vector<1x8x4xf32>
    tpu.vector_store %arg16[%c0_151, %c0_152, %c0_153], %176 {strides = array<i32>} : memref<1x8x4xf32, #tpu.memory_space<vmem>>, vector<1x8x4xf32>,
    %cst_154 = arith.constant dense<0.000000e+00> : vector<8xf32>
    %177 = vector.multi_reduction <add>, %173, %cst_154 [1] : vector<8x4xf32> to vector<8xf32>
    %178 = vector.shape_cast %177 : vector<8xf32> to vector<8x1xf32>
    %179 = arith.mulf %173, %173 : vector<8x4xf32>
    %cst_155 = arith.constant dense<0.000000e+00> : vector<8xf32>
    %180 = vector.multi_reduction <add>, %179, %cst_155 [1] : vector<8x4xf32> to vector<8xf32>
    %181 = vector.shape_cast %180 : vector<8xf32> to vector<8x1xf32>
    %182 = tpu.concatenate %178, %181 in 1 : vector<8x1xf32>, vector<8x1xf32> -> vector<8x2xf32>
    %c0_156 = arith.constant 0 : index
    %c0_157 = arith.constant 0 : index
    %c0_158 = arith.constant 0 : index
    %183 = vector.load %arg17[%c0_156, %c0_157, %c0_158] : memref<1x8x2xf32, #tpu.memory_space<vmem>>, vector<1x8x2xf32>
    %184 = vector.shape_cast %183 : vector<1x8x2xf32> to vector<8x2xf32>
    %185 = vector.shape_cast %182 : vector<8x2xf32> to vector<1x8x2xf32>
    tpu.vector_store %arg17[%c0_156, %c0_157, %c0_158], %185 {strides = array<i32>} : memref<1x8x2xf32, #tpu.memory_space<vmem>>, vector<1x8x2xf32>,
    return
  }
  func.func @transform_0(%arg0: i32) -> (i32, i32, i32) {
    %c0_i32 = arith.constant 0 : i32
    %c0_i32_0 = arith.constant 0 : i32
    %c0_i32_1 = arith.constant 0 : i32
    return %arg0, %c0_i32, %c0_i32_0 : i32, i32, i32
  }
  func.func @transform_1(%arg0: i32) -> (i32, i32) {
    %c0_i32 = arith.constant 0 : i32
    %c0_i32_0 = arith.constant 0 : i32
    %c0_i32_1 = arith.constant 0 : i32
    return %c0_i32, %c0_i32_0 : i32, i32
  }
  func.func @transform_2(%arg0: i32) -> (i32, i32, i32) {
    %c0_i32 = arith.constant 0 : i32
    %c0_i32_0 = arith.constant 0 : i32
    %c0_i32_1 = arith.constant 0 : i32
    %c0_i32_2 = arith.constant 0 : i32
    return %c0_i32, %c0_i32_0, %c0_i32_1 : i32, i32, i32
  }
  func.func @transform_3(%arg0: i32) -> (i32, i32) {
    %c0_i32 = arith.constant 0 : i32
    %c0_i32_0 = arith.constant 0 : i32
    %c0_i32_1 = arith.constant 0 : i32
    return %c0_i32, %c0_i32_0 : i32, i32
  }
  func.func @transform_4(%arg0: i32) -> (i32, i32) {
    %c0_i32 = arith.constant 0 : i32
    %c0_i32_0 = arith.constant 0 : i32
    %c0_i32_1 = arith.constant 0 : i32
    return %c0_i32, %c0_i32_0 : i32, i32
  }
  func.func @transform_5(%arg0: i32) -> (i32, i32) {
    %c0_i32 = arith.constant 0 : i32
    %c0_i32_0 = arith.constant 0 : i32
    %c0_i32_1 = arith.constant 0 : i32
    return %c0_i32, %c0_i32_0 : i32, i32
  }
  func.func @transform_6(%arg0: i32) -> (i32, i32) {
    %c0_i32 = arith.constant 0 : i32
    %c0_i32_0 = arith.constant 0 : i32
    %c0_i32_1 = arith.constant 0 : i32
    return %c0_i32, %c0_i32_0 : i32, i32
  }
  func.func @transform_7(%arg0: i32) -> (i32, i32, i32) {
    %c0_i32 = arith.constant 0 : i32
    %c0_i32_0 = arith.constant 0 : i32
    %c0_i32_1 = arith.constant 0 : i32
    %c0_i32_2 = arith.constant 0 : i32
    return %c0_i32, %c0_i32_0, %c0_i32_1 : i32, i32, i32
  }
  func.func @transform_8(%arg0: i32) -> (i32, i32) {
    %c0_i32 = arith.constant 0 : i32
    %c0_i32_0 = arith.constant 0 : i32
    %c0_i32_1 = arith.constant 0 : i32
    return %c0_i32, %c0_i32_0 : i32, i32
  }
  func.func @transform_9(%arg0: i32) -> (i32, i32) {
    %c0_i32 = arith.constant 0 : i32
    %c0_i32_0 = arith.constant 0 : i32
    %c0_i32_1 = arith.constant 0 : i32
    return %c0_i32, %c0_i32_0 : i32, i32
  }
  func.func @transform_10(%arg0: i32) -> (i32, i32) {
    %c0_i32 = arith.constant 0 : i32
    %c0_i32_0 = arith.constant 0 : i32
    %c0_i32_1 = arith.constant 0 : i32
    return %c0_i32, %c0_i32_0 : i32, i32
  }
  func.func @transform_11(%arg0: i32) -> (i32, i32) {
    %c0_i32 = arith.constant 0 : i32
    %c0_i32_0 = arith.constant 0 : i32
    %c0_i32_1 = arith.constant 0 : i32
    return %c0_i32, %c0_i32_0 : i32, i32
  }
  func.func @transform_12(%arg0: i32) -> (i32, i32) {
    %c0_i32 = arith.constant 0 : i32
    %c0_i32_0 = arith.constant 0 : i32
    %c0_i32_1 = arith.constant 0 : i32
    return %c0_i32, %c0_i32_0 : i32, i32
  }
  func.func @transform_13(%arg0: i32) -> (i32, i32, i32) {
    %c0_i32 = arith.constant 0 : i32
    %c0_i32_0 = arith.constant 0 : i32
    %c0_i32_1 = arith.constant 0 : i32
    %c0_i32_2 = arith.constant 0 : i32
    return %c0_i32, %c0_i32_0, %c0_i32_1 : i32, i32, i32
  }
  func.func @transform_14(%arg0: i32) -> (i32, i32) {
    %c0_i32 = arith.constant 0 : i32
    %c0_i32_0 = arith.constant 0 : i32
    %c0_i32_1 = arith.constant 0 : i32
    return %c0_i32, %c0_i32_0 : i32, i32
  }
  func.func @transform_15(%arg0: i32) -> (i32, i32, i32) {
    %c0_i32 = arith.constant 0 : i32
    %c0_i32_0 = arith.constant 0 : i32
    %c0_i32_1 = arith.constant 0 : i32
    return %arg0, %c0_i32, %c0_i32_0 : i32, i32, i32
  }
  func.func @transform_16(%arg0: i32) -> (i32, i32, i32) {
    %c0_i32 = arith.constant 0 : i32
    %c0_i32_0 = arith.constant 0 : i32
    %c0_i32_1 = arith.constant 0 : i32
    return %arg0, %c0_i32, %c0_i32_0 : i32, i32, i32
  }
}

module attributes {stable_mosaic.version = 11 : i64} {
  func.func @_bn_apply_kernel(%arg0: i32, %arg1: memref<1x8x4xf32, #tpu.memory_space<vmem>>, %arg2: memref<8x1xf32, #tpu.memory_space<vmem>>, %arg3: memref<8x1xf32, #tpu.memory_space<vmem>>, %arg4: memref<1x8x4xf32, #tpu.memory_space<vmem>>) attributes {dimension_semantics = [#tpu.dimension_semantics<parallel>], iteration_bounds = array<i64: 2>, scalar_prefetch = 0 : i64, scratch_operands = 0 : i64, tpu.core_type = #tpu.core_type<tc>, window_params = [{transform_indices = @transform_0, window_bounds = array<i64: 1, 8, 4>}, {pipeline_mode = #tpu.pipeline_mode<synchronous>, transform_indices = @transform_1, window_bounds = array<i64: 8, 1>}, {pipeline_mode = #tpu.pipeline_mode<synchronous>, transform_indices = @transform_2, window_bounds = array<i64: 8, 1>}, {transform_indices = @transform_3, window_bounds = array<i64: 1, 8, 4>}]} {
    %c0 = arith.constant 0 : index
    %c0_0 = arith.constant 0 : index
    %c0_1 = arith.constant 0 : index
    %0 = vector.load %arg1[%c0, %c0_0, %c0_1] : memref<1x8x4xf32, #tpu.memory_space<vmem>>, vector<1x8x4xf32>
    %1 = vector.shape_cast %0 : vector<1x8x4xf32> to vector<8x4xf32>
    %c0_2 = arith.constant 0 : index
    %c0_3 = arith.constant 0 : index
    %2 = vector.load %arg2[%c0_2, %c0_3] : memref<8x1xf32, #tpu.memory_space<vmem>>, vector<8x1xf32>
    %3 = vector.broadcast %2 : vector<8x1xf32> to vector<8x4xf32>
    %4 = arith.mulf %1, %3 : vector<8x4xf32>
    %c0_4 = arith.constant 0 : index
    %c0_5 = arith.constant 0 : index
    %5 = vector.load %arg3[%c0_4, %c0_5] : memref<8x1xf32, #tpu.memory_space<vmem>>, vector<8x1xf32>
    %6 = vector.broadcast %5 : vector<8x1xf32> to vector<8x4xf32>
    %7 = arith.addf %4, %6 : vector<8x4xf32>
    %c0_6 = arith.constant 0 : index
    %c0_7 = arith.constant 0 : index
    %c0_8 = arith.constant 0 : index
    %8 = vector.load %arg4[%c0_6, %c0_7, %c0_8] : memref<1x8x4xf32, #tpu.memory_space<vmem>>, vector<1x8x4xf32>
    %9 = vector.shape_cast %8 : vector<1x8x4xf32> to vector<8x4xf32>
    %10 = vector.shape_cast %7 : vector<8x4xf32> to vector<1x8x4xf32>
    tpu.vector_store %arg4[%c0_6, %c0_7, %c0_8], %10 {strides = array<i32>} : memref<1x8x4xf32, #tpu.memory_space<vmem>>, vector<1x8x4xf32>,
    return
  }
  func.func @transform_0(%arg0: i32) -> (i32, i32, i32) {
    %c0_i32 = arith.constant 0 : i32
    %c0_i32_0 = arith.constant 0 : i32
    %c0_i32_1 = arith.constant 0 : i32
    return %arg0, %c0_i32, %c0_i32_0 : i32, i32, i32
  }
  func.func @transform_1(%arg0: i32) -> (i32, i32) {
    %c0_i32 = arith.constant 0 : i32
    %c0_i32_0 = arith.constant 0 : i32
    %c0_i32_1 = arith.constant 0 : i32
    return %c0_i32, %c0_i32_0 : i32, i32
  }
  func.func @transform_2(%arg0: i32) -> (i32, i32) {
    %c0_i32 = arith.constant 0 : i32
    %c0_i32_0 = arith.constant 0 : i32
    %c0_i32_1 = arith.constant 0 : i32
    return %c0_i32, %c0_i32_0 : i32, i32
  }
  func.func @transform_3(%arg0: i32) -> (i32, i32, i32) {
    %c0_i32 = arith.constant 0 : i32
    %c0_i32_0 = arith.constant 0 : i32
    %c0_i32_1 = arith.constant 0 : i32
    return %arg0, %c0_i32, %c0_i32_0 : i32, i32, i32
  }
}

module attributes {stable_mosaic.version = 11 : i64} {
  func.func @_block_kernel(%arg0: i32, %arg1: memref<1x8x4xf32, #tpu.memory_space<vmem>>, %arg2: memref<4x1xf32, #tpu.memory_space<vmem>>, %arg3: memref<3x8x24xf32, #tpu.memory_space<vmem>>, %arg4: memref<8x1xf32, #tpu.memory_space<vmem>>, %arg5: memref<8x8xf32, #tpu.memory_space<vmem>>, %arg6: memref<8x8xf32, #tpu.memory_space<vmem>>, %arg7: memref<8x1xf32, #tpu.memory_space<vmem>>, %arg8: memref<3x8x24xf32, #tpu.memory_space<vmem>>, %arg9: memref<8x1xf32, #tpu.memory_space<vmem>>, %arg10: memref<8x8xf32, #tpu.memory_space<vmem>>, %arg11: memref<8x8xf32, #tpu.memory_space<vmem>>, %arg12: memref<8x8xf32, #tpu.memory_space<vmem>>, %arg13: memref<8x1xf32, #tpu.memory_space<vmem>>, %arg14: memref<3x8x24xf32, #tpu.memory_space<vmem>>, %arg15: memref<8x1xf32, #tpu.memory_space<vmem>>, %arg16: memref<1x8x1xf32, #tpu.memory_space<vmem>>, %arg17: memref<1x8x2xf32, #tpu.memory_space<vmem>>, %arg18: memref<8x5xf32, #tpu.memory_space<vmem>>, %arg19: memref<8x5xf32, #tpu.memory_space<vmem>>) attributes {dimension_semantics = [#tpu.dimension_semantics<parallel>], iteration_bounds = array<i64: 2>, scalar_prefetch = 0 : i64, scratch_operands = 2 : i64, tpu.core_type = #tpu.core_type<tc>, window_params = [{transform_indices = @transform_0, window_bounds = array<i64: 1, 8, 4>}, {pipeline_mode = #tpu.pipeline_mode<synchronous>, transform_indices = @transform_1, window_bounds = array<i64: 4, 1>}, {pipeline_mode = #tpu.pipeline_mode<synchronous>, transform_indices = @transform_2, window_bounds = array<i64: 3, 8, 24>}, {pipeline_mode = #tpu.pipeline_mode<synchronous>, transform_indices = @transform_3, window_bounds = array<i64: 8, 1>}, {pipeline_mode = #tpu.pipeline_mode<synchronous>, transform_indices = @transform_4, window_bounds = array<i64: 8, 8>}, {pipeline_mode = #tpu.pipeline_mode<synchronous>, transform_indices = @transform_5, window_bounds = array<i64: 8, 8>}, {pipeline_mode = #tpu.pipeline_mode<synchronous>, transform_indices = @transform_6, window_bounds = array<i64: 8, 1>}, {pipeline_mode = #tpu.pipeline_mode<synchronous>, transform_indices = @transform_7, window_bounds = array<i64: 3, 8, 24>}, {pipeline_mode = #tpu.pipeline_mode<synchronous>, transform_indices = @transform_8, window_bounds = array<i64: 8, 1>}, {pipeline_mode = #tpu.pipeline_mode<synchronous>, transform_indices = @transform_9, window_bounds = array<i64: 8, 8>}, {pipeline_mode = #tpu.pipeline_mode<synchronous>, transform_indices = @transform_10, window_bounds = array<i64: 8, 8>}, {pipeline_mode = #tpu.pipeline_mode<synchronous>, transform_indices = @transform_11, window_bounds = array<i64: 8, 8>}, {pipeline_mode = #tpu.pipeline_mode<synchronous>, transform_indices = @transform_12, window_bounds = array<i64: 8, 1>}, {pipeline_mode = #tpu.pipeline_mode<synchronous>, transform_indices = @transform_13, window_bounds = array<i64: 3, 8, 24>}, {pipeline_mode = #tpu.pipeline_mode<synchronous>, transform_indices = @transform_14, window_bounds = array<i64: 8, 1>}, {transform_indices = @transform_15, window_bounds = array<i64: 1, 8, 1>}, {transform_indices = @transform_16, window_bounds = array<i64: 1, 8, 2>}]} {
    %cst = arith.constant 0.000000e+00 : f32
    %0 = vector.broadcast %cst : f32 to vector<8x2xf32>
    %c0 = arith.constant 0 : index
    %c0_0 = arith.constant 0 : index
    %1 = vector.load %arg18[%c0, %c0_0] : memref<8x5xf32, #tpu.memory_space<vmem>>, vector<8x2xf32>
    tpu.vector_store %arg18[%c0, %c0_0], %0 {strides = array<i32>} : memref<8x5xf32, #tpu.memory_space<vmem>>, vector<8x2xf32>,
    %cst_1 = arith.constant 0.000000e+00 : f32
    %2 = vector.broadcast %cst_1 : f32 to vector<8x2xf32>
    %c0_2 = arith.constant 0 : index
    %c3 = arith.constant 3 : index
    %3 = vector.load %arg18[%c0_2, %c3] : memref<8x5xf32, #tpu.memory_space<vmem>>, vector<8x2xf32>
    tpu.vector_store %arg18[%c0_2, %c3], %2 {strides = array<i32>} : memref<8x5xf32, #tpu.memory_space<vmem>>, vector<8x2xf32>,
    %cst_3 = arith.constant 0.000000e+00 : f32
    %4 = vector.broadcast %cst_3 : f32 to vector<8x2xf32>
    %c0_4 = arith.constant 0 : index
    %c0_5 = arith.constant 0 : index
    %5 = vector.load %arg19[%c0_4, %c0_5] : memref<8x5xf32, #tpu.memory_space<vmem>>, vector<8x2xf32>
    tpu.vector_store %arg19[%c0_4, %c0_5], %4 {strides = array<i32>} : memref<8x5xf32, #tpu.memory_space<vmem>>, vector<8x2xf32>,
    %cst_6 = arith.constant 0.000000e+00 : f32
    %6 = vector.broadcast %cst_6 : f32 to vector<8x2xf32>
    %c0_7 = arith.constant 0 : index
    %c3_8 = arith.constant 3 : index
    %7 = vector.load %arg19[%c0_7, %c3_8] : memref<8x5xf32, #tpu.memory_space<vmem>>, vector<8x2xf32>
    tpu.vector_store %arg19[%c0_7, %c3_8], %6 {strides = array<i32>} : memref<8x5xf32, #tpu.memory_space<vmem>>, vector<8x2xf32>,
    %c0_9 = arith.constant 0 : index
    %c0_10 = arith.constant 0 : index
    %c0_11 = arith.constant 0 : index
    %8 = vector.load %arg1[%c0_9, %c0_10, %c0_11] : memref<1x8x4xf32, #tpu.memory_space<vmem>>, vector<1x8x4xf32>
    %9 = vector.shape_cast %8 : vector<1x8x4xf32> to vector<8x4xf32>
    %c0_12 = arith.constant 0 : index
    %c0_13 = arith.constant 0 : index
    %10 = vector.load %arg2[%c0_12, %c0_13] : memref<4x1xf32, #tpu.memory_space<vmem>>, vector<4x1xf32>
    %cst_14 = arith.constant dense<0.000000e+00> : vector<8x1xf32>
    %11 = tpu.matmul %9, %10, %cst_14 {dimension_numbers = #tpu.dot_dimension_numbers<[1], [0], [0], [1], [0, 0, 1, 1], [], []>} : vector<8x4xf32>, vector<4x1xf32>, vector<8x1xf32> -> vector<8x1xf32>
    %c0_15 = arith.constant 0 : index
    %c2 = arith.constant 2 : index
    %12 = vector.load %arg18[%c0_15, %c2] : memref<8x5xf32, #tpu.memory_space<vmem>>, vector<8x1xf32>
    tpu.vector_store %arg18[%c0_15, %c2], %11 {strides = array<i32>} : memref<8x5xf32, #tpu.memory_space<vmem>>, vector<8x1xf32>,
    %13 = tpu.iota {dimensions = array<i32: 1>} : vector<1x1xi32>
    %c1_i32 = arith.constant 1 : i32
    %c0_i32 = arith.constant 0 : i32
    %14 = arith.cmpi eq, %c1_i32, %c0_i32 : i32
    %c1_i32_16 = arith.constant 1 : i32
    %15 = arith.select %14, %c1_i32_16, %c1_i32 : i32
    %16 = vector.broadcast %15 : i32 to vector<1x1xi32>
    %17 = arith.remsi %13, %16 : vector<1x1xi32>
    %c0_i32_17 = arith.constant 0 : i32
    %18 = vector.broadcast %c0_i32_17 : i32 to vector<1x1xi32>
    %19 = arith.cmpi ne, %17, %18 : vector<1x1xi32>
    %c0_i32_18 = arith.constant 0 : i32
    %20 = vector.broadcast %c0_i32_18 : i32 to vector<1x1xi32>
    %21 = arith.cmpi slt, %17, %20 : vector<1x1xi32>
    %c0_i32_19 = arith.constant 0 : i32
    %22 = arith.cmpi slt, %15, %c0_i32_19 : i32
    %23 = vector.broadcast %22 : i1 to vector<1x1xi1>
    %24 = vector.broadcast %23 : vector<1x1xi1> to vector<1x1xi1>
    %25 = arith.xori %21, %24 : vector<1x1xi1>
    %26 = arith.andi %25, %19 : vector<1x1xi1>
    %27 = vector.broadcast %15 : i32 to vector<1x1xi32>
    %28 = arith.addi %17, %27 : vector<1x1xi32>
    %29 = arith.select %26, %28, %17 : vector<1x1xi1>, vector<1x1xi32>
    %c0_i32_20 = arith.constant 0 : i32
    %30 = vector.broadcast %c0_i32_20 : i32 to vector<1x1xi32>
    %31 = arith.cmpi ne, %29, %30 : vector<1x1xi32>
    %c0_i32_21 = arith.constant 0 : i32
    %32 = vector.broadcast %c0_i32_21 : i32 to vector<1x1xi32>
    %33 = arith.cmpi ne, %29, %32 : vector<1x1xi32>
    %c1 = arith.constant 1 : index
    %c0_22 = arith.constant 0 : index
    %c0_23 = arith.constant 0 : index
    %34 = vector.load %arg3[%c1, %c0_22, %c0_23] : memref<3x8x24xf32, #tpu.memory_space<vmem>>, vector<1x8x24xf32>
    %35 = vector.shape_cast %34 : vector<1x8x24xf32> to vector<8x24xf32>
    %c0_24 = arith.constant 0 : index
    %c1_25 = arith.constant 1 : index
    %36 = vector.load %arg18[%c0_24, %c1_25] : memref<8x5xf32, #tpu.memory_space<vmem>>, vector<8x1xf32>
    %c0_26 = arith.constant 0 : index
    %c2_27 = arith.constant 2 : index
    %37 = vector.load %arg18[%c0_26, %c2_27] : memref<8x5xf32, #tpu.memory_space<vmem>>, vector<8x1xf32>
    %c0_28 = arith.constant 0 : index
    %c3_29 = arith.constant 3 : index
    %38 = vector.load %arg18[%c0_28, %c3_29] : memref<8x5xf32, #tpu.memory_space<vmem>>, vector<8x1xf32>
    %39 = tpu.concatenate %36, %37, %38 in 0 : vector<8x1xf32>, vector<8x1xf32>, vector<8x1xf32> -> vector<24x1xf32>
    %cst_30 = arith.constant dense<0.000000e+00> : vector<8x1xf32>
    %40 = tpu.matmul %35, %39, %cst_30 {dimension_numbers = #tpu.dot_dimension_numbers<[1], [0], [0], [1], [0, 0, 1, 1], [], []>} : vector<8x24xf32>, vector<24x1xf32>, vector<8x1xf32> -> vector<8x1xf32>
    %c0_31 = arith.constant 0 : index
    %c0_32 = arith.constant 0 : index
    %c0_33 = arith.constant 0 : index
    %41 = vector.load %arg3[%c0_31, %c0_32, %c0_33] : memref<3x8x24xf32, #tpu.memory_space<vmem>>, vector<1x8x24xf32>
    %42 = vector.shape_cast %41 : vector<1x8x24xf32> to vector<8x24xf32>
    %c0_34 = arith.constant 0 : index
    %c0_35 = arith.constant 0 : index
    %43 = vector.load %arg18[%c0_34, %c0_35] : memref<8x5xf32, #tpu.memory_space<vmem>>, vector<8x1xf32>
    %c0_36 = arith.constant 0 : index
    %c1_37 = arith.constant 1 : index
    %44 = vector.load %arg18[%c0_36, %c1_37] : memref<8x5xf32, #tpu.memory_space<vmem>>, vector<8x1xf32>
    %c0_38 = arith.constant 0 : index
    %c2_39 = arith.constant 2 : index
    %45 = vector.load %arg18[%c0_38, %c2_39] : memref<8x5xf32, #tpu.memory_space<vmem>>, vector<8x1xf32>
    %46 = tpu.concatenate %43, %44, %45 in 0 : vector<8x1xf32>, vector<8x1xf32>, vector<8x1xf32> -> vector<24x1xf32>
    %cst_40 = arith.constant dense<0.000000e+00> : vector<8x1xf32>
    %47 = tpu.matmul %42, %46, %cst_40 {dimension_numbers = #tpu.dot_dimension_numbers<[1], [0], [0], [1], [0, 0, 1, 1], [], []>} : vector<8x24xf32>, vector<24x1xf32>, vector<8x1xf32> -> vector<8x1xf32>
    %c2_41 = arith.constant 2 : index
    %c0_42 = arith.constant 0 : index
    %c0_43 = arith.constant 0 : index
    %48 = vector.load %arg3[%c2_41, %c0_42, %c0_43] : memref<3x8x24xf32, #tpu.memory_space<vmem>>, vector<1x8x24xf32>
    %49 = vector.shape_cast %48 : vector<1x8x24xf32> to vector<8x24xf32>
    %c0_44 = arith.constant 0 : index
    %c2_45 = arith.constant 2 : index
    %50 = vector.load %arg18[%c0_44, %c2_45] : memref<8x5xf32, #tpu.memory_space<vmem>>, vector<8x1xf32>
    %c0_46 = arith.constant 0 : index
    %c3_47 = arith.constant 3 : index
    %51 = vector.load %arg18[%c0_46, %c3_47] : memref<8x5xf32, #tpu.memory_space<vmem>>, vector<8x1xf32>
    %c0_48 = arith.constant 0 : index
    %c4 = arith.constant 4 : index
    %52 = vector.load %arg18[%c0_48, %c4] : memref<8x5xf32, #tpu.memory_space<vmem>>, vector<8x1xf32>
    %53 = tpu.concatenate %50, %51, %52 in 0 : vector<8x1xf32>, vector<8x1xf32>, vector<8x1xf32> -> vector<24x1xf32>
    %cst_49 = arith.constant dense<0.000000e+00> : vector<8x1xf32>
    %54 = tpu.matmul %49, %53, %cst_49 {dimension_numbers = #tpu.dot_dimension_numbers<[1], [0], [0], [1], [0, 0, 1, 1], [], []>} : vector<8x24xf32>, vector<24x1xf32>, vector<8x1xf32> -> vector<8x1xf32>
    %cst_50 = arith.constant 0.000000e+00 : f32
    %55 = vector.shape_cast %31 : vector<1x1xi1> to vector<1x1xi1>
    %56 = vector.broadcast %55 : vector<1x1xi1> to vector<8x1xi1>
    %57 = vector.broadcast %cst_50 : f32 to vector<8x1xf32>
    %58 = arith.select %56, %47, %57 : vector<8x1xi1>, vector<8x1xf32>
    %59 = arith.addf %40, %58 : vector<8x1xf32>
    %cst_51 = arith.constant 0.000000e+00 : f32
    %60 = vector.shape_cast %33 : vector<1x1xi1> to vector<1x1xi1>
    %61 = vector.broadcast %60 : vector<1x1xi1> to vector<8x1xi1>
    %62 = vector.broadcast %cst_51 : f32 to vector<8x1xf32>
    %63 = arith.select %61, %54, %62 : vector<8x1xi1>, vector<8x1xf32>
    %64 = arith.addf %59, %63 : vector<8x1xf32>
    %c0_52 = arith.constant 0 : index
    %c0_53 = arith.constant 0 : index
    %65 = vector.load %arg4[%c0_52, %c0_53] : memref<8x1xf32, #tpu.memory_space<vmem>>, vector<8x1xf32>
    %66 = arith.addf %64, %65 : vector<8x1xf32>
    %cst_54 = arith.constant 0.000000e+00 : f32
    %67 = vector.broadcast %cst_54 : f32 to vector<8x1xf32>
    %68 = arith.cmpf oge, %66, %67 : vector<8x1xf32>
    %cst_55 = arith.constant 0.00999999977 : f32
    %69 = vector.broadcast %cst_55 : f32 to vector<8x1xf32>
    %70 = arith.mulf %69, %66 : vector<8x1xf32>
    %71 = arith.select %68, %66, %70 : vector<8x1xi1>, vector<8x1xf32>
    %c0_56 = arith.constant 0 : index
    %c0_57 = arith.constant 0 : index
    %72 = vector.load %arg5[%c0_56, %c0_57] : memref<8x8xf32, #tpu.memory_space<vmem>>, vector<8x8xf32>
    %c0_58 = arith.constant 0 : index
    %c2_59 = arith.constant 2 : index
    %73 = vector.load %arg18[%c0_58, %c2_59] : memref<8x5xf32, #tpu.memory_space<vmem>>, vector<8x1xf32>
    %cst_60 = arith.constant dense<0.000000e+00> : vector<8x1xf32>
    %74 = tpu.matmul %72, %73, %cst_60 {dimension_numbers = #tpu.dot_dimension_numbers<[1], [0], [0], [1], [0, 0, 1, 1], [], []>} : vector<8x8xf32>, vector<8x1xf32>, vector<8x1xf32> -> vector<8x1xf32>
    %c0_61 = arith.constant 0 : index
    %c0_62 = arith.constant 0 : index
    %75 = vector.load %arg6[%c0_61, %c0_62] : memref<8x8xf32, #tpu.memory_space<vmem>>, vector<8x8xf32>
    %cst_63 = arith.constant dense<0.000000e+00> : vector<8x1xf32>
    %76 = tpu.matmul %75, %71, %cst_63 {dimension_numbers = #tpu.dot_dimension_numbers<[1], [0], [0], [1], [0, 0, 1, 1], [], []>} : vector<8x8xf32>, vector<8x1xf32>, vector<8x1xf32> -> vector<8x1xf32>
    %77 = arith.addf %74, %76 : vector<8x1xf32>
    %c0_64 = arith.constant 0 : index
    %c0_65 = arith.constant 0 : index
    %78 = vector.load %arg7[%c0_64, %c0_65] : memref<8x1xf32, #tpu.memory_space<vmem>>, vector<8x1xf32>
    %79 = arith.addf %77, %78 : vector<8x1xf32>
    %c0_66 = arith.constant 0 : index
    %c2_67 = arith.constant 2 : index
    %80 = vector.load %arg19[%c0_66, %c2_67] : memref<8x5xf32, #tpu.memory_space<vmem>>, vector<8x1xf32>
    tpu.vector_store %arg19[%c0_66, %c2_67], %79 {strides = array<i32>} : memref<8x5xf32, #tpu.memory_space<vmem>>, vector<8x1xf32>,
    %c1_68 = arith.constant 1 : index
    %c0_69 = arith.constant 0 : index
    %c0_70 = arith.constant 0 : index
    %81 = vector.load %arg8[%c1_68, %c0_69, %c0_70] : memref<3x8x24xf32, #tpu.memory_space<vmem>>, vector<1x8x24xf32>
    %82 = vector.shape_cast %81 : vector<1x8x24xf32> to vector<8x24xf32>
    %c0_71 = arith.constant 0 : index
    %c1_72 = arith.constant 1 : index
    %83 = vector.load %arg19[%c0_71, %c1_72] : memref<8x5xf32, #tpu.memory_space<vmem>>, vector<8x1xf32>
    %c0_73 = arith.constant 0 : index
    %c2_74 = arith.constant 2 : index
    %84 = vector.load %arg19[%c0_73, %c2_74] : memref<8x5xf32, #tpu.memory_space<vmem>>, vector<8x1xf32>
    %c0_75 = arith.constant 0 : index
    %c3_76 = arith.constant 3 : index
    %85 = vector.load %arg19[%c0_75, %c3_76] : memref<8x5xf32, #tpu.memory_space<vmem>>, vector<8x1xf32>
    %86 = tpu.concatenate %83, %84, %85 in 0 : vector<8x1xf32>, vector<8x1xf32>, vector<8x1xf32> -> vector<24x1xf32>
    %cst_77 = arith.constant dense<0.000000e+00> : vector<8x1xf32>
    %87 = tpu.matmul %82, %86, %cst_77 {dimension_numbers = #tpu.dot_dimension_numbers<[1], [0], [0], [1], [0, 0, 1, 1], [], []>} : vector<8x24xf32>, vector<24x1xf32>, vector<8x1xf32> -> vector<8x1xf32>
    %c0_78 = arith.constant 0 : index
    %c0_79 = arith.constant 0 : index
    %c0_80 = arith.constant 0 : index
    %88 = vector.load %arg8[%c0_78, %c0_79, %c0_80] : memref<3x8x24xf32, #tpu.memory_space<vmem>>, vector<1x8x24xf32>
    %89 = vector.shape_cast %88 : vector<1x8x24xf32> to vector<8x24xf32>
    %c0_81 = arith.constant 0 : index
    %c0_82 = arith.constant 0 : index
    %90 = vector.load %arg19[%c0_81, %c0_82] : memref<8x5xf32, #tpu.memory_space<vmem>>, vector<8x1xf32>
    %c0_83 = arith.constant 0 : index
    %c1_84 = arith.constant 1 : index
    %91 = vector.load %arg19[%c0_83, %c1_84] : memref<8x5xf32, #tpu.memory_space<vmem>>, vector<8x1xf32>
    %c0_85 = arith.constant 0 : index
    %c2_86 = arith.constant 2 : index
    %92 = vector.load %arg19[%c0_85, %c2_86] : memref<8x5xf32, #tpu.memory_space<vmem>>, vector<8x1xf32>
    %93 = tpu.concatenate %90, %91, %92 in 0 : vector<8x1xf32>, vector<8x1xf32>, vector<8x1xf32> -> vector<24x1xf32>
    %cst_87 = arith.constant dense<0.000000e+00> : vector<8x1xf32>
    %94 = tpu.matmul %89, %93, %cst_87 {dimension_numbers = #tpu.dot_dimension_numbers<[1], [0], [0], [1], [0, 0, 1, 1], [], []>} : vector<8x24xf32>, vector<24x1xf32>, vector<8x1xf32> -> vector<8x1xf32>
    %c2_88 = arith.constant 2 : index
    %c0_89 = arith.constant 0 : index
    %c0_90 = arith.constant 0 : index
    %95 = vector.load %arg8[%c2_88, %c0_89, %c0_90] : memref<3x8x24xf32, #tpu.memory_space<vmem>>, vector<1x8x24xf32>
    %96 = vector.shape_cast %95 : vector<1x8x24xf32> to vector<8x24xf32>
    %c0_91 = arith.constant 0 : index
    %c2_92 = arith.constant 2 : index
    %97 = vector.load %arg19[%c0_91, %c2_92] : memref<8x5xf32, #tpu.memory_space<vmem>>, vector<8x1xf32>
    %c0_93 = arith.constant 0 : index
    %c3_94 = arith.constant 3 : index
    %98 = vector.load %arg19[%c0_93, %c3_94] : memref<8x5xf32, #tpu.memory_space<vmem>>, vector<8x1xf32>
    %c0_95 = arith.constant 0 : index
    %c4_96 = arith.constant 4 : index
    %99 = vector.load %arg19[%c0_95, %c4_96] : memref<8x5xf32, #tpu.memory_space<vmem>>, vector<8x1xf32>
    %100 = tpu.concatenate %97, %98, %99 in 0 : vector<8x1xf32>, vector<8x1xf32>, vector<8x1xf32> -> vector<24x1xf32>
    %cst_97 = arith.constant dense<0.000000e+00> : vector<8x1xf32>
    %101 = tpu.matmul %96, %100, %cst_97 {dimension_numbers = #tpu.dot_dimension_numbers<[1], [0], [0], [1], [0, 0, 1, 1], [], []>} : vector<8x24xf32>, vector<24x1xf32>, vector<8x1xf32> -> vector<8x1xf32>
    %cst_98 = arith.constant 0.000000e+00 : f32
    %102 = vector.shape_cast %31 : vector<1x1xi1> to vector<1x1xi1>
    %103 = vector.broadcast %102 : vector<1x1xi1> to vector<8x1xi1>
    %104 = vector.broadcast %cst_98 : f32 to vector<8x1xf32>
    %105 = arith.select %103, %94, %104 : vector<8x1xi1>, vector<8x1xf32>
    %106 = arith.addf %87, %105 : vector<8x1xf32>
    %cst_99 = arith.constant 0.000000e+00 : f32
    %107 = vector.shape_cast %33 : vector<1x1xi1> to vector<1x1xi1>
    %108 = vector.broadcast %107 : vector<1x1xi1> to vector<8x1xi1>
    %109 = vector.broadcast %cst_99 : f32 to vector<8x1xf32>
    %110 = arith.select %108, %101, %109 : vector<8x1xi1>, vector<8x1xf32>
    %111 = arith.addf %106, %110 : vector<8x1xf32>
    %c0_100 = arith.constant 0 : index
    %c0_101 = arith.constant 0 : index
    %112 = vector.load %arg9[%c0_100, %c0_101] : memref<8x1xf32, #tpu.memory_space<vmem>>, vector<8x1xf32>
    %113 = arith.addf %111, %112 : vector<8x1xf32>
    %cst_102 = arith.constant 0.000000e+00 : f32
    %114 = vector.broadcast %cst_102 : f32 to vector<8x1xf32>
    %115 = arith.cmpf oge, %113, %114 : vector<8x1xf32>
    %cst_103 = arith.constant 0.00999999977 : f32
    %116 = vector.broadcast %cst_103 : f32 to vector<8x1xf32>
    %117 = arith.mulf %116, %113 : vector<8x1xf32>
    %118 = arith.select %115, %113, %117 : vector<8x1xi1>, vector<8x1xf32>
    %c0_104 = arith.constant 0 : index
    %c0_105 = arith.constant 0 : index
    %119 = vector.load %arg10[%c0_104, %c0_105] : memref<8x8xf32, #tpu.memory_space<vmem>>, vector<8x8xf32>
    %c0_106 = arith.constant 0 : index
    %c2_107 = arith.constant 2 : index
    %120 = vector.load %arg18[%c0_106, %c2_107] : memref<8x5xf32, #tpu.memory_space<vmem>>, vector<8x1xf32>
    %cst_108 = arith.constant dense<0.000000e+00> : vector<8x1xf32>
    %121 = tpu.matmul %119, %120, %cst_108 {dimension_numbers = #tpu.dot_dimension_numbers<[1], [0], [0], [1], [0, 0, 1, 1], [], []>} : vector<8x8xf32>, vector<8x1xf32>, vector<8x1xf32> -> vector<8x1xf32>
    %c0_109 = arith.constant 0 : index
    %c0_110 = arith.constant 0 : index
    %122 = vector.load %arg11[%c0_109, %c0_110] : memref<8x8xf32, #tpu.memory_space<vmem>>, vector<8x8xf32>
    %cst_111 = arith.constant dense<0.000000e+00> : vector<8x1xf32>
    %123 = tpu.matmul %122, %71, %cst_111 {dimension_numbers = #tpu.dot_dimension_numbers<[1], [0], [0], [1], [0, 0, 1, 1], [], []>} : vector<8x8xf32>, vector<8x1xf32>, vector<8x1xf32> -> vector<8x1xf32>
    %124 = arith.addf %121, %123 : vector<8x1xf32>
    %c0_112 = arith.constant 0 : index
    %c0_113 = arith.constant 0 : index
    %125 = vector.load %arg12[%c0_112, %c0_113] : memref<8x8xf32, #tpu.memory_space<vmem>>, vector<8x8xf32>
    %cst_114 = arith.constant dense<0.000000e+00> : vector<8x1xf32>
    %126 = tpu.matmul %125, %118, %cst_114 {dimension_numbers = #tpu.dot_dimension_numbers<[1], [0], [0], [1], [0, 0, 1, 1], [], []>} : vector<8x8xf32>, vector<8x1xf32>, vector<8x1xf32> -> vector<8x1xf32>
    %127 = arith.addf %124, %126 : vector<8x1xf32>
    %c0_115 = arith.constant 0 : index
    %c0_116 = arith.constant 0 : index
    %128 = vector.load %arg13[%c0_115, %c0_116] : memref<8x1xf32, #tpu.memory_space<vmem>>, vector<8x1xf32>
    %129 = arith.addf %127, %128 : vector<8x1xf32>
    %c0_117 = arith.constant 0 : index
    %c2_118 = arith.constant 2 : index
    %130 = vector.load %arg19[%c0_117, %c2_118] : memref<8x5xf32, #tpu.memory_space<vmem>>, vector<8x1xf32>
    tpu.vector_store %arg19[%c0_117, %c2_118], %129 {strides = array<i32>} : memref<8x5xf32, #tpu.memory_space<vmem>>, vector<8x1xf32>,
    %c1_119 = arith.constant 1 : index
    %c0_120 = arith.constant 0 : index
    %c0_121 = arith.constant 0 : index
    %131 = vector.load %arg14[%c1_119, %c0_120, %c0_121] : memref<3x8x24xf32, #tpu.memory_space<vmem>>, vector<1x8x24xf32>
    %132 = vector.shape_cast %131 : vector<1x8x24xf32> to vector<8x24xf32>
    %c0_122 = arith.constant 0 : index
    %c1_123 = arith.constant 1 : index
    %133 = vector.load %arg19[%c0_122, %c1_123] : memref<8x5xf32, #tpu.memory_space<vmem>>, vector<8x1xf32>
    %c0_124 = arith.constant 0 : index
    %c2_125 = arith.constant 2 : index
    %134 = vector.load %arg19[%c0_124, %c2_125] : memref<8x5xf32, #tpu.memory_space<vmem>>, vector<8x1xf32>
    %c0_126 = arith.constant 0 : index
    %c3_127 = arith.constant 3 : index
    %135 = vector.load %arg19[%c0_126, %c3_127] : memref<8x5xf32, #tpu.memory_space<vmem>>, vector<8x1xf32>
    %136 = tpu.concatenate %133, %134, %135 in 0 : vector<8x1xf32>, vector<8x1xf32>, vector<8x1xf32> -> vector<24x1xf32>
    %cst_128 = arith.constant dense<0.000000e+00> : vector<8x1xf32>
    %137 = tpu.matmul %132, %136, %cst_128 {dimension_numbers = #tpu.dot_dimension_numbers<[1], [0], [0], [1], [0, 0, 1, 1], [], []>} : vector<8x24xf32>, vector<24x1xf32>, vector<8x1xf32> -> vector<8x1xf32>
    %c0_129 = arith.constant 0 : index
    %c0_130 = arith.constant 0 : index
    %c0_131 = arith.constant 0 : index
    %138 = vector.load %arg14[%c0_129, %c0_130, %c0_131] : memref<3x8x24xf32, #tpu.memory_space<vmem>>, vector<1x8x24xf32>
    %139 = vector.shape_cast %138 : vector<1x8x24xf32> to vector<8x24xf32>
    %c0_132 = arith.constant 0 : index
    %c0_133 = arith.constant 0 : index
    %140 = vector.load %arg19[%c0_132, %c0_133] : memref<8x5xf32, #tpu.memory_space<vmem>>, vector<8x1xf32>
    %c0_134 = arith.constant 0 : index
    %c1_135 = arith.constant 1 : index
    %141 = vector.load %arg19[%c0_134, %c1_135] : memref<8x5xf32, #tpu.memory_space<vmem>>, vector<8x1xf32>
    %c0_136 = arith.constant 0 : index
    %c2_137 = arith.constant 2 : index
    %142 = vector.load %arg19[%c0_136, %c2_137] : memref<8x5xf32, #tpu.memory_space<vmem>>, vector<8x1xf32>
    %143 = tpu.concatenate %140, %141, %142 in 0 : vector<8x1xf32>, vector<8x1xf32>, vector<8x1xf32> -> vector<24x1xf32>
    %cst_138 = arith.constant dense<0.000000e+00> : vector<8x1xf32>
    %144 = tpu.matmul %139, %143, %cst_138 {dimension_numbers = #tpu.dot_dimension_numbers<[1], [0], [0], [1], [0, 0, 1, 1], [], []>} : vector<8x24xf32>, vector<24x1xf32>, vector<8x1xf32> -> vector<8x1xf32>
    %c2_139 = arith.constant 2 : index
    %c0_140 = arith.constant 0 : index
    %c0_141 = arith.constant 0 : index
    %145 = vector.load %arg14[%c2_139, %c0_140, %c0_141] : memref<3x8x24xf32, #tpu.memory_space<vmem>>, vector<1x8x24xf32>
    %146 = vector.shape_cast %145 : vector<1x8x24xf32> to vector<8x24xf32>
    %c0_142 = arith.constant 0 : index
    %c2_143 = arith.constant 2 : index
    %147 = vector.load %arg19[%c0_142, %c2_143] : memref<8x5xf32, #tpu.memory_space<vmem>>, vector<8x1xf32>
    %c0_144 = arith.constant 0 : index
    %c3_145 = arith.constant 3 : index
    %148 = vector.load %arg19[%c0_144, %c3_145] : memref<8x5xf32, #tpu.memory_space<vmem>>, vector<8x1xf32>
    %c0_146 = arith.constant 0 : index
    %c4_147 = arith.constant 4 : index
    %149 = vector.load %arg19[%c0_146, %c4_147] : memref<8x5xf32, #tpu.memory_space<vmem>>, vector<8x1xf32>
    %150 = tpu.concatenate %147, %148, %149 in 0 : vector<8x1xf32>, vector<8x1xf32>, vector<8x1xf32> -> vector<24x1xf32>
    %cst_148 = arith.constant dense<0.000000e+00> : vector<8x1xf32>
    %151 = tpu.matmul %146, %150, %cst_148 {dimension_numbers = #tpu.dot_dimension_numbers<[1], [0], [0], [1], [0, 0, 1, 1], [], []>} : vector<8x24xf32>, vector<24x1xf32>, vector<8x1xf32> -> vector<8x1xf32>
    %cst_149 = arith.constant 0.000000e+00 : f32
    %152 = vector.shape_cast %31 : vector<1x1xi1> to vector<1x1xi1>
    %153 = vector.broadcast %152 : vector<1x1xi1> to vector<8x1xi1>
    %154 = vector.broadcast %cst_149 : f32 to vector<8x1xf32>
    %155 = arith.select %153, %144, %154 : vector<8x1xi1>, vector<8x1xf32>
    %156 = arith.addf %137, %155 : vector<8x1xf32>
    %cst_150 = arith.constant 0.000000e+00 : f32
    %157 = vector.shape_cast %33 : vector<1x1xi1> to vector<1x1xi1>
    %158 = vector.broadcast %157 : vector<1x1xi1> to vector<8x1xi1>
    %159 = vector.broadcast %cst_150 : f32 to vector<8x1xf32>
    %160 = arith.select %158, %151, %159 : vector<8x1xi1>, vector<8x1xf32>
    %161 = arith.addf %156, %160 : vector<8x1xf32>
    %c0_151 = arith.constant 0 : index
    %c0_152 = arith.constant 0 : index
    %162 = vector.load %arg15[%c0_151, %c0_152] : memref<8x1xf32, #tpu.memory_space<vmem>>, vector<8x1xf32>
    %163 = arith.addf %161, %162 : vector<8x1xf32>
    %cst_153 = arith.constant 0.000000e+00 : f32
    %164 = vector.broadcast %cst_153 : f32 to vector<8x1xf32>
    %165 = arith.cmpf oge, %163, %164 : vector<8x1xf32>
    %cst_154 = arith.constant 0.00999999977 : f32
    %166 = vector.broadcast %cst_154 : f32 to vector<8x1xf32>
    %167 = arith.mulf %166, %163 : vector<8x1xf32>
    %168 = arith.select %165, %163, %167 : vector<8x1xi1>, vector<8x1xf32>
    %c0_155 = arith.constant 0 : index
    %c0_156 = arith.constant 0 : index
    %c0_157 = arith.constant 0 : index
    %169 = vector.load %arg16[%c0_155, %c0_156, %c0_157] : memref<1x8x1xf32, #tpu.memory_space<vmem>>, vector<1x8x1xf32>
    %170 = vector.shape_cast %169 : vector<1x8x1xf32> to vector<8x1xf32>
    %171 = vector.shape_cast %168 : vector<8x1xf32> to vector<1x8x1xf32>
    tpu.vector_store %arg16[%c0_155, %c0_156, %c0_157], %171 {strides = array<i32>} : memref<1x8x1xf32, #tpu.memory_space<vmem>>, vector<1x8x1xf32>,
    %cst_158 = arith.constant dense<0.000000e+00> : vector<8xf32>
    %172 = vector.multi_reduction <add>, %168, %cst_158 [1] : vector<8x1xf32> to vector<8xf32>
    %173 = vector.shape_cast %172 : vector<8xf32> to vector<8x1xf32>
    %174 = arith.mulf %168, %168 : vector<8x1xf32>
    %cst_159 = arith.constant dense<0.000000e+00> : vector<8xf32>
    %175 = vector.multi_reduction <add>, %174, %cst_159 [1] : vector<8x1xf32> to vector<8xf32>
    %176 = vector.shape_cast %175 : vector<8xf32> to vector<8x1xf32>
    %177 = tpu.concatenate %173, %176 in 1 : vector<8x1xf32>, vector<8x1xf32> -> vector<8x2xf32>
    %c0_160 = arith.constant 0 : index
    %c0_161 = arith.constant 0 : index
    %c0_162 = arith.constant 0 : index
    %178 = vector.load %arg17[%c0_160, %c0_161, %c0_162] : memref<1x8x2xf32, #tpu.memory_space<vmem>>, vector<1x8x2xf32>
    %179 = vector.shape_cast %178 : vector<1x8x2xf32> to vector<8x2xf32>
    %180 = vector.shape_cast %177 : vector<8x2xf32> to vector<1x8x2xf32>
    tpu.vector_store %arg17[%c0_160, %c0_161, %c0_162], %180 {strides = array<i32>} : memref<1x8x2xf32, #tpu.memory_space<vmem>>, vector<1x8x2xf32>,
    return
  }
  func.func @transform_0(%arg0: i32) -> (i32, i32, i32) {
    %c0_i32 = arith.constant 0 : i32
    %c0_i32_0 = arith.constant 0 : i32
    %c0_i32_1 = arith.constant 0 : i32
    return %arg0, %c0_i32, %c0_i32_0 : i32, i32, i32
  }
  func.func @transform_1(%arg0: i32) -> (i32, i32) {
    %c0_i32 = arith.constant 0 : i32
    %c0_i32_0 = arith.constant 0 : i32
    %c0_i32_1 = arith.constant 0 : i32
    return %c0_i32, %c0_i32_0 : i32, i32
  }
  func.func @transform_2(%arg0: i32) -> (i32, i32, i32) {
    %c0_i32 = arith.constant 0 : i32
    %c0_i32_0 = arith.constant 0 : i32
    %c0_i32_1 = arith.constant 0 : i32
    %c0_i32_2 = arith.constant 0 : i32
    return %c0_i32, %c0_i32_0, %c0_i32_1 : i32, i32, i32
  }
  func.func @transform_3(%arg0: i32) -> (i32, i32) {
    %c0_i32 = arith.constant 0 : i32
    %c0_i32_0 = arith.constant 0 : i32
    %c0_i32_1 = arith.constant 0 : i32
    return %c0_i32, %c0_i32_0 : i32, i32
  }
  func.func @transform_4(%arg0: i32) -> (i32, i32) {
    %c0_i32 = arith.constant 0 : i32
    %c0_i32_0 = arith.constant 0 : i32
    %c0_i32_1 = arith.constant 0 : i32
    return %c0_i32, %c0_i32_0 : i32, i32
  }
  func.func @transform_5(%arg0: i32) -> (i32, i32) {
    %c0_i32 = arith.constant 0 : i32
    %c0_i32_0 = arith.constant 0 : i32
    %c0_i32_1 = arith.constant 0 : i32
    return %c0_i32, %c0_i32_0 : i32, i32
  }
  func.func @transform_6(%arg0: i32) -> (i32, i32) {
    %c0_i32 = arith.constant 0 : i32
    %c0_i32_0 = arith.constant 0 : i32
    %c0_i32_1 = arith.constant 0 : i32
    return %c0_i32, %c0_i32_0 : i32, i32
  }
  func.func @transform_7(%arg0: i32) -> (i32, i32, i32) {
    %c0_i32 = arith.constant 0 : i32
    %c0_i32_0 = arith.constant 0 : i32
    %c0_i32_1 = arith.constant 0 : i32
    %c0_i32_2 = arith.constant 0 : i32
    return %c0_i32, %c0_i32_0, %c0_i32_1 : i32, i32, i32
  }
  func.func @transform_8(%arg0: i32) -> (i32, i32) {
    %c0_i32 = arith.constant 0 : i32
    %c0_i32_0 = arith.constant 0 : i32
    %c0_i32_1 = arith.constant 0 : i32
    return %c0_i32, %c0_i32_0 : i32, i32
  }
  func.func @transform_9(%arg0: i32) -> (i32, i32) {
    %c0_i32 = arith.constant 0 : i32
    %c0_i32_0 = arith.constant 0 : i32
    %c0_i32_1 = arith.constant 0 : i32
    return %c0_i32, %c0_i32_0 : i32, i32
  }
  func.func @transform_10(%arg0: i32) -> (i32, i32) {
    %c0_i32 = arith.constant 0 : i32
    %c0_i32_0 = arith.constant 0 : i32
    %c0_i32_1 = arith.constant 0 : i32
    return %c0_i32, %c0_i32_0 : i32, i32
  }
  func.func @transform_11(%arg0: i32) -> (i32, i32) {
    %c0_i32 = arith.constant 0 : i32
    %c0_i32_0 = arith.constant 0 : i32
    %c0_i32_1 = arith.constant 0 : i32
    return %c0_i32, %c0_i32_0 : i32, i32
  }
  func.func @transform_12(%arg0: i32) -> (i32, i32) {
    %c0_i32 = arith.constant 0 : i32
    %c0_i32_0 = arith.constant 0 : i32
    %c0_i32_1 = arith.constant 0 : i32
    return %c0_i32, %c0_i32_0 : i32, i32
  }
  func.func @transform_13(%arg0: i32) -> (i32, i32, i32) {
    %c0_i32 = arith.constant 0 : i32
    %c0_i32_0 = arith.constant 0 : i32
    %c0_i32_1 = arith.constant 0 : i32
    %c0_i32_2 = arith.constant 0 : i32
    return %c0_i32, %c0_i32_0, %c0_i32_1 : i32, i32, i32
  }
  func.func @transform_14(%arg0: i32) -> (i32, i32) {
    %c0_i32 = arith.constant 0 : i32
    %c0_i32_0 = arith.constant 0 : i32
    %c0_i32_1 = arith.constant 0 : i32
    return %c0_i32, %c0_i32_0 : i32, i32
  }
  func.func @transform_15(%arg0: i32) -> (i32, i32, i32) {
    %c0_i32 = arith.constant 0 : i32
    %c0_i32_0 = arith.constant 0 : i32
    %c0_i32_1 = arith.constant 0 : i32
    return %arg0, %c0_i32, %c0_i32_0 : i32, i32, i32
  }
  func.func @transform_16(%arg0: i32) -> (i32, i32, i32) {
    %c0_i32 = arith.constant 0 : i32
    %c0_i32_0 = arith.constant 0 : i32
    %c0_i32_1 = arith.constant 0 : i32
    return %arg0, %c0_i32, %c0_i32_0 : i32, i32, i32
  }
}

module attributes {stable_mosaic.version = 11 : i64} {
  func.func @_bn_apply_kernel(%arg0: i32, %arg1: memref<1x8x1xf32, #tpu.memory_space<vmem>>, %arg2: memref<8x1xf32, #tpu.memory_space<vmem>>, %arg3: memref<8x1xf32, #tpu.memory_space<vmem>>, %arg4: memref<1x8x1xf32, #tpu.memory_space<vmem>>) attributes {dimension_semantics = [#tpu.dimension_semantics<parallel>], iteration_bounds = array<i64: 2>, scalar_prefetch = 0 : i64, scratch_operands = 0 : i64, tpu.core_type = #tpu.core_type<tc>, window_params = [{transform_indices = @transform_0, window_bounds = array<i64: 1, 8, 1>}, {pipeline_mode = #tpu.pipeline_mode<synchronous>, transform_indices = @transform_1, window_bounds = array<i64: 8, 1>}, {pipeline_mode = #tpu.pipeline_mode<synchronous>, transform_indices = @transform_2, window_bounds = array<i64: 8, 1>}, {transform_indices = @transform_3, window_bounds = array<i64: 1, 8, 1>}]} {
    %c0 = arith.constant 0 : index
    %c0_0 = arith.constant 0 : index
    %c0_1 = arith.constant 0 : index
    %0 = vector.load %arg1[%c0, %c0_0, %c0_1] : memref<1x8x1xf32, #tpu.memory_space<vmem>>, vector<1x8x1xf32>
    %1 = vector.shape_cast %0 : vector<1x8x1xf32> to vector<8x1xf32>
    %c0_2 = arith.constant 0 : index
    %c0_3 = arith.constant 0 : index
    %2 = vector.load %arg2[%c0_2, %c0_3] : memref<8x1xf32, #tpu.memory_space<vmem>>, vector<8x1xf32>
    %3 = arith.mulf %1, %2 : vector<8x1xf32>
    %c0_4 = arith.constant 0 : index
    %c0_5 = arith.constant 0 : index
    %4 = vector.load %arg3[%c0_4, %c0_5] : memref<8x1xf32, #tpu.memory_space<vmem>>, vector<8x1xf32>
    %5 = arith.addf %3, %4 : vector<8x1xf32>
    %c0_6 = arith.constant 0 : index
    %c0_7 = arith.constant 0 : index
    %c0_8 = arith.constant 0 : index
    %6 = vector.load %arg4[%c0_6, %c0_7, %c0_8] : memref<1x8x1xf32, #tpu.memory_space<vmem>>, vector<1x8x1xf32>
    %7 = vector.shape_cast %6 : vector<1x8x1xf32> to vector<8x1xf32>
    %8 = vector.shape_cast %5 : vector<8x1xf32> to vector<1x8x1xf32>
    tpu.vector_store %arg4[%c0_6, %c0_7, %c0_8], %8 {strides = array<i32>} : memref<1x8x1xf32, #tpu.memory_space<vmem>>, vector<1x8x1xf32>,
    return
  }
  func.func @transform_0(%arg0: i32) -> (i32, i32, i32) {
    %c0_i32 = arith.constant 0 : i32
    %c0_i32_0 = arith.constant 0 : i32
    %c0_i32_1 = arith.constant 0 : i32
    return %arg0, %c0_i32, %c0_i32_0 : i32, i32, i32
  }
  func.func @transform_1(%arg0: i32) -> (i32, i32) {
    %c0_i32 = arith.constant 0 : i32
    %c0_i32_0 = arith.constant 0 : i32
    %c0_i32_1 = arith.constant 0 : i32
    return %c0_i32, %c0_i32_0 : i32, i32
  }
  func.func @transform_2(%arg0: i32) -> (i32, i32) {
    %c0_i32 = arith.constant 0 : i32
    %c0_i32_0 = arith.constant 0 : i32
    %c0_i32_1 = arith.constant 0 : i32
    return %c0_i32, %c0_i32_0 : i32, i32
  }
  func.func @transform_3(%arg0: i32) -> (i32, i32, i32) {
    %c0_i32 = arith.constant 0 : i32
    %c0_i32_0 = arith.constant 0 : i32
    %c0_i32_1 = arith.constant 0 : i32
    return %arg0, %c0_i32, %c0_i32_0 : i32, i32, i32
  }
}

</mosaic_0001>

<bundles_post_ra>
// kernel: densenet_encoder_forward.11
= control target key start
LH: loop header
LB: loop body
LE: loop exit
PB: predicated region body
PF: predicated region fallthrough
CT: control target
= control target key end

     0   :  { %s298_s12 = smov 0   ;;  %s321_s0 = inlined_call_operand.vmem [shape: f32[2,8,256], index: 0, kind: input, shape index: {}, may-alias: {0,3}]   ;;  %s322_s1 = inlined_call_operand.vmem [shape: f32[8,1], index: 1, kind: input, shape index: {}]   ;;  %s323_s2 = inlined_call_operand.vmem [shape: f32[8,1], index: 2, kind: input, shape index: {}]   ;;  %s324_s3 = inlined_call_operand.vmem [shape: f32[2,8,256], index: 3, kind: output, shape index: {}, may-alias: {0,3}]  }
   0x1 LB: > { %s246_s13 = sadd.s32 4294967295, %s275_s12   ;;  %p250_p0 = scmp.ge.s32.totalorder %s275_s12, 1  ;;  %s275_s12 = sphi %s298_s12, %s13_s12  }
   0x2   : > { %p137_p1 = scmp.lt.s32.totalorder %s275_s12, 3 }
   0x4   : > { %p138_p2 = pnand %p250_p0, %p137_p1 }
   0x5   : > { %p161_p3 = scmp.lt.s32.totalorder (!%p138_p2), %s246_s13, 1 }
   0x6   : > { %141 = sbr.rel (%p138_p2) target bundleno = 140 (0x8c), region = 32 }
   0xb   : > { %v173_v0 = vld [vmem:[%s322_s1] sm:$0xff]  ;;  %v277_v1 = vmov 0   ;;  %s326_s13 = smov (!%p161_p3, %s246_s13), 1 }
   0xc   : > { %268 = vset.pattern.permute.xlu0 %v277_v1  ;;  %v181_v2 = vld [vmem:[%s323_s2] sm:$0xff]  ;;  %s257_s18 = sshll.u32 %s326_s13, 4 }
   0xd   : > { %176 = vperm.xlu0 %268, %v173_v0   ;;  %s165_s21 = scalar_lea.vmem %s321_s0, %s257_s18  ;;  %s170_s24 = scalar_lea.vmem %s324_s3, %s257_s18 }
   0xe   : > { %v171_v4 = vld [vmem:[%s165_s21] sm:$0xff]  ;;  %v172_v5 = vld [vmem:[%s165_s21 + $0x8] sm:$0xff] }
  0x15   : > { %184 = vperm.xlu0 %268, %v181_v2  }
  0x7f   : > { %v177_v3 = vpop.permute.xlu0 %176 }
  0x80   : > { %v179_v6 = vmul.f32 %v177_v3, %v171_v4  ;;  %v180_v7 = vmul.f32 %v177_v3, %v172_v5 }
  0x87   : > { %v185_v8 = vpop.permute.xlu0 %184 }
  0x88   : > { %v187_v9 = vadd.f32 %v185_v8, %v179_v6  ;;  %v188_v10 = vadd.f32 %v185_v8, %v180_v7 }
  0x8a   : > { %189 = vst [vmem:[%s170_s24] sm:$0xff] %v187_v9 }
  0x8b   : > { %190 = vst [vmem:[%s170_s24 + $0x8] sm:$0xff] %v188_v10 }
  0x8c PF: > { %s13_s12 = sadd.s32 1, %s275_s12  }
  0x8d   : > { %p10_p4 = scmp.ge.s32.totalorder %s13_s12, 4  }
  0x8f   :  { %12 = sbr.rel (!%p10_p4) target bundleno = 1 (0x1), region = 62 }

// kernel: densenet_encoder_forward.13
= control target key start
LH: loop header
LB: loop body
LE: loop exit
PB: predicated region body
PF: predicated region fallthrough
CT: control target
= control target key end

     0   :  { %s284_s12 = smov 0   ;;  %s301_s0 = inlined_call_operand.vmem [shape: f32[2,8,64], index: 0, kind: input, shape index: {}, may-alias: {0,3}]   ;;  %s302_s1 = inlined_call_operand.vmem [shape: f32[8,1], index: 1, kind: input, shape index: {}]   ;;  %s303_s2 = inlined_call_operand.vmem [shape: f32[8,1], index: 2, kind: input, shape index: {}]   ;;  %s304_s3 = inlined_call_operand.vmem [shape: f32[2,8,64], index: 3, kind: output, shape index: {}, may-alias: {0,3}]  }
   0x1 LB: > { %s236_s13 = sadd.s32 4294967295, %s261_s12   ;;  %p240_p0 = scmp.ge.s32.totalorder %s261_s12, 1  ;;  %s261_s12 = sphi %s284_s12, %s13_s12  }
   0x2   : > { %p136_p1 = scmp.lt.s32.totalorder %s261_s12, 3 }
   0x4   : > { %p137_p2 = pnand %p240_p0, %p136_p1 }
   0x5   : > { %p158_p3 = scmp.lt.s32.totalorder (!%p137_p2), %s236_s13, 1 }
   0x6   : > { %140 = sbr.rel (%p137_p2) target bundleno = 139 (0x8b), region = 32 }
   0xb   : > { %v167_v0 = vld [vmem:[%s302_s1] sm:$0xff]  ;;  %v263_v1 = vmov 0   ;;  %s306_s13 = smov (!%p158_p3, %s236_s13), 1  ;;  %vm181_vm0 = vcmask 523264  }
   0xc   : > { %254 = vset.pattern.permute.xlu0 %v263_v1  ;;  %v174_v2 = vld [vmem:[%s303_s2] sm:$0xff]  ;;  %s241_s18 = sshll.u32 %s306_s13, 3 }
   0xd   : > { %170 = vperm.xlu0 %254, %v167_v0   ;;  %s161_s21 = scalar_lea.vmem %s301_s0, %s241_s18  ;;  %s165_s24 = scalar_lea.vmem %s304_s3, %s241_s18 }
   0xe   : > { %v166_v4 = vld [vmem:[%s161_s21] sm:$0xff] }
  0x15   : > { %177 = vperm.xlu0 %254, %v174_v2  }
  0x7f   : > { %v171_v3 = vpop.permute.xlu0 %170 }
  0x80   : > { %v173_v5 = vmul.f32 %v171_v3, %v166_v4 }
  0x87   : > { %v178_v6 = vpop.permute.xlu0 %177 }
  0x88   : > { %v180_v7 = vadd.f32 %v178_v6, %v173_v5 }
  0x8a   : > { %182 = vst.msk [vmem:[%s165_s24] sm:$0xff] %vm181_vm0, %v180_v7 }
  0x8b PF: > { %s13_s12 = sadd.s32 1, %s261_s12  }
  0x8c   : > { %p10_p4 = scmp.ge.s32.totalorder %s13_s12, 4  }
  0x8e   :  { %12 = sbr.rel (!%p10_p4) target bundleno = 1 (0x1), region = 62 }

// kernel: densenet_encoder_forward.10
= control target key start
LH: loop header
LB: loop body
LE: loop exit
PB: predicated region body
PF: predicated region fallthrough
CT: control target
= control target key end

     0   :  { %s1871_s18 = smov 0   ;;  %s2172_s0 = inlined_call_operand.vmem [shape: f32[2,1,256], index: 0, kind: input, shape index: {}]   ;;  %s2173_s1 = inlined_call_operand.vmem [shape: f32[3,8,3], index: 1, kind: input, shape index: {}]   ;;  %s2174_s2 = inlined_call_operand.vmem [shape: f32[8,1], index: 2, kind: input, shape index: {}]   ;;  %s2175_s3 = inlined_call_operand.vmem [shape: f32[8,1], index: 3, kind: input, shape index: {}]   ;;  %s2176_s4 = inlined_call_operand.vmem [shape: f32[8,8], index: 4, kind: input, shape index: {}]   ;;  %s2177_s5 = inlined_call_operand.vmem [shape: f32[8,1], index: 5, kind: input, shape index: {}]   ;;  %s2178_s6 = inlined_call_operand.vmem [shape: f32[3,8,24], index: 6, kind: input, shape index: {}]   ;;  %s2179_s7 = inlined_call_operand.vmem [shape: f32[8,1], index: 7, kind: input, shape index: {}]   ;;  %s2180_s8 = inlined_call_operand.vmem [shape: f32[8,1], index: 8, kind: input, shape index: {}]   ;;  %s2181_s9 = inlined_call_operand.vmem [shape: f32[8,8], index: 9, kind: input, shape index: {}]   ;;  %s2182_s10 = inlined_call_operand.vmem [shape: f32[8,8], index: 10, kind: input, shape index: {}]   ;;  %s2183_s11 = inlined_call_operand.vmem [shape: f32[8,1], index: 11, kind: input, shape index: {}]   ;;  %s2184_s12 = inlined_call_operand.vmem [shape: f32[3,8,24], index: 12, kind: input, shape index: {}]   ;;  %s2185_s13 = inlined_call_operand.vmem [shape: f32[8,1], index: 13, kind: input, shape index: {}]   ;;  %s2186_s14 = inlined_call_operand.vmem [shape: f32[2,8,256], index: 14, kind: output, shape index: {0}]   ;;  %s2187_s15 = inlined_call_operand.vmem [shape: f32[2,8,2], index: 15, kind: output, shape index: {1}]  }
   0x1 LB: > { %s1610_s19 = sadd.s32 4294967295, %s1782_s18   ;;  %p1614_p0 = scmp.ge.s32.totalorder %s1782_s18, 1  ;;  %s1782_s18 = sphi %s1871_s18, %s26_s18  }
   0x2   : > { %p439_p1 = scmp.lt.s32.totalorder %s1782_s18, 3 }
   0x4   : > { %p440_p2 = pnand %p1614_p0, %p439_p1 }
   0x5   : > { %p490_p3 = scmp.lt.s32.totalorder (!%p440_p2), %s1610_s19, 1  ;;  %s1785_s24 = smov (!%p440_p2), 17  }
   0x6   : > { %443 = sbr.rel (%p440_p2) target bundleno = 1954 (0x7a2), region = 76  ;;  %s1786_s25 = smov (!%p440_p2), 112  }
   0x7   : > { %s1787_s26 = smov (!%p440_p2), 96   ;;  %s1789_s27 = smov (!%p440_p2), 126  }
   0x8   : > { %s1790_s28 = smov (!%p440_p2), 127  }
   0xb   : > { %v503_v0 = vlaneseq  ;;  %vm512_vm0 = vcmask 138240   ;;  %v1784_v1 = vmov 0.0   ;;  %s2199_s19 = smov (!%p490_p3, %s1610_s19), 1  ;;  %v1788_v11 = vmov 0   ;;  %v806_v35 = vld [vmem:[%s2175_s3] sm:$0xff]  ;;  %v1624_v40 = vld [vmem:[%s2173_s1 + $0x10] sm:$0xff] }
   0xc   : > { %513 = vst.msk [vmem:[#allocation3] sm:$0xff] %vm512_vm0, %v1784_v1  ;;  %s1615_s20 = sshll.u32 %s2199_s19, 1  ;;  %1674 = vset.pattern.permute.xlu2 %v1788_v11  ;;  %1673 = vset.pattern.permute.xlu1 %v1788_v11  ;;  %vm573_vm7 = vcmask 916480   ;;  %vm585_vm8 = vcmask 785408   ;;  %vm591_vm9 = vcmask 1040384   ;;  %vm595_vm10 = vcmask 1041408  }
   0xd   : > { %vm505_vm1 = vcmp.lt.s32.totalorder %v503_v0, 17  ;;  %vm1885_vm2 = vcmp.ge.s32.totalorder %v503_v0, 17  ;;  %vm509_vm3 = vcmp.lt.s32.totalorder %v503_v0, 34  ;;  %s493_s23 = scalar_lea.vmem %s2172_s0, %s1615_s20  ;;  %vm523_vm5 = vcmp.lt.s32.totalorder %v503_v0, 273  ;;  %1725 = vset.pattern.permute.xlu0 %v1788_v11  ;;  %v599_v36 = vld [vmem:[%s2173_s1] sm:$0xff]  ;;  %v1619_v46 = vld [vmem:[%s2173_s1 + $0x8] sm:$0xff] }
   0xe   : > { %507 = vst.msk [vmem:[#allocation2] sm:$0x1] %vm505_vm1, %v1784_v1  ;;  %vm510_vm4 = vmand %vm1885_vm2, %vm509_vm3  ;;  %v516_v3 = vld [vmem:[%s493_s23] sm:$0x3]  ;;  %vm614_vm11 = vcmask 1042432   ;;  %vm610_vm12 = vcmask 23552  }
   0xf   : > { %511 = vst.msk [vmem:[#allocation2 + $0x2] sm:$0x1] %vm510_vm4, %v1784_v1  ;;  %518 = vrot.lane.b32.xlu0 %v516_v3, %s1785_s24  ;;  %vm524_vm6 = vmand %vm1885_vm2, %vm523_vm5  ;;  %v792_v37 = vld [vmem:[%s2174_s2] sm:$0xff]  ;;  %vm672_vm13 = vcmask 1031168   ;;  %vm734_vm14 = vcmask 1039360   ;;  %v527_v50 = vand.u32 127, %v503_v0 }
  0x10   : > { %vm816_vm5 = vcmask 64512   ;;  %s1657_s30 = sshll.u32 %s2199_s19, 4  ;;  %s1618_s21 = sshll.u32 %s2199_s19, 3 }
  0x11   : > { %v533_v52 = vand.u32 15, %v527_v50  ;;  %v528_v53 = vadd.s32 128, %v527_v50  ;;  %s498_s20 = scalar_lea.vmem %s2186_s14, %s1657_s30 }
  0x13   : > { %vm1976_vm15 = vcmp.ne.s32.totalorder %v533_v52, 0  ;;  %vm1980_vm1 = vcmp.ne.s32.totalorder %v533_v52, 15  ;;  %v540_v58 = vand.u32 15, %v528_v53  ;;  %v1127_v52 = vld [vmem:[%s2180_s8] sm:$0xff] }
  0x14   : > { %v910_v53 = vld [vmem:[%s2178_s6] sm:$0xff] }
  0x15   : > { %vm1988_vm2 = vcmp.ne.s32.totalorder %v540_v58, 0  ;;  %vm1992_vm3 = vcmp.ne.s32.totalorder %v540_v58, 15 }
  0x81   : > { %v519_v4 = vpop.permute.xlu0 %518 }
  0x82   : > { %v520_v5 = vrot.slane %v519_v4, 7 }
  0x84   : > { %v521_v6 = vsel %vm512_vm0, %v520_v5, %v519_v4 }
  0x85   : > { %525 = vst.msk [vmem:[#allocation2] sm:$0x7] %vm524_vm6, %v521_v6 }
  0x8c   : > { %v559_v7 = vld [vmem:[#allocation2] sm:$0x7] }
  0x8d   : > { %v1903_v8 = vperm.slane %v559_v7, 1  ;;  %v1905_v9 = vperm.slane %v559_v7, 0  ;;  %v1913_v10 = vperm.slane %v559_v7, 2  ;;  %v600_v13 = vld [vmem:[#allocation2] sm:$0x3] }
  0x8e   : > { %v602_v17 = vperm.slane %v600_v13, 0  ;;  %v603_v25 = vperm.slane %v600_v13, 1 }
  0x8f   : > { %569 = vrot.lane.b32.xlu1 %v1903_v8, %s1786_s25  ;;  %579 = vrot.lane.b32.xlu2 %v1905_v9, %s1787_s26 }
  0x90   : > { %567 = vrot.lane.b32.xlu0 %v1905_v9, %s1786_s25 }
  0x97   : > { %571 = vrot.lane.b32.xlu1 %v1913_v10, %s1786_s25  ;;  %581 = vrot.lane.b32.xlu2 %v1903_v8, %s1787_s26 }
  0x98   : > { %583 = vrot.lane.b32.xlu0 %v1913_v10, %s1787_s26 }
  0xe9   : > { %v580_v12 = vpop.permute.xlu2 %579 }
  0xf1   : > { %v582_v14 = vpop.permute.xlu2 %581 }
  0xf2   : > { %v586_v19 = vsel %vm585_vm8, %v580_v12, %v582_v14 }
 0x101   : > { %v570_v15 = vpop.permute.xlu1 %569 }
 0x102   : > { %v568_v16 = vpop.permute.xlu0 %567 }
 0x103   : > { %v574_v18 = vsel %vm573_vm7, %v568_v16, %v570_v15 }
 0x104   : > { %v606_v20 = vsel %vm591_vm9, %v602_v17, %v574_v18  ;;  %v592_v21 = vsel %vm591_vm9, %v1905_v9, %v574_v18 }
 0x105   : > { %v608_v22 = vsel %vm595_vm10, %v606_v20, %v586_v19  ;;  %v596_v23 = vsel %vm595_vm10, %v592_v21, %v586_v19  ;;  %v873_v20 = vld [vmem:[%s2177_s5] sm:$0xff] }
 0x106   : > { %1620 = vmatpush.msk.msra.mxu0 %vm614_vm11, %v608_v22  ;;  %666 = vrot.lane.b32.xlu1 %v596_v23, %s1789_s27 }
 0x107   : > { %1621 = vmatmul.msk.f32.vlgmr.msra.gmra.mxu0 %vm610_vm12, %v599_v36 }
 0x109   : > { %v572_v24 = vpop.permute.xlu1 %571 }
 0x10a   : > { %v575_v26 = vsel %vm573_vm7, %v570_v15, %v572_v24  ;;  %v594_v27 = vsel %vm591_vm9, %v1913_v10, %v572_v24  ;;  %v584_v28 = vpop.permute.xlu0 %583 }
 0x10b   : > { %v587_v29 = vsel %vm585_vm8, %v582_v14, %v584_v28  ;;  %v598_v30 = vsel %vm595_vm10, %v594_v27, %v584_v28  ;;  %v607_v31 = vsel %vm591_vm9, %v603_v25, %v575_v26  ;;  %v593_v32 = vsel %vm591_vm9, %v1903_v8, %v575_v26  ;;  %v815_v14 = vld [vmem:[%s2176_s4] sm:$0xff] }
 0x10c   : > { %670 = vrot.lane.b32.xlu0 %v598_v30, %s1789_s27  ;;  %v609_v33 = vsel %vm595_vm10, %v607_v31, %v587_v29  ;;  %v597_v34 = vsel %vm595_vm10, %v593_v32, %v587_v29  ;;  %vm514_vm9 = vcmask 277640   ;;  %vm882_vm10 = vcmask 1047688  }
 0x10d   : > { %1622 = vmatpush.msk.msra.mxu1 %vm614_vm11, %v609_v33  ;;  %668 = vrot.lane.b32.xlu2 %v597_v34, %s1789_s27  ;;  %515 = vst.msk [vmem:[#allocation3 + $0x10] sm:$0xff] %vm514_vm9, %v1784_v1 }
 0x10e   : > { %728 = vrot.lane.b32.xlu1 %v596_v23, %s1790_s28  ;;  %1623 = vmatmul.msk.f32.vlgmr.msra.gmra.mxu1 %vm610_vm12, %v599_v36 }
 0x114   : > { %732 = vrot.lane.b32.xlu0 %v598_v30, %s1790_s28 }
 0x115   : > { %730 = vrot.lane.b32.xlu2 %v597_v34, %s1790_s28 }
 0x116   : > { %795 = vperm.xlu1 %1673, %v792_v37  }
 0x11d   : > { %809 = vperm.xlu2 %1674, %v806_v35  }
 0x125   : > { %876 = vperm.xlu2 %1674, %v873_v20  }
 0x167   : > { %v669_v38 = vpop.permute.xlu2 %668 }
 0x16f   : > { %v731_v44 = vpop.permute.xlu2 %730 }
 0x177   : > { %v810_v23 = vpop.permute.xlu2 %809 }
 0x178   : > { %v667_v39 = vpop.permute.xlu1 %666  ;;  %v812_v24 = vmul.f32 %v810_v23, %v1905_v9  ;;  %v814_v29 = vmul.f32 %v810_v23, %v1913_v10  ;;  %v813_v30 = vmul.f32 %v810_v23, %v1903_v8 }
 0x179   : > { %v673_v41 = vsel %vm672_vm13, %v667_v39, %v669_v38 }
 0x17a   : > { %1625 = vmatpush.msk.msra.mxu2 %vm614_vm11, %v673_v41 }
 0x17b   : > { %1626 = vmatmul.msk.f32.vlgmr.msra.gmra.mxu2 %vm610_vm12, %v1624_v40 }
 0x17e   : > { %v671_v42 = vpop.permute.xlu0 %670 }
 0x17f   : > { %v674_v43 = vsel %vm672_vm13, %v669_v38, %v671_v42  ;;  %v877_v27 = vpop.permute.xlu2 %876 }
 0x180   : > { %v729_v45 = vpop.permute.xlu1 %728  ;;  %1627 = vmatpush.msk.msra.mxu3 %vm614_vm11, %v674_v43 }
 0x181   : > { %v735_v47 = vsel %vm734_vm14, %v729_v45, %v731_v44  ;;  %1628 = vmatmul.msk.f32.vlgmr.msra.gmra.mxu3 %vm610_vm12, %v1624_v40 }
 0x182   : > { %1629 = vmatpush.msk.msrb.mxu0 %vm614_vm11, %v735_v47 }
 0x183   : > { %1630 = vmatmul.msk.f32.vlgmr.msrb.gmra.mxu0 %vm610_vm12, %v1619_v46 }
 0x184   : > { %v638_v51 = vpop.f32.mrf.mxu0 }
 0x185   : > { %v726_v59 = vsel %vm1976_vm15, %v638_v51, 0.0  ;;  %v1113_v51 = vld [vmem:[%s2179_s7] sm:$0xff] }
 0x186   : > { %v733_v48 = vpop.permute.xlu0 %732 }
 0x187   : > { %v736_v49 = vsel %vm734_vm14, %v731_v44, %v733_v48 }
 0x188   : > { %1631 = vmatpush.msk.msrb.mxu1 %vm614_vm11, %v736_v49  ;;  %v796_v63 = vpop.permute.xlu1 %795  ;;  %vm915_vm11 = vcmask 195584  }
 0x189   : > { %1632 = vmatmul.msk.f32.vlgmr.msrb.gmra.mxu1 %vm610_vm12, %v1619_v46 }
 0x18b   : > { %v658_v54 = vpop.f32.mrf.mxu1 }
 0x18c   : > { %v727_v6 = vsel %vm1988_vm2, %v658_v54, 0.0 }
 0x1fe   : > { %v699_v57 = vpop.f32.mrf.mxu2 }
 0x1ff   : > { %v788_v61 = vsel %vm1980_vm1, %v699_v57, 0.0 }
 0x200   : > { %v761_v60 = vpop.f32.mrf.mxu0 }
 0x201   : > { %v762_v62 = vadd.f32 %v761_v60, %v726_v59 }
 0x203   : > { %v790_v2 = vadd.f32 %v788_v61, %v762_v62 }
 0x204   : > { %v719_v4 = vpop.f32.mrf.mxu3 }
 0x205   : > { %v798_v5 = vadd.f32 %v796_v63, %v790_v2  ;;  %v789_v11 = vsel %vm1992_vm3, %v719_v4, 0.0 }
 0x206   : > { %v781_v7 = vpop.f32.mrf.mxu1 }
 0x207   : > { %v782_v12 = vadd.f32 %v781_v7, %v727_v6  ;;  %vm800_vm4 = vcmp.ge.f32.partialorder %v798_v5, 0.0  ;;  %v802_v13 = vmul.f32 0.01, %v798_v5 }
 0x209   : > { %v791_v15 = vadd.f32 %v789_v11, %v782_v12  ;;  %v2003_v16 = vsel %vm800_vm4, %v798_v5, %v802_v13 }
 0x20a   : > { %835 = vmatpush.msrb.mxu2 %v2003_v16 }
 0x20b   : > { %v799_v17 = vadd.f32 %v796_v63, %v791_v15  ;;  %1633 = vmatmul.msk.f32.vlgmr.msrb.gmra.mxu2 %vm816_vm5, %v815_v14  ;;  %v1638_v15 = vld [vmem:[%s2178_s6 + $0x10] sm:$0xff] }
 0x20d   : > { %vm801_vm6 = vcmp.ge.f32.partialorder %v799_v17, 0.0  ;;  %v803_v18 = vmul.f32 0.01, %v799_v17 }
 0x20f   : > { %v2007_v19 = vsel %vm801_vm6, %v799_v17, %v803_v18 }
 0x210   : > { %855 = vmatpush.msrb.mxu3 %v2007_v19 }
 0x211   : > { %1634 = vmatmul.msk.f32.vlgmr.msrb.gmra.mxu3 %vm816_vm5, %v815_v14 }
 0x28e   : > { %v837_v21 = vpop.f32.mrf.mxu2 }
 0x28f   : > { %862 = vrot.lane.b32.xlu0 %v837_v21, %s1785_s24 }
 0x294   : > { %v857_v22 = vpop.f32.mrf.mxu3 }
 0x295   : > { %864 = vrot.lane.b32.xlu1 %v857_v22, %s1785_s24 }
 0x301   : > { %v863_v25 = vpop.permute.xlu0 %862 }
 0x302   : > { %v870_v26 = vadd.f32 %v863_v25, %v812_v24 }
 0x304   : > { %v879_v28 = vadd.f32 %v877_v27, %v870_v26 }
 0x306   : > { %883 = vst.msk [vmem:[#allocation3] sm:$0xff] %vm882_vm10, %v879_v28 }
 0x307   : > { %v865_v31 = vpop.permute.xlu1 %864 }
 0x308   : > { %v866_v32 = vsel %vm512_vm0, %v863_v25, %v865_v31  ;;  %v872_v33 = vadd.f32 %v865_v31, %v814_v29  ;;  %v1144_v31 = vld [vmem:[%s2181_s9] sm:$0xff] }
 0x309   : > { %v871_v34 = vadd.f32 %v866_v32, %v813_v30 }
 0x30a   : > { %v881_v1 = vadd.f32 %v877_v27, %v872_v33 }
 0x30b   : > { %v880_v35 = vadd.f32 %v877_v27, %v871_v34 }
 0x30c   : > { %885 = vst.msk [vmem:[#allocation3 + $0x10] sm:$0xff] %vm512_vm0, %v881_v1 }
 0x30d   : > { %v888_v9 = vld [vmem:[#allocation3] sm:$0xff] }
 0x30e   : > { %v1680_v36 = vpack.i.bf16 %v880_v35, %v888_v9 }
 0x310   : > { %1681 = vrot.lane.b32.xlu2 %v1680_v36, %s1786_s25  ;;  %1676 = vrot.lane.b32.xlu0 %v1680_v36, %s1787_s26 }
 0x313   : > { %v890_v10 = vld [vmem:[#allocation3 + $0x10] sm:$0xff] }
 0x314   : > { %906 = vrot.lane.b32.xlu1 %v890_v10, %s1787_s26 }
 0x318   : > { %965 = vrot.lane.b32.xlu2 %v890_v10, %s1789_s27  ;;  %898 = vrot.lane.b32.xlu0 %v890_v10, %s1786_s25 }
 0x31c   : > { %1686 = vrot.lane.b32.xlu1 %v1680_v36, %s1789_s27 }
 0x36a   : > { %v1682_v8 = vpop.permute.xlu2 %1681 }
 0x36b   : > { %v1684_v37 = vunpack.i.h.bf16 %v1682_v8  ;;  %v1683_v38 = vunpack.i.l.bf16 %v1682_v8 }
 0x36d   : > { %v900_v44 = vsel %vm573_vm7, %v1683_v38, %v1684_v37 }
 0x372   : > { %v966_v54 = vpop.permute.xlu2 %965 }
 0x382   : > { %v1677_v39 = vpop.permute.xlu0 %1676 }
 0x383   : > { %v1679_v40 = vunpack.i.h.bf16 %v1677_v39  ;;  %v1678_v41 = vunpack.i.l.bf16 %v1677_v39 }
 0x385   : > { %v908_v42 = vsel %vm585_vm8, %v1678_v41, %v1679_v40 }
 0x386   : > { %v907_v43 = vpop.permute.xlu1 %906  ;;  %932 = vmatpush.msra.mxu0 %v908_v42 }
 0x387   : > { %v1710_v45 = vpack.i.bf16 %v900_v44, %v907_v43  ;;  %v909_v46 = vsel %vm585_vm8, %v1679_v40, %v907_v43 }
 0x388   : > { %952 = vmatpush.msra.mxu1 %v909_v46  ;;  %v1690_v47 = vpack.i.bf16 %v909_v46, %v908_v42  ;;  %933 = vmatpush.msra.mxu0 %v900_v44 }
 0x389   : > { %1696 = vrot.lane.b32.xlu2 %v1710_v45, %s1789_s27 }
 0x38a   : > { %1691 = vrot.lane.b32.xlu1 %v1690_v47, %s1789_s27  ;;  %v899_v48 = vpop.permute.xlu0 %898  ;;  %934 = vmatpush.msra.mxu0 %v888_v9 }
 0x38b   : > { %v901_v49 = vsel %vm573_vm7, %v1684_v37, %v899_v48  ;;  %1636 = vmatmul.msk.f32.vlgmr.msra.gmra.mxu0 %vm915_vm11, %v910_v53 }
 0x38c   : > { %953 = vmatpush.msra.mxu1 %v901_v49  ;;  %v1715_v50 = vpack.i.bf16 %v899_v48, %v901_v49 }
 0x38e   : > { %1701 = vrot.lane.b32.xlu0 %v1715_v50, %s1789_s27  ;;  %954 = vmatpush.msra.mxu1 %v880_v35  ;;  %v1687_v57 = vpop.permute.xlu1 %1686  ;;  %v1635_v35 = vld [vmem:[%s2178_s6 + $0x8] sm:$0xff] }
 0x38f   : > { %1637 = vmatmul.msk.f32.vlgmr.msra.gmra.mxu1 %vm915_vm11, %v910_v53  ;;  %v1689_v4 = vunpack.i.h.bf16 %v1687_v57  ;;  %v1688_v6 = vunpack.i.l.bf16 %v1687_v57 }
 0x391   : > { %1716 = vrot.lane.b32.xlu2 %v1715_v50, %s1790_s28  ;;  %v979_v18 = vsel %vm672_vm13, %v1688_v6, %v1689_v4  ;;  %v980_v20 = vsel %vm672_vm13, %v1689_v4, %v966_v54 }
 0x392   : > { %1711 = vrot.lane.b32.xlu1 %v1710_v45, %s1790_s28 }
 0x396   : > { %1706 = vrot.lane.b32.xlu0 %v1690_v47, %s1790_s28 }
 0x399   : > { %1116 = vperm.xlu2 %1674, %v1113_v51  }
 0x39a   : > { %1040 = vrot.lane.b32.xlu1 %v890_v10, %s1790_s28 }
 0x39e   : > { %1721 = vrot.lane.b32.xlu0 %v1680_v36, %s1790_s28 }
 0x3a6   : > { %1131 = vperm.xlu0 %1725, %v1127_v52  }
 0x3e3   : > { %v1697_v58 = vpop.permute.xlu2 %1696 }
 0x3e4   : > { %v1698_v60 = vunpack.i.l.bf16 %v1697_v58  ;;  %v1699_v7 = vunpack.i.h.bf16 %v1697_v58  ;;  %v1201_v58 = vld [vmem:[%s2182_s10] sm:$0xff] }
 0x3eb   : > { %v1717_v17 = vpop.permute.xlu2 %1716 }
 0x3ec   : > { %v1719_v22 = vunpack.i.h.bf16 %v1717_v17  ;;  %v1718_v23 = vunpack.i.l.bf16 %v1717_v17 }
 0x3f3   : > { %v1117_v51 = vpop.permute.xlu2 %1116 }
 0x3fc   : > { %v1692_v59 = vpop.permute.xlu1 %1691 }
 0x3fd   : > { %v1694_v61 = vunpack.i.h.bf16 %v1692_v59  ;;  %v1693_v62 = vunpack.i.l.bf16 %v1692_v59 }
 0x3ff   : > { %v983_v63 = vsel %vm672_vm13, %v1693_v62, %v1694_v61  ;;  %v984_v2 = vsel %vm672_vm13, %v1694_v61, %v1698_v60  ;;  %v1258_v61 = vld [vmem:[%s2183_s11] sm:$0xff] }
 0x400   : > { %1007 = vmatpush.msra.mxu2 %v983_v63  ;;  %1027 = vmatpush.msra.mxu3 %v984_v2  ;;  %v1702_v5 = vpop.permute.xlu0 %1701  ;;  %v1128_v2 = vld [vmem:[#allocation2] sm:$0x7] }
 0x401   : > { %v1704_v11 = vunpack.i.h.bf16 %v1702_v5  ;;  %v1703_v12 = vunpack.i.l.bf16 %v1702_v5  ;;  %1261 = vperm.xlu0 %1725, %v1258_v61   ;;  %v1137_v6 = vperm.slane %v1128_v2, 2 }
 0x403   : > { %v981_v13 = vsel %vm672_vm13, %v1699_v7, %v1703_v12  ;;  %v982_v14 = vsel %vm672_vm13, %v1703_v12, %v1704_v11 }
 0x404   : > { %1008 = vmatpush.msra.mxu2 %v981_v13  ;;  %1028 = vmatpush.msra.mxu3 %v982_v14  ;;  %v1712_v21 = vpop.permute.xlu1 %1711 }
 0x405   : > { %v1714_v25 = vunpack.i.h.bf16 %v1712_v21  ;;  %v1713_v26 = vunpack.i.l.bf16 %v1712_v21  ;;  %v1136_v21 = vperm.slane %v1128_v2, 1 }
 0x406   : > { %1009 = vmatpush.msra.mxu2 %v979_v18  ;;  %1029 = vmatpush.msra.mxu3 %v980_v20  ;;  %v1135_v20 = vperm.slane %v1128_v2, 0 }
 0x407   : > { %1639 = vmatmul.msk.f32.vlgmr.msra.gmra.mxu2 %vm915_vm11, %v1638_v15  ;;  %1640 = vmatmul.msk.f32.vlgmr.msra.gmra.mxu3 %vm915_vm11, %v1638_v15  ;;  %v1056_v32 = vsel %vm734_vm14, %v1714_v25, %v1718_v23 }
 0x408   : > { %1163 = vmatpush.msrb.mxu2 %v2003_v16  ;;  %1183 = vmatpush.msrb.mxu3 %v2007_v19  ;;  %v1707_v24 = vpop.permute.xlu0 %1706  ;;  %v1057_v16 = vsel %vm734_vm14, %v1718_v23, %v1719_v22  ;;  %v936_v10 = vpop.f32.mrf.mxu0 }
 0x409   : > { %v1709_v27 = vunpack.i.h.bf16 %v1707_v24  ;;  %v1708_v28 = vunpack.i.l.bf16 %v1707_v24  ;;  %v1034_v40 = vsel %vm1976_vm15, %v936_v10, 0.0 }
 0x40b   : > { %v1058_v29 = vsel %vm734_vm14, %v1708_v28, %v1709_v27  ;;  %v1059_v30 = vsel %vm734_vm14, %v1709_v27, %v1713_v26 }
 0x40c   : > { %1082 = vmatpush.msrb.mxu0 %v1058_v29  ;;  %1102 = vmatpush.msrb.mxu1 %v1059_v30  ;;  %v1041_v1 = vpop.permute.xlu1 %1040  ;;  %v956_v8 = vpop.f32.mrf.mxu1 }
 0x40d   : > { %v1035_v39 = vsel %vm1988_vm2, %v956_v8, 0.0 }
 0x40e   : > { %1083 = vmatpush.msrb.mxu0 %v1056_v32  ;;  %1103 = vmatpush.msrb.mxu1 %v1057_v16 }
 0x40f   : > { %1643 = vmatmul.msk.f32.vlgmr.msrb.gmra.mxu2 %vm816_vm5, %v1144_v31  ;;  %1644 = vmatmul.msk.f32.vlgmr.msrb.gmra.mxu3 %vm816_vm5, %v1144_v31 }
 0x410   : > { %v1722_v19 = vpop.permute.xlu0 %1721 }
 0x411   : > { %v1724_v33 = vunpack.i.h.bf16 %v1722_v19  ;;  %v1723_v34 = vunpack.i.l.bf16 %v1722_v19 }
 0x413   : > { %v1054_v9 = vsel %vm734_vm14, %v1723_v34, %v1724_v33  ;;  %v1055_v36 = vsel %vm734_vm14, %v1724_v33, %v1041_v1 }
 0x414   : > { %1084 = vmatpush.msrb.mxu0 %v1054_v9  ;;  %1104 = vmatpush.msrb.mxu1 %v1055_v36 }
 0x415   : > { %1641 = vmatmul.msk.f32.vlgmr.msrb.gmra.mxu0 %vm915_vm11, %v1635_v35  ;;  %1642 = vmatmul.msk.f32.vlgmr.msrb.gmra.mxu1 %vm915_vm11, %v1635_v35 }
 0x418   : > { %v1132_v4 = vpop.permute.xlu0 %1131 }
 0x419   : > { %v1143_v7 = vmul.f32 %v1137_v6, %v1132_v4  ;;  %v1141_v22 = vmul.f32 %v1135_v20, %v1132_v4  ;;  %v1142_v24 = vmul.f32 %v1136_v21, %v1132_v4  ;;  %v1647_v4 = vld [vmem:[%s2184_s12 + $0x8] sm:$0xff] }
 0x473   : > { %v1262_v13 = vpop.permute.xlu0 %1261 }
 0x48a   : > { %v1011_v37 = vpop.f32.mrf.mxu2  ;;  %v1031_v38 = vpop.f32.mrf.mxu3 }
 0x48b   : > { %v1109_v41 = vsel %vm1980_vm1, %v1011_v37, 0.0  ;;  %v1110_v42 = vsel %vm1992_vm3, %v1031_v38, 0.0 }
 0x492   : > { %v1086_v43 = vpop.f32.mrf.mxu0  ;;  %v1106_v44 = vpop.f32.mrf.mxu1 }
 0x493   : > { %v1087_v45 = vadd.f32 %v1086_v43, %v1034_v40  ;;  %v1107_v46 = vadd.f32 %v1106_v44, %v1035_v39  ;;  %v1165_v47 = vpop.f32.mrf.mxu2  ;;  %v1185_v48 = vpop.f32.mrf.mxu3  ;;  %v1496_v44 = vld [vmem:[%s2185_s13] sm:$0xff] }
 0x494   : > { %1192 = vrot.lane.b32.xlu2 %v1185_v48, %s1785_s24  ;;  %1190 = vrot.lane.b32.xlu1 %v1165_v47, %s1785_s24 }
 0x495   : > { %v1111_v49 = vadd.f32 %v1109_v41, %v1087_v45  ;;  %v1112_v50 = vadd.f32 %v1110_v42, %v1107_v46  ;;  %v1294_v46 = vld [vmem:[%s2184_s12] sm:$0xff] }
 0x497   : > { %v1119_v52 = vadd.f32 %v1117_v51, %v1111_v49  ;;  %v1120_v53 = vadd.f32 %v1117_v51, %v1112_v50 }
 0x499   : > { %vm1121_vm12 = vcmp.ge.f32.partialorder %v1119_v52, 0.0  ;;  %v1123_v54 = vmul.f32 0.01, %v1119_v52  ;;  %vm1122_vm4 = vcmp.ge.f32.partialorder %v1120_v53, 0.0  ;;  %v1124_v57 = vmul.f32 0.01, %v1120_v53 }
 0x49b   : > { %v1125_v59 = vsel %vm1121_vm12, %v1119_v52, %v1123_v54  ;;  %v1126_v60 = vsel %vm1122_vm4, %v1120_v53, %v1124_v57 }
 0x49c   : > { %1220 = vmatpush.msra.mxu0 %v1125_v59  ;;  %1240 = vmatpush.msra.mxu1 %v1126_v60 }
 0x49d   : > { %1645 = vmatmul.msk.f32.vlgmr.msra.gmra.mxu0 %vm816_vm5, %v1201_v58  ;;  %1646 = vmatmul.msk.f32.vlgmr.msra.gmra.mxu1 %vm816_vm5, %v1201_v58 }
 0x4ee   : > { %v1193_v5 = vpop.permute.xlu2 %1192 }
 0x4ef   : > { %v1200_v11 = vadd.f32 %v1193_v5, %v1143_v7 }
 0x506   : > { %v1191_v18 = vpop.permute.xlu1 %1190 }
 0x507   : > { %v1194_v23 = vsel %vm512_vm0, %v1191_v18, %v1193_v5  ;;  %v1198_v25 = vadd.f32 %v1191_v18, %v1141_v22 }
 0x508   : > { %v1199_v26 = vadd.f32 %v1194_v23, %v1142_v24 }
 0x51a   : > { %v1222_v62 = vpop.f32.mrf.mxu0  ;;  %v1242_v63 = vpop.f32.mrf.mxu1 }
 0x51b   : > { %1249 = vrot.lane.b32.xlu2 %v1242_v63, %s1785_s24  ;;  %1247 = vrot.lane.b32.xlu1 %v1222_v62, %s1785_s24 }
 0x575   : > { %v1250_v12 = vpop.permute.xlu2 %1249 }
 0x576   : > { %v1257_v14 = vadd.f32 %v1250_v12, %v1200_v11 }
 0x578   : > { %v1266_v15 = vadd.f32 %v1262_v13, %v1257_v14 }
 0x57a   : > { %1269 = vst.msk [vmem:[#allocation3 + $0x10] sm:$0xff] %vm512_vm0, %v1266_v15 }
 0x581   : > { %v1274_v17 = vld [vmem:[#allocation3 + $0x10] sm:$0xff] }
 0x582   : > { %1290 = vrot.lane.b32.xlu2 %v1274_v17, %s1787_s26 }
 0x58d   : > { %v1248_v27 = vpop.permute.xlu1 %1247 }
 0x58e   : > { %v1251_v28 = vsel %vm512_vm0, %v1248_v27, %v1250_v12  ;;  %v1255_v29 = vadd.f32 %v1248_v27, %v1198_v25 }
 0x58f   : > { %v1256_v30 = vadd.f32 %v1251_v28, %v1199_v26 }
 0x590   : > { %v1264_v31 = vadd.f32 %v1262_v13, %v1255_v29  ;;  %v1650_v29 = vld [vmem:[%s2184_s12 + $0x10] sm:$0xff] }
 0x591   : > { %v1265_v32 = vadd.f32 %v1262_v13, %v1256_v30 }
 0x592   : > { %1267 = vst.msk [vmem:[#allocation3] sm:$0xff] %vm882_vm10, %v1264_v31 }
 0x599   : > { %v1272_v16 = vld [vmem:[#allocation3] sm:$0xff] }
 0x59a   : > { %v1736_v19 = vpack.i.bf16 %v1265_v32, %v1272_v16 }
 0x59c   : > { %1737 = vrot.lane.b32.xlu2 %v1736_v19, %s1790_s28  ;;  %1732 = vrot.lane.b32.xlu0 %v1736_v19, %s1786_s25 }
 0x59d   : > { %1727 = vrot.lane.b32.xlu1 %v1736_v19, %s1787_s26  ;;  %s502_s26 = scalar_lea.vmem %s2187_s15, %s1618_s21 }
 0x5a5   : > { %1282 = vrot.lane.b32.xlu1 %v1274_v17, %s1786_s25 }
 0x5dc   : > { %v1291_v10 = vpop.permute.xlu2 %1290 }
 0x5f6   : > { %v1738_v45 = vpop.permute.xlu2 %1737 }
 0x5f7   : > { %v1740_v54 = vunpack.i.h.bf16 %v1738_v45  ;;  %v1739_v58 = vunpack.i.l.bf16 %v1738_v45 }
 0x5f9   : > { %v1437_v5 = vsel %vm734_vm14, %v1739_v58, %v1740_v54 }
 0x60e   : > { %v1733_v33 = vpop.permute.xlu0 %1732 }
 0x60f   : > { %v1735_v34 = vunpack.i.h.bf16 %v1733_v33  ;;  %v1734_v1 = vunpack.i.l.bf16 %v1733_v33  ;;  %v1728_v35 = vpop.permute.xlu1 %1727 }
 0x610   : > { %v1730_v9 = vunpack.i.h.bf16 %v1728_v35  ;;  %v1729_v36 = vunpack.i.l.bf16 %v1728_v35 }
 0x611   : > { %v1284_v8 = vsel %vm573_vm7, %v1734_v1, %v1735_v34 }
 0x612   : > { %v1292_v37 = vsel %vm585_vm8, %v1729_v36, %v1730_v9  ;;  %v1293_v38 = vsel %vm585_vm8, %v1730_v9, %v1291_v10  ;;  %v1746_v39 = vpack.i.bf16 %v1284_v8, %v1291_v10  ;;  %vm1520_vm8 = vcmask 7168  }
 0x613   : > { %1315 = vmatpush.msra.mxu2 %v1292_v37  ;;  %1335 = vmatpush.msra.mxu3 %v1293_v38  ;;  %v1741_v40 = vpack.i.bf16 %v1293_v38, %v1292_v37 }
 0x614   : > { %1747 = vrot.lane.b32.xlu0 %v1746_v39, %s1790_s28 }
 0x615   : > { %1742 = vrot.lane.b32.xlu2 %v1741_v40, %s1790_s28  ;;  %1316 = vmatpush.msra.mxu2 %v1284_v8 }
 0x617   : > { %v1283_v41 = vpop.permute.xlu1 %1282  ;;  %1317 = vmatpush.msra.mxu2 %v1272_v16 }
 0x618   : > { %v1285_v42 = vsel %vm573_vm7, %v1735_v34, %v1283_v41  ;;  %1648 = vmatmul.msk.f32.vlgmr.msra.gmra.mxu2 %vm915_vm11, %v1294_v46 }
 0x619   : > { %1336 = vmatpush.msra.mxu3 %v1285_v42  ;;  %v1751_v43 = vpack.i.bf16 %v1283_v41, %v1285_v42 }
 0x61b   : > { %1752 = vrot.lane.b32.xlu1 %v1751_v43, %s1790_s28  ;;  %1337 = vmatpush.msra.mxu3 %v1265_v32 }
 0x61c   : > { %1423 = vrot.lane.b32.xlu0 %v1274_v17, %s1790_s28  ;;  %1649 = vmatmul.msk.f32.vlgmr.msra.gmra.mxu3 %vm915_vm11, %v1294_v46 }
 0x61d   : > { %1762 = vrot.lane.b32.xlu2 %v1746_v39, %s1789_s27 }
 0x623   : > { %1757 = vrot.lane.b32.xlu1 %v1741_v40, %s1789_s27 }
 0x624   : > { %1767 = vrot.lane.b32.xlu0 %v1751_v43, %s1789_s27 }
 0x625   : > { %1348 = vrot.lane.b32.xlu2 %v1274_v17, %s1789_s27 }
 0x62b   : > { %1772 = vrot.lane.b32.xlu1 %v1736_v19, %s1789_s27 }
 0x62c   : > { %1499 = vperm.xlu0 %1725, %v1496_v44  }
 0x66f   : > { %v1743_v47 = vpop.permute.xlu2 %1742 }
 0x670   : > { %v1745_v48 = vunpack.i.h.bf16 %v1743_v47  ;;  %v1744_v49 = vunpack.i.l.bf16 %v1743_v47 }
 0x672   : > { %v1441_v50 = vsel %vm734_vm14, %v1744_v49, %v1745_v48 }
 0x673   : > { %1465 = vmatpush.msrb.mxu2 %v1441_v50 }
 0x677   : > { %v1763_v7 = vpop.permute.xlu2 %1762 }
 0x678   : > { %v1764_v12 = vunpack.i.l.bf16 %v1763_v7  ;;  %v1765_v17 = vunpack.i.h.bf16 %v1763_v7 }
 0x67f   : > { %v1349_v28 = vpop.permute.xlu2 %1348 }
 0x686   : > { %v1748_v51 = vpop.permute.xlu0 %1747 }
 0x687   : > { %v1749_v52 = vunpack.i.l.bf16 %v1748_v51  ;;  %v1750_v59 = vunpack.i.h.bf16 %v1748_v51 }
 0x689   : > { %v1442_v53 = vsel %vm734_vm14, %v1745_v48, %v1749_v52 }
 0x68a   : > { %1485 = vmatpush.msrb.mxu3 %v1442_v53 }
 0x68d   : > { %v1753_v57 = vpop.permute.xlu1 %1752 }
 0x68e   : > { %v1755_v60 = vunpack.i.h.bf16 %v1753_v57  ;;  %v1754_v61 = vunpack.i.l.bf16 %v1753_v57  ;;  %v1424_v62 = vpop.permute.xlu0 %1423 }
 0x68f   : > { %v1438_v6 = vsel %vm734_vm14, %v1740_v54, %v1424_v62 }
 0x690   : > { %v1439_v63 = vsel %vm734_vm14, %v1750_v59, %v1754_v61  ;;  %v1440_v2 = vsel %vm734_vm14, %v1754_v61, %v1755_v60 }
 0x691   : > { %1466 = vmatpush.msrb.mxu2 %v1439_v63  ;;  %1486 = vmatpush.msrb.mxu3 %v1440_v2 }
 0x693   : > { %1467 = vmatpush.msrb.mxu2 %v1437_v5  ;;  %1487 = vmatpush.msrb.mxu3 %v1438_v6 }
 0x694   : > { %1653 = vmatmul.msk.f32.vlgmr.msrb.gmra.mxu2 %vm915_vm11, %v1647_v4  ;;  %1654 = vmatmul.msk.f32.vlgmr.msrb.gmra.mxu3 %vm915_vm11, %v1647_v4 }
 0x695   : > { %v1758_v11 = vpop.permute.xlu1 %1757 }
 0x696   : > { %v1760_v13 = vunpack.i.h.bf16 %v1758_v11  ;;  %v1759_v14 = vunpack.i.l.bf16 %v1758_v11  ;;  %v1768_v15 = vpop.permute.xlu0 %1767 }
 0x697   : > { %v1770_v18 = vunpack.i.h.bf16 %v1768_v15  ;;  %v1769_v20 = vunpack.i.l.bf16 %v1768_v15 }
 0x698   : > { %v1366_v21 = vsel %vm672_vm13, %v1759_v14, %v1760_v13  ;;  %v1367_v22 = vsel %vm672_vm13, %v1760_v13, %v1764_v12 }
 0x699   : > { %1390 = vmatpush.msrb.mxu0 %v1366_v21  ;;  %1410 = vmatpush.msrb.mxu1 %v1367_v22  ;;  %v1364_v23 = vsel %vm672_vm13, %v1765_v17, %v1769_v20  ;;  %v1365_v24 = vsel %vm672_vm13, %v1769_v20, %v1770_v18 }
 0x69b   : > { %1391 = vmatpush.msrb.mxu0 %v1364_v23  ;;  %1411 = vmatpush.msrb.mxu1 %v1365_v24  ;;  %v1319_v32 = vpop.f32.mrf.mxu2 }
 0x69c   : > { %v1417_v19 = vsel %vm1976_vm15, %v1319_v32, 0.0 }
 0x69d   : > { %v1773_v25 = vpop.permute.xlu1 %1772 }
 0x69e   : > { %v1775_v26 = vunpack.i.h.bf16 %v1773_v25  ;;  %v1774_v27 = vunpack.i.l.bf16 %v1773_v25  ;;  %v1500_v40 = vpop.permute.xlu0 %1499 }
 0x69f   : > { %v1339_v16 = vpop.f32.mrf.mxu3 }
 0x6a0   : > { %v1362_v30 = vsel %vm672_vm13, %v1774_v27, %v1775_v26  ;;  %v1363_v31 = vsel %vm672_vm13, %v1775_v26, %v1349_v28  ;;  %v1418_v33 = vsel %vm1988_vm2, %v1339_v16, 0.0  ;;  %vm1522_vm13 = vcmask 15360  }
 0x6a1   : > { %1392 = vmatpush.msrb.mxu0 %v1362_v30  ;;  %1412 = vmatpush.msrb.mxu1 %v1363_v31 }
 0x6a2   : > { %1651 = vmatmul.msk.f32.vlgmr.msrb.gmra.mxu0 %vm915_vm11, %v1650_v29  ;;  %1652 = vmatmul.msk.f32.vlgmr.msrb.gmra.mxu1 %vm915_vm11, %v1650_v29 }
 0x717   : > { %v1469_v34 = vpop.f32.mrf.mxu2  ;;  %v1489_v1 = vpop.f32.mrf.mxu3 }
 0x718   : > { %v1470_v35 = vadd.f32 %v1469_v34, %v1417_v19  ;;  %v1490_v9 = vadd.f32 %v1489_v1, %v1418_v33 }
 0x71f   : > { %v1394_v36 = vpop.f32.mrf.mxu0  ;;  %v1414_v10 = vpop.f32.mrf.mxu1 }
 0x720   : > { %v1492_v8 = vsel %vm1980_vm1, %v1394_v36, 0.0  ;;  %v1493_v37 = vsel %vm1992_vm3, %v1414_v10, 0.0 }
 0x721   : > { %v1494_v38 = vadd.f32 %v1492_v8, %v1470_v35  ;;  %v1495_v39 = vadd.f32 %v1493_v37, %v1490_v9 }
 0x723   : > { %v1502_v55 = vadd.f32 %v1500_v40, %v1494_v38  ;;  %v1503_v41 = vadd.f32 %v1500_v40, %v1495_v39 }
 0x725   : > { %v1506_v0 = vmul.f32 0.01, %v1502_v55  ;;  %v1507_v42 = vmul.f32 0.01, %v1503_v41  ;;  %vm1504_vm0 = vcmp.ge.f32.partialorder %v1502_v55, 0.0  ;;  %vm1505_vm7 = vcmp.ge.f32.partialorder %v1503_v41, 0.0 }
 0x727   : > { %v1508_v56 = vsel %vm1504_vm0, %v1502_v55, %v1506_v0  ;;  %v1509_v43 = vsel %vm1505_vm7, %v1503_v41, %v1507_v42 }
 0x728   : > { %1511 = vst [vmem:[%s498_s20 + $0x8] sm:$0xff] %v1509_v43  ;;  %v1512_v3 = vadd.f32 %v1509_v43, %v1508_v56  ;;  %v1515_v44 = vmul.f32 %v1508_v56, %v1508_v56  ;;  %v1516_v45 = vmul.f32 %v1509_v43, %v1509_v43 }
 0x729   : > { %1510 = vst [vmem:[%s498_s20] sm:$0xff] %v1508_v56 }
 0x72a   : > { %1513 = vadd.xlane.f32.xlu1 %v1512_v3  ;;  %v1517_v46 = vadd.f32 %v1516_v45, %v1515_v44 }
 0x72c   : > { %1518 = vadd.xlane.f32.xlu2 %v1517_v46 }
 0x79d   : > { %v1514_v47 = vpop.xlane.xlu1 %1513 }
 0x79f   : > { %v1519_v48 = vpop.xlane.xlu2 %1518 }
 0x7a0   : > { %v1521_v49 = vsel %vm1520_vm8, %v1514_v47, %v1519_v48 }
 0x7a1   : > { %1523 = vst.msk [vmem:[%s502_s26] sm:$0xff] %vm1522_vm13, %v1521_v49 }
 0x7a2 PF: > { %s26_s18 = sadd.s32 1, %s1782_s18  }
 0x7a3   : > { %p23_p4 = scmp.ge.s32.totalorder %s26_s18, 4  }
 0x7a5   :  { %25 = sbr.rel (!%p23_p4) target bundleno = 1 (0x1), region = 124 }

// kernel: densenet_encoder_forward.15
= control target key start
LH: loop header
LB: loop body
LE: loop exit
PB: predicated region body
PF: predicated region fallthrough
CT: control target
= control target key end

     0   :  { %s284_s12 = smov 0   ;;  %s301_s0 = inlined_call_operand.vmem [shape: f32[2,8,16], index: 0, kind: input, shape index: {}, may-alias: {0,3}]   ;;  %s302_s1 = inlined_call_operand.vmem [shape: f32[8,1], index: 1, kind: input, shape index: {}]   ;;  %s303_s2 = inlined_call_operand.vmem [shape: f32[8,1], index: 2, kind: input, shape index: {}]   ;;  %s304_s3 = inlined_call_operand.vmem [shape: f32[2,8,16], index: 3, kind: output, shape index: {}, may-alias: {0,3}]  }
   0x1 LB: > { %s236_s13 = sadd.s32 4294967295, %s261_s12   ;;  %p240_p0 = scmp.ge.s32.totalorder %s261_s12, 1  ;;  %s261_s12 = sphi %s284_s12, %s13_s12  }
   0x2   : > { %p136_p1 = scmp.lt.s32.totalorder %s261_s12, 3 }
   0x4   : > { %p137_p2 = pnand %p240_p0, %p136_p1 }
   0x5   : > { %p158_p3 = scmp.lt.s32.totalorder (!%p137_p2), %s236_s13, 1 }
   0x6   : > { %140 = sbr.rel (%p137_p2) target bundleno = 139 (0x8b), region = 32 }
   0xb   : > { %v167_v0 = vld [vmem:[%s302_s1] sm:$0xff]  ;;  %v263_v1 = vmov 0   ;;  %s306_s13 = smov (!%p158_p3, %s236_s13), 1  ;;  %vm181_vm0 = vcmask 130048  }
   0xc   : > { %254 = vset.pattern.permute.xlu0 %v263_v1  ;;  %v174_v2 = vld [vmem:[%s303_s2] sm:$0xff]  ;;  %s241_s18 = sshll.u32 %s306_s13, 3 }
   0xd   : > { %170 = vperm.xlu0 %254, %v167_v0   ;;  %s161_s21 = scalar_lea.vmem %s301_s0, %s241_s18  ;;  %s165_s24 = scalar_lea.vmem %s304_s3, %s241_s18 }
   0xe   : > { %v166_v4 = vld [vmem:[%s161_s21] sm:$0xff] }
  0x15   : > { %177 = vperm.xlu0 %254, %v174_v2  }
  0x7f   : > { %v171_v3 = vpop.permute.xlu0 %170 }
  0x80   : > { %v173_v5 = vmul.f32 %v171_v3, %v166_v4 }
  0x87   : > { %v178_v6 = vpop.permute.xlu0 %177 }
  0x88   : > { %v180_v7 = vadd.f32 %v178_v6, %v173_v5 }
  0x8a   : > { %182 = vst.msk [vmem:[%s165_s24] sm:$0xff] %vm181_vm0, %v180_v7 }
  0x8b PF: > { %s13_s12 = sadd.s32 1, %s261_s12  }
  0x8c   : > { %p10_p4 = scmp.ge.s32.totalorder %s13_s12, 4  }
  0x8e   :  { %12 = sbr.rel (!%p10_p4) target bundleno = 1 (0x1), region = 62 }

// kernel: densenet_encoder_forward.12
= control target key start
LH: loop header
LB: loop body
LE: loop exit
PB: predicated region body
PF: predicated region fallthrough
CT: control target
= control target key end

     0   :  { %s1410_s21 = smov 0   ;;  %s1660_s0 = inlined_call_operand.vmem [shape: f32[2,8,256], index: 0, kind: input, shape index: {}]   ;;  %s1661_s1 = inlined_call_operand.vmem [shape: f32[256,64], index: 1, kind: input, shape index: {}]   ;;  %s1662_s2 = inlined_call_operand.vmem [shape: f32[3,8,24], index: 2, kind: input, shape index: {}]   ;;  %s1663_s3 = inlined_call_operand.vmem [shape: f32[8,1], index: 3, kind: input, shape index: {}]   ;;  %s1664_s4 = inlined_call_operand.vmem [shape: f32[8,8], index: 4, kind: input, shape index: {}]   ;;  %s1665_s5 = inlined_call_operand.vmem [shape: f32[8,8], index: 5, kind: input, shape index: {}]   ;;  %s1666_s6 = inlined_call_operand.vmem [shape: f32[8,1], index: 6, kind: input, shape index: {}]   ;;  %s1667_s7 = inlined_call_operand.vmem [shape: f32[3,8,24], index: 7, kind: input, shape index: {}]   ;;  %s1668_s8 = inlined_call_operand.vmem [shape: f32[8,1], index: 8, kind: input, shape index: {}]   ;;  %s1669_s9 = inlined_call_operand.vmem [shape: f32[8,8], index: 9, kind: input, shape index: {}]   ;;  %s1670_s10 = inlined_call_operand.vmem [shape: f32[8,8], index: 10, kind: input, shape index: {}]   ;;  %s1671_s11 = inlined_call_operand.vmem [shape: f32[8,8], index: 11, kind: input, shape index: {}]   ;;  %s1672_s12 = inlined_call_operand.vmem [shape: f32[8,1], index: 12, kind: input, shape index: {}]   ;;  %s1673_s13 = inlined_call_operand.vmem [shape: f32[3,8,24], index: 13, kind: input, shape index: {}]   ;;  %s1674_s14 = inlined_call_operand.vmem [shape: f32[8,1], index: 14, kind: input, shape index: {}]   ;;  %s1675_s15 = inlined_call_operand.vmem [shape: f32[2,8,64], index: 15, kind: output, shape index: {0}]   ;;  %s1676_s16 = inlined_call_operand.vmem [shape: f32[2,8,2], index: 16, kind: output, shape index: {1}]  }
   0x1   :  { %1677 = sst [smem:[#allocation4_spill]] %s1660_s0 }
   0x2 LB: > { %s1228_s22 = sadd.s32 4294967295, %s1315_s21   ;;  %p1232_p0 = scmp.ge.s32.totalorder %s1315_s21, 1  ;;  %s1315_s21 = sphi %s1410_s21, %s27_s21  }
   0x3   : > { %p465_p1 = scmp.lt.s32.totalorder %s1315_s21, 3 }
   0x5   : > { %p466_p2 = pnand %p1232_p0, %p465_p1 }
   0x6   : > { %p518_p3 = scmp.lt.s32.totalorder (!%p466_p2), %s1228_s22, 1  ;;  %s1678_s19 = sld [smem:[#allocation4_spill]] (!%p466_p2) }
   0x7   : > { %469 = sbr.rel (%p466_p2) target bundleno = 2073 (0x819), region = 80  ;;  %s1319_s28 = smov (!%p466_p2), 120  }
   0x8   : > { %s1320_s29 = smov (!%p466_p2), 112   ;;  %s1321_s30 = smov (!%p466_p2), 126  }
   0x9   : > { %s1322_s0 = smov (!%p466_p2), 127   ;;  %s1323_s17 = smov (!%p466_p2), 119  }
   0xc   : > { %v554_v0 = vld [vmem:[%s1661_s1 + $0x78] sm:$0xff]  ;;  %v553_v2 = vld [vmem:[%s1661_s1 + $0x70] sm:$0xff]  ;;  %v552_v4 = vld [vmem:[%s1661_s1 + $0x68] sm:$0xff]  ;;  %s1684_s22 = smov (!%p518_p3, %s1228_s22), 1  ;;  %vm531_vm0 = vcmask 72704   ;;  %vm533_vm1 = vcmask 671304   ;;  %v617_v59 = vlaneseq }
   0xd   : > { %v570_v1 = vld [vmem:[%s1661_s1 + $0xf8] sm:$0xff]  ;;  %571 = vmatpush.msra.mxu0 %v554_v0  ;;  %v569_v3 = vld [vmem:[%s1661_s1 + $0xf0] sm:$0xff]  ;;  %v568_v5 = vld [vmem:[%s1661_s1 + $0xe8] sm:$0xff]  ;;  %s1259_s23 = sshll.u32 %s1684_s22, 4  ;;  %v1317_v34 = vmov 0.0   ;;  %vm615_vm2 = vcmask 597064  }
   0xe   : > { %591 = vmatpush.msra.mxu1 %v570_v1  ;;  %v551_v6 = vld [vmem:[%s1661_s1 + $0x60] sm:$0xff]  ;;  %v550_v8 = vld [vmem:[%s1661_s1 + $0x58] sm:$0xff]  ;;  %v549_v10 = vld [vmem:[%s1661_s1 + $0x50] sm:$0xff]  ;;  %s522_s20 = scalar_lea.vmem %s1678_s19, %s1259_s23  ;;  %532 = vst.msk [vmem:[#allocation2] sm:$0xff] %vm531_vm0, %v1317_v34  ;;  %s1318_s23 = smov 9   ;;  %vm644_vm3 = vcmask 195584  }
   0xf   : > { %572 = vmatpush.msra.mxu0 %v553_v2  ;;  %v567_v7 = vld [vmem:[%s1661_s1 + $0xe0] sm:$0xff]  ;;  %v566_v9 = vld [vmem:[%s1661_s1 + $0xd8] sm:$0xff]  ;;  %v565_v11 = vld [vmem:[%s1661_s1 + $0xd0] sm:$0xff]  ;;  %534 = vst.msk [vmem:[#allocation2] sm:$0xff] %vm533_vm1, %v1317_v34  ;;  %v1324_v48 = vmov 0   ;;  %vm753_vm4 = vcmask 64512  }
  0x10   : > { %592 = vmatpush.msra.mxu1 %v569_v3  ;;  %v548_v12 = vld [vmem:[%s1661_s1 + $0x48] sm:$0xff]  ;;  %v547_v14 = vld [vmem:[%s1661_s1 + $0x40] sm:$0xff]  ;;  %v546_v16 = vld [vmem:[%s1661_s1 + $0x38] sm:$0xff]  ;;  %535 = vst.msk [vmem:[#allocation3] sm:$0xff] %vm531_vm0, %v1317_v34  ;;  %1286 = vset.pattern.permute.xlu1 %v1324_v48  ;;  %v618_v60 = vand.u32 127, %v617_v59  ;;  %s1235_s24 = sshll.u32 %s1684_s22, 3 }
  0x11   : > { %573 = vmatpush.msra.mxu0 %v552_v4  ;;  %v564_v13 = vld [vmem:[%s1661_s1 + $0xc8] sm:$0xff]  ;;  %v563_v15 = vld [vmem:[%s1661_s1 + $0xc0] sm:$0xff]  ;;  %v562_v17 = vld [vmem:[%s1661_s1 + $0xb8] sm:$0xff]  ;;  %536 = vst.msk [vmem:[#allocation3] sm:$0xff] %vm533_vm1, %v1317_v34  ;;  %1287 = vset.pattern.permute.xlu0 %v1324_v48  ;;  %vm1131_vm10 = vcmask 523264   ;;  %vm1140_vm11 = vcmask 7168   ;;  %s530_s22 = scalar_lea.vmem %s1676_s16, %s1235_s24 }
  0x12   : > { %593 = vmatpush.msra.mxu1 %v568_v5  ;;  %v545_v18 = vld [vmem:[%s1661_s1 + $0x30] sm:$0xff]  ;;  %v544_v20 = vld [vmem:[%s1661_s1 + $0x28] sm:$0xff]  ;;  %v543_v22 = vld [vmem:[%s1661_s1 + $0x20] sm:$0xff]  ;;  %1298 = vset.pattern.permute.xlu2 %v1324_v48  ;;  %v623_v62 = vand.u32 7, %v618_v60  ;;  %vm1142_vm12 = vcmask 15360  }
  0x13   : > { %574 = vmatpush.msra.mxu0 %v551_v6  ;;  %v561_v19 = vld [vmem:[%s1661_s1 + $0xb0] sm:$0xff]  ;;  %v560_v21 = vld [vmem:[%s1661_s1 + $0xa8] sm:$0xff]  ;;  %v559_v23 = vld [vmem:[%s1661_s1 + $0xa0] sm:$0xff] }
  0x14   : > { %594 = vmatpush.msra.mxu1 %v567_v7  ;;  %v542_v24 = vld [vmem:[%s1661_s1 + $0x18] sm:$0xff]  ;;  %v541_v26 = vld [vmem:[%s1661_s1 + $0x10] sm:$0xff]  ;;  %v540_v28 = vld [vmem:[%s1661_s1 + $0x8] sm:$0xff]  ;;  %vm1563_vm5 = vcmp.ne.s32.totalorder %v623_v62, 0  ;;  %vm1567_vm6 = vcmp.ne.s32.totalorder %v623_v62, 7 }
  0x15   : > { %575 = vmatpush.msra.mxu0 %v550_v8  ;;  %v558_v25 = vld [vmem:[%s1661_s1 + $0x98] sm:$0xff]  ;;  %v557_v27 = vld [vmem:[%s1661_s1 + $0x90] sm:$0xff]  ;;  %v556_v29 = vld [vmem:[%s1661_s1 + $0x88] sm:$0xff] }
  0x16   : > { %595 = vmatpush.msra.mxu1 %v566_v9  ;;  %v539_v30 = vld [vmem:[%s1661_s1] sm:$0xff]  ;;  %v538_v33 = vld [vmem:[%s522_s20 + $0x8] sm:$0xff]  ;;  %v1239_v49 = vld [vmem:[%s1662_s2 + $0x10] sm:$0xff] }
  0x17   : > { %576 = vmatpush.msra.mxu0 %v549_v10  ;;  %v555_v31 = vld [vmem:[%s1661_s1 + $0x80] sm:$0xff]  ;;  %v1237_v55 = vld [vmem:[%s1662_s2 + $0x8] sm:$0xff] }
  0x18   : > { %596 = vmatpush.msra.mxu1 %v565_v11  ;;  %v537_v32 = vld [vmem:[%s522_s20] sm:$0xff] }
  0x19   : > { %577 = vmatpush.msra.mxu0 %v548_v12  ;;  %v641_v43 = vld [vmem:[%s1662_s2] sm:$0xff] }
  0x1a   : > { %597 = vmatpush.msra.mxu1 %v564_v13  ;;  %v741_v46 = vld [vmem:[%s1663_s3] sm:$0xff] }
  0x1b   : > { %578 = vmatpush.msra.mxu0 %v547_v14  ;;  %v751_v57 = vld [vmem:[%s1664_s4] sm:$0xff] }
  0x1c   : > { %598 = vmatpush.msra.mxu1 %v563_v15  ;;  %v803_v58 = vld [vmem:[%s1666_s6] sm:$0xff] }
  0x1d   : > { %579 = vmatpush.msra.mxu0 %v546_v16  ;;  %v752_v10 = vld [vmem:[%s1665_s5] sm:$0xff] }
  0x1e   : > { %599 = vmatpush.msra.mxu1 %v562_v17  ;;  %v981_v48 = vld [vmem:[%s1671_s11] sm:$0xff] }
  0x1f   : > { %580 = vmatpush.msra.mxu0 %v545_v18  ;;  %v1121_v62 = vld [vmem:[%s1674_s14] sm:$0xff] }
  0x20   : > { %600 = vmatpush.msra.mxu1 %v561_v19  ;;  %v918_v19 = vld [vmem:[%s1668_s8] sm:$0xff] }
  0x21   : > { %581 = vmatpush.msra.mxu0 %v544_v20 }
  0x22   : > { %601 = vmatpush.msra.mxu1 %v560_v21 }
  0x23   : > { %582 = vmatpush.msra.mxu0 %v543_v22 }
  0x24   : > { %602 = vmatpush.msra.mxu1 %v559_v23  ;;  %v823_v23 = vld [vmem:[%s1667_s7] sm:$0xff] }
  0x25   : > { %583 = vmatpush.msra.mxu0 %v542_v24 }
  0x26   : > { %603 = vmatpush.msra.mxu1 %v558_v25 }
  0x27   : > { %584 = vmatpush.msra.mxu0 %v541_v26 }
  0x28   : > { %604 = vmatpush.msra.mxu1 %v557_v27  ;;  %v1244_v27 = vld [vmem:[%s1667_s7 + $0x8] sm:$0xff] }
  0x29   : > { %585 = vmatpush.msra.mxu0 %v540_v28 }
  0x2a   : > { %605 = vmatpush.msra.mxu1 %v556_v29 }
  0x2b   : > { %586 = vmatpush.msra.mxu0 %v539_v30 }
  0x2c   : > { %606 = vmatpush.msra.mxu1 %v555_v31  ;;  %587 = vmatmul.f32.vlgmr.msra.gmra.mxu0 %v537_v32  ;;  %v1246_v32 = vld [vmem:[%s1667_s7 + $0x10] sm:$0xff] }
  0x2d   : > { %607 = vmatmul.f32.vlgmr.msra.gmra.mxu1 %v538_v33 }
  0xa9   : > { %v588_v35 = vpop.f32.mrf.mxu0 }
  0xaa   : > { %v608_v36 = vpop.f32.mrf.mxu1 }
  0xab   : > { %v609_v37 = vadd.f32 %v608_v36, %v588_v35  ;;  %v930_v35 = vld [vmem:[%s1670_s10] sm:$0xff] }
  0xac   : > { %v928_v36 = vld [vmem:[%s1669_s9] sm:$0xff] }
  0xad   : > { %612 = vrot.lane.b32.xlu0 %v609_v37, %s1318_s23  ;;  %v1006_v37 = vld [vmem:[%s1672_s12] sm:$0xff] }
 0x11f   : > { %v613_v38 = vpop.permute.xlu0 %612 }
 0x120   : > { %616 = vst.msk [vmem:[#allocation2] sm:$0xff] %vm615_vm2, %v613_v38 }
 0x127   : > { %v1526_v39 = vld [vmem:[#allocation2] sm:$0xff] }
 0x128   : > { %637 = vrot.lane.b32.xlu1 %v1526_v39, %s1319_s28  ;;  %639 = vrot.lane.b32.xlu0 %v1526_v39, %s1320_s29 }
 0x130   : > { %670 = vrot.lane.b32.xlu0 %v1526_v39, %s1321_s30 }
 0x138   : > { %806 = vperm.xlu0 %1287, %v803_v58  }
 0x19a   : > { %v638_v40 = vpop.permute.xlu1 %637  ;;  %v640_v41 = vpop.permute.xlu0 %639 }
 0x19b   : > { %v1276_v42 = vpack.i.bf16 %v638_v40, %v640_v41  ;;  %661 = vmatpush.msra.mxu2 %v640_v41 }
 0x19d   : > { %662 = vmatpush.msra.mxu2 %v638_v40  ;;  %1282 = vrot.lane.b32.xlu2 %v1276_v42, %s1321_s30 }
 0x19e   : > { %1277 = vrot.lane.b32.xlu1 %v1276_v42, %s1322_s0 }
 0x19f   : > { %663 = vmatpush.msra.mxu2 %v1526_v39 }
 0x1a0   : > { %1238 = vmatmul.msk.f32.vlgmr.msra.gmra.mxu2 %vm644_vm3, %v641_v43 }
 0x1a2   : > { %v671_v50 = vpop.permute.xlu0 %670 }
 0x1a5   : > { %705 = vrot.lane.b32.xlu2 %v1526_v39, %s1322_s0 }
 0x1a6   : > { %744 = vperm.xlu1 %1286, %v741_v46  }
 0x1aa   : > { %v807_v14 = vpop.permute.xlu0 %806 }
 0x1ad   : > { %777 = vrot.lane.b32.xlu2 %v1526_v39, %s1323_s17 }
 0x1f7   : > { %v1283_v44 = vpop.permute.xlu2 %1282 }
 0x1f8   : > { %v1284_v45 = vunpack.i.l.bf16 %v1283_v44  ;;  %v1285_v47 = vunpack.i.h.bf16 %v1283_v44 }
 0x1fa   : > { %695 = vmatpush.msra.mxu3 %v1284_v45 }
 0x1fc   : > { %696 = vmatpush.msra.mxu3 %v1285_v47 }
 0x1fe   : > { %697 = vmatpush.msra.mxu3 %v671_v50 }
 0x1ff   : > { %1240 = vmatmul.msk.f32.vlgmr.msra.gmra.mxu3 %vm644_vm3, %v1239_v49  ;;  %v706_v51 = vpop.permute.xlu2 %705 }
 0x207   : > { %v778_v56 = vpop.permute.xlu2 %777 }
 0x210   : > { %v1278_v52 = vpop.permute.xlu1 %1277 }
 0x211   : > { %v1279_v53 = vunpack.i.l.bf16 %v1278_v52  ;;  %v1280_v54 = vunpack.i.h.bf16 %v1278_v52 }
 0x213   : > { %730 = vmatpush.msrb.mxu2 %v1279_v53 }
 0x215   : > { %731 = vmatpush.msrb.mxu2 %v1280_v54 }
 0x217   : > { %732 = vmatpush.msrb.mxu2 %v706_v51 }
 0x218   : > { %1241 = vmatmul.msk.f32.vlgmr.msrb.gmra.mxu2 %vm644_vm3, %v1237_v55  ;;  %v745_v6 = vpop.permute.xlu1 %744 }
 0x219   : > { %798 = vmatpush.msra.mxu2 %v778_v56 }
 0x220   : > { %1243 = vmatmul.msk.f32.vlgmr.msra.gmra.mxu2 %vm753_vm4, %v751_v57 }
 0x223   : > { %v665_v61 = vpop.f32.mrf.mxu2 }
 0x224   : > { %v704_v2 = vsel %vm1563_vm5, %v665_v61, 0.0 }
 0x282   : > { %v699_v1 = vpop.f32.mrf.mxu3 }
 0x283   : > { %v739_v4 = vsel %vm1567_vm6, %v699_v1, 0.0  ;;  %v1026_v1 = vld [vmem:[%s1673_s13] sm:$0xff] }
 0x29b   : > { %v734_v3 = vpop.f32.mrf.mxu2 }
 0x29c   : > { %v735_v5 = vadd.f32 %v734_v3, %v704_v2 }
 0x29e   : > { %v740_v7 = vadd.f32 %v739_v4, %v735_v5 }
 0x2a0   : > { %v747_v8 = vadd.f32 %v745_v6, %v740_v7 }
 0x2a2   : > { %vm748_vm7 = vcmp.ge.f32.partialorder %v747_v8, 0.0  ;;  %v749_v9 = vmul.f32 0.01, %v747_v8 }
 0x2a3   : > { %v800_v12 = vpop.f32.mrf.mxu2 }
 0x2a4   : > { %v750_v11 = vsel %vm748_vm7, %v747_v8, %v749_v9  ;;  %v1252_v8 = vld [vmem:[%s1673_s13 + $0x8] sm:$0xff] }
 0x2a5   : > { %772 = vmatpush.msrb.mxu3 %v750_v11 }
 0x2a6   : > { %1242 = vmatmul.msk.f32.vlgmr.msrb.gmra.mxu3 %vm753_vm4, %v752_v10  ;;  %v1254_v10 = vld [vmem:[%s1673_s13 + $0x10] sm:$0xff] }
 0x329   : > { %v774_v13 = vpop.f32.mrf.mxu3 }
 0x32a   : > { %v801_v15 = vadd.f32 %v800_v12, %v774_v13 }
 0x32c   : > { %v809_v16 = vadd.f32 %v807_v14, %v801_v15 }
 0x32e   : > { %811 = vrot.lane.b32.xlu1 %v809_v16, %s1318_s23 }
 0x3a0   : > { %v812_v17 = vpop.permute.xlu1 %811 }
 0x3a1   : > { %814 = vst.msk [vmem:[#allocation3] sm:$0xff] %vm615_vm2, %v812_v17 }
 0x3a8   : > { %v817_v18 = vld [vmem:[#allocation3] sm:$0xff] }
 0x3a9   : > { %819 = vrot.lane.b32.xlu1 %v817_v18, %s1319_s28  ;;  %821 = vrot.lane.b32.xlu2 %v817_v18, %s1320_s29 }
 0x3b1   : > { %884 = vrot.lane.b32.xlu1 %v817_v18, %s1322_s0 }
 0x3b9   : > { %921 = vperm.xlu1 %1286, %v918_v19  }
 0x403   : > { %v822_v20 = vpop.permute.xlu2 %821 }
 0x404   : > { %842 = vmatpush.msra.mxu3 %v822_v20 }
 0x41b   : > { %v820_v21 = vpop.permute.xlu1 %819 }
 0x41c   : > { %v1293_v22 = vpack.i.bf16 %v820_v21, %v822_v20  ;;  %843 = vmatpush.msra.mxu3 %v820_v21 }
 0x41e   : > { %844 = vmatpush.msra.mxu3 %v817_v18  ;;  %1294 = vrot.lane.b32.xlu0 %v1293_v22, %s1321_s30 }
 0x41f   : > { %1289 = vrot.lane.b32.xlu2 %v1293_v22, %s1322_s0  ;;  %1245 = vmatmul.msk.f32.vlgmr.msra.gmra.mxu3 %vm644_vm3, %v823_v23 }
 0x423   : > { %v885_v28 = vpop.permute.xlu1 %884 }
 0x426   : > { %955 = vrot.lane.b32.xlu0 %v1526_v39, %s1323_s17  ;;  %s526_s17 = scalar_lea.vmem %s1675_s15, %s1235_s24 }
 0x427   : > { %851 = vrot.lane.b32.xlu2 %v817_v18, %s1321_s30 }
 0x42b   : > { %v922_v45 = vpop.permute.xlu1 %921 }
 0x42f   : > { %1009 = vperm.xlu2 %1298, %v1006_v37  }
 0x479   : > { %v1290_v24 = vpop.permute.xlu2 %1289 }
 0x47a   : > { %v1291_v25 = vunpack.i.l.bf16 %v1290_v24  ;;  %v1292_v26 = vunpack.i.h.bf16 %v1290_v24 }
 0x47c   : > { %909 = vmatpush.msrb.mxu3 %v1291_v25 }
 0x47e   : > { %910 = vmatpush.msrb.mxu3 %v1292_v26 }
 0x480   : > { %911 = vmatpush.msrb.mxu3 %v885_v28 }
 0x481   : > { %1248 = vmatmul.msk.f32.vlgmr.msrb.gmra.mxu3 %vm644_vm3, %v1244_v27  ;;  %v852_v33 = vpop.permute.xlu2 %851 }
 0x489   : > { %v1010_v54 = vpop.permute.xlu2 %1009 }
 0x490   : > { %v1295_v29 = vpop.permute.xlu0 %1294 }
 0x491   : > { %v1296_v30 = vunpack.i.l.bf16 %v1295_v29  ;;  %v1297_v31 = vunpack.i.h.bf16 %v1295_v29 }
 0x493   : > { %876 = vmatpush.msrb.mxu2 %v1296_v30 }
 0x495   : > { %877 = vmatpush.msrb.mxu2 %v1297_v31 }
 0x497   : > { %878 = vmatpush.msrb.mxu2 %v852_v33 }
 0x498   : > { %v956_v34 = vpop.permute.xlu0 %955  ;;  %1247 = vmatmul.msk.f32.vlgmr.msrb.gmra.mxu2 %vm644_vm3, %v1246_v32 }
 0x499   : > { %949 = vmatpush.msra.mxu2 %v750_v11  ;;  %976 = vmatpush.msra.mxu3 %v956_v34 }
 0x49a   : > { %1250 = vmatmul.msk.f32.vlgmr.msra.gmra.mxu3 %vm753_vm4, %v928_v36 }
 0x4a0   : > { %1249 = vmatmul.msk.f32.vlgmr.msra.gmra.mxu2 %vm753_vm4, %v930_v35 }
 0x4a2   : > { %v846_v38 = vpop.f32.mrf.mxu3 }
 0x4a3   : > { %v883_v39 = vsel %vm1563_vm5, %v846_v38, 0.0 }
 0x504   : > { %v913_v40 = vpop.f32.mrf.mxu3 }
 0x505   : > { %v914_v41 = vadd.f32 %v913_v40, %v883_v39 }
 0x51b   : > { %v880_v42 = vpop.f32.mrf.mxu2 }
 0x51c   : > { %v916_v43 = vsel %vm1567_vm6, %v880_v42, 0.0 }
 0x51d   : > { %v917_v44 = vadd.f32 %v916_v43, %v914_v41  ;;  %v978_v51 = vpop.f32.mrf.mxu3 }
 0x51f   : > { %v924_v46 = vadd.f32 %v922_v45, %v917_v44 }
 0x521   : > { %vm925_vm8 = vcmp.ge.f32.partialorder %v924_v46, 0.0  ;;  %v926_v47 = vmul.f32 0.01, %v924_v46 }
 0x523   : > { %v927_v49 = vsel %vm925_vm8, %v924_v46, %v926_v47  ;;  %v951_v50 = vpop.f32.mrf.mxu2 }
 0x524   : > { %1000 = vmatpush.msrb.mxu0 %v927_v49  ;;  %v979_v52 = vadd.f32 %v978_v51, %v951_v50 }
 0x525   : > { %1251 = vmatmul.msk.f32.vlgmr.msrb.gmra.mxu0 %vm753_vm4, %v981_v48 }
 0x5a2   : > { %v1002_v53 = vpop.f32.mrf.mxu0 }
 0x5a3   : > { %v1005_v55 = vadd.f32 %v1002_v53, %v979_v52 }
 0x5a5   : > { %v1012_v56 = vadd.f32 %v1010_v54, %v1005_v55 }
 0x5a7   : > { %1014 = vrot.lane.b32.xlu0 %v1012_v56, %s1318_s23 }
 0x619   : > { %v1015_v57 = vpop.permute.xlu0 %1014 }
 0x61a   : > { %1017 = vst.msk [vmem:[#allocation3] sm:$0xff] %vm615_vm2, %v1015_v57 }
 0x621   : > { %v1020_v58 = vld [vmem:[#allocation3] sm:$0xff] }
 0x622   : > { %1022 = vrot.lane.b32.xlu2 %v1020_v58, %s1319_s28  ;;  %1024 = vrot.lane.b32.xlu1 %v1020_v58, %s1320_s29 }
 0x62a   : > { %1087 = vrot.lane.b32.xlu2 %v1020_v58, %s1322_s0 }
 0x67c   : > { %v1023_v59 = vpop.permute.xlu2 %1022 }
 0x684   : > { %v1088_v9 = vpop.permute.xlu2 %1087 }
 0x694   : > { %v1025_v60 = vpop.permute.xlu1 %1024 }
 0x695   : > { %v1304_v61 = vpack.i.bf16 %v1023_v59, %v1025_v60  ;;  %1045 = vmatpush.msrb.mxu1 %v1025_v60 }
 0x697   : > { %1046 = vmatpush.msrb.mxu1 %v1023_v59  ;;  %1305 = vrot.lane.b32.xlu1 %v1304_v61, %s1321_s30 }
 0x698   : > { %1300 = vrot.lane.b32.xlu0 %v1304_v61, %s1322_s0 }
 0x699   : > { %1047 = vmatpush.msrb.mxu1 %v1020_v58 }
 0x69a   : > { %1253 = vmatmul.msk.f32.vlgmr.msrb.gmra.mxu1 %vm644_vm3, %v1026_v1 }
 0x69f   : > { %1124 = vperm.xlu1 %1286, %v1121_v62  }
 0x6a0   : > { %1054 = vrot.lane.b32.xlu0 %v1020_v58, %s1321_s30 }
 0x709   : > { %v1306_v2 = vpop.permute.xlu1 %1305 }
 0x70a   : > { %v1307_v3 = vunpack.i.l.bf16 %v1306_v2  ;;  %v1301_v4 = vpop.permute.xlu0 %1300  ;;  %v1308_v6 = vunpack.i.h.bf16 %v1306_v2 }
 0x70b   : > { %v1302_v5 = vunpack.i.l.bf16 %v1301_v4  ;;  %v1303_v7 = vunpack.i.h.bf16 %v1301_v4 }
 0x70c   : > { %1079 = vmatpush.msrb.mxu2 %v1307_v3 }
 0x70d   : > { %1112 = vmatpush.msrb.mxu3 %v1302_v5 }
 0x70e   : > { %1080 = vmatpush.msrb.mxu2 %v1308_v6 }
 0x70f   : > { %1113 = vmatpush.msrb.mxu3 %v1303_v7 }
 0x711   : > { %1114 = vmatpush.msrb.mxu3 %v1088_v9  ;;  %v1125_v19 = vpop.permute.xlu1 %1124 }
 0x712   : > { %v1055_v11 = vpop.permute.xlu0 %1054  ;;  %1256 = vmatmul.msk.f32.vlgmr.msrb.gmra.mxu3 %vm644_vm3, %v1252_v8 }
 0x713   : > { %1081 = vmatpush.msrb.mxu2 %v1055_v11 }
 0x714   : > { %1255 = vmatmul.msk.f32.vlgmr.msrb.gmra.mxu2 %vm644_vm3, %v1254_v10 }
 0x717   : > { %v1049_v12 = vpop.f32.mrf.mxu1 }
 0x718   : > { %v1086_v13 = vsel %vm1563_vm5, %v1049_v12, 0.0 }
 0x795   : > { %v1116_v14 = vpop.f32.mrf.mxu3 }
 0x796   : > { %v1117_v15 = vadd.f32 %v1116_v14, %v1086_v13 }
 0x797   : > { %v1083_v16 = vpop.f32.mrf.mxu2 }
 0x798   : > { %v1119_v17 = vsel %vm1567_vm6, %v1083_v16, 0.0 }
 0x799   : > { %v1120_v18 = vadd.f32 %v1119_v17, %v1117_v15 }
 0x79b   : > { %v1127_v20 = vadd.f32 %v1125_v19, %v1120_v18 }
 0x79d   : > { %vm1128_vm9 = vcmp.ge.f32.partialorder %v1127_v20, 0.0  ;;  %v1129_v21 = vmul.f32 0.01, %v1127_v20 }
 0x79f   : > { %v1130_v22 = vsel %vm1128_vm9, %v1127_v20, %v1129_v21 }
 0x7a0   : > { %v1133_v63 = vsel %vm1131_vm10, %v1130_v22, 0.0  ;;  %1132 = vst.msk [vmem:[%s526_s17] sm:$0xff] %vm1131_vm10, %v1130_v22  ;;  %v1136_v23 = vmul.f32 %v1130_v22, %v1130_v22 }
 0x7a1   : > { %1134 = vadd.xlane.f32.xlu2 %v1133_v63 }
 0x7a2   : > { %v1137_v24 = vsel %vm1131_vm10, %v1136_v23, 0.0 }
 0x7a3   : > { %1138 = vadd.xlane.f32.xlu0 %v1137_v24 }
 0x814   : > { %v1135_v0 = vpop.xlane.xlu2 %1134 }
 0x816   : > { %v1139_v25 = vpop.xlane.xlu0 %1138 }
 0x817   : > { %v1141_v26 = vsel %vm1140_vm11, %v1135_v0, %v1139_v25 }
 0x818   : > { %1143 = vst.msk [vmem:[%s530_s22] sm:$0xff] %vm1142_vm12, %v1141_v26 }
 0x819 PF: > { %s27_s21 = sadd.s32 1, %s1315_s21  }
 0x81a   : > { %p24_p4 = scmp.ge.s32.totalorder %s27_s21, 4  }
 0x81c   :  { %26 = sbr.rel (!%p24_p4) target bundleno = 2 (0x2), region = 128 }

// kernel: densenet_encoder_forward.14
= control target key start
LH: loop header
LB: loop body
LE: loop exit
PB: predicated region body
PF: predicated region fallthrough
CT: control target
= control target key end

     0   :  { %s1365_s21 = smov 0   ;;  %s1540_s0 = inlined_call_operand.vmem [shape: f32[2,8,64], index: 0, kind: input, shape index: {}]   ;;  %s1541_s1 = inlined_call_operand.vmem [shape: f32[64,16], index: 1, kind: input, shape index: {}]   ;;  %s1542_s2 = inlined_call_operand.vmem [shape: f32[3,8,24], index: 2, kind: input, shape index: {}]   ;;  %s1543_s3 = inlined_call_operand.vmem [shape: f32[8,1], index: 3, kind: input, shape index: {}]   ;;  %s1544_s4 = inlined_call_operand.vmem [shape: f32[8,8], index: 4, kind: input, shape index: {}]   ;;  %s1545_s5 = inlined_call_operand.vmem [shape: f32[8,8], index: 5, kind: input, shape index: {}]   ;;  %s1546_s6 = inlined_call_operand.vmem [shape: f32[8,1], index: 6, kind: input, shape index: {}]   ;;  %s1547_s7 = inlined_call_operand.vmem [shape: f32[3,8,24], index: 7, kind: input, shape index: {}]   ;;  %s1548_s8 = inlined_call_operand.vmem [shape: f32[8,1], index: 8, kind: input, shape index: {}]   ;;  %s1549_s9 = inlined_call_operand.vmem [shape: f32[8,8], index: 9, kind: input, shape index: {}]   ;;  %s1550_s10 = inlined_call_operand.vmem [shape: f32[8,8], index: 10, kind: input, shape index: {}]   ;;  %s1551_s11 = inlined_call_operand.vmem [shape: f32[8,8], index: 11, kind: input, shape index: {}]   ;;  %s1552_s12 = inlined_call_operand.vmem [shape: f32[8,1], index: 12, kind: input, shape index: {}]   ;;  %s1553_s13 = inlined_call_operand.vmem [shape: f32[3,8,24], index: 13, kind: input, shape index: {}]   ;;  %s1554_s14 = inlined_call_operand.vmem [shape: f32[8,1], index: 14, kind: input, shape index: {}]   ;;  %s1555_s15 = inlined_call_operand.vmem [shape: f32[2,8,16], index: 15, kind: output, shape index: {0}]   ;;  %s1556_s16 = inlined_call_operand.vmem [shape: f32[2,8,2], index: 16, kind: output, shape index: {1}]  }
   0x1   :  { %1557 = sst [smem:[#allocation4_spill]] %s1540_s0 }
   0x2 LB: > { %s1184_s22 = sadd.s32 4294967295, %s1270_s21   ;;  %p1188_p0 = scmp.ge.s32.totalorder %s1270_s21, 1  ;;  %s1270_s21 = sphi %s1365_s21, %s27_s21  }
   0x3   : > { %p464_p1 = scmp.lt.s32.totalorder %s1270_s21, 3 }
   0x5   : > { %p465_p2 = pnand %p1188_p0, %p464_p1 }
   0x6   : > { %p516_p3 = scmp.lt.s32.totalorder (!%p465_p2), %s1184_s22, 1  ;;  %s1558_s27 = sld [smem:[#allocation4_spill]] (!%p465_p2) }
   0x7   : > { %468 = sbr.rel (%p465_p2) target bundleno = 2040 (0x7f8), region = 80  ;;  %s1274_s0 = smov (!%p465_p2), 124  }
   0x8   : > { %s1275_s17 = smov (!%p465_p2), 120   ;;  %s1276_s19 = smov (!%p465_p2), 126  }
   0x9   : > { %s1277_s20 = smov (!%p465_p2), 127   ;;  %s1278_s23 = smov (!%p465_p2), 123  }
   0xc   : > { %v542_v0 = vld [vmem:[%s1541_s1 + $0x38] sm:$0xff]  ;;  %v541_v1 = vld [vmem:[%s1541_s1 + $0x30] sm:$0xff]  ;;  %v540_v2 = vld [vmem:[%s1541_s1 + $0x28] sm:$0xff]  ;;  %s1564_s22 = smov (!%p516_p3, %s1184_s22), 1  ;;  %vm543_vm0 = vcmask 523264   ;;  %vm528_vm1 = vcmask 39936   ;;  %v573_v32 = vlaneseq }
   0xd   : > { %555 = vmatpush.msra.mxu0 %v542_v0  ;;  %v539_v3 = vld [vmem:[%s1541_s1 + $0x20] sm:$0xff]  ;;  %v538_v4 = vld [vmem:[%s1541_s1 + $0x18] sm:$0xff]  ;;  %s1388_s18 = sshll.u32 %s1564_s22, 3  ;;  %v537_v5 = vld [vmem:[%s1541_s1 + $0x10] sm:$0xff]  ;;  %vm530_vm2 = vcmask 212136   ;;  %v1272_v9 = vmov 0.0  }
   0xe   : > { %v536_v6 = vld [vmem:[%s1541_s1 + $0x8] sm:$0xff]  ;;  %s519_s28 = scalar_lea.vmem %s1558_s27, %s1388_s18  ;;  %v535_v7 = vld [vmem:[%s1541_s1] sm:$0xff]  ;;  %529 = vst.msk [vmem:[#allocation2] sm:$0xff] %vm528_vm1, %v1272_v9  ;;  %s1273_s22 = smov 5   ;;  %vm571_vm3 = vcmask 171048   ;;  %vm600_vm4 = vcmask 195584  }
   0xf   : > { %556 = vmatpush.msra.mxu0 %v541_v1  ;;  %v534_v8 = vld [vmem:[%s519_s28] sm:$0xff]  ;;  %531 = vst.msk [vmem:[#allocation2] sm:$0xff] %vm530_vm2, %v1272_v9  ;;  %v1279_v21 = vmov 0   ;;  %v1195_v22 = vld [vmem:[%s1542_s2 + $0x10] sm:$0xff]  ;;  %v1193_v27 = vld [vmem:[%s1542_s2 + $0x8] sm:$0xff]  ;;  %vm709_vm5 = vcmask 64512   ;;  %s523_s29 = scalar_lea.vmem %s1555_s15, %s1388_s18 }
  0x10   : > { %532 = vst.msk [vmem:[#allocation3] sm:$0xff] %vm528_vm1, %v1272_v9  ;;  %v597_v18 = vld [vmem:[%s1542_s2] sm:$0xff]  ;;  %1241 = vset.pattern.permute.xlu2 %v1279_v21  ;;  %1242 = vset.pattern.permute.xlu0 %v1279_v21  ;;  %v574_v33 = vand.u32 127, %v573_v32  ;;  %v1200_v1 = vld [vmem:[%s1547_s7 + $0x8] sm:$0xff]  ;;  %vm1087_vm11 = vcmask 130048   ;;  %vm1096_vm12 = vcmask 7168  }
  0x11   : > { %557 = vmatpush.msra.mxu0 %v540_v2  ;;  %533 = vst.msk [vmem:[#allocation3] sm:$0xff] %vm530_vm2, %v1272_v9  ;;  %v697_v19 = vld [vmem:[%s1543_s3] sm:$0xff]  ;;  %1263 = vset.pattern.permute.xlu1 %v1279_v21  ;;  %vm1098_vm13 = vcmask 15360  }
  0x12   : > { %v707_v30 = vld [vmem:[%s1544_s4] sm:$0xff]  ;;  %v579_v34 = vand.u32 3, %v574_v33 }
  0x13   : > { %558 = vmatpush.msra.mxu0 %v539_v3  ;;  %v759_v31 = vld [vmem:[%s1546_s6] sm:$0xff] }
  0x14   : > { %vm1442_vm6 = vcmp.ne.s32.totalorder %v579_v34, 0  ;;  %vm1446_vm7 = vcmp.ne.s32.totalorder %v579_v34, 3  ;;  %v708_v47 = vld [vmem:[%s1545_s5] sm:$0xff] }
  0x15   : > { %559 = vmatpush.msra.mxu0 %v538_v4  ;;  %v874_v56 = vld [vmem:[%s1548_s8] sm:$0xff] }
  0x16   : > { %v962_v60 = vld [vmem:[%s1552_s12] sm:$0xff] }
  0x17   : > { %560 = vmatpush.msra.mxu0 %v537_v5  ;;  %v779_v61 = vld [vmem:[%s1547_s7] sm:$0xff] }
  0x18   : > { %v886_v9 = vld [vmem:[%s1550_s10] sm:$0xff] }
  0x19   : > { %561 = vmatpush.msra.mxu0 %v536_v6  ;;  %v1202_v6 = vld [vmem:[%s1547_s7 + $0x10] sm:$0xff]  ;;  %v937_v21 = vld [vmem:[%s1551_s11] sm:$0xff] }
  0x1b   : > { %562 = vmatpush.msra.mxu0 %v535_v7 }
  0x1c   : > { %1192 = vmatmul.msk.f32.vlgmr.msra.gmra.mxu0 %vm543_vm0, %v534_v8 }
  0x99   : > { %v564_v10 = vpop.f32.mrf.mxu0 }
  0x9a   : > { %568 = vrot.lane.b32.xlu0 %v564_v10, %s1273_s22  ;;  %v884_v10 = vld [vmem:[%s1549_s9] sm:$0xff] }
 0x10c   : > { %v569_v11 = vpop.permute.xlu0 %568 }
 0x10d   : > { %572 = vst.msk [vmem:[#allocation2] sm:$0xff] %vm571_vm3, %v569_v11 }
 0x114   : > { %v1405_v12 = vld [vmem:[#allocation2] sm:$0xff] }
 0x115   : > { %593 = vrot.lane.b32.xlu1 %v1405_v12, %s1274_s0  ;;  %595 = vrot.lane.b32.xlu0 %v1405_v12, %s1275_s17 }
 0x11d   : > { %626 = vrot.lane.b32.xlu0 %v1405_v12, %s1276_s19 }
 0x125   : > { %762 = vperm.xlu0 %1242, %v759_v31  }
 0x187   : > { %v594_v13 = vpop.permute.xlu1 %593  ;;  %v596_v14 = vpop.permute.xlu0 %595 }
 0x188   : > { %v1231_v15 = vpack.i.bf16 %v594_v13, %v596_v14  ;;  %617 = vmatpush.msra.mxu1 %v596_v14 }
 0x18a   : > { %618 = vmatpush.msra.mxu1 %v594_v13  ;;  %1237 = vrot.lane.b32.xlu2 %v1231_v15, %s1276_s19 }
 0x18b   : > { %1232 = vrot.lane.b32.xlu1 %v1231_v15, %s1277_s20 }
 0x18c   : > { %619 = vmatpush.msra.mxu1 %v1405_v12 }
 0x18d   : > { %1194 = vmatmul.msk.f32.vlgmr.msra.gmra.mxu1 %vm600_vm4, %v597_v18 }
 0x18f   : > { %v627_v23 = vpop.permute.xlu0 %626 }
 0x192   : > { %661 = vrot.lane.b32.xlu2 %v1405_v12, %s1277_s20 }
 0x193   : > { %733 = vrot.lane.b32.xlu1 %v1405_v12, %s1278_s23 }
 0x197   : > { %v763_v51 = vpop.permute.xlu0 %762 }
 0x19a   : > { %700 = vperm.xlu2 %1241, %v697_v19  }
 0x1e4   : > { %v1238_v16 = vpop.permute.xlu2 %1237 }
 0x1e5   : > { %v1239_v17 = vunpack.i.l.bf16 %v1238_v16  ;;  %v1240_v20 = vunpack.i.h.bf16 %v1238_v16 }
 0x1e7   : > { %651 = vmatpush.msra.mxu2 %v1239_v17 }
 0x1e9   : > { %652 = vmatpush.msra.mxu2 %v1240_v20 }
 0x1eb   : > { %653 = vmatpush.msra.mxu2 %v627_v23 }
 0x1ec   : > { %1196 = vmatmul.msk.f32.vlgmr.msra.gmra.mxu2 %vm600_vm4, %v1195_v22  ;;  %v662_v28 = vpop.permute.xlu2 %661 }
 0x1f4   : > { %v701_v43 = vpop.permute.xlu2 %700 }
 0x1fd   : > { %v1233_v24 = vpop.permute.xlu1 %1232 }
 0x1fe   : > { %v1234_v25 = vunpack.i.l.bf16 %v1233_v24  ;;  %v1235_v26 = vunpack.i.h.bf16 %v1233_v24 }
 0x200   : > { %686 = vmatpush.msra.mxu3 %v1234_v25 }
 0x202   : > { %687 = vmatpush.msra.mxu3 %v1235_v26 }
 0x204   : > { %688 = vmatpush.msra.mxu3 %v662_v28 }
 0x205   : > { %v734_v29 = vpop.permute.xlu1 %733  ;;  %1197 = vmatmul.msk.f32.vlgmr.msra.gmra.mxu3 %vm600_vm4, %v1193_v27 }
 0x206   : > { %754 = vmatpush.msrb.mxu2 %v734_v29 }
 0x207   : > { %1199 = vmatmul.msk.f32.vlgmr.msrb.gmra.mxu2 %vm709_vm5, %v707_v30 }
 0x20a   : > { %v621_v36 = vpop.f32.mrf.mxu1 }
 0x20b   : > { %v660_v39 = vsel %vm1442_vm6, %v621_v36, 0.0  ;;  %v982_v36 = vld [vmem:[%s1553_s13] sm:$0xff] }
 0x26f   : > { %v655_v38 = vpop.f32.mrf.mxu2 }
 0x270   : > { %v695_v41 = vsel %vm1446_vm7, %v655_v38, 0.0 }
 0x288   : > { %v690_v40 = vpop.f32.mrf.mxu3 }
 0x289   : > { %v691_v42 = vadd.f32 %v690_v40, %v660_v39 }
 0x28a   : > { %v756_v49 = vpop.f32.mrf.mxu2 }
 0x28b   : > { %v696_v44 = vadd.f32 %v695_v41, %v691_v42  ;;  %v1077_v41 = vld [vmem:[%s1554_s14] sm:$0xff] }
 0x28d   : > { %v703_v45 = vadd.f32 %v701_v43, %v696_v44 }
 0x28f   : > { %vm704_vm8 = vcmp.ge.f32.partialorder %v703_v45, 0.0  ;;  %v705_v46 = vmul.f32 0.01, %v703_v45 }
 0x291   : > { %v706_v48 = vsel %vm704_vm8, %v703_v45, %v705_v46  ;;  %v1210_v45 = vld [vmem:[%s1553_s13 + $0x10] sm:$0xff] }
 0x292   : > { %728 = vmatpush.msrb.mxu1 %v706_v48 }
 0x293   : > { %1198 = vmatmul.msk.f32.vlgmr.msrb.gmra.mxu1 %vm709_vm5, %v708_v47  ;;  %v1208_v47 = vld [vmem:[%s1553_s13 + $0x8] sm:$0xff] }
 0x310   : > { %v730_v50 = vpop.f32.mrf.mxu1 }
 0x311   : > { %v757_v52 = vadd.f32 %v756_v49, %v730_v50 }
 0x313   : > { %v765_v53 = vadd.f32 %v763_v51, %v757_v52 }
 0x315   : > { %767 = vrot.lane.b32.xlu1 %v765_v53, %s1273_s22 }
 0x387   : > { %v768_v54 = vpop.permute.xlu1 %767 }
 0x388   : > { %770 = vst.msk [vmem:[#allocation3] sm:$0xff] %vm571_vm3, %v768_v54 }
 0x38f   : > { %v773_v55 = vld [vmem:[#allocation3] sm:$0xff] }
 0x390   : > { %840 = vrot.lane.b32.xlu0 %v773_v55, %s1277_s20  ;;  %775 = vrot.lane.b32.xlu1 %v773_v55, %s1274_s0 }
 0x391   : > { %777 = vrot.lane.b32.xlu2 %v773_v55, %s1275_s17 }
 0x398   : > { %877 = vperm.xlu0 %1242, %v874_v56  }
 0x3eb   : > { %v778_v57 = vpop.permute.xlu2 %777 }
 0x3ec   : > { %798 = vmatpush.msrb.mxu3 %v778_v57 }
 0x402   : > { %v776_v58 = vpop.permute.xlu1 %775  ;;  %v841_v2 = vpop.permute.xlu0 %840 }
 0x403   : > { %v1248_v59 = vpack.i.bf16 %v776_v58, %v778_v57  ;;  %799 = vmatpush.msrb.mxu3 %v776_v58 }
 0x405   : > { %800 = vmatpush.msrb.mxu3 %v773_v55  ;;  %1249 = vrot.lane.b32.xlu1 %v1248_v59, %s1276_s19 }
 0x406   : > { %1244 = vrot.lane.b32.xlu2 %v1248_v59, %s1277_s20  ;;  %1201 = vmatmul.msk.f32.vlgmr.msrb.gmra.mxu3 %vm600_vm4, %v779_v61 }
 0x407   : > { %905 = vmatpush.msra.mxu3 %v706_v48 }
 0x40a   : > { %v878_v18 = vpop.permute.xlu0 %877 }
 0x40d   : > { %911 = vrot.lane.b32.xlu1 %v1405_v12, %s1278_s23 }
 0x40e   : > { %807 = vrot.lane.b32.xlu2 %v773_v55, %s1276_s19  ;;  %1205 = vmatmul.msk.f32.vlgmr.msra.gmra.mxu3 %vm709_vm5, %v886_v9 }
 0x416   : > { %965 = vperm.xlu2 %1241, %v962_v60  }
 0x460   : > { %v1245_v62 = vpop.permute.xlu2 %1244 }
 0x461   : > { %v1246_v63 = vunpack.i.l.bf16 %v1245_v62  ;;  %v1247_v0 = vunpack.i.h.bf16 %v1245_v62 }
 0x463   : > { %865 = vmatpush.msra.mxu2 %v1246_v63 }
 0x465   : > { %866 = vmatpush.msra.mxu2 %v1247_v0 }
 0x467   : > { %867 = vmatpush.msra.mxu2 %v841_v2 }
 0x468   : > { %1204 = vmatmul.msk.f32.vlgmr.msra.gmra.mxu2 %vm600_vm4, %v1200_v1  ;;  %v808_v7 = vpop.permute.xlu2 %807 }
 0x470   : > { %v966_v28 = vpop.permute.xlu2 %965 }
 0x477   : > { %v1250_v3 = vpop.permute.xlu1 %1249 }
 0x478   : > { %v1251_v4 = vunpack.i.l.bf16 %v1250_v3  ;;  %v1252_v5 = vunpack.i.h.bf16 %v1250_v3 }
 0x47a   : > { %832 = vmatpush.msra.mxu1 %v1251_v4 }
 0x47c   : > { %833 = vmatpush.msra.mxu1 %v1252_v5 }
 0x47e   : > { %834 = vmatpush.msra.mxu1 %v808_v7 }
 0x47f   : > { %v912_v8 = vpop.permute.xlu1 %911  ;;  %1203 = vmatmul.msk.f32.vlgmr.msra.gmra.mxu1 %vm600_vm4, %v1202_v6 }
 0x480   : > { %932 = vmatpush.msrb.mxu0 %v912_v8 }
 0x481   : > { %1206 = vmatmul.msk.f32.vlgmr.msrb.gmra.mxu0 %vm709_vm5, %v884_v10 }
 0x489   : > { %v802_v11 = vpop.f32.mrf.mxu3 }
 0x48a   : > { %v839_v12 = vsel %vm1442_vm6, %v802_v11, 0.0 }
 0x491   : > { %v907_v23 = vpop.f32.mrf.mxu3 }
 0x4eb   : > { %v869_v13 = vpop.f32.mrf.mxu2 }
 0x4ec   : > { %v870_v14 = vadd.f32 %v869_v13, %v839_v12 }
 0x4fc   : > { %v836_v15 = vpop.f32.mrf.mxu1 }
 0x4fd   : > { %v872_v16 = vsel %vm1446_vm7, %v836_v15, 0.0 }
 0x4fe   : > { %v873_v17 = vadd.f32 %v872_v16, %v870_v14  ;;  %v934_v24 = vpop.f32.mrf.mxu0 }
 0x4ff   : > { %v935_v25 = vadd.f32 %v934_v24, %v907_v23 }
 0x500   : > { %v880_v19 = vadd.f32 %v878_v18, %v873_v17 }
 0x502   : > { %vm881_vm9 = vcmp.ge.f32.partialorder %v880_v19, 0.0  ;;  %v882_v20 = vmul.f32 0.01, %v880_v19 }
 0x504   : > { %v883_v22 = vsel %vm881_vm9, %v880_v19, %v882_v20 }
 0x505   : > { %956 = vmatpush.msrb.mxu1 %v883_v22 }
 0x506   : > { %1207 = vmatmul.msk.f32.vlgmr.msrb.gmra.mxu1 %vm709_vm5, %v937_v21 }
 0x583   : > { %v958_v26 = vpop.f32.mrf.mxu1 }
 0x584   : > { %v961_v27 = vadd.f32 %v958_v26, %v935_v25 }
 0x586   : > { %v968_v29 = vadd.f32 %v966_v28, %v961_v27 }
 0x588   : > { %970 = vrot.lane.b32.xlu0 %v968_v29, %s1273_s22  ;;  %s527_s22 = scalar_lea.vmem %s1556_s16, %s1388_s18 }
 0x5fa   : > { %v971_v30 = vpop.permute.xlu0 %970 }
 0x5fb   : > { %973 = vst.msk [vmem:[#allocation3] sm:$0xff] %vm571_vm3, %v971_v30 }
 0x602   : > { %v976_v31 = vld [vmem:[#allocation3] sm:$0xff] }
 0x603   : > { %978 = vrot.lane.b32.xlu2 %v976_v31, %s1274_s0  ;;  %980 = vrot.lane.b32.xlu1 %v976_v31, %s1275_s17 }
 0x60b   : > { %1010 = vrot.lane.b32.xlu1 %v976_v31, %s1276_s19 }
 0x613   : > { %1080 = vperm.xlu1 %1263, %v1077_v41  }
 0x65d   : > { %v979_v32 = vpop.permute.xlu2 %978 }
 0x675   : > { %v981_v33 = vpop.permute.xlu1 %980 }
 0x676   : > { %v1258_v34 = vpack.i.bf16 %v979_v32, %v981_v33  ;;  %1001 = vmatpush.msrb.mxu2 %v981_v33 }
 0x678   : > { %1002 = vmatpush.msrb.mxu2 %v979_v32  ;;  %1259 = vrot.lane.b32.xlu2 %v1258_v34, %s1277_s20 }
 0x679   : > { %1254 = vrot.lane.b32.xlu0 %v1258_v34, %s1276_s19 }
 0x67a   : > { %1003 = vmatpush.msrb.mxu2 %v976_v31 }
 0x67b   : > { %1209 = vmatmul.msk.f32.vlgmr.msrb.gmra.mxu2 %vm600_vm4, %v982_v36 }
 0x67d   : > { %v1011_v46 = vpop.permute.xlu1 %1010 }
 0x681   : > { %1043 = vrot.lane.b32.xlu0 %v976_v31, %s1277_s20 }
 0x685   : > { %v1081_v55 = vpop.permute.xlu1 %1080 }
 0x6d2   : > { %v1260_v38 = vpop.permute.xlu2 %1259 }
 0x6d3   : > { %v1261_v39 = vunpack.i.l.bf16 %v1260_v38  ;;  %v1262_v40 = vunpack.i.h.bf16 %v1260_v38 }
 0x6d5   : > { %1068 = vmatpush.msra.mxu0 %v1261_v39 }
 0x6d7   : > { %1069 = vmatpush.msra.mxu0 %v1262_v40 }
 0x6eb   : > { %v1255_v42 = vpop.permute.xlu0 %1254 }
 0x6ec   : > { %v1256_v43 = vunpack.i.l.bf16 %v1255_v42  ;;  %v1257_v44 = vunpack.i.h.bf16 %v1255_v42 }
 0x6ee   : > { %1035 = vmatpush.msrb.mxu3 %v1256_v43 }
 0x6f0   : > { %1036 = vmatpush.msrb.mxu3 %v1257_v44 }
 0x6f2   : > { %1037 = vmatpush.msrb.mxu3 %v1011_v46 }
 0x6f3   : > { %v1044_v48 = vpop.permute.xlu0 %1043  ;;  %1211 = vmatmul.msk.f32.vlgmr.msrb.gmra.mxu3 %vm600_vm4, %v1210_v45 }
 0x6f4   : > { %1070 = vmatpush.msra.mxu0 %v1044_v48 }
 0x6f5   : > { %1212 = vmatmul.msk.f32.vlgmr.msra.gmra.mxu0 %vm600_vm4, %v1208_v47 }
 0x6fe   : > { %v1005_v49 = vpop.f32.mrf.mxu2 }
 0x6ff   : > { %v1042_v50 = vsel %vm1442_vm6, %v1005_v49, 0.0 }
 0x772   : > { %v1072_v51 = vpop.f32.mrf.mxu0 }
 0x773   : > { %v1073_v52 = vadd.f32 %v1072_v51, %v1042_v50 }
 0x776   : > { %v1039_v53 = vpop.f32.mrf.mxu3 }
 0x777   : > { %v1075_v54 = vsel %vm1446_vm7, %v1039_v53, 0.0 }
 0x778   : > { %v1076_v56 = vadd.f32 %v1075_v54, %v1073_v52 }
 0x77a   : > { %v1083_v57 = vadd.f32 %v1081_v55, %v1076_v56 }
 0x77c   : > { %vm1084_vm10 = vcmp.ge.f32.partialorder %v1083_v57, 0.0  ;;  %v1085_v58 = vmul.f32 0.01, %v1083_v57 }
 0x77e   : > { %v1086_v59 = vsel %vm1084_vm10, %v1083_v57, %v1085_v58 }
 0x77f   : > { %v1092_v35 = vmul.f32 %v1086_v59, %v1086_v59  ;;  %1088 = vst.msk [vmem:[%s523_s29] sm:$0xff] %vm1087_vm11, %v1086_v59  ;;  %v1089_v60 = vsel %vm1087_vm11, %v1086_v59, 0.0 }
 0x780   : > { %1090 = vadd.xlane.f32.xlu2 %v1089_v60 }
 0x781   : > { %v1093_v61 = vsel %vm1087_vm11, %v1092_v35, 0.0 }
 0x782   : > { %1094 = vadd.xlane.f32.xlu0 %v1093_v61 }
 0x7f3   : > { %v1091_v62 = vpop.xlane.xlu2 %1090 }
 0x7f5   : > { %v1095_v37 = vpop.xlane.xlu0 %1094 }
 0x7f6   : > { %v1097_v63 = vsel %vm1096_vm12, %v1091_v62, %v1095_v37 }
 0x7f7   : > { %1099 = vst.msk [vmem:[%s527_s22] sm:$0xff] %vm1098_vm13, %v1097_v63 }
 0x7f8 PF: > { %s27_s21 = sadd.s32 1, %s1270_s21  }
 0x7f9   : > { %p24_p4 = scmp.ge.s32.totalorder %s27_s21, 4  }
 0x7fb   :  { %26 = sbr.rel (!%p24_p4) target bundleno = 2 (0x2), region = 128 }

// kernel: densenet_encoder_forward.17
= control target key start
LH: loop header
LB: loop body
LE: loop exit
PB: predicated region body
PF: predicated region fallthrough
CT: control target
= control target key end

     0   :  { %s284_s12 = smov 0   ;;  %s301_s0 = inlined_call_operand.vmem [shape: f32[2,8,4], index: 0, kind: input, shape index: {}, may-alias: {0,3}]   ;;  %s302_s1 = inlined_call_operand.vmem [shape: f32[8,1], index: 1, kind: input, shape index: {}]   ;;  %s303_s2 = inlined_call_operand.vmem [shape: f32[8,1], index: 2, kind: input, shape index: {}]   ;;  %s304_s3 = inlined_call_operand.vmem [shape: f32[2,8,4], index: 3, kind: output, shape index: {}, may-alias: {0,3}]  }
   0x1 LB: > { %s236_s13 = sadd.s32 4294967295, %s261_s12   ;;  %p240_p0 = scmp.ge.s32.totalorder %s261_s12, 1  ;;  %s261_s12 = sphi %s284_s12, %s13_s12  }
   0x2   : > { %p136_p1 = scmp.lt.s32.totalorder %s261_s12, 3 }
   0x4   : > { %p137_p2 = pnand %p240_p0, %p136_p1 }
   0x5   : > { %p158_p3 = scmp.lt.s32.totalorder (!%p137_p2), %s236_s13, 1 }
   0x6   : > { %140 = sbr.rel (%p137_p2) target bundleno = 139 (0x8b), region = 32 }
   0xb   : > { %v167_v0 = vld [vmem:[%s302_s1] sm:$0xff]  ;;  %v263_v1 = vmov 0   ;;  %s306_s13 = smov (!%p158_p3, %s236_s13), 1  ;;  %vm181_vm0 = vcmask 31744  }
   0xc   : > { %254 = vset.pattern.permute.xlu0 %v263_v1  ;;  %v174_v2 = vld [vmem:[%s303_s2] sm:$0xff]  ;;  %s241_s18 = sshll.u32 %s306_s13, 3 }
   0xd   : > { %170 = vperm.xlu0 %254, %v167_v0   ;;  %s161_s21 = scalar_lea.vmem %s301_s0, %s241_s18  ;;  %s165_s24 = scalar_lea.vmem %s304_s3, %s241_s18 }
   0xe   : > { %v166_v4 = vld [vmem:[%s161_s21] sm:$0xff] }
  0x15   : > { %177 = vperm.xlu0 %254, %v174_v2  }
  0x7f   : > { %v171_v3 = vpop.permute.xlu0 %170 }
  0x80   : > { %v173_v5 = vmul.f32 %v171_v3, %v166_v4 }
  0x87   : > { %v178_v6 = vpop.permute.xlu0 %177 }
  0x88   : > { %v180_v7 = vadd.f32 %v178_v6, %v173_v5 }
  0x8a   : > { %182 = vst.msk [vmem:[%s165_s24] sm:$0xff] %vm181_vm0, %v180_v7 }
  0x8b PF: > { %s13_s12 = sadd.s32 1, %s261_s12  }
  0x8c   : > { %p10_p4 = scmp.ge.s32.totalorder %s13_s12, 4  }
  0x8e   :  { %12 = sbr.rel (!%p10_p4) target bundleno = 1 (0x1), region = 62 }

// kernel: densenet_encoder_forward.16
= control target key start
LH: loop header
LB: loop body
LE: loop exit
PB: predicated region body
PF: predicated region fallthrough
CT: control target
= control target key end

     0   :  { %s1348_s21 = smov 0   ;;  %s1501_s0 = inlined_call_operand.vmem [shape: f32[2,8,16], index: 0, kind: input, shape index: {}]   ;;  %s1502_s1 = inlined_call_operand.vmem [shape: f32[16,4], index: 1, kind: input, shape index: {}]   ;;  %s1503_s2 = inlined_call_operand.vmem [shape: f32[3,8,24], index: 2, kind: input, shape index: {}]   ;;  %s1504_s3 = inlined_call_operand.vmem [shape: f32[8,1], index: 3, kind: input, shape index: {}]   ;;  %s1505_s4 = inlined_call_operand.vmem [shape: f32[8,8], index: 4, kind: input, shape index: {}]   ;;  %s1506_s5 = inlined_call_operand.vmem [shape: f32[8,8], index: 5, kind: input, shape index: {}]   ;;  %s1507_s6 = inlined_call_operand.vmem [shape: f32[8,1], index: 6, kind: input, shape index: {}]   ;;  %s1508_s7 = inlined_call_operand.vmem [shape: f32[3,8,24], index: 7, kind: input, shape index: {}]   ;;  %s1509_s8 = inlined_call_operand.vmem [shape: f32[8,1], index: 8, kind: input, shape index: {}]   ;;  %s1510_s9 = inlined_call_operand.vmem [shape: f32[8,8], index: 9, kind: input, shape index: {}]   ;;  %s1511_s10 = inlined_call_operand.vmem [shape: f32[8,8], index: 10, kind: input, shape index: {}]   ;;  %s1512_s11 = inlined_call_operand.vmem [shape: f32[8,8], index: 11, kind: input, shape index: {}]   ;;  %s1513_s12 = inlined_call_operand.vmem [shape: f32[8,1], index: 12, kind: input, shape index: {}]   ;;  %s1514_s13 = inlined_call_operand.vmem [shape: f32[3,8,24], index: 13, kind: input, shape index: {}]   ;;  %s1515_s14 = inlined_call_operand.vmem [shape: f32[8,1], index: 14, kind: input, shape index: {}]   ;;  %s1516_s15 = inlined_call_operand.vmem [shape: f32[2,8,4], index: 15, kind: output, shape index: {0}]   ;;  %s1517_s16 = inlined_call_operand.vmem [shape: f32[2,8,2], index: 16, kind: output, shape index: {1}]  }
   0x1   :  { %1518 = sst [smem:[#allocation4_spill]] %s1501_s0 }
   0x2 LB: > { %s1169_s22 = sadd.s32 4294967295, %s1254_s21   ;;  %p1173_p0 = scmp.ge.s32.totalorder %s1254_s21, 1  ;;  %s1254_s21 = sphi %s1348_s21, %s27_s21  }
   0x3   : > { %p464_p1 = scmp.lt.s32.totalorder %s1254_s21, 3 }
   0x5   : > { %p465_p2 = pnand %p1173_p0, %p464_p1 }
   0x6   : > { %p516_p3 = scmp.lt.s32.totalorder (!%p465_p2), %s1169_s22, 1  ;;  %s1519_s30 = sld [smem:[#allocation4_spill]] (!%p465_p2) }
   0x7   : > { %468 = sbr.rel (%p465_p2) target bundleno = 2042 (0x7fa), region = 80  ;;  %s1257_s17 = smov (!%p465_p2), 3  }
   0x8   : > { %s1258_s18 = smov (!%p465_p2), 126   ;;  %s1259_s19 = smov (!%p465_p2), 124  }
   0x9   : > { %s1260_s20 = smov (!%p465_p2), 127  }
   0xc   : > { %v536_v0 = vld [vmem:[%s1502_s1 + $0x8] sm:$0xff]  ;;  %v535_v1 = vld [vmem:[%s1502_s1] sm:$0xff]  ;;  %s1525_s22 = smov (!%p516_p3, %s1169_s22), 1  ;;  %vm537_vm0 = vcmask 130048   ;;  %vm528_vm1 = vcmask 23552   ;;  %vm530_vm2 = vcmask 80952   ;;  %v567_v25 = vlaneseq }
   0xd   : > { %555 = vmatpush.msra.mxu0 %v536_v0  ;;  %s1362_s27 = sshll.u32 %s1525_s22, 3  ;;  %v1256_v3 = vmov 0.0   ;;  %vm565_vm3 = vcmask 56344   ;;  %s1261_s22 = smov 125   ;;  %vm594_vm4 = vcmask 195584   ;;  %v591_v12 = vld [vmem:[%s1503_s2] sm:$0xff] }
   0xe   : > { %s519_s0 = scalar_lea.vmem %s1519_s30, %s1362_s27  ;;  %529 = vst.msk [vmem:[#allocation2] sm:$0xff] %vm528_vm1, %v1256_v3  ;;  %v688_v13 = vld [vmem:[%s1504_s3] sm:$0xff]  ;;  %v1262_v15 = vmov 0   ;;  %v1180_v16 = vld [vmem:[%s1503_s2 + $0x10] sm:$0xff]  ;;  %v1178_v20 = vld [vmem:[%s1503_s2 + $0x8] sm:$0xff]  ;;  %vm700_vm5 = vcmask 64512   ;;  %s523_s25 = scalar_lea.vmem %s1516_s15, %s1362_s27 }
   0xf   : > { %556 = vmatpush.msra.mxu0 %v535_v1  ;;  %v534_v2 = vld [vmem:[%s519_s0] sm:$0xff]  ;;  %531 = vst.msk [vmem:[#allocation2] sm:$0xff] %vm530_vm2, %v1256_v3  ;;  %1225 = vset.pattern.permute.xlu0 %v1262_v15  ;;  %v568_v26 = vand.u32 127, %v567_v25  ;;  %v1185_v58 = vld [vmem:[%s1508_s7 + $0x8] sm:$0xff]  ;;  %v1187_v0 = vld [vmem:[%s1508_s7 + $0x10] sm:$0xff]  ;;  %vm1072_vm11 = vcmask 31744  }
  0x10   : > { %1177 = vmatmul.msk.f32.vlgmr.msra.gmra.mxu0 %vm537_vm0, %v534_v2  ;;  %532 = vst.msk [vmem:[#allocation3] sm:$0xff] %vm528_vm1, %v1256_v3  ;;  %1226 = vset.pattern.permute.xlu2 %v1262_v15  ;;  %v698_v23 = vld [vmem:[%s1505_s4] sm:$0xff]  ;;  %vm1081_vm12 = vcmask 7168   ;;  %vm1083_vm13 = vcmask 15360  }
  0x11   : > { %533 = vst.msk [vmem:[#allocation3] sm:$0xff] %vm530_vm2, %v1256_v3  ;;  %1237 = vset.pattern.permute.xlu1 %v1262_v15  ;;  %v750_v24 = vld [vmem:[%s1507_s6] sm:$0xff]  ;;  %v573_v27 = vand.u32 1, %v568_v26 }
  0x12   : > { %v699_v40 = vld [vmem:[%s1506_s5] sm:$0xff] }
  0x13   : > { %vm1405_vm6 = vcmp.ne.s32.totalorder %v573_v27, 0  ;;  %vm1409_vm7 = vcmp.ne.s32.totalorder %v573_v27, 1  ;;  %v950_v49 = vld [vmem:[%s1513_s12] sm:$0xff] }
  0x14   : > { %v770_v53 = vld [vmem:[%s1508_s7] sm:$0xff] }
  0x15   : > { %v862_v56 = vld [vmem:[%s1509_s8] sm:$0xff] }
  0x16   : > { %v872_v1 = vld [vmem:[%s1510_s9] sm:$0xff] }
  0x17   : > { %v874_v2 = vld [vmem:[%s1511_s10] sm:$0xff] }
  0x18   : > { %v1062_v27 = vld [vmem:[%s1515_s14] sm:$0xff] }
  0x8d   : > { %v558_v4 = vpop.f32.mrf.mxu0 }
  0x8e   : > { %562 = vrot.lane.b32.xlu0 %v558_v4, %s1257_s17 }
 0x100   : > { %v563_v5 = vpop.permute.xlu0 %562 }
 0x101   : > { %566 = vst.msk [vmem:[#allocation2] sm:$0xff] %vm565_vm3, %v563_v5 }
 0x108   : > { %v1370_v6 = vld [vmem:[#allocation2] sm:$0xff] }
 0x109   : > { %587 = vrot.lane.b32.xlu1 %v1370_v6, %s1258_s18  ;;  %589 = vrot.lane.b32.xlu0 %v1370_v6, %s1259_s19 }
 0x111   : > { %691 = vperm.xlu0 %1225, %v688_v13   ;;  %v925_v13 = vld [vmem:[%s1512_s11] sm:$0xff] }
 0x17b   : > { %v588_v7 = vpop.permute.xlu1 %587  ;;  %v590_v8 = vpop.permute.xlu0 %589 }
 0x17c   : > { %v1215_v9 = vpack.i.bf16 %v588_v7, %v590_v8  ;;  %611 = vmatpush.msra.mxu1 %v590_v8 }
 0x17e   : > { %612 = vmatpush.msra.mxu1 %v588_v7  ;;  %1221 = vrot.lane.b32.xlu2 %v1215_v9, %s1258_s18 }
 0x17f   : > { %1216 = vrot.lane.b32.xlu1 %v1215_v9, %s1260_s20 }
 0x180   : > { %613 = vmatpush.msra.mxu1 %v1370_v6 }
 0x181   : > { %1179 = vmatmul.msk.f32.vlgmr.msra.gmra.mxu1 %vm594_vm4, %v591_v12 }
 0x183   : > { %v692_v36 = vpop.permute.xlu0 %691 }
 0x186   : > { %652 = vrot.lane.b32.xlu2 %v1370_v6, %s1260_s20 }
 0x187   : > { %724 = vrot.lane.b32.xlu1 %v1370_v6, %s1261_s22 }
 0x18e   : > { %753 = vperm.xlu2 %1226, %v750_v24  }
 0x1d8   : > { %v1222_v10 = vpop.permute.xlu2 %1221 }
 0x1d9   : > { %v1223_v11 = vunpack.i.l.bf16 %v1222_v10  ;;  %v1224_v14 = vunpack.i.h.bf16 %v1222_v10 }
 0x1db   : > { %642 = vmatpush.msra.mxu2 %v1223_v11 }
 0x1dd   : > { %643 = vmatpush.msra.mxu2 %v1224_v14 }
 0x1df   : > { %644 = vmatpush.msra.mxu2 %v588_v7 }
 0x1e0   : > { %1181 = vmatmul.msk.f32.vlgmr.msra.gmra.mxu2 %vm594_vm4, %v1180_v16  ;;  %v653_v21 = vpop.permute.xlu2 %652 }
 0x1e8   : > { %v754_v44 = vpop.permute.xlu2 %753 }
 0x1f1   : > { %v1217_v17 = vpop.permute.xlu1 %1216 }
 0x1f2   : > { %v1218_v18 = vunpack.i.l.bf16 %v1217_v17  ;;  %v1219_v19 = vunpack.i.h.bf16 %v1217_v17 }
 0x1f4   : > { %677 = vmatpush.msra.mxu3 %v1218_v18 }
 0x1f6   : > { %678 = vmatpush.msra.mxu3 %v1219_v19 }
 0x1f8   : > { %679 = vmatpush.msra.mxu3 %v653_v21 }
 0x1f9   : > { %v725_v22 = vpop.permute.xlu1 %724  ;;  %1182 = vmatmul.msk.f32.vlgmr.msra.gmra.mxu3 %vm594_vm4, %v1178_v20 }
 0x1fa   : > { %745 = vmatpush.msrb.mxu1 %v725_v22 }
 0x1fb   : > { %1184 = vmatmul.msk.f32.vlgmr.msrb.gmra.mxu1 %vm700_vm5, %v698_v23 }
 0x1fe   : > { %v615_v29 = vpop.f32.mrf.mxu1 }
 0x1ff   : > { %v651_v32 = vsel %vm1405_vm6, %v615_v29, 0.0  ;;  %v970_v29 = vld [vmem:[%s1514_s13] sm:$0xff] }
 0x263   : > { %v646_v31 = vpop.f32.mrf.mxu2 }
 0x264   : > { %v686_v34 = vsel %vm1409_vm7, %v646_v31, 0.0 }
 0x278   : > { %v747_v42 = vpop.f32.mrf.mxu1 }
 0x27c   : > { %v681_v33 = vpop.f32.mrf.mxu3 }
 0x27d   : > { %v682_v35 = vadd.f32 %v681_v33, %v651_v32 }
 0x27f   : > { %v687_v37 = vadd.f32 %v686_v34, %v682_v35 }
 0x281   : > { %v694_v38 = vadd.f32 %v692_v36, %v687_v37  ;;  %v1195_v37 = vld [vmem:[%s1514_s13 + $0x10] sm:$0xff] }
 0x283   : > { %vm695_vm8 = vcmp.ge.f32.partialorder %v694_v38, 0.0  ;;  %v696_v39 = vmul.f32 0.01, %v694_v38 }
 0x285   : > { %v697_v41 = vsel %vm695_vm8, %v694_v38, %v696_v39  ;;  %v1193_v38 = vld [vmem:[%s1514_s13 + $0x8] sm:$0xff] }
 0x286   : > { %719 = vmatpush.msrb.mxu0 %v697_v41  ;;  %893 = vmatpush.msra.mxu1 %v697_v41 }
 0x287   : > { %1183 = vmatmul.msk.f32.vlgmr.msrb.gmra.mxu0 %vm700_vm5, %v699_v40  ;;  %1190 = vmatmul.msk.f32.vlgmr.msra.gmra.mxu1 %vm700_vm5, %v874_v2 }
 0x304   : > { %v721_v43 = vpop.f32.mrf.mxu0  ;;  %v895_v15 = vpop.f32.mrf.mxu1 }
 0x305   : > { %v748_v45 = vadd.f32 %v747_v42, %v721_v43 }
 0x307   : > { %v756_v46 = vadd.f32 %v754_v44, %v748_v45 }
 0x309   : > { %758 = vrot.lane.b32.xlu1 %v756_v46, %s1257_s17 }
 0x37b   : > { %v759_v47 = vpop.permute.xlu1 %758 }
 0x37c   : > { %761 = vst.msk [vmem:[#allocation3] sm:$0xff] %vm565_vm3, %v759_v47 }
 0x383   : > { %v764_v48 = vld [vmem:[#allocation3] sm:$0xff] }
 0x384   : > { %766 = vrot.lane.b32.xlu0 %v764_v48, %s1258_s18  ;;  %768 = vrot.lane.b32.xlu2 %v764_v48, %s1259_s19 }
 0x38c   : > { %828 = vrot.lane.b32.xlu0 %v764_v48, %s1260_s20 }
 0x394   : > { %953 = vperm.xlu0 %1225, %v950_v49  }
 0x3de   : > { %v769_v50 = vpop.permute.xlu2 %768 }
 0x3df   : > { %789 = vmatpush.msrb.mxu2 %v769_v50 }
 0x3f6   : > { %v767_v51 = vpop.permute.xlu0 %766 }
 0x3f7   : > { %790 = vmatpush.msrb.mxu2 %v767_v51  ;;  %v1232_v52 = vpack.i.bf16 %v767_v51, %v769_v50 }
 0x3f9   : > { %791 = vmatpush.msrb.mxu2 %v764_v48  ;;  %1233 = vrot.lane.b32.xlu2 %v1232_v52, %s1260_s20 }
 0x3fa   : > { %1228 = vrot.lane.b32.xlu1 %v1232_v52, %s1258_s18  ;;  %1186 = vmatmul.msk.f32.vlgmr.msrb.gmra.mxu2 %vm594_vm4, %v770_v53 }
 0x3fe   : > { %v829_v59 = vpop.permute.xlu0 %828 }
 0x401   : > { %899 = vrot.lane.b32.xlu2 %v1370_v6, %s1261_s22 }
 0x402   : > { %865 = vperm.xlu1 %1237, %v862_v56  }
 0x406   : > { %v954_v20 = vpop.permute.xlu0 %953 }
 0x453   : > { %v1234_v54 = vpop.permute.xlu2 %1233 }
 0x454   : > { %v1235_v55 = vunpack.i.l.bf16 %v1234_v54  ;;  %v1236_v57 = vunpack.i.h.bf16 %v1234_v54 }
 0x456   : > { %853 = vmatpush.msra.mxu0 %v1235_v55 }
 0x458   : > { %854 = vmatpush.msra.mxu0 %v1236_v57 }
 0x45a   : > { %855 = vmatpush.msra.mxu0 %v829_v59 }
 0x45b   : > { %v900_v60 = vpop.permute.xlu2 %899  ;;  %1189 = vmatmul.msk.f32.vlgmr.msra.gmra.mxu0 %vm594_vm4, %v1185_v58 }
 0x45c   : > { %920 = vmatpush.msra.mxu2 %v900_v60 }
 0x45d   : > { %1191 = vmatmul.msk.f32.vlgmr.msra.gmra.mxu2 %vm700_vm5, %v872_v1 }
 0x46c   : > { %v1229_v61 = vpop.permute.xlu1 %1228 }
 0x46d   : > { %v1230_v62 = vunpack.i.l.bf16 %v1229_v61  ;;  %v1231_v63 = vunpack.i.h.bf16 %v1229_v61 }
 0x46f   : > { %820 = vmatpush.msrb.mxu3 %v1230_v62 }
 0x471   : > { %821 = vmatpush.msrb.mxu3 %v1231_v63 }
 0x473   : > { %822 = vmatpush.msrb.mxu3 %v767_v51 }
 0x474   : > { %1188 = vmatmul.msk.f32.vlgmr.msrb.gmra.mxu3 %vm594_vm4, %v1187_v0  ;;  %v866_v9 = vpop.permute.xlu1 %865 }
 0x47d   : > { %v793_v3 = vpop.f32.mrf.mxu2 }
 0x47e   : > { %v827_v4 = vsel %vm1405_vm6, %v793_v3, 0.0 }
 0x4d8   : > { %v857_v5 = vpop.f32.mrf.mxu0 }
 0x4d9   : > { %v858_v6 = vadd.f32 %v857_v5, %v827_v4 }
 0x4e0   : > { %v922_v16 = vpop.f32.mrf.mxu2 }
 0x4e1   : > { %v923_v17 = vadd.f32 %v922_v16, %v895_v15 }
 0x4f7   : > { %v824_v7 = vpop.f32.mrf.mxu3 }
 0x4f8   : > { %v860_v8 = vsel %vm1409_vm7, %v824_v7, 0.0 }
 0x4f9   : > { %v861_v10 = vadd.f32 %v860_v8, %v858_v6 }
 0x4fb   : > { %v868_v11 = vadd.f32 %v866_v9, %v861_v10 }
 0x4fd   : > { %vm869_vm9 = vcmp.ge.f32.partialorder %v868_v11, 0.0  ;;  %v870_v12 = vmul.f32 0.01, %v868_v11 }
 0x4ff   : > { %v871_v14 = vsel %vm869_vm9, %v868_v11, %v870_v12 }
 0x500   : > { %944 = vmatpush.msra.mxu3 %v871_v14 }
 0x501   : > { %1192 = vmatmul.msk.f32.vlgmr.msra.gmra.mxu3 %vm700_vm5, %v925_v13 }
 0x584   : > { %v946_v18 = vpop.f32.mrf.mxu3 }
 0x585   : > { %v949_v19 = vadd.f32 %v946_v18, %v923_v17 }
 0x587   : > { %v956_v21 = vadd.f32 %v954_v20, %v949_v19 }
 0x589   : > { %958 = vrot.lane.b32.xlu1 %v956_v21, %s1257_s17  ;;  %s527_s17 = scalar_lea.vmem %s1517_s16, %s1362_s27 }
 0x5fb   : > { %v959_v22 = vpop.permute.xlu1 %958 }
 0x5fc   : > { %961 = vst.msk [vmem:[#allocation3] sm:$0xff] %vm565_vm3, %v959_v22 }
 0x603   : > { %v964_v23 = vld [vmem:[#allocation3] sm:$0xff] }
 0x604   : > { %966 = vrot.lane.b32.xlu0 %v964_v23, %s1258_s18  ;;  %968 = vrot.lane.b32.xlu2 %v964_v23, %s1259_s19 }
 0x60c   : > { %1028 = vrot.lane.b32.xlu2 %v964_v23, %s1260_s20 }
 0x65e   : > { %v969_v24 = vpop.permute.xlu2 %968 }
 0x65f   : > { %989 = vmatpush.msrb.mxu0 %v969_v24 }
 0x666   : > { %v1029_v39 = vpop.permute.xlu2 %1028 }
 0x676   : > { %v967_v25 = vpop.permute.xlu0 %966 }
 0x677   : > { %990 = vmatpush.msrb.mxu0 %v967_v25  ;;  %v1243_v26 = vpack.i.bf16 %v967_v25, %v969_v24 }
 0x679   : > { %991 = vmatpush.msrb.mxu0 %v964_v23  ;;  %1244 = vrot.lane.b32.xlu0 %v1243_v26, %s1258_s18 }
 0x67a   : > { %1239 = vrot.lane.b32.xlu1 %v1243_v26, %s1260_s20  ;;  %1194 = vmatmul.msk.f32.vlgmr.msrb.gmra.mxu0 %vm594_vm4, %v970_v29 }
 0x682   : > { %1065 = vperm.xlu1 %1237, %v1062_v27  }
 0x6eb   : > { %v1245_v31 = vpop.permute.xlu0 %1244 }
 0x6ec   : > { %v1246_v32 = vunpack.i.l.bf16 %v1245_v31  ;;  %v1240_v33 = vpop.permute.xlu1 %1239  ;;  %v1247_v35 = vunpack.i.h.bf16 %v1245_v31 }
 0x6ed   : > { %v1241_v34 = vunpack.i.l.bf16 %v1240_v33  ;;  %v1242_v36 = vunpack.i.h.bf16 %v1240_v33 }
 0x6ee   : > { %1020 = vmatpush.msrb.mxu1 %v1246_v32 }
 0x6ef   : > { %1053 = vmatpush.msrb.mxu2 %v1241_v34 }
 0x6f0   : > { %1021 = vmatpush.msrb.mxu1 %v1247_v35 }
 0x6f1   : > { %1054 = vmatpush.msrb.mxu2 %v1242_v36 }
 0x6f2   : > { %1022 = vmatpush.msrb.mxu1 %v967_v25 }
 0x6f3   : > { %1055 = vmatpush.msrb.mxu2 %v1029_v39  ;;  %1196 = vmatmul.msk.f32.vlgmr.msrb.gmra.mxu1 %vm594_vm4, %v1195_v37 }
 0x6f4   : > { %1197 = vmatmul.msk.f32.vlgmr.msrb.gmra.mxu2 %vm594_vm4, %v1193_v38  ;;  %v1066_v47 = vpop.permute.xlu1 %1065 }
 0x6f7   : > { %v993_v40 = vpop.f32.mrf.mxu0 }
 0x6f8   : > { %v1027_v42 = vsel %vm1405_vm6, %v993_v40, 0.0 }
 0x770   : > { %v1024_v41 = vpop.f32.mrf.mxu1 }
 0x771   : > { %v1060_v44 = vsel %vm1409_vm7, %v1024_v41, 0.0 }
 0x777   : > { %v1057_v43 = vpop.f32.mrf.mxu2 }
 0x778   : > { %v1058_v45 = vadd.f32 %v1057_v43, %v1027_v42 }
 0x77a   : > { %v1061_v46 = vadd.f32 %v1060_v44, %v1058_v45 }
 0x77c   : > { %v1068_v48 = vadd.f32 %v1066_v47, %v1061_v46 }
 0x77e   : > { %vm1069_vm10 = vcmp.ge.f32.partialorder %v1068_v48, 0.0  ;;  %v1070_v49 = vmul.f32 0.01, %v1068_v48 }
 0x780   : > { %v1071_v50 = vsel %vm1069_vm10, %v1068_v48, %v1070_v49 }
 0x781   : > { %v1074_v51 = vsel %vm1072_vm11, %v1071_v50, 0.0  ;;  %1073 = vst.msk [vmem:[%s523_s25] sm:$0xff] %vm1072_vm11, %v1071_v50  ;;  %v1077_v28 = vmul.f32 %v1071_v50, %v1071_v50 }
 0x782   : > { %1075 = vadd.xlane.f32.xlu2 %v1074_v51 }
 0x783   : > { %v1078_v52 = vsel %vm1072_vm11, %v1077_v28, 0.0 }
 0x784   : > { %1079 = vadd.xlane.f32.xlu0 %v1078_v52 }
 0x7f5   : > { %v1076_v30 = vpop.xlane.xlu2 %1075 }
 0x7f7   : > { %v1080_v53 = vpop.xlane.xlu0 %1079 }
 0x7f8   : > { %v1082_v54 = vsel %vm1081_vm12, %v1076_v30, %v1080_v53 }
 0x7f9   : > { %1084 = vst.msk [vmem:[%s527_s17] sm:$0xff] %vm1083_vm13, %v1082_v54 }
 0x7fa PF: > { %s27_s21 = sadd.s32 1, %s1254_s21  }
 0x7fb   : > { %p24_p4 = scmp.ge.s32.totalorder %s27_s21, 4  }
 0x7fd   :  { %26 = sbr.rel (!%p24_p4) target bundleno = 2 (0x2), region = 128 }

// kernel: densenet_encoder_forward.19
= control target key start
LH: loop header
LB: loop body
LE: loop exit
PB: predicated region body
PF: predicated region fallthrough
CT: control target
= control target key end

     0   :  { %s247_s12 = smov 0   ;;  %s283_s0 = inlined_call_operand.vmem [shape: f32[2,8,1], index: 0, kind: input, shape index: {}, may-alias: {0,3}]   ;;  %s284_s1 = inlined_call_operand.vmem [shape: f32[8,1], index: 1, kind: input, shape index: {}]   ;;  %s285_s2 = inlined_call_operand.vmem [shape: f32[8,1], index: 2, kind: input, shape index: {}]   ;;  %s286_s3 = inlined_call_operand.vmem [shape: f32[2,8,1], index: 3, kind: output, shape index: {}, may-alias: {0,3}]  }
   0x1 LB: > { %s226_s13 = sadd.s32 4294967295, %s249_s12   ;;  %p230_p0 = scmp.ge.s32.totalorder %s249_s12, 1  ;;  %s249_s12 = sphi %s247_s12, %s13_s12  }
   0x2   : > { %p136_p1 = scmp.lt.s32.totalorder %s249_s12, 3 }
   0x4   : > { %p137_p2 = pnand %p230_p0, %p136_p1 }
   0x5   : > { %p158_p3 = scmp.lt.s32.totalorder (!%p137_p2), %s226_s13, 1 }
   0x6   : > { %140 = sbr.rel (%p137_p2) target bundleno = 20 (0x14), region = 32 }
   0xb   : > { %s288_s13 = smov (!%p158_p3, %s226_s13), 1  ;;  %v167_v0 = vld [vmem:[%s284_s1] sm:$0xff]  ;;  %vm171_vm0 = vcmask 7168  }
   0xc   : > { %s231_s14 = sshll.u32 %s288_s13, 3  ;;  %v169_v2 = vld [vmem:[%s285_s2] sm:$0xff] }
   0xd   : > { %s161_s19 = scalar_lea.vmem %s283_s0, %s231_s14  ;;  %s165_s24 = scalar_lea.vmem %s286_s3, %s231_s14 }
   0xe   : > { %v166_v1 = vld [vmem:[%s161_s19] sm:$0xff] }
   0xf   : > { %v168_v3 = vmul.f32 %v167_v0, %v166_v1 }
  0x11   : > { %v170_v4 = vadd.f32 %v169_v2, %v168_v3 }
  0x13   : > { %172 = vst.msk [vmem:[%s165_s24] sm:$0xff] %vm171_vm0, %v170_v4 }
  0x14 PF: > { %s13_s12 = sadd.s32 1, %s249_s12  }
  0x15   : > { %p10_p4 = scmp.ge.s32.totalorder %s13_s12, 4  }
  0x17   :  { %12 = sbr.rel (!%p10_p4) target bundleno = 1 (0x1), region = 62 }

// kernel: densenet_encoder_forward.18
= control target key start
LH: loop header
LB: loop body
LE: loop exit
PB: predicated region body
PF: predicated region fallthrough
CT: control target
= control target key end

     0   :  { %s1083_s21 = smov 0   ;;  %s1177_s0 = inlined_call_operand.vmem [shape: f32[2,8,4], index: 0, kind: input, shape index: {}]   ;;  %s1178_s1 = inlined_call_operand.vmem [shape: f32[4,1], index: 1, kind: input, shape index: {}]   ;;  %s1179_s2 = inlined_call_operand.vmem [shape: f32[3,8,24], index: 2, kind: input, shape index: {}]   ;;  %s1180_s3 = inlined_call_operand.vmem [shape: f32[8,1], index: 3, kind: input, shape index: {}]   ;;  %s1181_s4 = inlined_call_operand.vmem [shape: f32[8,8], index: 4, kind: input, shape index: {}]   ;;  %s1182_s5 = inlined_call_operand.vmem [shape: f32[8,8], index: 5, kind: input, shape index: {}]   ;;  %s1183_s6 = inlined_call_operand.vmem [shape: f32[8,1], index: 6, kind: input, shape index: {}]   ;;  %s1184_s7 = inlined_call_operand.vmem [shape: f32[3,8,24], index: 7, kind: input, shape index: {}]   ;;  %s1185_s8 = inlined_call_operand.vmem [shape: f32[8,1], index: 8, kind: input, shape index: {}]   ;;  %s1186_s9 = inlined_call_operand.vmem [shape: f32[8,8], index: 9, kind: input, shape index: {}]   ;;  %s1187_s10 = inlined_call_operand.vmem [shape: f32[8,8], index: 10, kind: input, shape index: {}]   ;;  %s1188_s11 = inlined_call_operand.vmem [shape: f32[8,8], index: 11, kind: input, shape index: {}]   ;;  %s1189_s12 = inlined_call_operand.vmem [shape: f32[8,1], index: 12, kind: input, shape index: {}]   ;;  %s1190_s13 = inlined_call_operand.vmem [shape: f32[3,8,24], index: 13, kind: input, shape index: {}]   ;;  %s1191_s14 = inlined_call_operand.vmem [shape: f32[8,1], index: 14, kind: input, shape index: {}]   ;;  %s1192_s15 = inlined_call_operand.vmem [shape: f32[2,8,1], index: 15, kind: output, shape index: {0}]   ;;  %s1193_s16 = inlined_call_operand.vmem [shape: f32[2,8,2], index: 16, kind: output, shape index: {1}]  }
   0x1   :  { %1194 = sst [smem:[#allocation4_spill]] %s1177_s0 }
   0x2 LB: > { %s934_s22 = sadd.s32 4294967295, %s991_s21   ;;  %p938_p0 = scmp.ge.s32.totalorder %s991_s21, 1  ;;  %s991_s21 = sphi %s1083_s21, %s27_s21  }
   0x3   : > { %p464_p1 = scmp.lt.s32.totalorder %s991_s21, 3 }
   0x5   : > { %p465_p2 = pnand %p938_p0, %p464_p1 }
   0x6   : > { %p516_p3 = scmp.lt.s32.totalorder (!%p465_p2), %s934_s22, 1  ;;  %s1195_s28 = sld [smem:[#allocation4_spill]] (!%p465_p2) }
   0x7   : > { %468 = sbr.rel (%p465_p2) target bundleno = 1984 (0x7c0), region = 80  ;;  %s994_s30 = smov (!%p465_p2), 2  }
   0x8   : > { %s995_s0 = smov (!%p465_p2), 127   ;;  %s996_s17 = smov (!%p465_p2), 126  }
   0x9   : > { %s997_s26 = smov (!%p465_p2), 1  }
   0xc   : > { %v535_v0 = vld [vmem:[%s1178_s1] sm:$0xf]  ;;  %vm540_vm0 = vcmask 1043456   ;;  %s1197_s22 = smov (!%p516_p3, %s934_s22), 1  ;;  %vm536_vm1 = vcmask 31744   ;;  %vm528_vm2 = vcmask 15360  }
   0xd   : > { %942 = vmatpush.msk.msra.mxu0 %vm540_vm0, %v535_v0  ;;  %s1094_s25 = sshll.u32 %s1197_s22, 3  ;;  %vm530_vm3 = vcmask 39960   ;;  %v993_v2 = vmov 0.0   ;;  %vm568_vm4 = vcmask 23568   ;;  %v944_v12 = vld [vmem:[%s1179_s2 + $0x8] sm:$0xff]  ;;  %vm586_vm5 = vcmask 195584  }
   0xe   : > { %s519_s29 = scalar_lea.vmem %s1195_s28, %s1094_s25  ;;  %529 = vst.msk [vmem:[#allocation2] sm:$0xff] %vm528_vm2, %v993_v2  ;;  %vm615_vm6 = vcmask 64512   ;;  %v613_v13 = vld [vmem:[%s1181_s4] sm:$0xff]  ;;  %v948_v36 = vld [vmem:[%s1184_s7 + $0x8] sm:$0xff]  ;;  %s523_s24 = scalar_lea.vmem %s1192_s15, %s1094_s25  ;;  %vm839_vm10 = vcmask 7168  }
   0xf   : > { %v534_v1 = vld [vmem:[%s519_s29] sm:$0xff]  ;;  %531 = vst.msk [vmem:[#allocation2] sm:$0xff] %vm530_vm3, %v993_v2  ;;  %v953_v58 = vld [vmem:[%s1190_s13 + $0x8] sm:$0xff]  ;;  %s527_s29 = scalar_lea.vmem %s1193_s16, %s1094_s25 }
  0x10   : > { %943 = vmatmul.msk.f32.vlgmr.msra.gmra.mxu0 %vm536_vm1, %v534_v1  ;;  %532 = vst.msk [vmem:[#allocation3] sm:$0xff] %vm528_vm2, %v993_v2  ;;  %v578_v14 = vld [vmem:[%s1180_s3] sm:$0xff] }
  0x11   : > { %533 = vst.msk [vmem:[#allocation3] sm:$0xff] %vm530_vm3, %v993_v2  ;;  %v614_v18 = vld [vmem:[%s1182_s5] sm:$0xff] }
  0x12   : > { %v663_v22 = vld [vmem:[%s1183_s6] sm:$0xff] }
  0x13   : > { %v714_v31 = vld [vmem:[%s1187_s10] sm:$0xff] }
  0x14   : > { %v712_v32 = vld [vmem:[%s1186_s9] sm:$0xff] }
  0x15   : > { %v678_v37 = vld [vmem:[%s1185_s8] sm:$0xff] }
  0x16   : > { %v765_v41 = vld [vmem:[%s1188_s11] sm:$0xff] }
  0x17   : > { %v790_v47 = vld [vmem:[%s1189_s12] sm:$0xff] }
  0x18   : > { %v805_v59 = vld [vmem:[%s1191_s14] sm:$0xff] }
  0x8d   : > { %v561_v3 = vpop.f32.mrf.mxu0 }
  0x8e   : > { %565 = vrot.lane.b32.xlu0 %v561_v3, %s994_s30 }
 0x100   : > { %v566_v4 = vpop.permute.xlu0 %565 }
 0x101   : > { %569 = vst.msk [vmem:[#allocation2] sm:$0xff] %vm568_vm4, %v566_v4 }
 0x108   : > { %v572_v5 = vld [vmem:[#allocation2] sm:$0xff] }
 0x109   : > { %574 = vrot.lane.b32.xlu1 %v572_v5, %s995_s0  ;;  %576 = vrot.lane.b32.xlu0 %v572_v5, %s996_s17 }
 0x17b   : > { %v575_v6 = vpop.permute.xlu1 %574  ;;  %v577_v7 = vpop.permute.xlu0 %576 }
 0x17c   : > { %v970_v8 = vpack.i.bf16 %v575_v6, %v577_v7  ;;  %658 = vmatpush.msra.mxu3 %v577_v7 }
 0x17d   : > { %947 = vmatmul.msk.f32.vlgmr.msra.gmra.mxu3 %vm615_vm6, %v613_v13 }
 0x17e   : > { %971 = vrot.lane.b32.xlu1 %v970_v8, %s995_s0 }
 0x1f0   : > { %v972_v9 = vpop.permute.xlu1 %971 }
 0x1f1   : > { %v973_v10 = vunpack.i.l.bf16 %v972_v9  ;;  %v974_v11 = vunpack.i.h.bf16 %v972_v9 }
 0x1f3   : > { %603 = vmatpush.msra.mxu1 %v973_v10 }
 0x1f5   : > { %604 = vmatpush.msra.mxu1 %v974_v11 }
 0x1f7   : > { %605 = vmatpush.msra.mxu1 %v575_v6 }
 0x1f8   : > { %945 = vmatmul.msk.f32.vlgmr.msra.gmra.mxu1 %vm586_vm5, %v944_v12 }
 0x200   : > { %v660_v20 = vpop.f32.mrf.mxu3 }
 0x275   : > { %v607_v15 = vpop.f32.mrf.mxu1 }
 0x276   : > { %v608_v16 = vadd.f32 %v607_v15, %v578_v14 }
 0x278   : > { %vm610_vm7 = vcmp.ge.f32.partialorder %v608_v16, 0.0  ;;  %v611_v17 = vmul.f32 0.01, %v608_v16 }
 0x27a   : > { %v612_v19 = vsel %vm610_vm7, %v608_v16, %v611_v17 }
 0x27b   : > { %634 = vmatpush.msra.mxu2 %v612_v19 }
 0x27c   : > { %946 = vmatmul.msk.f32.vlgmr.msra.gmra.mxu2 %vm615_vm6, %v614_v18 }
 0x27d   : > { %733 = vmatpush.msrb.mxu2 %v612_v19 }
 0x284   : > { %950 = vmatmul.msk.f32.vlgmr.msrb.gmra.mxu2 %vm615_vm6, %v714_v31 }
 0x2ff   : > { %v636_v21 = vpop.f32.mrf.mxu2 }
 0x300   : > { %v661_v23 = vadd.f32 %v660_v20, %v636_v21 }
 0x302   : > { %v664_v24 = vadd.f32 %v663_v22, %v661_v23 }
 0x304   : > { %666 = vrot.lane.b32.xlu2 %v664_v24, %s994_s30 }
 0x307   : > { %v735_v43 = vpop.f32.mrf.mxu2 }
 0x35e   : > { %v667_v25 = vpop.permute.xlu2 %666 }
 0x35f   : > { %669 = vst.msk [vmem:[#allocation3] sm:$0xff] %vm568_vm4, %v667_v25 }
 0x366   : > { %v672_v26 = vld [vmem:[#allocation3] sm:$0xff] }
 0x367   : > { %674 = vrot.lane.b32.xlu0 %v672_v26, %s995_s0  ;;  %676 = vrot.lane.b32.xlu2 %v672_v26, %s996_s17 }
 0x36f   : > { %739 = vrot.lane.b32.xlu2 %v572_v5, %s996_s17 }
 0x3c1   : > { %v677_v27 = vpop.permute.xlu2 %676 }
 0x3c9   : > { %v740_v28 = vpop.permute.xlu2 %739 }
 0x3ca   : > { %760 = vmatpush.msrb.mxu3 %v740_v28 }
 0x3cb   : > { %951 = vmatmul.msk.f32.vlgmr.msrb.gmra.mxu3 %vm615_vm6, %v712_v32 }
 0x3d9   : > { %v675_v29 = vpop.permute.xlu0 %674 }
 0x3da   : > { %v975_v30 = vpack.i.bf16 %v675_v29, %v677_v27 }
 0x3dc   : > { %976 = vrot.lane.b32.xlu1 %v975_v30, %s995_s0 }
 0x44e   : > { %v977_v33 = vpop.permute.xlu1 %976  ;;  %v762_v44 = vpop.f32.mrf.mxu3 }
 0x44f   : > { %v978_v34 = vunpack.i.l.bf16 %v977_v33  ;;  %v979_v35 = vunpack.i.h.bf16 %v977_v33  ;;  %v763_v45 = vadd.f32 %v762_v44, %v735_v43 }
 0x451   : > { %702 = vmatpush.msrb.mxu0 %v978_v34 }
 0x453   : > { %703 = vmatpush.msrb.mxu0 %v979_v35 }
 0x455   : > { %704 = vmatpush.msrb.mxu0 %v675_v29 }
 0x456   : > { %949 = vmatmul.msk.f32.vlgmr.msrb.gmra.mxu0 %vm586_vm5, %v948_v36 }
 0x4d3   : > { %v706_v38 = vpop.f32.mrf.mxu0 }
 0x4d4   : > { %v707_v39 = vadd.f32 %v706_v38, %v678_v37 }
 0x4d6   : > { %vm709_vm8 = vcmp.ge.f32.partialorder %v707_v39, 0.0  ;;  %v710_v40 = vmul.f32 0.01, %v707_v39 }
 0x4d8   : > { %v711_v42 = vsel %vm709_vm8, %v707_v39, %v710_v40 }
 0x4d9   : > { %784 = vmatpush.msrb.mxu1 %v711_v42 }
 0x4da   : > { %952 = vmatmul.msk.f32.vlgmr.msrb.gmra.mxu1 %vm615_vm6, %v765_v41 }
 0x557   : > { %v786_v46 = vpop.f32.mrf.mxu1 }
 0x558   : > { %v789_v48 = vadd.f32 %v786_v46, %v763_v45 }
 0x55a   : > { %v791_v49 = vadd.f32 %v790_v47, %v789_v48 }
 0x55c   : > { %793 = vrot.lane.b32.xlu0 %v791_v49, %s994_s30 }
 0x5ce   : > { %v794_v50 = vpop.permute.xlu0 %793 }
 0x5cf   : > { %796 = vst.msk [vmem:[#allocation3] sm:$0xff] %vm568_vm4, %v794_v50 }
 0x5d6   : > { %v799_v51 = vld [vmem:[#allocation3] sm:$0xff] }
 0x5d7   : > { %803 = vrot.lane.b32.xlu1 %v799_v51, %s996_s17  ;;  %801 = vrot.lane.b32.xlu2 %v799_v51, %s995_s0 }
 0x631   : > { %v802_v52 = vpop.permute.xlu2 %801 }
 0x649   : > { %v804_v53 = vpop.permute.xlu1 %803 }
 0x64a   : > { %v980_v54 = vpack.i.bf16 %v802_v52, %v804_v53 }
 0x64c   : > { %981 = vrot.lane.b32.xlu0 %v980_v54, %s995_s0 }
 0x6be   : > { %v982_v55 = vpop.permute.xlu0 %981 }
 0x6bf   : > { %v983_v56 = vunpack.i.l.bf16 %v982_v55  ;;  %v984_v57 = vunpack.i.h.bf16 %v982_v55 }
 0x6c1   : > { %829 = vmatpush.msra.mxu0 %v983_v56 }
 0x6c3   : > { %830 = vmatpush.msra.mxu0 %v984_v57 }
 0x6c5   : > { %831 = vmatpush.msra.mxu0 %v802_v52 }
 0x6c6   : > { %954 = vmatmul.msk.f32.vlgmr.msra.gmra.mxu0 %vm586_vm5, %v953_v58 }
 0x743   : > { %v833_v60 = vpop.f32.mrf.mxu0 }
 0x744   : > { %v834_v61 = vadd.f32 %v833_v60, %v805_v59 }
 0x746   : > { %vm836_vm9 = vcmp.ge.f32.partialorder %v834_v61, 0.0  ;;  %v837_v62 = vmul.f32 0.01, %v834_v61 }
 0x748   : > { %v838_v63 = vsel %vm836_vm9, %v834_v61, %v837_v62 }
 0x749   : > { %v842_v0 = vmul.f32 %v838_v63, %v838_v63  ;;  %840 = vst.msk [vmem:[%s523_s24] sm:$0xff] %vm839_vm10, %v838_v63 }
 0x74b   : > { %845 = vrot.lane.b32.xlu1 %v842_v0, %s997_s26 }
 0x7bd   : > { %v846_v1 = vpop.permute.xlu1 %845 }
 0x7be   : > { %v848_v2 = vsel %vm839_vm10, %v838_v63, %v846_v1 }
 0x7bf   : > { %849 = vst.msk [vmem:[%s527_s29] sm:$0xff] %vm528_vm2, %v848_v2 }
 0x7c0 PF: > { %s27_s21 = sadd.s32 1, %s991_s21  }
 0x7c1   : > { %p24_p4 = scmp.ge.s32.totalorder %s27_s21, 4  }
 0x7c3   :  { %26 = sbr.rel (!%p24_p4) target bundleno = 2 (0x2), region = 125 }

</bundles_post_ra>
